<compile_context>
chip_gen: v7x
topology: tpu7x:2x2x1
jax: 0.10.0
libtpu: 0.0.40
codegen_flags: <defaults>
</compile_context>

<pallas_src>
import math
import functools

import numpy as np
import jax
import jax.numpy as jnp
from jax.experimental import pallas as pl
from jax.experimental.pallas import tpu as pltpu


def _round_up(x, m):
    return (x + m - 1) // m * m


# ----------------------------------------------------------------------------
# Host-side constants: (6, E) posenc scale/selection matrix S, (1, E) phase
# shift row, and the permutation mapping PyTorch's emb column order onto the
# kernel's internal layout [rpos | rdir | pos-sin | pos-cos | dir-sin | dir-cos].
# ----------------------------------------------------------------------------
@functools.lru_cache(maxsize=None)
def _build_posenc_consts(max_pos_freq, max_dir_freq, d=3):
    mp, md = max_pos_freq, max_dir_freq
    E = 2 * d + 2 * mp * d + 2 * md * d
    S = np.zeros((2 * d, E), np.float32)
    shift = np.zeros((1, E), np.float32)

    # identity columns (no sin applied)
    for k in range(d):
        S[k, k] = 1.0              # rpos
        S[d + k, d + k] = 1.0      # rdir

    col = 2 * d

    def fill(row_off, max_freq, phase):
        nonlocal col
        for f in range(max_freq):        # f-major, k-minor == PyTorch reshape order
            for k in range(d):
                S[row_off + k, col] = float(2.0 ** f)
                shift[0, col] = phase
                col += 1

    fill(0, mp, 0.0)               # sin(2^f * rpos)
    fill(0, mp, math.pi / 2.0)     # sin(2^f * rpos + pi/2)  (== cos)
    fill(d, md, 0.0)               # sin(2^f * rdir)
    fill(d, md, math.pi / 2.0)     # cos
    assert col == E

    # internal column j pulls original PyTorch emb column perm[j]
    off_d = d + 2 * mp * d
    perm = np.concatenate([
        np.arange(0, d),                               # rpos
        np.arange(off_d, off_d + d),                   # rdir
        np.arange(d, d + 2 * mp * d),                  # pos sin/cos freqs
        np.arange(off_d + d, off_d + d + 2 * md * d),  # dir sin/cos freqs
    ]).astype(np.int32)
    assert perm.shape[0] == E
    return S, shift, perm, 2 * d


# ----------------------------------------------------------------------------
# Pallas kernel: fused posenc + 2-layer SiLU MLP
# ----------------------------------------------------------------------------
def _ray_mlp_kernel(x6_ref, s_ref, shift_ref, w0_ref, b0_ref, w1_ref, b1_ref,
                    out_ref, *, sin_start):
    x6 = x6_ref[...]                                         # (TN, 6) f32
    # Synthesize pre-sin embedding columns in VMEM (no (N, E) HBM traffic).
    raw = jnp.dot(x6, s_ref[...],
                  preferred_element_type=jnp.float32) + shift_ref[...]
    col = jax.lax.broadcasted_iota(jnp.int32, raw.shape, 1)
    emb = jnp.where(col >= sin_start, jnp.sin(raw), raw)     # f32 posenc

    # Dense_0 + SiLU: bf16 MXU operands, f32 accumulation / activation math.
    h = jnp.dot(emb.astype(jnp.bfloat16), w0_ref[...],
                preferred_element_type=jnp.float32) + b0_ref[...]
    h = h * jax.nn.sigmoid(h)

    # Dense_1
    out = jnp.dot(h.astype(jnp.bfloat16), w1_ref[...],
                  preferred_element_type=jnp.float32) + b1_ref[...]
    out_ref[...] = out.astype(out_ref.dtype)


def ray_encoder_pallas(x6, S, shift, w0t, b0, w1t, b1, *, sin_start,
                       tile_n=4096, out_dtype=jnp.float32):
    """x6: (N, 6) rpos||rdir rows; S: (6, E); shift: (1, E); w0t: (E, H) bf16;
    w1t: (H, H) bf16; b0/b1: (1, H) f32."""
    N, K6 = x6.shape
    E = S.shape[1]
    H = w0t.shape[1]

    # Row tile: big enough to amortize the ~0.35 us per-step pipeline cost,
    # clamped to the (padded) problem size.  Multiple of 8 for sublane tiling.
    tile = max(8, min(int(tile_n), _round_up(N, 8)))
    tile = _round_up(tile, 8)
    Np = _round_up(N, tile)
    if Np != N:
        x6 = jnp.pad(x6, ((0, Np - N), (0, 0)))
    grid = Np // tile

    kernel = functools.partial(_ray_mlp_kernel, sin_start=sin_start)

    out = pl.pallas_call(
        kernel,
        out_shape=jax.ShapeDtypeStruct((Np, H), out_dtype),
        grid_spec=pltpu.PrefetchScalarGridSpec(
            num_scalar_prefetch=0,
            grid=(grid,),
            in_specs=[
                pl.BlockSpec((tile, K6), lambda i: (i, 0)),   # rpos||rdir rows
                pl.BlockSpec((K6, E), lambda i: (0, 0)),      # posenc scales S
                pl.BlockSpec((1, E), lambda i: (0, 0)),       # phase shift row
                pl.BlockSpec((E, H), lambda i: (0, 0)),       # W0^T (bf16, permuted cols)
                pl.BlockSpec((1, H), lambda i: (0, 0)),       # b0
                pl.BlockSpec((H, H), lambda i: (0, 0)),       # W1^T (bf16)
                pl.BlockSpec((1, H), lambda i: (0, 0)),       # b1
            ],
            out_specs=pl.BlockSpec((tile, H), lambda i: (i, 0)),
        ),
        compiler_params=pltpu.CompilerParams(
            dimension_semantics=("parallel",),
            vmem_limit_bytes=32 * 1024 * 1024),
    )(x6, S, shift, w0t, b0, w1t, b1)

    return out[:N] if Np != N else out


# ----------------------------------------------------------------------------
# JAX glue: flatten rays, permute weights into the kernel's internal layout
# ----------------------------------------------------------------------------
def ray_encoder_forward(rpos, rdir, params, *, max_pos_freq, max_dir_freq,
                        tile_n=4096, out_dtype=jnp.float32):
    d = rpos.shape[-1]
    S, shift, perm, sin_start = _build_posenc_consts(max_pos_freq, max_dir_freq, d)

    lead = rpos.shape[:-1]
    x6 = jnp.concatenate([rpos, rdir], axis=-1).reshape(-1, 2 * d)
    x6 = x6.astype(jnp.float32)

    w0t = jnp.asarray(params["w0"])[:, perm].T.astype(jnp.bfloat16)   # (E, H)
    w1t = jnp.asarray(params["w1"]).T.astype(jnp.bfloat16)            # (H, H)
    b0 = jnp.asarray(params["b0"], jnp.float32)[None, :]
    b1 = jnp.asarray(params["b1"], jnp.float32)[None, :]

    out = ray_encoder_pallas(
        x6, jnp.asarray(S), jnp.asarray(shift), w0t, b0, w1t, b1,
        sin_start=sin_start, tile_n=tile_n, out_dtype=out_dtype)
    return out.reshape(*lead, out.shape[-1])


# ----------------------------------------------------------------------------
# Pure-JAX f32 reference (mirrors the PyTorch forward exactly)
# ----------------------------------------------------------------------------
def ray_encoder_ref(rpos, rdir, params, *, max_pos_freq, max_dir_freq):
    def posenc(x, mf):
        scales = (2.0 ** jnp.arange(mf)).astype(jnp.float32)
        xb = x[..., None, :] * scales[:, None]
        xb = xb.reshape(*x.shape[:-1], -1)
        emb = jnp.sin(jnp.concatenate([xb, xb + jnp.pi / 2], axis=-1))
        return jnp.concatenate([x, emb], axis=-1)

    emb = jnp.concatenate([posenc(rpos, max_pos_freq),
                           posenc(rdir, max_dir_freq)], axis=-1)
    h = emb @ params["w0"].T + params["b0"]
    h = h * jax.nn.sigmoid(h)
    return h @ params["w1"].T + params["b1"]


# ----------------------------------------------------------------------------
# Deterministic parameter init (emulates score_sde default_init:
# variance_scaling(1.0, fan_avg, uniform); biases zero, as in __init__)
# ----------------------------------------------------------------------------
def _default_init(key, shape):
    fan_out, fan_in = shape          # PyTorch Linear weight is (out, in)
    variance = 1.0 / ((fan_in + fan_out) / 2.0)
    bound = math.sqrt(3.0 * variance)
    return jax.random.uniform(key, shape, jnp.float32, -bound, bound)


if __name__ == "__main__":
    # Hyperparams chosen so emb_ch = (mp+1)*(md+1) = 132 equals the actual
    # concatenated embedding width for 3-D rpos/rdir:
    #   3*(2*11+1) + 3*(2*10+1) = 69 + 63 = 132
    max_pos_freq, max_dir_freq, nf = 11, 10, 32
    emb_ch = (max_pos_freq + 1) * (max_dir_freq + 1)       # 132
    hidden = nf * 4                                        # 128

    key = jax.random.PRNGKey(0)
    k_pos, k_dir, k_w0, k_w1 = jax.random.split(key, 4)

    # Small ray batch: (B=2, R=128, 3) positions and directions.
    rpos = jax.random.normal(k_pos, (2, 128, 3), jnp.float32)
    rdir = jax.random.normal(k_dir, (2, 128, 3), jnp.float32)
    rdir = rdir / jnp.linalg.norm(rdir, axis=-1, keepdims=True)

    params = {
        "w0": _default_init(k_w0, (hidden, emb_ch)),   # Dense_0.weight
        "b0": jnp.zeros((hidden,), jnp.float32),       # Dense_0.bias
        "w1": _default_init(k_w1, (hidden, hidden)),   # Dense_1.weight
        "b1": jnp.zeros((hidden,), jnp.float32),       # Dense_1.bias
    }

    fwd = jax.jit(functools.partial(ray_encoder_forward,
                                    max_pos_freq=max_pos_freq,
                                    max_dir_freq=max_dir_freq))
    out = jax.block_until_ready(fwd(rpos, rdir, params))

    ref = jax.block_until_ready(
        ray_encoder_ref(rpos, rdir, params,
                        max_pos_freq=max_pos_freq, max_dir_freq=max_dir_freq))

    assert out.shape == (2, 128, hidden), out.shape
    # Tolerance loosened vs the f32 reference because the MLP matmuls use
    # bf16 MXU operands (f32 accumulation); posenc/sin/SiLU stay in f32.
    max_err = float(jnp.max(jnp.abs(out - ref)))
    assert max_err < 0.1, max_err

    print("KERNEL_OK")
</pallas_src>

<mosaic_0001>
module attributes {stable_mosaic.version = 11 : i64} {
  func.func @_ray_mlp_kernel(%arg0: i32, %arg1: memref<256x6xf32, #tpu.memory_space<vmem>>, %arg2: memref<6x132xf32, #tpu.memory_space<vmem>>, %arg3: memref<1x132xf32, #tpu.memory_space<vmem>>, %arg4: memref<132x128xbf16, #tpu.memory_space<vmem>>, %arg5: memref<1x128xf32, #tpu.memory_space<vmem>>, %arg6: memref<128x128xbf16, #tpu.memory_space<vmem>>, %arg7: memref<1x128xf32, #tpu.memory_space<vmem>>, %arg8: memref<256x128xf32, #tpu.memory_space<vmem>>) attributes {dimension_semantics = [#tpu.dimension_semantics<parallel>], iteration_bounds = array<i64: 1>, scalar_prefetch = 0 : i64, scratch_operands = 0 : i64, tpu.core_type = #tpu.core_type<tc>, window_params = [{transform_indices = @transform_0, window_bounds = array<i64: 256, 6>}, {pipeline_mode = #tpu.pipeline_mode<synchronous>, transform_indices = @transform_1, window_bounds = array<i64: 6, 132>}, {pipeline_mode = #tpu.pipeline_mode<synchronous>, transform_indices = @transform_2, window_bounds = array<i64: 1, 132>}, {pipeline_mode = #tpu.pipeline_mode<synchronous>, transform_indices = @transform_3, window_bounds = array<i64: 132, 128>}, {pipeline_mode = #tpu.pipeline_mode<synchronous>, transform_indices = @transform_4, window_bounds = array<i64: 1, 128>}, {pipeline_mode = #tpu.pipeline_mode<synchronous>, transform_indices = @transform_5, window_bounds = array<i64: 128, 128>}, {pipeline_mode = #tpu.pipeline_mode<synchronous>, transform_indices = @transform_6, window_bounds = array<i64: 1, 128>}, {transform_indices = @transform_7, window_bounds = array<i64: 256, 128>}]} {
    %c0 = arith.constant 0 : index
    %c0_0 = arith.constant 0 : index
    %0 = vector.load %arg1[%c0, %c0_0] : memref<256x6xf32, #tpu.memory_space<vmem>>, vector<256x6xf32>
    %c0_1 = arith.constant 0 : index
    %c0_2 = arith.constant 0 : index
    %1 = vector.load %arg2[%c0_1, %c0_2] : memref<6x132xf32, #tpu.memory_space<vmem>>, vector<6x132xf32>
    %cst = arith.constant dense<0.000000e+00> : vector<256x132xf32>
    %2 = tpu.matmul %0, %1, %cst {dimension_numbers = #tpu.dot_dimension_numbers<[1], [0], [0], [1], [0, 0, 1, 1], [], []>} : vector<256x6xf32>, vector<6x132xf32>, vector<256x132xf32> -> vector<256x132xf32>
    %c0_3 = arith.constant 0 : index
    %c0_4 = arith.constant 0 : index
    %3 = vector.load %arg3[%c0_3, %c0_4] : memref<1x132xf32, #tpu.memory_space<vmem>>, vector<1x132xf32>
    %4 = vector.broadcast %3 : vector<1x132xf32> to vector<256x132xf32>
    %5 = arith.addf %2, %4 : vector<256x132xf32>
    %6 = tpu.iota {dimensions = array<i32: 1>} : vector<256x132xi32>
    %c6_i32 = arith.constant 6 : i32
    %7 = vector.broadcast %c6_i32 : i32 to vector<256x132xi32>
    %8 = arith.cmpi sge, %6, %7 : vector<256x132xi32>
    %9 = math.sin %5 : vector<256x132xf32>
    %10 = arith.select %8, %9, %5 : vector<256x132xi1>, vector<256x132xf32>
    %11 = arith.truncf %10 : vector<256x132xf32> to vector<256x132xbf16>
    %c0_5 = arith.constant 0 : index
    %c0_6 = arith.constant 0 : index
    %12 = vector.load %arg4[%c0_5, %c0_6] : memref<132x128xbf16, #tpu.memory_space<vmem>>, vector<132x128xbf16>
    %cst_7 = arith.constant dense<0.000000e+00> : vector<256x128xf32>
    %13 = tpu.matmul %11, %12, %cst_7 {dimension_numbers = #tpu.dot_dimension_numbers<[1], [0], [0], [1], [0, 0, 1, 1], [], []>} : vector<256x132xbf16>, vector<132x128xbf16>, vector<256x128xf32> -> vector<256x128xf32>
    %c0_8 = arith.constant 0 : index
    %c0_9 = arith.constant 0 : index
    %14 = vector.load %arg5[%c0_8, %c0_9] : memref<1x128xf32, #tpu.memory_space<vmem>>, vector<1x128xf32>
    %15 = vector.broadcast %14 : vector<1x128xf32> to vector<256x128xf32>
    %16 = arith.addf %13, %15 : vector<256x128xf32>
    %17 = arith.negf %16 : vector<256x128xf32>
    %18 = math.exp %17 : vector<256x128xf32>
    %cst_10 = arith.constant 1.000000e+00 : f32
    %19 = vector.broadcast %cst_10 : f32 to vector<256x128xf32>
    %20 = arith.addf %19, %18 : vector<256x128xf32>
    %21 = arith.divf %19, %20 : vector<256x128xf32>
    %22 = arith.mulf %16, %21 : vector<256x128xf32>
    %23 = arith.truncf %22 : vector<256x128xf32> to vector<256x128xbf16>
    %c0_11 = arith.constant 0 : index
    %c0_12 = arith.constant 0 : index
    %24 = vector.load %arg6[%c0_11, %c0_12] : memref<128x128xbf16, #tpu.memory_space<vmem>>, vector<128x128xbf16>
    %cst_13 = arith.constant dense<0.000000e+00> : vector<256x128xf32>
    %25 = tpu.matmul %23, %24, %cst_13 {dimension_numbers = #tpu.dot_dimension_numbers<[1], [0], [0], [1], [0, 0, 1, 1], [], []>} : vector<256x128xbf16>, vector<128x128xbf16>, vector<256x128xf32> -> vector<256x128xf32>
    %c0_14 = arith.constant 0 : index
    %c0_15 = arith.constant 0 : index
    %26 = vector.load %arg7[%c0_14, %c0_15] : memref<1x128xf32, #tpu.memory_space<vmem>>, vector<1x128xf32>
    %27 = vector.broadcast %26 : vector<1x128xf32> to vector<256x128xf32>
    %28 = arith.addf %25, %27 : vector<256x128xf32>
    %c0_16 = arith.constant 0 : index
    %c0_17 = arith.constant 0 : index
    %29 = vector.load %arg8[%c0_16, %c0_17] : memref<256x128xf32, #tpu.memory_space<vmem>>, vector<256x128xf32>
    tpu.vector_store %arg8[%c0_16, %c0_17], %28 {strides = array<i32>} : memref<256x128xf32, #tpu.memory_space<vmem>>, vector<256x128xf32>,
    return
  }
  func.func @transform_0(%arg0: i32) -> (i32, i32) {
    %c0_i32 = arith.constant 0 : i32
    %c0_i32_0 = arith.constant 0 : i32
    return %arg0, %c0_i32 : i32, i32
  }
  func.func @transform_1(%arg0: i32) -> (i32, i32) {
    %c0_i32 = arith.constant 0 : i32
    %c0_i32_0 = arith.constant 0 : i32
    %c0_i32_1 = arith.constant 0 : i32
    return %c0_i32, %c0_i32_0 : i32, i32
  }
  func.func @transform_2(%arg0: i32) -> (i32, i32) {
    %c0_i32 = arith.constant 0 : i32
    %c0_i32_0 = arith.constant 0 : i32
    %c0_i32_1 = arith.constant 0 : i32
    return %c0_i32, %c0_i32_0 : i32, i32
  }
  func.func @transform_3(%arg0: i32) -> (i32, i32) {
    %c0_i32 = arith.constant 0 : i32
    %c0_i32_0 = arith.constant 0 : i32
    %c0_i32_1 = arith.constant 0 : i32
    return %c0_i32, %c0_i32_0 : i32, i32
  }
  func.func @transform_4(%arg0: i32) -> (i32, i32) {
    %c0_i32 = arith.constant 0 : i32
    %c0_i32_0 = arith.constant 0 : i32
    %c0_i32_1 = arith.constant 0 : i32
    return %c0_i32, %c0_i32_0 : i32, i32
  }
  func.func @transform_5(%arg0: i32) -> (i32, i32) {
    %c0_i32 = arith.constant 0 : i32
    %c0_i32_0 = arith.constant 0 : i32
    %c0_i32_1 = arith.constant 0 : i32
    return %c0_i32, %c0_i32_0 : i32, i32
  }
  func.func @transform_6(%arg0: i32) -> (i32, i32) {
    %c0_i32 = arith.constant 0 : i32
    %c0_i32_0 = arith.constant 0 : i32
    %c0_i32_1 = arith.constant 0 : i32
    return %c0_i32, %c0_i32_0 : i32, i32
  }
  func.func @transform_7(%arg0: i32) -> (i32, i32) {
    %c0_i32 = arith.constant 0 : i32
    %c0_i32_0 = arith.constant 0 : i32
    return %arg0, %c0_i32 : i32, i32
  }
}

</mosaic_0001>

<bundles_post_ra>
// kernel: ray_encoder_forward.1
= control target key start
LH: loop header
LB: loop body
LE: loop exit
PB: predicated region body
PF: predicated region fallthrough
CT: control target
= control target key end

     0   :  { %vm171_vm0 = vcmask 1045504   ;;  %v9138_v2 = vmov 0.0   ;;  %vm74_vm1 = vcmask 48128   ;;  %s17446_s0 = inlined_call_operand.vmem [shape: f32[256,6], index: 0, kind: input, shape index: {}]   ;;  %s17447_s1 = inlined_call_operand.vmem [shape: f32[6,132], index: 1, kind: input, shape index: {}]   ;;  %s17448_s2 = inlined_call_operand.vmem [shape: f32[1,132], index: 2, kind: input, shape index: {}]   ;;  %s17449_s3 = inlined_call_operand.vmem [shape: bf16[132,128], index: 3, kind: input, shape index: {}]   ;;  %s17450_s4 = inlined_call_operand.vmem [shape: f32[1,128], index: 4, kind: input, shape index: {}]   ;;  %s17451_s5 = inlined_call_operand.vmem [shape: bf16[128,128], index: 5, kind: input, shape index: {}]   ;;  %s17452_s6 = inlined_call_operand.vmem [shape: f32[1,128], index: 6, kind: input, shape index: {}]   ;;  %s17453_s7 = inlined_call_operand.hbm [shape: f32[256,128], index: 7, kind: output, shape index: {}]  }
   0x1   :  { %v61_v0 = vld [vmem:[%s17447_s1 + $0x8] sm:$0x3f]  ;;  %v60_v1 = vld [vmem:[%s17447_s1] sm:$0x3f]  ;;  %242 = vmatprep.mubr.f32.mxu0 %v9138_v2  ;;  %v30_v5 = vld [vmem:[%s17446_s0 + $0x10] sm:$0xff] }
   0x2   :  { %8001 = vmatprep.subr.msk.mxu0 %vm171_vm0, %v61_v0  ;;  %v28_v3 = vld [vmem:[%s17446_s0] sm:$0xff]  ;;  %v29_v4 = vld [vmem:[%s17446_s0 + $0x8] sm:$0xff]  ;;  %v31_v6 = vld [vmem:[%s17446_s0 + $0x18] sm:$0xff] }
   0x3   :  { %8002 = vmatpush1.msk.msra.mxu0 %vm171_vm0, %v60_v1  ;;  %v32_v7 = vld [vmem:[%s17446_s0 + $0x20] sm:$0xff]  ;;  %v33_v8 = vld [vmem:[%s17446_s0 + $0x28] sm:$0xff] }
   0x4   :  { %8003 = vmatmul.mubr.msk.f32.vlgmr.msra.gmra.mrb[0].mxu0 %vm74_vm1, %v28_v3 }
   0x5   :  { %248 = vmatprep.mubr.f32.mxu0 %v9138_v2 }
   0x8   :  { %8004 = vmatmul.mubr.msk.f32.gmra.mrb[2].mxu0 %vm74_vm1, %v29_v4 }
   0x9   :  { %254 = vmatprep.mubr.f32.mxu0 %v9138_v2 }
   0xc   :  { %8005 = vmatmul.mubr.msk.f32.gmra.mrb[4].mxu0 %vm74_vm1, %v30_v5 }
   0xd   :  { %260 = vmatprep.mubr.f32.mxu0 %v9138_v2 }
  0x10   :  { %8006 = vmatmul.mubr.msk.f32.gmra.mrb[6].mxu0 %vm74_vm1, %v31_v6 }
  0x11   :  { %266 = vmatprep.mubr.f32.mxu0 %v9138_v2 }
  0x14   :  { %8007 = vmatmul.mubr.msk.f32.gmra.mrb[8].mxu0 %vm74_vm1, %v32_v7 }
  0x15   :  { %272 = vmatprep.mubr.f32.mxu0 %v9138_v2 }
  0x18   :  { %8008 = vmatmul.mubr.msk.f32.gmra.mrb[10].mxu0 %vm74_vm1, %v33_v8 }
  0x19   :  { %12 = vsyncpa [#allocation3], 0  ;;  %278 = vmatprep.mubr.f32.mxu0 %v9138_v2  ;;  %v34_v9 = vld [vmem:[%s17446_s0 + $0x30] sm:$0xff]  ;;  %v35_v10 = vld [vmem:[%s17446_s0 + $0x38] sm:$0xff]  ;;  %v17454_v35 = vlaneseq  ;;  %v17459_v4 = vmov 2475754826  }
  0x1a   :  { %v36_v11 = vld [vmem:[%s17446_s0 + $0x40] sm:$0xff]  ;;  %v37_v12 = vld [vmem:[%s17446_s0 + $0x48] sm:$0xff]  ;;  %v38_v13 = vld [vmem:[%s17446_s0 + $0x50] sm:$0xff] }
  0x1b   :  { %v39_v14 = vld [vmem:[%s17446_s0 + $0x58] sm:$0xff]  ;;  %v40_v15 = vld [vmem:[%s17446_s0 + $0x60] sm:$0xff]  ;;  %v41_v16 = vld [vmem:[%s17446_s0 + $0x68] sm:$0xff]  ;;  %v65_v36 = vshrl.u32 %v17454_v35, 7 }
  0x1c   :  { %8009 = vmatmul.mubr.msk.f32.gmra.mrb[12].mxu0 %vm74_vm1, %v34_v9  ;;  %v42_v17 = vld [vmem:[%s17446_s0 + $0x70] sm:$0xff]  ;;  %v43_v18 = vld [vmem:[%s17446_s0 + $0x78] sm:$0xff]  ;;  %v44_v19 = vld [vmem:[%s17446_s0 + $0x80] sm:$0xff]  ;;  %v17470_v9 = vmov 2131351028  }
  0x1d   :  { %284 = vmatprep.mubr.f32.mxu0 %v9138_v2  ;;  %v45_v20 = vld [vmem:[%s17446_s0 + $0x88] sm:$0xff]  ;;  %v46_v21 = vld [vmem:[%s17446_s0 + $0x90] sm:$0xff]  ;;  %v47_v22 = vld [vmem:[%s17446_s0 + $0x98] sm:$0xff]  ;;  %v66_v37 = vsub.s32 0, %v65_v36  ;;  %v70_v39 = vsub.s32 1, %v65_v36 }
  0x1e   :  { %v48_v23 = vld [vmem:[%s17446_s0 + $0xa0] sm:$0xff]  ;;  %v49_v24 = vld [vmem:[%s17446_s0 + $0xa8] sm:$0xff]  ;;  %v50_v25 = vld [vmem:[%s17446_s0 + $0xb0] sm:$0xff] }
  0x1f   :  { %v51_v26 = vld [vmem:[%s17446_s0 + $0xb8] sm:$0xff]  ;;  %v52_v27 = vld [vmem:[%s17446_s0 + $0xc0] sm:$0xff]  ;;  %v53_v28 = vld [vmem:[%s17446_s0 + $0xc8] sm:$0xff] }
  0x20   :  { %8010 = vmatmul.mubr.msk.f32.gmra.mrb[14].mxu0 %vm74_vm1, %v35_v10  ;;  %v54_v29 = vld [vmem:[%s17446_s0 + $0xd0] sm:$0xff]  ;;  %v55_v30 = vld [vmem:[%s17446_s0 + $0xd8] sm:$0xff]  ;;  %v56_v31 = vld [vmem:[%s17446_s0 + $0xe0] sm:$0xff] }
  0x21   :  { %290 = vmatprep.mubr.f32.mxu0 %v9138_v2  ;;  %v57_v32 = vld [vmem:[%s17446_s0 + $0xe8] sm:$0xff]  ;;  %v58_v33 = vld [vmem:[%s17446_s0 + $0xf0] sm:$0xff]  ;;  %v59_v34 = vld [vmem:[%s17446_s0 + $0xf8] sm:$0xff] }
  0x22   :  { %v62_v38 = vld [vmem:[%s17448_s2] sm:$0x3] }
  0x23   :  { %v9359_v40 = vrot.slane %v62_v38, %v66_v37  ;;  %v9361_v41 = vrot.slane %v62_v38, %v70_v39 }
  0x24   :  { %8011 = vmatmul.mubr.msk.f32.gmra.mrb[16].mxu0 %vm74_vm1, %v36_v11 }
  0x25   :  { %296 = vmatprep.mubr.f32.mxu0 %v9138_v2  ;;  %17815 = vst [vmem:[#allocation5_spill] sm:$0xff] %v9359_v40  ;;  %17816 = vst [vmem:[#allocation6_spill] sm:$0xff] %v9361_v41 }
  0x28   :  { %8012 = vmatmul.mubr.msk.f32.gmra.mrb[18].mxu0 %vm74_vm1, %v37_v12  ;;  %v17464_v12 = vmov 2102212464  }
  0x29   :  { %302 = vmatprep.mubr.f32.mxu0 %v9138_v2 }
  0x2c   :  { %8013 = vmatmul.mubr.msk.f32.gmra.mrb[20].mxu0 %vm74_vm1, %v38_v13 }
  0x2d   :  { %308 = vmatprep.mubr.f32.mxu0 %v9138_v2 }
  0x30   :  { %8014 = vmatmul.mubr.msk.f32.gmra.mrb[22].mxu0 %vm74_vm1, %v39_v14 }
  0x31   :  { %314 = vmatprep.mubr.f32.mxu0 %v9138_v2 }
  0x34   :  { %8015 = vmatmul.mubr.msk.f32.gmra.mrb[24].mxu0 %vm74_vm1, %v40_v15  ;;  %v17466_v15 = vmov 920167782  }
  0x35   :  { %320 = vmatprep.mubr.f32.mxu0 %v9138_v2 }
  0x38   :  { %8016 = vmatmul.mubr.msk.f32.gmra.mrb[26].mxu0 %vm74_vm1, %v41_v16 }
  0x39   :  { %326 = vmatprep.mubr.f32.mxu0 %v9138_v2 }
  0x3c   :  { %8017 = vmatmul.mubr.msk.f32.gmra.mrb[28].mxu0 %vm74_vm1, %v42_v17 }
  0x3d   :  { %332 = vmatprep.mubr.f32.mxu0 %v9138_v2 }
  0x40   :  { %8018 = vmatmul.mubr.msk.f32.gmra.mrb[30].mxu0 %vm74_vm1, %v43_v18  ;;  %v17462_v18 = vmov 1326507024  }
  0x41   :  { %338 = vmatprep.mubr.f32.mxu0 %v9138_v2 }
  0x44   :  { %8019 = vmatmul.mubr.msk.f32.gmra.mrb[32].mxu0 %vm74_vm1, %v44_v19 }
  0x45   :  { %344 = vmatprep.mubr.f32.mxu0 %v9138_v2 }
  0x48   :  { %8020 = vmatmul.mubr.msk.f32.gmra.mrb[34].mxu0 %vm74_vm1, %v45_v20 }
  0x49   :  { %350 = vmatprep.mubr.f32.mxu0 %v9138_v2 }
  0x4c   :  { %8021 = vmatmul.mubr.msk.f32.gmra.mrb[36].mxu0 %vm74_vm1, %v46_v21 }
  0x4d   :  { %356 = vmatprep.mubr.f32.mxu0 %v9138_v2 }
  0x50   :  { %8022 = vmatmul.mubr.msk.f32.gmra.mrb[38].mxu0 %vm74_vm1, %v47_v22 }
  0x51   :  { %362 = vmatprep.mubr.f32.mxu0 %v9138_v2 }
  0x54   :  { %8023 = vmatmul.mubr.msk.f32.gmra.mrb[40].mxu0 %vm74_vm1, %v48_v23 }
  0x55   :  { %368 = vmatprep.mubr.f32.mxu0 %v9138_v2 }
  0x58   :  { %8024 = vmatmul.mubr.msk.f32.gmra.mrb[42].mxu0 %vm74_vm1, %v49_v24 }
  0x59   :  { %374 = vmatprep.mubr.f32.mxu0 %v9138_v2 }
  0x5c   :  { %8025 = vmatmul.mubr.msk.f32.gmra.mrb[44].mxu0 %vm74_vm1, %v50_v25 }
  0x5d   :  { %380 = vmatprep.mubr.f32.mxu0 %v9138_v2 }
  0x60   :  { %8026 = vmatmul.mubr.msk.f32.gmra.mrb[46].mxu0 %vm74_vm1, %v51_v26 }
  0x61   :  { %386 = vmatprep.mubr.f32.mxu0 %v9138_v2 }
  0x64   :  { %8027 = vmatmul.mubr.msk.f32.gmra.mrb[48].mxu0 %vm74_vm1, %v52_v27 }
  0x65   :  { %392 = vmatprep.mubr.f32.mxu0 %v9138_v2 }
  0x68   :  { %8028 = vmatmul.mubr.msk.f32.gmra.mrb[50].mxu0 %vm74_vm1, %v53_v28 }
  0x69   :  { %398 = vmatprep.mubr.f32.mxu0 %v9138_v2 }
  0x6c   :  { %8029 = vmatmul.mubr.msk.f32.gmra.mrb[52].mxu0 %vm74_vm1, %v54_v29 }
  0x6d   :  { %404 = vmatprep.mubr.f32.mxu0 %v9138_v2 }
  0x70   :  { %8030 = vmatmul.mubr.msk.f32.gmra.mrb[54].mxu0 %vm74_vm1, %v55_v30 }
  0x71   :  { %410 = vmatprep.mubr.f32.mxu0 %v9138_v2 }
  0x74   :  { %8031 = vmatmul.mubr.msk.f32.gmra.mrb[56].mxu0 %vm74_vm1, %v56_v31 }
  0x75   :  { %416 = vmatprep.mubr.f32.mxu0 %v9138_v2 }
  0x78   :  { %8032 = vmatmul.mubr.msk.f32.gmra.mrb[58].mxu0 %vm74_vm1, %v57_v32 }
  0x79   :  { %422 = vmatprep.mubr.f32.mxu0 %v9138_v2 }
  0x7c   :  { %8033 = vmatmul.mubr.msk.f32.gmra.mrb[60].mxu0 %vm74_vm1, %v58_v33 }
  0x7d   :  { %428 = vmatprep.mubr.f32.mxu0 %v9138_v2  ;;  %v17475_v2 = vmov 683565275  }
  0x80   :  { %8034 = vmatmul.mubr.msk.f32.gmra.mrb[62].mxu0 %vm74_vm1, %v59_v34 }
  0xd7   :  { %v244_v42 = vpop.f32.mrb[0].mxu0 }
  0xd8   :  { %v9364_v43 = vadd.f32 %v244_v42, %v9359_v40  ;;  %v246_v44 = vpop.f32.mrb[1].mxu0 }
  0xd9   :  { %v9367_v45 = vadd.f32 %v246_v44, %v9361_v41 }
  0xda   :  { %17817 = vst [vmem:[#allocation7_spill] sm:$0xff] %v9364_v43  ;;  %v443_v46 = vand.u32 2139095040, %v9364_v43  ;;  %v17456_v62 = vand.u32 2147483647, %v9364_v43 }
  0xdb   :  { %17818 = vst [vmem:[#allocation8_spill] sm:$0xff] %v9367_v45  ;;  %v547_v47 = vand.u32 2139095040, %v9367_v45  ;;  %v250_v48 = vpop.f32.mrb[2].mxu0 }
  0xdc   :  { %v444_v49 = vshrl.u32 %v443_v46, 23  ;;  %v9371_v50 = vpop.f32.mrb[3].mxu0  ;;  %v9378_v56 = vadd.f32 %v250_v48, %v9359_v40  ;;  %v447_v20 = vand.u32 8388607, %v17456_v62 }
  0xdd   :  { %v548_v52 = vshrl.u32 %v547_v47, 23 }
  0xde   :  { %v8035_v51 = vadd.s32 4294967169, %v444_v49  ;;  %17819 = vst [vmem:[#allocation9_spill] sm:$0xff] %v9378_v56  ;;  %v651_v0 = vand.u32 2139095040, %v9378_v56  ;;  %v448_v29 = vor.u32 8388608, %v447_v20  ;;  %v17458_v49 = vand.u32 2147483647, %v9367_v45 }
  0xdf   :  { %v9373_v53 = vpop.f32.mrb[4].mxu0  ;;  %v8039_v58 = vadd.s32 4294967169, %v548_v52 }
  0xe0   :  { %v450_v54 = vadd.s32 1, %v8035_v51  ;;  %v9375_v55 = vpop.f32.mrb[5].mxu0  ;;  %v652_v26 = vshrl.u32 %v651_v0, 23  ;;  %v488_v42 = vshll.u32 %v448_v29, 8 }
  0xe1   :  { %v554_v6 = vadd.s32 1, %v8039_v58 }
  0xe2   :  { %vm451_vm2 = vcmp.gt.s32.totalorder %v450_v54, 0  ;;  %v8043_v36 = vadd.s32 4294967169, %v652_v26 }
  0xe3   :  { %v452_v57 = vsel %vm451_vm2, %v450_v54, 0  ;;  %v9380_v59 = vpop.f32.mrb[6].mxu0  ;;  %vm555_vm4 = vcmp.gt.s32.totalorder %v554_v6, 0 }
  0xe4   :  { %v454_v60 = vand.u32 31, %v452_v57  ;;  %v9382_v61 = vpop.f32.mrb[7].mxu0  ;;  %v9386_v1 = vshrl.u32 %v452_v57, 5  ;;  %v556_v32 = vsel %vm555_vm4, %v554_v6, 0  ;;  %v658_v44 = vadd.s32 1, %v8043_v36 }
  0xe5   :  { %v558_v38 = vand.u32 31, %v556_v32  ;;  %v9447_v6 = vadd.f32 %v9371_v50, %v9361_v41 }
  0xe6   :  { %v455_v63 = vsub.s32 32, %v454_v60  ;;  %v457_v3 = vshll.u32 %v17475_v2, %v454_v60  ;;  %v460_v5 = vshll.u32 %v17459_v4, %v454_v60  ;;  %v463_v11 = vshll.u32 %v17470_v9, %v454_v60 }
  0xe7   :  { %v9390_v7 = vpop.f32.mrb[8].mxu0  ;;  %v466_v14 = vshll.u32 %v17464_v12, %v454_v60  ;;  %v469_v17 = vshll.u32 %v17466_v15, %v454_v60  ;;  %vm475_vm3 = vcmp.lt.s32.totalorder %v9386_v1, 4  ;;  %vm472_vm5 = vcmp.lt.s32.totalorder %v9386_v1, 1  ;;  %17820 = vst [vmem:[#allocation10_spill] sm:$0xff] %v9447_v6 }
  0xe8   :  { %v458_v8 = vshrl.u32 %v17459_v4, %v455_v63  ;;  %v461_v10 = vshrl.u32 %v17470_v9, %v455_v63  ;;  %v464_v13 = vshrl.u32 %v17464_v12, %v455_v63  ;;  %v467_v16 = vshrl.u32 %v17466_v15, %v455_v63  ;;  %v9422_v46 = vpop.f32.mrb[9].mxu0 }
  0xe9   :  { %v470_v19 = vshrl.u32 %v17462_v18, %v455_v63  ;;  %vm474_vm6 = vcmp.lt.s32.totalorder %v9386_v1, 3  ;;  %vm473_vm7 = vcmp.lt.s32.totalorder %v9386_v1, 2  ;;  %v9432_v54 = vsub.s32 32, %v558_v38 }
  0xea   :  { %v459_v21 = vor.u32 %v458_v8, %v457_v3  ;;  %v462_v22 = vor.u32 %v461_v10, %v460_v5  ;;  %v465_v23 = vor.u32 %v464_v13, %v463_v11  ;;  %v468_v24 = vor.u32 %v467_v16, %v466_v14 }
  0xeb   :  { %v471_v25 = vor.u32 %v470_v19, %v469_v17  ;;  %vm659_vm8 = vcmp.gt.s32.totalorder %v658_v44, 0  ;;  %v456_v58 = vshrl.u32 %v17475_v2, %v455_v63  ;;  %v9439_v60 = vand.u32 8388607, %v17458_v49 }
  0xec   :  { %v481_v27 = vsel %vm475_vm3, %v468_v24, 920167782  ;;  %v480_v30 = vsel %vm472_vm5, %v459_v21, %v462_v22  ;;  %v484_v33 = vsel %vm472_vm5, %v462_v22, %v465_v23  ;;  %v477_v57 = vsel %vm475_vm3, %v465_v23, 2102212464 }
  0xed   :  { %v485_v28 = vsel %vm475_vm3, %v471_v25, 1326507024  ;;  %v482_v31 = vsel %vm474_vm6, %v465_v23, %v481_v27  ;;  %v571_v0 = vshrl.u32 %v17466_v15, %v9432_v54  ;;  %v574_v3 = vshrl.u32 %v17462_v18, %v9432_v54 }
  0xee   :  { %v486_v34 = vsel %vm474_vm6, %v468_v24, %v485_v28  ;;  %v483_v37 = vsel %vm473_vm7, %v480_v30, %v482_v31  ;;  %v660_v5 = vsel %vm659_vm8, %v658_v44, 0  ;;  %v476_v8 = vsel %vm472_vm5, %v456_v58, %v459_v21 }
  0xef   :  { %v487_v39 = vsel %vm473_vm7, %v484_v33, %v486_v34  ;;  %v9424_v47 = vmul.u32.u64.low %v488_v42, %v483_v37  ;;  %v9425_v48 = vmul.u32.u64.high %v488_v42, %v483_v37, %v9424_v47  ;;  %v478_v63 = vsel %vm474_vm6, %v462_v22, %v477_v57 }
  0xf0   :  { %v9429_v51 = vmul.u32.u64.low %v488_v42, %v487_v39  ;;  %v9430_v52 = vmul.u32.u64.high %v488_v42, %v487_v39, %v9429_v51  ;;  %v562_v10 = vshrl.u32 %v17459_v4, %v9432_v54  ;;  %v662_v11 = vand.u32 31, %v660_v5 }
  0xf1   :  { %v565_v13 = vshrl.u32 %v17470_v9, %v9432_v54  ;;  %v568_v14 = vshrl.u32 %v17464_v12, %v9432_v54  ;;  %v570_v16 = vshll.u32 %v17464_v12, %v558_v38  ;;  %v573_v50 = vshll.u32 %v17466_v15, %v558_v38 }
  0xf2   :  { %v498_v17 = vadd.s32 1, %v9425_v48  ;;  %v9462_v19 = vshrl.u32 %v556_v32, 5  ;;  %v561_v20 = vshll.u32 %v17475_v2, %v558_v38  ;;  %v564_v21 = vshll.u32 %v17459_v4, %v558_v38 }
  0xf3   :  { %vm497_vm9 = vc.u32 %v9430_v52, %v9424_v47  ;;  %v567_v22 = vshll.u32 %v17470_v9, %v558_v38  ;;  %v572_v23 = vor.u32 %v571_v0, %v570_v16  ;;  %v575_v24 = vor.u32 %v574_v3, %v573_v50 }
  0xf4   :  { %v479_v25 = vsel %vm473_vm7, %v476_v8, %v478_v63  ;;  %v9471_v26 = vsub.s32 32, %v662_v11  ;;  %v755_v27 = vand.u32 2139095040, %v9447_v6  ;;  %v9474_v28 = vor.u32 %v562_v10, %v561_v20 }
  0xf5   :  { %v9476_v29 = vor.u32 %v565_v13, %v564_v21  ;;  %v569_v30 = vor.u32 %v568_v14, %v567_v22  ;;  %v499_v31 = vsel %vm497_vm9, %v498_v17, %v9425_v48  ;;  %vm579_vm10 = vcmp.lt.s32.totalorder %v9462_v19, 4 }
  0xf6   :  { %v17455_v32 = vand.u32 2147483647, %v9378_v56  ;;  %v495_v33 = vmul.u32 %v488_v42, %v479_v25  ;;  %v552_v34 = vor.u32 8388608, %v9439_v60  ;;  %v585_v1 = vsel %vm579_vm10, %v572_v23, 920167782 }
  0xf7   :  { %v589_v36 = vsel %vm579_vm10, %v575_v24, 1326507024  ;;  %vm576_vm11 = vcmp.lt.s32.totalorder %v9462_v19, 1  ;;  %vm578_vm12 = vcmp.lt.s32.totalorder %v9462_v19, 3  ;;  %v675_v37 = vshrl.u32 %v17466_v15, %v9471_v26 }
  0xf8   :  { %v756_v38 = vshrl.u32 %v755_v27, 23  ;;  %v500_v39 = vadd.s32 %v499_v31, %v495_v33  ;;  %v584_v42 = vsel %vm576_vm11, %v9474_v28, %v9476_v29  ;;  %v588_v44 = vsel %vm576_vm11, %v9476_v29, %v569_v30  ;;  %v9524_v31 = vpop.f32.mrb[10].mxu0 }
  0xf9   :  { %v678_v48 = vshrl.u32 %v17462_v18, %v9471_v26  ;;  %v586_v51 = vsel %vm578_vm12, %v569_v30, %v585_v1  ;;  %v590_v57 = vsel %vm578_vm12, %v572_v23, %v589_v36  ;;  %v9503_v58 = vshrl.u32 %v660_v5, 5 }
  0xfa   :  { %v674_v60 = vshll.u32 %v17464_v12, %v662_v11  ;;  %v666_v0 = vshrl.u32 %v17459_v4, %v9471_v26  ;;  %v669_v3 = vshrl.u32 %v17470_v9, %v9471_v26  ;;  %v672_v8 = vshrl.u32 %v17464_v12, %v9471_v26 }
  0xfb   :  { %v677_v63 = vshll.u32 %v17466_v15, %v662_v11  ;;  %vm577_vm13 = vcmp.lt.s32.totalorder %v9462_v19, 2  ;;  %v655_v10 = vand.u32 8388607, %v17455_v32  ;;  %v8047_v13 = vadd.s32 4294967169, %v756_v38 }
  0xfc   :  { %v676_v5 = vor.u32 %v675_v37, %v674_v60  ;;  %v665_v14 = vshll.u32 %v17475_v2, %v662_v11  ;;  %v668_v16 = vshll.u32 %v17459_v4, %v662_v11  ;;  %v671_v50 = vshll.u32 %v17470_v9, %v662_v11 }
  0xfd   :  { %v679_v17 = vor.u32 %v678_v48, %v677_v63  ;;  %v501_v20 = vadd.s32 536870912, %v500_v39  ;;  %v587_v21 = vsel %vm577_vm13, %v584_v42, %v586_v51  ;;  %v591_v22 = vsel %vm577_vm13, %v588_v44, %v590_v57 }
  0xfe   :  { %v592_v23 = vshll.u32 %v552_v34, 8  ;;  %v667_v24 = vor.u32 %v666_v0, %v665_v14  ;;  %v670_v25 = vor.u32 %v669_v3, %v668_v16  ;;  %v673_v27 = vor.u32 %v672_v8, %v671_v50 }
  0xff   :  { %vm683_vm14 = vcmp.lt.s32.totalorder %v9503_v58, 4  ;;  %v762_v37 = vadd.s32 1, %v8047_v13  ;;  %vm680_vm15 = vcmp.lt.s32.totalorder %v9503_v58, 1  ;;  %vm682_vm0 = vcmp.lt.s32.totalorder %v9503_v58, 3 }
 0x100   :  { %v689_v33 = vsel %vm683_vm14, %v676_v5, 920167782  ;;  %v9528_v11 = vmul.u32.u64.low %v592_v23, %v587_v21  ;;  %v9529_v1 = vmul.u32.u64.high %v592_v23, %v587_v21, %v9528_v11  ;;  %v693_v36 = vsel %vm683_vm14, %v679_v17, 1326507024 }
 0x101   :  { %v9534_v38 = vmul.u32.u64.low %v592_v23, %v591_v22  ;;  %v9535_v34 = vmul.u32.u64.high %v592_v23, %v591_v22, %v9534_v38  ;;  %v9539_v42 = vshrl.u32 %v501_v20, 30  ;;  %v656_v44 = vor.u32 8388608, %v655_v10 }
 0x102   :  { %v688_v48 = vsel %vm680_vm15, %v667_v24, %v670_v25  ;;  %v690_v51 = vsel %vm682_vm0, %v673_v27, %v689_v33  ;;  %v692_v57 = vsel %vm680_vm15, %v670_v25, %v673_v27  ;;  %v694_v60 = vsel %vm682_vm0, %v676_v5, %v693_v36 }
 0x103   :  { %17821 = vst [vmem:[#allocation11_spill] sm:$0xff] %v9539_v42  ;;  %v581_v0 = vsel %vm579_vm10, %v569_v30, 2102212464  ;;  %vm681_vm1 = vcmp.lt.s32.totalorder %v9503_v58, 2  ;;  %vm763_vm2 = vcmp.gt.s32.totalorder %v762_v37, 0  ;;  %v560_v3 = vshrl.u32 %v17475_v2, %v9432_v54 }
 0x104   :  { %v691_v8 = vsel %vm681_vm1, %v688_v48, %v690_v51  ;;  %v503_v63 = vshll.u32 %v9539_v42, 30  ;;  %v695_v10 = vsel %vm681_vm1, %v692_v57, %v694_v60  ;;  %v696_v13 = vshll.u32 %v656_v44, 8  ;;  %v9605_v60 = vpop.f32.mrb[11].mxu0 }
 0x105   :  { %v580_v5 = vsel %vm576_vm11, %v560_v3, %v9474_v28  ;;  %v582_v30 = vsel %vm578_vm12, %v9476_v29, %v581_v0  ;;  %v764_v14 = vsel %vm763_vm2, %v762_v37, 0  ;;  %v9567_v54 = vadd.f32 %v9373_v53, %v9359_v40 }
 0x106   :  { %v602_v16 = vadd.s32 1, %v9529_v1  ;;  %v9570_v50 = vmul.u32.u64.low %v696_v13, %v691_v8  ;;  %v9571_v17 = vmul.u32.u64.high %v696_v13, %v691_v8, %v9570_v50  ;;  %vm601_vm3 = vc.u32 %v9535_v34, %v9528_v11 }
 0x107   :  { %17822 = vst [vmem:[#allocation12_spill] sm:$0xff] %v9567_v54  ;;  %v9576_v20 = vmul.u32.u64.low %v696_v13, %v695_v10  ;;  %v9577_v28 = vmul.u32.u64.high %v696_v13, %v695_v10, %v9576_v20  ;;  %v9579_v21 = vsub.s32 %v500_v39, %v503_v63  ;;  %v583_v29 = vsel %vm577_vm13, %v580_v5, %v582_v30 }
 0x108   :  { %v766_v22 = vand.u32 31, %v764_v14  ;;  %v859_v53 = vand.u32 2139095040, %v9567_v54  ;;  %v603_v33 = vsel %vm601_vm3, %v602_v16, %v9529_v1  ;;  %v599_v36 = vmul.u32 %v592_v23, %v583_v29 }
 0x109   :  { %v685_v37 = vsel %vm683_vm14, %v673_v27, 2102212464  ;;  %v506_v38 = vsub.s32 0, %v9579_v21  ;;  %v664_v44 = vshrl.u32 %v17475_v2, %v9471_v26  ;;  %v706_v23 = vadd.s32 1, %v9571_v17 }
 0x10a   :  { %v9590_v48 = vsub.s32 32, %v766_v22  ;;  %v9592_v39 = vadd.s32 %v603_v33, %v599_v36  ;;  %v860_v19 = vshrl.u32 %v859_v53, 23  ;;  %v686_v1 = vsel %vm682_vm0, %v670_v25, %v685_v37 }
 0x10b   :  { %v684_v51 = vsel %vm680_vm15, %v664_v44, %v667_v24  ;;  %vm705_vm4 = vc.u32 %v9577_v28, %v9570_v50  ;;  %v8036_v27 = vmin.u32 %v506_v38, %v9579_v21  ;;  %v17457_v26 = vand.u32 2147483647, %v9447_v6 }
 0x10c   :  { %v779_v57 = vshrl.u32 %v17466_v15, %v9590_v48  ;;  %v605_v0 = vadd.s32 536870912, %v9592_v39  ;;  %v687_v24 = vsel %vm681_vm1, %v684_v51, %v686_v1  ;;  %v782_v25 = vshrl.u32 %v17462_v18, %v9590_v48 }
 0x10d   :  { %v8051_v3 = vadd.s32 4294967169, %v860_v19  ;;  %v707_v8 = vsel %vm705_vm4, %v706_v23, %v9571_v17  ;;  %v9613_v63 = vshrl.u32 %v764_v14, 5  ;;  %v770_v10 = vshrl.u32 %v17459_v4, %v9590_v48 }
 0x10e   :  { %v778_v5 = vshll.u32 %v17464_v12, %v766_v22  ;;  %v773_v30 = vshrl.u32 %v17470_v9, %v9590_v48  ;;  %v776_v58 = vshrl.u32 %v17464_v12, %v9590_v48  ;;  %v781_v16 = vshll.u32 %v17466_v15, %v766_v22 }
 0x10f   :  { %v866_v20 = vadd.s32 1, %v8051_v3  ;;  %v508_v29 = vclz %v8036_v27  ;;  %v703_v53 = vmul.u32 %v696_v13, %v687_v24  ;;  %v769_v17 = vshll.u32 %v17475_v2, %v766_v22 }
 0x110   :  { %v780_v14 = vor.u32 %v779_v57, %v778_v5  ;;  %v772_v33 = vshll.u32 %v17459_v4, %v766_v22  ;;  %v775_v36 = vshll.u32 %v17470_v9, %v766_v22  ;;  %v783_v37 = vor.u32 %v782_v25, %v781_v16 }
 0x111   :  { %vm867_vm5 = vcmp.gt.s32.totalorder %v866_v20, 0  ;;  %v9626_v38 = vadd.s32 %v707_v8, %v703_v53  ;;  %v759_v44 = vand.u32 8388607, %v17457_v26  ;;  %v771_v19 = vor.u32 %v770_v10, %v769_v17 }
 0x112   :  { %v774_v51 = vor.u32 %v773_v30, %v772_v33  ;;  %v777_v1 = vor.u32 %v776_v58, %v775_v36  ;;  %vm787_vm6 = vcmp.lt.s32.totalorder %v9613_v63, 4  ;;  %v868_v13 = vsel %vm867_vm5, %v866_v20, 0 }
 0x113   :  { %v793_v23 = vsel %vm787_vm6, %v780_v14, 920167782  ;;  %v8037_v27 = vadd.s32 4294967294, %v508_v29  ;;  %v9633_v57 = vshrl.u32 %v605_v0, 30  ;;  %v797_v22 = vsel %vm787_vm6, %v783_v37, 1326507024 }
 0x114   :  { %v870_v24 = vand.u32 31, %v868_v13  ;;  %v709_v25 = vadd.s32 536870912, %v9626_v38  ;;  %v760_v3 = vor.u32 8388608, %v759_v44  ;;  %vm784_vm7 = vcmp.lt.s32.totalorder %v9613_v63, 1 }
 0x115   :  { %17823 = vst [vmem:[#allocation13_spill] sm:$0xff] %v9633_v57  ;;  %vm786_vm8 = vcmp.lt.s32.totalorder %v9613_v63, 3  ;;  %v792_v8 = vsel %vm784_vm7, %v771_v19, %v774_v51  ;;  %v796_v0 = vsel %vm784_vm7, %v774_v51, %v777_v1  ;;  %vm8038_vm9 = vcmp.lt.s32.totalorder %v8037_v27, 0 }
 0x116   :  { %v794_v10 = vsel %vm786_vm8, %v777_v1, %v793_v23  ;;  %v9644_v5 = vsub.s32 32, %v870_v24  ;;  %v798_v30 = vsel %vm786_vm8, %v780_v14, %v797_v22  ;;  %v607_v58 = vshll.u32 %v9633_v57, 30 }
 0x117   :  { %vm785_vm10 = vcmp.lt.s32.totalorder %v9613_v63, 2  ;;  %v17461_v16 = vand.u32 2147483647, %v9567_v54  ;;  %v9653_v20 = vshrl.u32 %v709_v25, 30  ;;  %v9657_v53 = vshll.u32 %v760_v3, 8 }
 0x118   :  { %v795_v29 = vsel %vm785_vm10, %v792_v8, %v794_v10  ;;  %v883_v17 = vshrl.u32 %v17466_v15, %v9644_v5  ;;  %v799_v14 = vsel %vm785_vm10, %v796_v0, %v798_v30  ;;  %v9663_v33 = vshrl.u32 %v868_v13, 5 }
 0x119   :  { %17824 = vst [vmem:[#allocation14_spill] sm:$0xff] %v9653_v20  ;;  %v882_v36 = vshll.u32 %v17464_v12, %v870_v24  ;;  %v886_v37 = vshrl.u32 %v17462_v18, %v9644_v5  ;;  %v874_v44 = vshrl.u32 %v17459_v4, %v9644_v5  ;;  %v877_v23 = vshrl.u32 %v17470_v9, %v9644_v5 }
 0x11a   :  { %v880_v22 = vshrl.u32 %v17464_v12, %v9644_v5  ;;  %v885_v25 = vshll.u32 %v17466_v15, %v870_v24  ;;  %v9676_v3 = vmul.u32.u64.low %v9657_v53, %v795_v29  ;;  %v9677_v13 = vmul.u32.u64.high %v9657_v53, %v795_v29, %v9676_v3 }
 0x11b   :  { %v884_v8 = vor.u32 %v883_v17, %v882_v36  ;;  %v9682_v10 = vadd.f32 %v9375_v55, %v9361_v41  ;;  %v873_v0 = vshll.u32 %v17475_v2, %v870_v24  ;;  %v876_v30 = vshll.u32 %v17459_v4, %v870_v24 }
 0x11c   :  { %v879_v35 = vshll.u32 %v17470_v9, %v870_v24  ;;  %v887_v32 = vor.u32 %v886_v37, %v885_v25  ;;  %v789_v62 = vsel %vm787_vm6, %v777_v1, 2102212464  ;;  %v863_v17 = vand.u32 8388607, %v17461_v16 }
 0x11d   :  { %17825 = vst [vmem:[#allocation15_spill] sm:$0xff] %v9682_v10  ;;  %v9690_v26 = vmul.u32.u64.low %v9657_v53, %v799_v14  ;;  %v9691_v29 = vmul.u32.u64.high %v9657_v53, %v799_v14, %v9690_v26  ;;  %v875_v36 = vor.u32 %v874_v44, %v873_v0  ;;  %v878_v55 = vor.u32 %v877_v23, %v876_v30  ;;  %v9720_v23 = vpop.f32.mrb[12].mxu0 }
 0x11e   :  { %v881_v49 = vor.u32 %v880_v22, %v879_v35  ;;  %vm891_vm11 = vcmp.lt.s32.totalorder %v9663_v33, 4  ;;  %v9697_v4 = vsub.s32 %v9592_v39, %v607_v58  ;;  %v768_v24 = vshrl.u32 %v17475_v2, %v9590_v48  ;;  %17826 = vst [vmem:[#allocation16_spill] sm:$0xff] %v9720_v23 }
 0x11f   :  { %v897_v1 = vsel %vm891_vm11, %v884_v8, 920167782  ;;  %v9704_v14 = vsel %vm8038_vm9, 0, %v8037_v27  ;;  %v711_v26 = vshll.u32 %v9653_v20, 30  ;;  %v901_v37 = vsel %vm891_vm11, %v887_v32, 1326507024 }
 0x120   :  { %v963_v35 = vand.u32 2139095040, %v9682_v10  ;;  %v788_v39 = vsel %vm784_vm7, %v768_v24, %v771_v19  ;;  %v790_v58 = vsel %vm786_vm8, %v774_v51, %v789_v62  ;;  %vm888_vm12 = vcmp.lt.s32.totalorder %v9663_v33, 1 }
 0x121   :  { %vm890_vm13 = vcmp.lt.s32.totalorder %v9663_v33, 3  ;;  %v864_v48 = vor.u32 8388608, %v863_v17  ;;  %v896_v27 = vsel %vm888_vm12, %v875_v36, %v878_v55  ;;  %v610_v22 = vsub.s32 0, %v9697_v4 }
 0x122   :  { %v898_v44 = vsel %vm890_vm13, %v881_v49, %v897_v1  ;;  %v964_v32 = vshrl.u32 %v963_v35, 23  ;;  %v900_v19 = vsel %vm888_vm12, %v878_v55, %v881_v49  ;;  %v902_v62 = vsel %vm890_vm13, %v884_v8, %v901_v37 }
 0x123   :  { %v791_v51 = vsel %vm785_vm10, %v788_v39, %v790_v58  ;;  %v810_v25 = vadd.s32 1, %v9677_v13  ;;  %vm889_vm14 = vcmp.lt.s32.totalorder %v9663_v33, 2  ;;  %v516_v30 = vsub.s32 4294967266, %v9704_v14 }
 0x124   :  { %v8055_v0 = vadd.s32 4294967169, %v964_v32  ;;  %vm809_vm15 = vc.u32 %v9691_v29, %v9676_v3  ;;  %v899_v17 = vsel %vm889_vm14, %v896_v27, %v898_v44  ;;  %v9737_v24 = vsub.s32 %v9626_v38, %v711_v26 }
 0x125   :  { %v903_v63 = vsel %vm889_vm14, %v900_v19, %v902_v62  ;;  %v904_v8 = vshll.u32 %v864_v48, 8  ;;  %v8040_v37 = vmin.u32 %v610_v22, %v9697_v4  ;;  %v807_v35 = vmul.u32 %v9657_v53, %v791_v51 }
 0x126   :  { %v970_v1 = vadd.s32 1, %v8055_v0  ;;  %v811_v39 = vsel %vm809_vm15, %v810_v25, %v9677_v13  ;;  %v9753_v26 = vadd.f32 %v9380_v59, %v9359_v40  ;;  %v517_v48 = vadd.s32 127, %v516_v30 }
 0x127   :  { %v9744_v58 = vmul.u32.u64.low %v904_v8, %v899_v17  ;;  %v9745_v32 = vmul.u32.u64.high %v904_v8, %v899_v17, %v9744_v58  ;;  %v9748_v27 = vmul.u32.u64.low %v904_v8, %v903_v63  ;;  %v9749_v44 = vmul.u32.u64.high %v904_v8, %v903_v63, %v9748_v27 }
 0x128   :  { %vm971_vm0 = vcmp.gt.s32.totalorder %v970_v1, 0  ;;  %17827 = vst [vmem:[#allocation17_spill] sm:$0xff] %v9753_v26  ;;  %v714_v22 = vsub.s32 0, %v9737_v24  ;;  %v812_v19 = vadd.s32 %v811_v39, %v807_v35  ;;  %v612_v62 = vclz %v8040_v37 }
 0x129   :  { %v972_v38 = vsel %vm971_vm0, %v970_v1, 0  ;;  %v893_v13 = vsel %vm891_vm11, %v881_v49, 2102212464  ;;  %v872_v51 = vshrl.u32 %v17475_v2, %v9644_v5  ;;  %v1067_v25 = vand.u32 2139095040, %v9753_v26 }
 0x12a   :  { %v974_v53 = vand.u32 31, %v972_v38  ;;  %v512_v0 = vsub.s32 32, %v9704_v14  ;;  %v518_v17 = vshll.u32 %v517_v48, 23  ;;  %v8044_v59 = vmin.u32 %v714_v22, %v9737_v24 }
 0x12b   :  { %v813_v63 = vadd.s32 536870912, %v812_v19  ;;  %v892_v30 = vsel %vm888_vm12, %v872_v51, %v875_v36  ;;  %v894_v1 = vsel %vm890_vm13, %v878_v55, %v893_v13  ;;  %v496_v49 = vadd.s32 %v9424_v47, %v9430_v52  ;;  %v9786_v51 = vpop.f32.mrb[13].mxu0 }
 0x12c   :  { %v9767_v37 = vsub.s32 32, %v974_v53  ;;  %v8041_v5 = vadd.s32 4294967294, %v612_v62  ;;  %v914_v35 = vadd.s32 1, %v9745_v32  ;;  %vm913_vm1 = vc.u32 %v9749_v44, %v9744_v58  ;;  %17829 = vst [vmem:[#allocation19_spill] sm:$0xff] %v9786_v51 }
 0x12d   :  { %v1068_v39 = vshrl.u32 %v1067_v25, 23  ;;  %v514_v27 = vshrl.u32 %v496_v49, %v512_v0  ;;  %v895_v48 = vsel %vm889_vm14, %v892_v30, %v894_v1  ;;  %v9776_v36 = vor.u32 4788187, %v518_v17 }
 0x12e   :  { %v716_v22 = vclz %v8044_v59  ;;  %v9778_v55 = vshrl.u32 %v813_v63, 30  ;;  %v987_v13 = vshrl.u32 %v17466_v15, %v9767_v37  ;;  %vm8042_vm2 = vcmp.lt.s32.totalorder %v8041_v5, 0 }
 0x12f   :  { %v915_v47 = vsel %vm913_vm1, %v914_v35, %v9745_v32  ;;  %v990_v62 = vshrl.u32 %v17462_v18, %v9767_v37  ;;  %v911_v33 = vmul.u32 %v904_v8, %v895_v48  ;;  %v9788_v25 = vshrl.u32 %v972_v38, 5 }
 0x130   :  { %17828 = vst [vmem:[#allocation18_spill] sm:$0xff] %v9778_v55  ;;  %v986_v0 = vshll.u32 %v17464_v12, %v974_v53  ;;  %v8059_v17 = vadd.s32 4294967169, %v1068_v39  ;;  %v17830_v59 = vmov 2475754826   ;;  %v981_v30 = vshrl.u32 %v17470_v9, %v9767_v37 }
 0x131   :  { %v978_v63 = vshrl.u32 %v17830_v59, %v9767_v37  ;;  %v984_v32 = vshrl.u32 %v17464_v12, %v9767_v37  ;;  %v989_v1 = vshll.u32 %v17466_v15, %v974_v53  ;;  %v8045_v49 = vadd.s32 4294967294, %v716_v22 }
 0x132   :  { %v815_v35 = vshll.u32 %v9778_v55, 30  ;;  %v9799_v8 = vadd.s32 %v915_v47, %v911_v33  ;;  %v988_v38 = vor.u32 %v987_v13, %v986_v0  ;;  %v977_v48 = vshll.u32 %v17475_v2, %v974_v53 }
 0x133   :  { %v980_v39 = vshll.u32 %v17830_v59, %v974_v53  ;;  %v983_v16 = vshll.u32 %v17470_v9, %v974_v53  ;;  %v991_v18 = vor.u32 %v990_v62, %v989_v1  ;;  %v513_v52 = vshll.u32 %v9579_v21, %v9704_v14 }
 0x134   :  { %v9807_v12 = vsel %vm8042_vm2, 0, %v8041_v5  ;;  %v17831_v22 = vand.u32 2147483647, %v9682_v10  ;;  %v1074_v20 = vadd.s32 1, %v8059_v17  ;;  %v9811_v47 = vor.u32 %v978_v63, %v977_v48 }
 0x135   :  { %v9813_v13 = vor.u32 %v981_v30, %v980_v39  ;;  %v985_v33 = vor.u32 %v984_v32, %v983_v16  ;;  %vm995_vm3 = vcmp.lt.s32.totalorder %v9788_v25, 4  ;;  %v515_v0 = vor.u32 %v514_v27, %v513_v52 }
 0x136   :  { %v967_v15 = vand.u32 8388607, %v17831_v22  ;;  %v9816_v53 = vsub.s32 %v812_v19, %v815_v35  ;;  %v1001_v21 = vsel %vm995_vm3, %v988_v38, 920167782  ;;  %v520_v14 = vand.u32 2147483647, %v9776_v36 }
 0x137   :  { %vm8046_vm4 = vcmp.lt.s32.totalorder %v8045_v49, 0  ;;  %v917_v5 = vadd.s32 536870912, %v9799_v8  ;;  %v1005_v62 = vsel %vm995_vm3, %v991_v18, 1326507024  ;;  %v620_v17 = vsub.s32 4294967266, %v9807_v12 }
 0x138   :  { %vm992_vm5 = vcmp.lt.s32.totalorder %v9788_v25, 1  ;;  %vm994_vm6 = vcmp.lt.s32.totalorder %v9788_v25, 3  ;;  %v9829_v16 = vadd.f32 %v9382_v61, %v9361_v41  ;;  %v968_v19 = vor.u32 8388608, %v967_v15 }
 0x139   :  { %v1000_v27 = vsel %vm992_vm5, %v9811_v47, %v9813_v13  ;;  %v1002_v36 = vsel %vm994_vm6, %v985_v33, %v1001_v21  ;;  %vm1075_vm7 = vcmp.gt.s32.totalorder %v1074_v20, 0  ;;  %v719_v18 = vsel %vm8046_vm4, 0, %v8045_v49 }
 0x13a   :  { %17832 = vst [vmem:[#allocation20_spill] sm:$0xff] %v9829_v16  ;;  %v818_v52 = vsub.s32 0, %v9816_v53  ;;  %v1004_v63 = vsel %vm992_vm5, %v9813_v13, %v985_v33  ;;  %v1006_v61 = vsel %vm994_vm6, %v988_v38, %v1005_v62  ;;  %v522_v15 = vcvt.s32.f32 %v515_v0 }
 0x13b   :  { %v600_v30 = vadd.s32 %v9528_v11, %v9535_v34  ;;  %v9845_v32 = vshrl.u32 %v917_v5, 30  ;;  %vm993_vm8 = vcmp.lt.s32.totalorder %v9788_v25, 2  ;;  %v616_v1 = vsub.s32 32, %v9807_v12 }
 0x13c   :  { %v621_v49 = vadd.s32 127, %v620_v17  ;;  %v1003_v35 = vsel %vm993_vm8, %v1000_v27, %v1002_v36  ;;  %v1076_v48 = vsel %vm1075_vm7, %v1074_v20, 0  ;;  %v720_v39 = vsub.s32 32, %v719_v18 }
 0x13d   :  { %17833 = vst [vmem:[#allocation21_spill] sm:$0xff] %v9845_v32  ;;  %v1007_v22 = vsel %vm993_vm8, %v1004_v63, %v1006_v61  ;;  %v9853_v38 = vshll.u32 %v968_v19, 8  ;;  %v1171_v0 = vand.u32 2139095040, %v9829_v16  ;;  %v9856_v11 = vmul.f32 %v522_v15, %v520_v14 }
 0x13e   :  { %v704_v34 = vadd.s32 %v9570_v50, %v9577_v28  ;;  %v724_v21 = vsub.s32 4294967266, %v719_v18  ;;  %v8048_v5 = vmin.u32 %v818_v52, %v9816_v53  ;;  %v919_v62 = vshll.u32 %v9845_v32, 30 }
 0x13f   :  { %17834 = vst [vmem:[#allocation22_spill] sm:$0xff] %v9856_v11  ;;  %v9863_v20 = vmul.u32.u64.low %v9853_v38, %v1003_v35  ;;  %v9864_v17 = vmul.u32.u64.high %v9853_v38, %v1003_v35, %v9863_v20  ;;  %v1078_v27 = vand.u32 31, %v1076_v48  ;;  %v618_v19 = vshrl.u32 %v600_v30, %v616_v1 }
 0x140   :  { %v622_v36 = vshll.u32 %v621_v49, 23  ;;  %v9868_v63 = vmul.u32.u64.low %v9853_v38, %v1007_v22  ;;  %v9869_v14 = vmul.u32.u64.high %v9853_v38, %v1007_v22, %v9868_v63  ;;  %v617_v50 = vshll.u32 %v9697_v4, %v9807_v12 }
 0x141   :  { %v721_v28 = vshll.u32 %v9737_v24, %v719_v18  ;;  %v722_v52 = vshrl.u32 %v704_v34, %v720_v39  ;;  %v1172_v61 = vshrl.u32 %v1171_v0, 23  ;;  %v9874_v15 = vadd.s32 127, %v724_v21  ;;  %v9903_v34 = vpop.f32.mrb[14].mxu0 }
 0x142   :  { %v820_v9 = vclz %v8048_v5  ;;  %v997_v35 = vsel %vm995_vm3, %v985_v33, 2102212464  ;;  %v17472_v30 = vand.u32 2147483647, %v9753_v26  ;;  %v9880_v1 = vsub.s32 %v9799_v8, %v919_v62  ;;  %17836 = vst [vmem:[#allocation24_spill] sm:$0xff] %v9903_v34 }
 0x143   :  { %v976_v49 = vshrl.u32 %v17475_v2, %v9767_v37  ;;  %v9884_v22 = vsub.s32 32, %v1078_v27  ;;  %v8063_v4 = vadd.s32 4294967169, %v1172_v61  ;;  %v9887_v24 = vor.u32 %v618_v19, %v617_v50 }
 0x144   :  { %v9889_v18 = vor.u32 4788187, %v622_v36  ;;  %v9893_v33 = vadd.f32 %v9390_v7, %v9359_v40  ;;  %v9895_v39 = vor.u32 %v722_v52, %v721_v28  ;;  %v998_v37 = vsel %vm994_vm6, %v9813_v13, %v997_v35 }
 0x145   :  { %v996_v8 = vsel %vm992_vm5, %v976_v49, %v9811_v47  ;;  %v1178_v0 = vadd.s32 1, %v8063_v4  ;;  %v9906_v5 = vadd.s32 4294967294, %v820_v9  ;;  %v9910_v7 = vand.u32 8388607, %v17472_v30 }
 0x146   :  { %17835 = vst [vmem:[#allocation23_spill] sm:$0xff] %v9893_v33  ;;  %v922_v19 = vsub.s32 0, %v9880_v1  ;;  %v1018_v47 = vadd.s32 1, %v9864_v17  ;;  %v17837_v36 = vmov 920167782   ;;  %v999_v63 = vsel %vm993_vm8, %v996_v8, %v998_v37 }
 0x147   :  { %v1091_v13 = vshrl.u32 %v17837_v36, %v9884_v22  ;;  %vm1179_vm9 = vcmp.gt.s32.totalorder %v1178_v0, 0  ;;  %vm1017_vm10 = vc.u32 %v9869_v14, %v9863_v20  ;;  %v17838_v9 = vmov 1326507024  }
 0x148   :  { %v1094_v50 = vshrl.u32 %v17838_v9, %v9884_v22  ;;  %v1180_v28 = vsel %vm1179_vm9, %v1178_v0, 0  ;;  %v9923_v52 = vshrl.u32 %v1076_v48, 5  ;;  %v1082_v61 = vshrl.u32 %v17830_v59, %v9884_v22 }
 0x149   :  { %v17839_v35 = vmov 2102212464   ;;  %v1182_v4 = vand.u32 31, %v1180_v28  ;;  %v1081_v30 = vshll.u32 %v17475_v2, %v1078_v27  ;;  %v17840_v25 = vmov 2131351028  }
 0x14a   :  { %v1090_v49 = vshll.u32 %v17839_v35, %v1078_v27  ;;  %v1085_v8 = vshrl.u32 %v17840_v25, %v9884_v22  ;;  %v1093_v37 = vshll.u32 %v17837_v36, %v1078_v27  ;;  %v1275_v12 = vand.u32 2139095040, %v9893_v33 }
 0x14b   :  { %vm8050_vm11 = vcmp.lt.s32.totalorder %v9906_v5, 0  ;;  %v1019_v48 = vsel %vm1017_vm10, %v1018_v47, %v9864_v17  ;;  %v1088_v0 = vshrl.u32 %v17839_v35, %v9884_v22  ;;  %v9937_v62 = vsub.s32 32, %v1182_v4 }
 0x14c   :  { %v1092_v21 = vor.u32 %v1091_v13, %v1090_v49  ;;  %v1015_v32 = vmul.u32 %v9853_v38, %v999_v63  ;;  %v1072_v2 = vor.u32 8388608, %v9910_v7  ;;  %v1084_v42 = vshll.u32 %v17830_v59, %v1078_v27 }
 0x14d   :  { %v1095_v55 = vor.u32 %v1094_v50, %v1093_v37  ;;  %v8052_v57 = vmin.u32 %v922_v19, %v9880_v1  ;;  %v9943_v26 = vor.u32 %v1082_v61, %v1081_v30  ;;  %v1087_v34 = vshll.u32 %v17840_v25, %v1078_v27 }
 0x14e   :  { %vm1096_vm12 = vcmp.lt.s32.totalorder %v9923_v52, 1  ;;  %v9947_v17 = vadd.s32 %v1019_v48, %v1015_v32  ;;  %v9949_v47 = vor.u32 %v1085_v8, %v1084_v42  ;;  %vm1099_vm13 = vcmp.lt.s32.totalorder %v9923_v52, 4 }
 0x14f   :  { %v1276_v38 = vshrl.u32 %v1275_v12, 23  ;;  %v9952_v13 = vor.u32 %v1088_v0, %v1087_v34  ;;  %vm1098_vm14 = vcmp.lt.s32.totalorder %v9923_v52, 3  ;;  %v1105_v7 = vsel %vm1099_vm13, %v1092_v21, 920167782 }
 0x150   :  { %v1195_v30 = vshrl.u32 %v17837_v36, %v9937_v62  ;;  %v1109_v27 = vsel %vm1099_vm13, %v1095_v55, 1326507024  ;;  %v9961_v32 = vshrl.u32 %v1180_v28, 5  ;;  %v1186_v42 = vshrl.u32 %v17830_v59, %v9937_v62 }
 0x151   :  { %v1194_v12 = vshll.u32 %v17839_v35, %v1182_v4  ;;  %v1189_v34 = vshrl.u32 %v17840_v25, %v9937_v62  ;;  %v1192_v19 = vshrl.u32 %v17839_v35, %v9937_v62  ;;  %v1197_v63 = vshll.u32 %v17837_v36, %v1182_v4 }
 0x152   :  { %v1198_v50 = vshrl.u32 %v17838_v9, %v9937_v62  ;;  %v1021_v55 = vadd.s32 536870912, %v9947_v17  ;;  %v1104_v28 = vsel %vm1096_vm12, %v9943_v26, %v9949_v47  ;;  %v8067_v49 = vadd.s32 4294967169, %v1276_v38 }
 0x153   :  { %v1196_v61 = vor.u32 %v1195_v30, %v1194_v12  ;;  %v17841_v8 = vmov 683565275   ;;  %v1188_v48 = vshll.u32 %v17830_v59, %v1182_v4  ;;  %v1191_v0 = vshll.u32 %v17840_v25, %v1182_v4 }
 0x154   :  { %v1185_v37 = vshll.u32 %v17841_v8, %v1182_v4  ;;  %v1199_v51 = vor.u32 %v1198_v50, %v1197_v63  ;;  %v1106_v54 = vsel %vm1098_vm14, %v9952_v13, %v1105_v7  ;;  %v1108_v23 = vsel %vm1096_vm12, %v9949_v47, %v9952_v13 }
 0x155   :  { %v1110_v30 = vsel %vm1098_vm14, %v1092_v21, %v1109_v27  ;;  %v17842_v38 = vand.u32 2147483647, %v9829_v16  ;;  %v9994_v11 = vor.u32 %v1189_v34, %v1188_v48  ;;  %v1193_v4 = vor.u32 %v1192_v19, %v1191_v0 }
 0x156   :  { %v9992_v10 = vor.u32 %v1186_v42, %v1185_v37  ;;  %vm1203_vm15 = vcmp.lt.s32.totalorder %v9961_v32, 4  ;;  %v10000_v7 = vsel %vm8050_vm11, 0, %v9906_v5  ;;  %v924_v63 = vclz %v8052_v57 }
 0x157   :  { %v1175_v12 = vand.u32 8388607, %v17842_v38  ;;  %v10002_v50 = vshrl.u32 %v1021_v55, 30  ;;  %v1209_v21 = vsel %vm1203_vm15, %v1196_v61, 920167782  ;;  %vm1097_vm0 = vcmp.lt.s32.totalorder %v9923_v52, 2 }
 0x158   :  { %v10007_v27 = vshll.u32 %v1072_v2, 8  ;;  %v1213_v42 = vsel %vm1203_vm15, %v1199_v51, 1326507024  ;;  %v1282_v34 = vadd.s32 1, %v8067_v49  ;;  %v1107_v19 = vsel %vm1097_vm0, %v1104_v28, %v1106_v54 }
 0x159   :  { %v1111_v5 = vsel %vm1097_vm0, %v1108_v23, %v1110_v30  ;;  %vm1200_vm1 = vcmp.lt.s32.totalorder %v9961_v32, 1  ;;  %vm1202_vm2 = vcmp.lt.s32.totalorder %v9961_v32, 3  ;;  %v1176_v57 = vor.u32 8388608, %v1175_v12 }
 0x15a   :  { %v1208_v2 = vsel %vm1200_vm1, %v9992_v10, %v9994_v11  ;;  %v1210_v51 = vsel %vm1202_vm2, %v1193_v4, %v1209_v21  ;;  %vm1283_vm3 = vcmp.gt.s32.totalorder %v1282_v34, 0  ;;  %v8053_v55 = vadd.s32 4294967294, %v924_v63 }
 0x15b   :  { %v1023_v54 = vshll.u32 %v10002_v50, 30  ;;  %v1212_v23 = vsel %vm1200_vm1, %v9994_v11, %v1193_v4  ;;  %v1214_v28 = vsel %vm1202_vm2, %v1196_v61, %v1213_v42  ;;  %vm1201_vm4 = vcmp.lt.s32.totalorder %v9961_v32, 2 }
 0x15c   :  { %v10030_v49 = vmul.u32.u64.low %v10007_v27, %v1107_v19  ;;  %v10031_v37 = vmul.u32.u64.high %v10007_v27, %v1107_v19, %v10030_v49  ;;  %v1284_v48 = vsel %vm1283_vm3, %v1282_v34, 0  ;;  %v1211_v12 = vsel %vm1201_vm4, %v1208_v2, %v1210_v51  ;;  %v10051_v34 = vpop.f32.mrb[15].mxu0 }
 0x15d   :  { %v10037_v30 = vmul.u32.u64.low %v10007_v27, %v1111_v5  ;;  %v10038_v38 = vmul.u32.u64.high %v10007_v27, %v1111_v5, %v10037_v30  ;;  %v17845_v63 = vshll.u32 %v9874_v15, 23  ;;  %v828_v21 = vsub.s32 4294967266, %v10000_v7  ;;  %17846 = vst [vmem:[#allocation27_spill] sm:$0xff] %v10051_v34 }
 0x15e   :  { %17843 = vst [vmem:[#allocation25_spill] sm:$0xff] %v10030_v49  ;;  %v1215_v42 = vsel %vm1201_vm4, %v1212_v23, %v1214_v28  ;;  %v10049_v19 = vshll.u32 %v1176_v57, 8  ;;  %v808_v5 = vadd.s32 %v9676_v3, %v9691_v29  ;;  %v10057_v2 = vsub.s32 %v9947_v17, %v1023_v54 }
 0x15f   :  { %17844 = vst [vmem:[#allocation26_spill] sm:$0xff] %v10038_v38  ;;  %v10044_v61 = vor.u32 4788187, %v17845_v63  ;;  %v1286_v15 = vand.u32 31, %v1284_v48  ;;  %vm8054_vm5 = vcmp.lt.s32.totalorder %v8053_v55, 0  ;;  %v824_v57 = vsub.s32 32, %v10000_v7 }
 0x160   :  { %v10061_v30 = vmul.u32.u64.low %v10049_v19, %v1211_v12  ;;  %v10062_v63 = vmul.u32.u64.high %v10049_v19, %v1211_v12, %v10061_v30  ;;  %v1101_v23 = vsel %vm1099_vm13, %v9952_v13, 2102212464  ;;  %v829_v54 = vadd.s32 127, %v828_v21 }
 0x161   :  { %v10070_v3 = vmul.u32.u64.low %v10049_v19, %v1215_v42  ;;  %v10071_v29 = vmul.u32.u64.high %v10049_v19, %v1215_v42, %v10070_v3  ;;  %v1080_v28 = vshrl.u32 %v17841_v8, %v9884_v22  ;;  %v10078_v12 = vadd.f32 %v9422_v46, %v9361_v41 }
 0x162   :  { %17847 = vst [vmem:[#allocation28_spill] sm:$0xff] %v10061_v30  ;;  %v10080_v51 = vsel %vm8054_vm5, 0, %v8053_v55  ;;  %v1026_v0 = vsub.s32 0, %v10057_v2  ;;  %v1205_v13 = vsel %vm1203_vm15, %v1193_v4, 2102212464  ;;  %v10085_v16 = vsub.s32 32, %v1286_v15 }
 0x163   :  { %17848 = vst [vmem:[#allocation29_spill] sm:$0xff] %v10071_v29  ;;  %17849 = vst [vmem:[#allocation30_spill] sm:$0xff] %v10078_v12  ;;  %v1100_v21 = vsel %vm1096_vm12, %v1080_v28, %v9943_v26  ;;  %v1102_v22 = vsel %vm1098_vm14, %v9949_v47, %v1101_v23  ;;  %v1122_v46 = vadd.s32 1, %v10031_v37  ;;  %v1184_v55 = vshrl.u32 %v17841_v8, %v9937_v62 }
 0x164   :  { %v825_v42 = vshll.u32 %v9816_v53, %v10000_v7  ;;  %v826_v3 = vshrl.u32 %v808_v5, %v824_v57  ;;  %v10100_v4 = vadd.s32 %v9744_v58, %v9749_v44  ;;  %vm1121_vm6 = vc.u32 %v10038_v38, %v10030_v49 }
 0x165   :  { %v830_v26 = vshll.u32 %v829_v54, 23  ;;  %v1204_v47 = vsel %vm1200_vm1, %v1184_v55, %v9992_v10  ;;  %v1206_v62 = vsel %vm1202_vm2, %v9994_v11, %v1205_v13  ;;  %v1379_v23 = vand.u32 2139095040, %v10078_v12 }
 0x166   :  { %v932_v53 = vsub.s32 4294967266, %v10080_v51  ;;  %v8056_v7 = vmin.u32 %v1026_v0, %v10057_v2  ;;  %v1103_v58 = vsel %vm1097_vm0, %v1100_v21, %v1102_v22  ;;  %v1302_v44 = vshrl.u32 %v17838_v9, %v10085_v16 }
 0x167   :  { %v1123_v5 = vsel %vm1121_vm6, %v1122_v46, %v10031_v37  ;;  %v1226_v10 = vadd.s32 1, %v10062_v63  ;;  %v1299_v11 = vshrl.u32 %v17837_v36, %v10085_v16  ;;  %v1207_v54 = vsel %vm1201_vm4, %v1204_v47, %v1206_v62 }
 0x168   :  { %vm1225_vm7 = vc.u32 %v10071_v29, %v10061_v30  ;;  %v10126_v52 = vshrl.u32 %v1284_v48, 5  ;;  %v1301_v0 = vshll.u32 %v17837_v36, %v1286_v15  ;;  %v1293_v37 = vshrl.u32 %v17840_v25, %v10085_v16 }
 0x169   :  { %v1296_v28 = vshrl.u32 %v17839_v35, %v10085_v16  ;;  %v1298_v13 = vshll.u32 %v17839_v35, %v1286_v15  ;;  %v1380_v21 = vshrl.u32 %v1379_v23, 23  ;;  %v1028_v22 = vclz %v8056_v7 }
 0x16a   :  { %v1119_v32 = vmul.u32 %v10007_v27, %v1103_v58  ;;  %v1290_v46 = vshrl.u32 %v17830_v59, %v10085_v16  ;;  %v1303_v55 = vor.u32 %v1302_v44, %v1301_v0  ;;  %v1227_v48 = vsel %vm1225_vm7, %v1226_v10, %v10062_v63 }
 0x16b   :  { %v1292_v47 = vshll.u32 %v17830_v59, %v1286_v15  ;;  %v1295_v62 = vshll.u32 %v17840_v25, %v1286_v15  ;;  %v1300_v17 = vor.u32 %v1299_v11, %v1298_v13  ;;  %v1223_v34 = vmul.u32 %v10049_v19, %v1207_v54 }
 0x16c   :  { %v10140_v57 = vadd.s32 %v1123_v5, %v1119_v32  ;;  %v17850_v23 = vand.u32 2147483647, %v9893_v33  ;;  %v1289_v27 = vshll.u32 %v17841_v8, %v1286_v15  ;;  %vm1307_vm8 = vcmp.lt.s32.totalorder %v10126_v52, 4 }
 0x16d   :  { %v10146_v58 = vor.u32 %v1293_v37, %v1292_v47  ;;  %v1297_v30 = vor.u32 %v1296_v28, %v1295_v62  ;;  %v8071_v63 = vadd.s32 4294967169, %v1380_v21  ;;  %v10149_v44 = vor.u32 4788187, %v830_v26  ;;  %v10162_v37 = vpop.f32.mrb[16].mxu0 }
 0x16e   :  { %v1279_v7 = vand.u32 8388607, %v17850_v23  ;;  %v10151_v10 = vadd.s32 %v1227_v48, %v1223_v34  ;;  %v10153_v11 = vor.u32 %v1290_v46, %v1289_v27  ;;  %v1317_v19 = vsel %vm1307_vm8, %v1303_v55, 1326507024  ;;  %17851 = vst [vmem:[#allocation31_spill] sm:$0xff] %v10162_v37 }
 0x16f   :  { %v10157_v5 = vor.u32 %v826_v3, %v825_v42  ;;  %v928_v54 = vsub.s32 32, %v10080_v51  ;;  %v8057_v15 = vadd.s32 4294967294, %v1028_v22  ;;  %v1313_v0 = vsel %vm1307_vm8, %v1300_v17, 920167782 }
 0x170   :  { %v10164_v28 = vadd.s32 127, %v932_v53  ;;  %vm1304_vm9 = vcmp.lt.s32.totalorder %v10126_v52, 1  ;;  %vm1306_vm10 = vcmp.lt.s32.totalorder %v10126_v52, 3  ;;  %v1386_v34 = vadd.s32 1, %v8071_v63 }
 0x171   :  { %v1125_v26 = vadd.s32 536870912, %v10140_v57  ;;  %v1280_v13 = vor.u32 8388608, %v1279_v7  ;;  %v1316_v42 = vsel %vm1304_vm9, %v10146_v58, %v1297_v30  ;;  %v1318_v3 = vsel %vm1306_vm10, %v1300_v17, %v1317_v19 }
 0x172   :  { %v1229_v21 = vadd.s32 536870912, %v10151_v10  ;;  %v1312_v53 = vsel %vm1304_vm9, %v10153_v11, %v10146_v58  ;;  %v1314_v22 = vsel %vm1306_vm10, %v1297_v30, %v1313_v0  ;;  %vm1387_vm11 = vcmp.gt.s32.totalorder %v1386_v34, 0 }
 0x173   :  { %vm8058_vm12 = vcmp.lt.s32.totalorder %v8057_v15, 0  ;;  %vm1305_vm13 = vcmp.lt.s32.totalorder %v10126_v52, 2  ;;  %v17494_v46 = vand.u32 2147483647, %v10078_v12  ;;  %v10185_v17 = vshrl.u32 %v10100_v4, %v928_v54 }
 0x174   :  { %v1319_v55 = vsel %vm1305_vm13, %v1316_v42, %v1318_v3  ;;  %v1388_v48 = vsel %vm1387_vm11, %v1386_v34, 0  ;;  %v10191_v47 = vadd.f32 %v9524_v31, %v9359_v40  ;;  %v1315_v23 = vsel %vm1305_vm13, %v1312_v53, %v1314_v22 }
 0x175   :  { %v10196_v7 = vshll.u32 %v1280_v13, 8  ;;  %v1390_v27 = vand.u32 31, %v1388_v48  ;;  %v10198_v63 = vsel %vm8058_vm12, 0, %v8057_v15  ;;  %v10200_v4 = vshrl.u32 %v1125_v26, 30 }
 0x176   :  { %17852 = vst [vmem:[#allocation32_spill] sm:$0xff] %v10191_v47  ;;  %v10202_v19 = vshrl.u32 %v1229_v21, 30  ;;  %v1288_v54 = vshrl.u32 %v17841_v8, %v10085_v16  ;;  %v1383_v34 = vand.u32 8388607, %v17494_v46  ;;  %v1483_v3 = vand.u32 2139095040, %v10191_v47 }
 0x177   :  { %17853 = vst [vmem:[#allocation33_spill] sm:$0xff] %v10200_v4  ;;  %v10207_v31 = vmul.u32.u64.low %v10196_v7, %v1319_v55  ;;  %v10208_v0 = vmul.u32.u64.high %v10196_v7, %v1319_v55, %v10207_v31  ;;  %v10212_v42 = vsub.s32 32, %v1390_v27  ;;  %v1393_v26 = vshll.u32 %v17841_v8, %v1390_v27 }
 0x178   :  { %v10215_v13 = vmul.u32.u64.low %v10196_v7, %v1315_v23  ;;  %v10216_v15 = vmul.u32.u64.high %v10196_v7, %v1315_v23, %v10215_v13  ;;  %v1396_v21 = vshll.u32 %v17830_v59, %v1390_v27  ;;  %v10228_v55 = vshrl.u32 %v1388_v48, 5 }
 0x179   :  { %v1394_v16 = vshrl.u32 %v17830_v59, %v10212_v42  ;;  %v1397_v53 = vshrl.u32 %v17840_v25, %v10212_v42  ;;  %v1400_v22 = vshrl.u32 %v17839_v35, %v10212_v42  ;;  %v1399_v23 = vshll.u32 %v17840_v25, %v1390_v27 }
 0x17a   :  { %v1402_v31 = vshll.u32 %v17839_v35, %v1390_v27  ;;  %v1403_v46 = vshrl.u32 %v17837_v36, %v10212_v42  ;;  %v1309_v32 = vsel %vm1307_vm8, %v1297_v30, 2102212464  ;;  %v1384_v62 = vor.u32 8388608, %v1383_v34 }
 0x17b   :  { %v10236_v37 = vor.u32 %v1394_v16, %v1393_v26  ;;  %v10238_v33 = vor.u32 %v1397_v53, %v1396_v21  ;;  %v1401_v12 = vor.u32 %v1400_v22, %v1399_v23  ;;  %v1405_v48 = vshll.u32 %v17837_v36, %v1390_v27 }
 0x17c   :  { %v1404_v29 = vor.u32 %v1403_v46, %v1402_v31  ;;  %v1406_v49 = vshrl.u32 %v17838_v9, %v10212_v42  ;;  %v1036_v38 = vsub.s32 4294967266, %v10198_v63  ;;  %v1127_v40 = vshll.u32 %v10200_v4, 30 }
 0x17d   :  { %v1231_v25 = vshll.u32 %v10202_v19, 30  ;;  %v1484_v35 = vshrl.u32 %v1483_v3, 23  ;;  %v1308_v30 = vsel %vm1304_vm9, %v1288_v54, %v10153_v11  ;;  %vm1408_vm14 = vcmp.lt.s32.totalorder %v10228_v55, 1 }
 0x17e   :  { %v1407_v34 = vor.u32 %v1406_v49, %v1405_v48  ;;  %vm1411_vm15 = vcmp.lt.s32.totalorder %v10228_v55, 4  ;;  %v1310_v46 = vsel %vm1306_vm10, %v10146_v58, %v1309_v32  ;;  %vm1410_vm0 = vcmp.lt.s32.totalorder %v10228_v55, 3 }
 0x17f   :  { %v1416_v27 = vsel %vm1408_vm14, %v10236_v37, %v10238_v33  ;;  %v1417_v26 = vsel %vm1411_vm15, %v1404_v29, 920167782  ;;  %vm1409_vm1 = vcmp.lt.s32.totalorder %v10228_v55, 2  ;;  %v1420_v11 = vsel %vm1408_vm14, %v10238_v33, %v1401_v12 }
 0x180   :  { %v1418_v49 = vsel %vm1410_vm0, %v1401_v12, %v1417_v26  ;;  %v10267_v58 = vshll.u32 %v1384_v62, 8  ;;  %v1330_v32 = vadd.s32 1, %v10216_v15  ;;  %v1421_v3 = vsel %vm1411_vm15, %v1407_v34, 1326507024 }
 0x181   :  { %v1419_v54 = vsel %vm1409_vm1, %v1416_v27, %v1418_v49  ;;  %v8075_v16 = vadd.s32 4294967169, %v1484_v35  ;;  %v10275_v21 = vsub.s32 %v10140_v57, %v1127_v40  ;;  %v10278_v53 = vsub.s32 %v10151_v10, %v1231_v25  ;;  %v10293_v40 = vpop.f32.mrb[17].mxu0 }
 0x182   :  { %vm1329_vm2 = vc.u32 %v10208_v0, %v10215_v13  ;;  %v1422_v62 = vsel %vm1410_vm0, %v1404_v29, %v1421_v3  ;;  %v1311_v22 = vsel %vm1305_vm13, %v1308_v30, %v1310_v46  ;;  %17854 = vst [vmem:[#allocation34_spill] sm:$0xff] %v10293_v40  ;;  %v832_v25 = vand.u32 2147483647, %v10149_v44 }
 0x183   :  { %v1423_v23 = vsel %vm1409_vm1, %v1420_v11, %v1422_v62  ;;  %v10289_v35 = vmul.u32.u64.low %v10267_v58, %v1419_v54  ;;  %v10290_v31 = vmul.u32.u64.high %v10267_v58, %v1419_v54, %v10289_v35  ;;  %v929_v57 = vshll.u32 %v9880_v1, %v10080_v51 }
 0x184   :  { %v10299_v29 = vmul.u32.u64.low %v10267_v58, %v1423_v23  ;;  %v10300_v10 = vmul.u32.u64.high %v10267_v58, %v1423_v23, %v10299_v29  ;;  %v17855_v52 = vshll.u32 %v10164_v28, 23  ;;  %v1032_v30 = vsub.s32 32, %v10198_v63 }
 0x185   :  { %v1331_v34 = vsel %vm1329_vm2, %v1330_v32, %v10216_v15  ;;  %v1490_v46 = vadd.s32 1, %v8075_v16  ;;  %v931_v27 = vor.u32 %v10185_v17, %v929_v57  ;;  %v1016_v44 = vadd.s32 %v9863_v20, %v9869_v14 }
 0x186   :  { %v935_v48 = vor.u32 4788187, %v17855_v52  ;;  %v1130_v26 = vsub.s32 0, %v10275_v21  ;;  %v1327_v1 = vmul.u32 %v10196_v7, %v1311_v22  ;;  %vm17597_vm3 = vcmp.lt.s32.totalorder %v9364_v43, 0 }
 0x187   :  { %vm546_vm4 = vcmp.lt.s32.totalorder %v9367_v45, 0  ;;  %v1037_v51 = vadd.s32 127, %v1036_v38  ;;  %v1234_v28 = vsub.s32 0, %v10278_v53  ;;  %v1413_v15 = vsel %vm1411_vm15, %v1401_v12, 2102212464 }
 0x188   :  { %vm1491_vm5 = vcmp.gt.s32.totalorder %v1490_v46, 0  ;;  %v17856_v17 = vand.u32 2147483647, %v9889_v18  ;;  %v17857_v49 = vcvt.s32.f32 %v9887_v24  ;;  %vm17596_vm6 = vcmp.lt.s32.totalorder %v9378_v56, 0 }
 0x189   :  { %v10321_v14 = vadd.s32 %v1331_v34, %v1327_v1  ;;  %v1392_v7 = vshrl.u32 %v17841_v8, %v10212_v42  ;;  %v1492_v11 = vsel %vm1491_vm5, %v1490_v46, 0  ;;  %v17858_v38 = vand.u32 2147483647, %v10044_v61 }
 0x18a   :  { %v627_v20 = vmul.f32 %v17857_v49, %v17856_v17  ;;  %v17859_v32 = vcvt.s32.f32 %v9895_v39  ;;  %v17860_v12 = vcvt.s32.f32 %v10157_v5  ;;  %v936_v18 = vand.u32 2147483647, %v935_v48  ;;  %v17869_v49 = vld [vmem:[#allocation15_spill] sm:$0xff] }
 0x18b   :  { %v1034_v16 = vshrl.u32 %v1016_v44, %v1032_v30  ;;  %v8060_v24 = vmin.u32 %v1130_v26, %v10275_v21  ;;  %v1412_v62 = vsel %vm1408_vm14, %v1392_v7, %v10236_v37  ;;  %v1414_v42 = vsel %vm1410_vm0, %v10238_v33, %v1413_v15  ;;  %v17862_v26 = vld [vmem:[#allocation22_spill] sm:$0xff] }
 0x18c   :  { %v731_v54 = vmul.f32 %v17859_v32, %v17858_v38  ;;  %v835_v3 = vmul.f32 %v17860_v12, %v832_v25  ;;  %v1494_v22 = vand.u32 31, %v1492_v11  ;;  %v938_v61 = vcvt.s32.f32 %v931_v27 }
 0x18d   :  { %v1038_v23 = vshll.u32 %v1037_v51, 23  ;;  %v8064_v39 = vmin.u32 %v1234_v28, %v10278_v53  ;;  %v1434_v5 = vadd.s32 1, %v10290_v31  ;;  %v628_v25 = vxor.u32 2147483648, %v627_v20 }
 0x18e   :  { %v1033_v57 = vshll.u32 %v10057_v2, %v10198_v63  ;;  %v1333_v29 = vadd.s32 536870912, %v10321_v14  ;;  %vm1433_vm7 = vc.u32 %v10300_v10, %v10289_v35  ;;  %v732_v37 = vxor.u32 2147483648, %v731_v54 }
 0x18f   :  { %v836_v52 = vxor.u32 2147483648, %v835_v3  ;;  %v10345_v48 = vmul.f32 %v938_v61, %v936_v18  ;;  %v1415_v33 = vsel %vm1409_vm1, %v1412_v62, %v1414_v42  ;;  %vm754_vm8 = vcmp.lt.s32.totalorder %v9447_v6, 0 }
 0x190   :  { %v1035_v30 = vor.u32 %v1034_v16, %v1033_v57  ;;  %v1132_v34 = vclz %v8060_v24  ;;  %v10350_v46 = vsub.s32 32, %v1494_v22  ;;  %v1039_v27 = vor.u32 4788187, %v1038_v23 }
 0x191   :  { %v1236_v2 = vclz %v8064_v39  ;;  %v1435_v63 = vsel %vm1433_vm7, %v1434_v5, %v10290_v31  ;;  %v10355_v44 = vadd.f32 %v9605_v60, %v9361_v41  ;;  %v17863_v1 = vxor.u32 2147483648, %v17862_v26 }
 0x192   :  { %v10366_v51 = vsel %vm546_vm4, %v628_v25, %v627_v20  ;;  %v10368_v28 = vshrl.u32 %v1333_v29, 30  ;;  %v1431_v15 = vmul.u32 %v10267_v58, %v1415_v33  ;;  %v10373_v31 = vsel %vm17596_vm6, %v732_v37, %v731_v54 }
 0x193   :  { %17861 = vst [vmem:[#allocation35_spill] sm:$0xff] %v10355_v44  ;;  %v10362_v55 = vsel %vm17597_vm3, %v17863_v1, %v17862_v26  ;;  %17865 = vst [vmem:[#allocation36_spill] sm:$0xff] %v10366_v51  ;;  %v10377_v60 = vsel %vm754_vm8, %v836_v52, %v835_v3  ;;  %vm962_vm9 = vcmp.lt.s32.totalorder %v17869_v49, 0  ;;  %v1046_v7 = vsub.s32 4, %v10002_v50  ;;  %v10412_v26 = vpop.f32.mrb[18].mxu0 }
 0x194   :  { %17864 = vst [vmem:[#allocation22_spill] sm:$0xff] %v10362_v55  ;;  %17866 = vst [vmem:[#allocation37_spill] sm:$0xff] %v10368_v28  ;;  %v1042_v20 = vcvt.s32.f32 %v1035_v30  ;;  %v8061_v38 = vadd.s32 4294967294, %v1132_v34  ;;  %v10382_v32 = vadd.s32 %v1435_v63, %v1431_v15  ;;  %v1507_v58 = vshrl.u32 %v17837_v36, %v10350_v46 }
 0x195   :  { %17867 = vst [vmem:[#allocation38_spill] sm:$0xff] %v10373_v31  ;;  %17868 = vst [vmem:[#allocation39_spill] sm:$0xff] %v10377_v60  ;;  %v1040_v12 = vand.u32 2147483647, %v1039_v27  ;;  %v8065_v54 = vadd.s32 4294967294, %v1236_v2  ;;  %v1510_v18 = vshrl.u32 %v17838_v9, %v10350_v46  ;;  %v1587_v3 = vand.u32 2139095040, %v10355_v44 }
 0x196   :  { %v1335_v16 = vshll.u32 %v10368_v28, 30  ;;  %v17506_v24 = vand.u32 2147483647, %v10191_v47  ;;  %v1498_v62 = vshrl.u32 %v17830_v59, %v10350_v46  ;;  %v17870_v42 = vmov 2102212464   ;;  %17872 = vst [vmem:[#allocation40_spill] sm:$0xff] %v10412_v26 }
 0x197   :  { %v1506_v61 = vshll.u32 %v17870_v42, %v1494_v22  ;;  %v10394_v23 = vshrl.u32 %v1492_v11, 5  ;;  %v17871_v39 = vmov 2131351028   ;;  %v1504_v25 = vshrl.u32 %v17870_v42, %v10350_v46 }
 0x198   :  { %v1501_v5 = vshrl.u32 %v17871_v39, %v10350_v46  ;;  %v1509_v57 = vshll.u32 %v17837_v36, %v1494_v22  ;;  %vm8062_vm10 = vcmp.lt.s32.totalorder %v8061_v38, 0  ;;  %v1437_v29 = vadd.s32 536870912, %v10382_v32 }
 0x199   :  { %v1497_v37 = vshll.u32 %v17841_v8, %v1494_v22  ;;  %v1508_v52 = vor.u32 %v1507_v58, %v1506_v61  ;;  %v1500_v33 = vshll.u32 %v17830_v59, %v1494_v22  ;;  %v1503_v30 = vshll.u32 %v17871_v39, %v1494_v22 }
 0x19a   :  { %v1511_v11 = vor.u32 %v1510_v18, %v1509_v57  ;;  %v1588_v34 = vshrl.u32 %v1587_v3, 23  ;;  %vm8066_vm11 = vcmp.lt.s32.totalorder %v8065_v54, 0  ;;  %v10406_v27 = vsub.s32 %v10321_v14, %v1335_v16 }
 0x19b   :  { %v1487_v2 = vand.u32 8388607, %v17506_v24  ;;  %v10410_v63 = vor.u32 %v1498_v62, %v1497_v37  ;;  %v10414_v1 = vor.u32 %v1501_v5, %v1500_v33  ;;  %v1505_v15 = vor.u32 %v1504_v25, %v1503_v30  ;;  %v17873_v5 = vld [vmem:[#allocation5_spill] sm:$0xff] }
 0x19c   :  { %vm1515_vm12 = vcmp.lt.s32.totalorder %v10394_v23, 4  ;;  %v8079_v58 = vadd.s32 4294967169, %v1588_v34  ;;  %v10417_v22 = vmul.f32 %v1042_v20, %v1040_v12  ;;  %v10422_v14 = vsel %vm962_vm9, %v1046_v7, %v10002_v50  ;;  %v17874_v20 = vld [vmem:[#allocation16_spill] sm:$0xff] }
 0x19d   :  { %v10424_v18 = vshrl.u32 %v1437_v29, 30  ;;  %v1521_v3 = vsel %vm1515_vm12, %v1508_v52, 920167782  ;;  %v10429_v16 = vsel %vm8062_vm10, 0, %v8061_v38  ;;  %v1525_v62 = vsel %vm1515_vm12, %v1511_v11, 1326507024 }
 0x19e   :  { %v1594_v61 = vadd.s32 1, %v8079_v58  ;;  %v10435_v12 = vadd.f32 %v17874_v20, %v17873_v5  ;;  %v10438_v25 = vsel %vm8066_vm11, 0, %v8065_v54  ;;  %v1488_v50 = vor.u32 8388608, %v1487_v2 }
 0x19f   :  { %vm1512_vm13 = vcmp.lt.s32.totalorder %v10394_v23, 1  ;;  %vm1514_vm14 = vcmp.lt.s32.totalorder %v10394_v23, 3  ;;  %v1338_v7 = vsub.s32 0, %v10406_v27  ;;  %v1439_v29 = vshll.u32 %v10424_v18, 30 }
 0x1a0   :  { %17875 = vst [vmem:[#allocation5_spill] sm:$0xff] %v10435_v12  ;;  %v1520_v38 = vsel %vm1512_vm13, %v10410_v63, %v10414_v1  ;;  %v1522_v57 = vsel %vm1514_vm14, %v1505_v15, %v1521_v3  ;;  %vm1595_vm15 = vcmp.gt.s32.totalorder %v1594_v61, 0  ;;  %v1524_v54 = vsel %vm1512_vm13, %v10414_v1, %v1505_v15 }
 0x1a1   :  { %v1526_v37 = vsel %vm1514_vm14, %v1508_v52, %v1525_v62  ;;  %v17507_v33 = vand.u32 2147483647, %v10355_v44  ;;  %vm1513_vm0 = vcmp.lt.s32.totalorder %v10394_v23, 2  ;;  %v1596_v34 = vsel %vm1595_vm15, %v1594_v61, 0 }
 0x1a2   :  { %v1523_v3 = vsel %vm1513_vm0, %v1520_v38, %v1522_v57  ;;  %v1691_v20 = vand.u32 2139095040, %v10435_v12  ;;  %v1244_v52 = vsub.s32 4294967266, %v10438_v25  ;;  %v1527_v62 = vsel %vm1513_vm0, %v1524_v54, %v1526_v37 }
 0x1a3   :  { %v10467_v24 = vshll.u32 %v1488_v50, 8  ;;  %v1598_v17 = vand.u32 31, %v1596_v34  ;;  %v10470_v11 = vmin.u32 %v1338_v7, %v10406_v27  ;;  %v10473_v61 = vsub.s32 %v10382_v32, %v1439_v29 }
 0x1a4   :  { %v1496_v58 = vshrl.u32 %v17841_v8, %v10350_v46  ;;  %v1591_v38 = vand.u32 8388607, %v17507_v33  ;;  %v1517_v57 = vsel %vm1515_vm12, %v1505_v15, 2102212464  ;;  %v10492_v29 = vshrl.u32 %v1596_v34, 5 }
 0x1a5   :  { %v10482_v54 = vmul.u32.u64.low %v10467_v24, %v1523_v3  ;;  %v10483_v50 = vmul.u32.u64.high %v10467_v24, %v1523_v3, %v10482_v54  ;;  %v10486_v37 = vsub.s32 32, %v1598_v17  ;;  %v1692_v46 = vshrl.u32 %v1691_v20, 23 }
 0x1a6   :  { %v10489_v7 = vmul.u32.u64.low %v10467_v24, %v1527_v62  ;;  %v10490_v32 = vmul.u32.u64.high %v10467_v24, %v1527_v62, %v10489_v7  ;;  %v1601_v30 = vshll.u32 %v17841_v8, %v1598_v17  ;;  %v1604_v15 = vshll.u32 %v17830_v59, %v1598_v17 }
 0x1a7   :  { %v1602_v33 = vshrl.u32 %v17830_v59, %v10486_v37  ;;  %v1605_v3 = vshrl.u32 %v17871_v39, %v10486_v37  ;;  %v1607_v2 = vshll.u32 %v17871_v39, %v1598_v17  ;;  %v1608_v28 = vshrl.u32 %v17870_v42, %v10486_v37 }
 0x1a8   :  { %v1610_v62 = vshll.u32 %v17870_v42, %v1598_v17  ;;  %v1611_v34 = vshrl.u32 %v17837_v36, %v10486_v37  ;;  %v1613_v4 = vshll.u32 %v17837_v36, %v1598_v17  ;;  %v1614_v31 = vshrl.u32 %v17838_v9, %v10486_v37 }
 0x1a9   :  { %v1603_v20 = vor.u32 %v1602_v33, %v1601_v30  ;;  %v1606_v7 = vor.u32 %v1605_v3, %v1604_v15  ;;  %v1592_v56 = vor.u32 8388608, %v1591_v38  ;;  %v1609_v55 = vor.u32 %v1608_v28, %v1607_v2 }
 0x1aa   :  { %v1612_v43 = vor.u32 %v1611_v34, %v1610_v62  ;;  %v8083_v60 = vadd.s32 4294967169, %v1692_v46  ;;  %v1516_v6 = vsel %vm1512_vm13, %v1496_v58, %v10410_v63  ;;  %v1615_v51 = vor.u32 %v1614_v31, %v1613_v4  ;;  %v10544_v34 = vpop.f32.mrb[19].mxu0 }
 0x1ab   :  { %vm1616_vm1 = vcmp.lt.s32.totalorder %v10492_v29, 1  ;;  %vm1619_vm2 = vcmp.lt.s32.totalorder %v10492_v29, 4  ;;  %v1442_v33 = vsub.s32 0, %v10473_v61  ;;  %vm1618_vm5 = vcmp.lt.s32.totalorder %v10492_v29, 3  ;;  %17879 = vst [vmem:[#allocation16_spill] sm:$0xff] %v10544_v34  ;;  %v17885_v34 = vld [vmem:[#allocation28_spill] sm:$0xff] }
 0x1ac   :  { %v1624_v17 = vsel %vm1616_vm1, %v1603_v20, %v1606_v7  ;;  %v1625_v28 = vsel %vm1619_vm2, %v1612_v43, 920167782  ;;  %v1518_v30 = vsel %vm1514_vm14, %v10414_v1, %v1517_v57  ;;  %vm1617_vm7 = vcmp.lt.s32.totalorder %v10492_v29, 2 }
 0x1ad   :  { %v1626_v4 = vsel %vm1618_vm5, %v1609_v55, %v1625_v28  ;;  %v1628_v31 = vsel %vm1616_vm1, %v1606_v7, %v1609_v55  ;;  %v1629_v2 = vsel %vm1619_vm2, %v1615_v51, 1326507024  ;;  %v10532_v58 = vshll.u32 %v1592_v56, 8  ;;  %v17880_v51 = vld [vmem:[#allocation12_spill] sm:$0xff] }
 0x1ae   :  { %v1627_v63 = vsel %vm1617_vm7, %v1624_v17, %v1626_v4  ;;  %v1698_v38 = vadd.s32 1, %v8083_v60  ;;  %v17876_v46 = vand.u32 2147483647, %v17869_v49  ;;  %v1245_v57 = vadd.s32 127, %v1244_v52  ;;  %v17881_v4 = vld [vmem:[#allocation26_spill] sm:$0xff] }
 0x1af   :  { %v1340_v15 = vclz %v10470_v11  ;;  %v1538_v3 = vadd.s32 1, %v10483_v50  ;;  %v1630_v62 = vsel %vm1618_vm5, %v1612_v43, %v1629_v2  ;;  %vm17593_vm11 = vcmp.lt.s32.totalorder %v17880_v51, 0  ;;  %v17882_v2 = vld [vmem:[#allocation25_spill] sm:$0xff] }
 0x1b0   :  { %vm10536_vm10 = vcmp.le.f32.partialorder %v17876_v46, 0.7853982  ;;  %vm1537_vm12 = vc.u32 %v10490_v32, %v10482_v54  ;;  %v1631_v56 = vsel %vm1617_vm7, %v1628_v31, %v1630_v62  ;;  %v8072_v11 = vmin.u32 %v1442_v33, %v10473_v61  ;;  %v17884_v62 = vld [vmem:[#allocation29_spill] sm:$0xff] }
 0x1b1   :  { %v10552_v60 = vmul.u32.u64.low %v10532_v58, %v1627_v63  ;;  %v10553_v52 = vmul.u32.u64.high %v10532_v58, %v1627_v63, %v10552_v60  ;;  %v1519_v43 = vsel %vm1513_vm0, %v1516_v6, %v1518_v30  ;;  %v1120_v46 = vadd.s32 %v17882_v2, %v17881_v4 }
 0x1b2   :  { %v10560_v17 = vmul.u32.u64.low %v10532_v58, %v1631_v56  ;;  %v10561_v28 = vmul.u32.u64.high %v10532_v58, %v1631_v56, %v10560_v17  ;;  %v17883_v45 = vsub.s32 4294967266, %v10429_v16  ;;  %v1224_v63 = vadd.s32 %v17885_v34, %v17884_v62 }
 0x1b3   :  { %vm1699_vm13 = vcmp.gt.s32.totalorder %v1698_v38, 0  ;;  %v1246_v47 = vshll.u32 %v1245_v57, 23  ;;  %v1539_v33 = vsel %vm1537_vm12, %v1538_v3, %v10483_v50  ;;  %v1621_v6 = vsel %vm1619_vm2, %v1609_v55, 2102212464 }
 0x1b4   :  { %v1141_v31 = vadd.s32 127, %v17883_v45  ;;  %v1700_v23 = vsel %vm1699_vm13, %v1698_v38, 0  ;;  %v17886_v30 = vxor.u32 2147483648, %v10417_v22  ;;  %v1137_v45 = vshll.u32 %v10275_v21, %v10429_v16 }
 0x1b5   :  { %v1535_v17 = vmul.u32 %v10467_v24, %v1519_v43  ;;  %v1600_v57 = vshrl.u32 %v17841_v8, %v10486_v37  ;;  %v17887_v50 = vsub.s32 32, %v10429_v16  ;;  %v17888_v55 = vsub.s32 32, %v10438_v25 }
 0x1b6   :  { %v1045_v56 = vsel %vm962_vm9, %v17886_v30, %v10417_v22  ;;  %v8069_v34 = vadd.s32 4294967294, %v1340_v15  ;;  %v1444_v4 = vclz %v8072_v11  ;;  %v1622_v21 = vsel %vm1618_vm5, %v1606_v7, %v1621_v6 }
 0x1b7   :  { %v1138_v3 = vshrl.u32 %v1120_v46, %v17887_v50  ;;  %v1242_v38 = vshrl.u32 %v1224_v63, %v17888_v55  ;;  %v10586_v2 = vadd.s32 %v1539_v33, %v1535_v17  ;;  %v1620_v22 = vsel %vm1616_vm1, %v1600_v57, %v1603_v20  ;;  %v17889_v20 = vld [vmem:[#allocation19_spill] sm:$0xff] }
 0x1b8   :  { %v1702_v24 = vand.u32 31, %v1700_v23  ;;  %v1142_v43 = vshll.u32 %v1141_v31, 23  ;;  %v1241_v37 = vshll.u32 %v10278_v53, %v10438_v25  ;;  %v1247_v16 = vor.u32 4788187, %v1246_v47 }
 0x1b9   :  { %v1642_v46 = vadd.s32 1, %v10553_v52  ;;  %v1048_v15 = vsel %vm10536_vm10, %v17869_v49, %v1045_v56  ;;  %v1049_v11 = vsel %vm10536_vm10, 0, %v10422_v14  ;;  %vm1641_vm9 = vc.u32 %v10561_v28, %v10552_v60 }
 0x1ba   :  { %v10605_v7 = vadd.f32 %v17889_v20, %v9361_v41  ;;  %v17891_v47 = vxor.u32 2147483648, %v10345_v48  ;;  %v10614_v25 = vor.u32 %v1138_v3, %v1137_v45  ;;  %v1243_v31 = vor.u32 %v1242_v38, %v1241_v37 }
 0x1bb   :  { %v1623_v14 = vsel %vm1617_vm7, %v1620_v22, %v1622_v21  ;;  %vm8070_vm14 = vcmp.lt.s32.totalorder %v8069_v34, 0  ;;  %v8073_v1 = vadd.s32 4294967294, %v1444_v4  ;;  %v1541_v62 = vadd.s32 536870912, %v10586_v2 }
 0x1bc   :  { %17890 = vst [vmem:[#allocation26_spill] sm:$0xff] %v10605_v7  ;;  %v10612_v53 = vsel %vm17593_vm11, %v17891_v47, %v10345_v48  ;;  %v10619_v63 = vsub.s32 32, %v1702_v24  ;;  %8730 = vcosq.f32 %v1048_v15  ;;  %v10621_v33 = vor.u32 4788187, %v1142_v43 }
 0x1bd   :  { %17892 = vst [vmem:[#allocation25_spill] sm:$0xff] %v10612_v53  ;;  %v1248_v6 = vand.u32 2147483647, %v1247_v16  ;;  %v1643_v30 = vsel %vm1641_vm9, %v1642_v46, %v10553_v52  ;;  %8732 = vsinq.f32 %v1048_v15  ;;  %v10624_v48 = vadd.s32 3, %v1049_v11 }
 0x1be   :  { %v1639_v56 = vmul.u32 %v10532_v58, %v1623_v14  ;;  %v1795_v29 = vand.u32 2139095040, %v10605_v7  ;;  %v1250_v17 = vcvt.s32.f32 %v1243_v31  ;;  %v10630_v50 = vsel %vm8070_vm14, 0, %v8069_v34 }
 0x1bf   :  { %17893 = vst [vmem:[#allocation29_spill] sm:$0xff] %v10624_v48  ;;  %vm8074_vm15 = vcmp.lt.s32.totalorder %v8073_v1, 0  ;;  %v10632_v3 = vshrl.u32 %v1541_v62, 30  ;;  %v1718_v52 = vshrl.u32 %v17838_v9, %v10619_v63  ;;  %v10643_v4 = vadd.s32 %v10215_v13, %v10208_v0 }
 0x1c0   :  { %v10634_v55 = vadd.s32 %v1643_v30, %v1639_v56  ;;  %v10639_v58 = vmul.f32 %v1250_v17, %v1248_v6  ;;  %v17522_v22 = vand.u32 2147483647, %v10435_v12  ;;  %v1348_v34 = vsub.s32 4294967266, %v10630_v50 }
 0x1c1   :  { %17894 = vst [vmem:[#allocation28_spill] sm:$0xff] %v10632_v3  ;;  %v1715_v21 = vshrl.u32 %v17837_v36, %v10619_v63  ;;  %v1717_v43 = vshll.u32 %v17837_v36, %v1702_v24  ;;  %v1796_v37 = vshrl.u32 %v1795_v29, 23  ;;  %v10650_v16 = vsel %vm8074_vm15, 0, %v8073_v1 }
 0x1c2   :  { %v10652_v46 = vshrl.u32 %v1700_v23, 5  ;;  %v1709_v15 = vshrl.u32 %v17871_v39, %v10619_v63  ;;  %v1712_v0 = vshrl.u32 %v17870_v42, %v10619_v63  ;;  %v1543_v13 = vshll.u32 %v10632_v3, 30  ;;  %v17900_v3 = vld [vmem:[#allocation27_spill] sm:$0xff] }
 0x1c3   :  { %v1645_v11 = vadd.s32 536870912, %v10634_v55  ;;  %v1714_v20 = vshll.u32 %v17870_v42, %v1702_v24  ;;  %v1719_v47 = vor.u32 %v1718_v52, %v1717_v43  ;;  %v1695_v31 = vand.u32 8388607, %v17522_v22 }
 0x1c4   :  { %v1706_v23 = vshrl.u32 %v17830_v59, %v10619_v63  ;;  %v1708_v14 = vshll.u32 %v17830_v59, %v1702_v24  ;;  %v1711_v1 = vshll.u32 %v17871_v39, %v1702_v24  ;;  %v1452_v6 = vsub.s32 4294967266, %v10650_v16 }
 0x1c5   :  { %v1716_v30 = vor.u32 %v1715_v21, %v1714_v20  ;;  %v8087_v56 = vadd.s32 4294967169, %v1796_v37  ;;  %v1705_v17 = vshll.u32 %v17841_v8, %v1702_v24  ;;  %vm1723_vm0 = vcmp.lt.s32.totalorder %v10652_v46, 4 }
 0x1c6   :  { %v10669_v29 = vpop.eup %8730  ;;  %v10672_v52 = vor.u32 %v1709_v15, %v1708_v14  ;;  %v1713_v43 = vor.u32 %v1712_v0, %v1711_v1  ;;  %v10678_v45 = vsub.s32 %v10586_v2, %v1543_v13  ;;  %v10680_v38 = vshrl.u32 %v1645_v11, 30  ;;  %v10694_v13 = vpop.f32.mrb[20].mxu0 }
 0x1c7   :  { %17895 = vst [vmem:[#allocation19_spill] sm:$0xff] %v10669_v29  ;;  %v10675_v22 = vpop.eup %8732  ;;  %v1733_v21 = vsel %vm1723_vm0, %v1719_v47, 1326507024  ;;  %v1802_v37 = vadd.s32 1, %v8087_v56  ;;  %v10684_v20 = vadd.s32 127, %v1348_v34  ;;  %v1432_v24 = vadd.s32 %v10289_v35, %v10300_v10  ;;  %17897 = vst [vmem:[#allocation42_spill] sm:$0xff] %v10694_v13 }
 0x1c8   :  { %17896 = vst [vmem:[#allocation41_spill] sm:$0xff] %v10675_v22  ;;  %v1696_v15 = vor.u32 8388608, %v1695_v31  ;;  %v10688_v0 = vor.u32 %v1706_v23, %v1705_v17  ;;  %vm1720_vm1 = vcmp.lt.s32.totalorder %v10652_v46, 1  ;;  %vm1722_vm2 = vcmp.lt.s32.totalorder %v10652_v46, 3 }
 0x1c9   :  { %v1729_v2 = vsel %vm1723_vm0, %v1716_v30, 920167782  ;;  %vm1803_vm5 = vcmp.gt.s32.totalorder %v1802_v37, 0  ;;  %v1453_v11 = vadd.s32 127, %v1452_v6  ;;  %v1732_v34 = vsel %vm1720_vm1, %v10672_v52, %v1713_v43 }
 0x1ca   :  { %v1734_v35 = vsel %vm1722_vm2, %v1716_v30, %v1733_v21  ;;  %v1804_v10 = vsel %vm1803_vm5, %v1802_v37, 0  ;;  %v1546_v31 = vsub.s32 0, %v10678_v45  ;;  %v1647_v23 = vshll.u32 %v10680_v38, 30  ;;  %v17898_v37 = vld [vmem:[#allocation24_spill] sm:$0xff] }
 0x1cb   :  { %v1806_v14 = vand.u32 31, %v1804_v10  ;;  %vm1721_vm7 = vcmp.lt.s32.totalorder %v10652_v46, 2  ;;  %v1728_v6 = vsel %vm1720_vm1, %v10688_v0, %v10672_v52  ;;  %v1730_v30 = vsel %vm1722_vm2, %v1713_v43, %v1729_v2 }
 0x1cc   :  { %v1735_v17 = vsel %vm1721_vm7, %v1732_v34, %v1734_v35  ;;  %v10720_v62 = vadd.f32 %v17898_v37, %v17873_v5  ;;  %v1448_v57 = vsub.s32 32, %v10650_v16  ;;  %v1454_v1 = vshll.u32 %v1453_v11, 23 }
 0x1cd   :  { %v10716_v21 = vsub.s32 32, %v1806_v14  ;;  %v10723_v47 = vshll.u32 %v1696_v15, 8  ;;  %v10727_v53 = vadd.f32 %v17900_v3, %v9361_v41  ;;  %v8076_v2 = vmin.u32 %v1546_v31, %v10678_v45 }
 0x1ce   :  { %17899 = vst [vmem:[#allocation24_spill] sm:$0xff] %v10720_v62  ;;  %v10731_v56 = vsub.s32 %v10634_v55, %v1647_v23  ;;  %v1731_v34 = vsel %vm1721_vm7, %v1728_v6, %v1730_v30  ;;  %v10740_v15 = vshrl.u32 %v1804_v10, 5  ;;  %v1818_v31 = vshll.u32 %v17870_v42, %v1806_v14 }
 0x1cf   :  { %17901 = vst [vmem:[#allocation27_spill] sm:$0xff] %v10727_v53  ;;  %v10737_v37 = vmul.u32.u64.low %v10723_v47, %v1735_v17  ;;  %v10738_v51 = vmul.u32.u64.high %v10723_v47, %v1735_v17, %v10737_v37  ;;  %v1810_v3 = vshrl.u32 %v17830_v59, %v10716_v21  ;;  %v1813_v11 = vshrl.u32 %v17871_v39, %v10716_v21 }
 0x1d0   :  { %v1816_v55 = vshrl.u32 %v17870_v42, %v10716_v21  ;;  %v1819_v23 = vshrl.u32 %v17837_v36, %v10716_v21  ;;  %v10752_v6 = vmul.u32.u64.low %v10723_v47, %v1731_v34  ;;  %v10753_v30 = vmul.u32.u64.high %v10723_v47, %v1731_v34, %v10752_v6 }
 0x1d1   :  { %v1809_v10 = vshll.u32 %v17841_v8, %v1806_v14  ;;  %v1812_v17 = vshll.u32 %v17830_v59, %v1806_v14  ;;  %v1815_v37 = vshll.u32 %v17871_v39, %v1806_v14  ;;  %v1821_v29 = vshll.u32 %v17837_v36, %v1806_v14 }
 0x1d2   :  { %v1820_v35 = vor.u32 %v1819_v23, %v1818_v31  ;;  %v1822_v49 = vshrl.u32 %v17838_v9, %v10716_v21  ;;  %v1548_v22 = vclz %v8076_v2  ;;  %v1725_v48 = vsel %vm1723_vm0, %v1713_v43, 2102212464 }
 0x1d3   :  { %v17902_v34 = vand.u32 2147483647, %v10605_v7  ;;  %v10766_v13 = vor.u32 %v1810_v3, %v1809_v10  ;;  %v10768_v26 = vor.u32 %v1813_v11, %v1812_v17  ;;  %v1817_v40 = vor.u32 %v1816_v55, %v1815_v37 }
 0x1d4   :  { %v1823_v41 = vor.u32 %v1822_v49, %v1821_v29  ;;  %vm1827_vm10 = vcmp.lt.s32.totalorder %v10740_v15, 4  ;;  %v1449_v14 = vshll.u32 %v10473_v61, %v10650_v16  ;;  %v1650_v31 = vsub.s32 0, %v10731_v56  ;;  %v17903_v29 = vld [vmem:[#allocation20_spill] sm:$0xff] }
 0x1d5   :  { %v1799_v12 = vand.u32 8388607, %v17902_v34  ;;  %v1704_v2 = vshrl.u32 %v17841_v8, %v10619_v63  ;;  %v1833_v43 = vsel %vm1827_vm10, %v1820_v35, 920167782  ;;  %v1450_v23 = vshrl.u32 %v1432_v24, %v1448_v57  ;;  %v10790_v57 = vpop.f32.mrb[21].mxu0 }
 0x1d6   :  { %v1455_v3 = vor.u32 4788187, %v1454_v1  ;;  %v1837_v11 = vsel %vm1827_vm10, %v1823_v41, 1326507024  ;;  %v1899_v49 = vand.u32 2139095040, %v10720_v62  ;;  %vm1170_vm12 = vcmp.lt.s32.totalorder %v17903_v29, 0 }
 0x1d7   :  { %v1724_v61 = vsel %vm1720_vm1, %v1704_v2, %v10688_v0  ;;  %v1726_v63 = vsel %vm1722_vm2, %v10672_v52, %v1725_v48  ;;  %vm1824_vm13 = vcmp.lt.s32.totalorder %v10740_v15, 1  ;;  %vm1826_vm9 = vcmp.lt.s32.totalorder %v10740_v15, 3 }
 0x1d8   :  { %v8077_v16 = vadd.s32 4294967294, %v1548_v22  ;;  %v1800_v41 = vor.u32 8388608, %v1799_v12  ;;  %v1832_v24 = vsel %vm1824_vm13, %v10766_v13, %v10768_v26  ;;  %v1834_v0 = vsel %vm1826_vm9, %v1817_v40, %v1833_v43 }
 0x1d9   :  { %v8080_v1 = vmin.u32 %v1650_v31, %v10731_v56  ;;  %v1746_v48 = vadd.s32 1, %v10753_v30  ;;  %v1836_v52 = vsel %vm1824_vm13, %v10768_v26, %v1817_v40  ;;  %v1838_v22 = vsel %vm1826_vm9, %v1820_v35, %v1837_v11  ;;  %v17906_v31 = vld [vmem:[#allocation30_spill] sm:$0xff] }
 0x1da   :  { %v1727_v12 = vsel %vm1721_vm7, %v1724_v61, %v1726_v63  ;;  %vm1745_vm14 = vc.u32 %v10738_v51, %v10752_v6  ;;  %vm1825_vm15 = vcmp.lt.s32.totalorder %v10740_v15, 2  ;;  %v1900_v55 = vshrl.u32 %v1899_v49, 23 }
 0x1db   :  { %v17904_v10 = vsub.s32 32, %v10630_v50  ;;  %v17905_v37 = vshll.u32 %v10684_v20, 23  ;;  %vm1378_vm0 = vcmp.lt.s32.totalorder %v17906_v31, 0  ;;  %v1451_v2 = vor.u32 %v1450_v23, %v1449_v14 }
 0x1dc   :  { %v1835_v46 = vsel %vm1825_vm15, %v1832_v24, %v1834_v0  ;;  %vm8078_vm1 = vcmp.lt.s32.totalorder %v8077_v16, 0  ;;  %v1839_v35 = vsel %vm1825_vm15, %v1836_v52, %v1838_v22  ;;  %v10820_v43 = vshll.u32 %v1800_v41, 8 }
 0x1dd   :  { %v1346_v17 = vshrl.u32 %v10643_v4, %v17904_v10  ;;  %v1351_v34 = vor.u32 4788187, %v17905_v37  ;;  %v8091_v11 = vadd.s32 4294967169, %v1900_v55  ;;  %v1456_v49 = vand.u32 2147483647, %v1455_v3 }
 0x1de   :  { %v1652_v61 = vclz %v8080_v1  ;;  %v1743_v4 = vmul.u32 %v10723_v47, %v1727_v12  ;;  %v1747_v20 = vsel %vm1745_vm14, %v1746_v48, %v10753_v30  ;;  %v17907_v63 = vand.u32 2147483647, %v17903_v29 }
 0x1df   :  { %v10831_v23 = vmul.u32.u64.low %v10820_v43, %v1835_v46  ;;  %v10832_v24 = vmul.u32.u64.high %v10820_v43, %v1835_v46, %v10831_v23  ;;  %v1906_v41 = vadd.s32 1, %v8091_v11  ;;  %v2003_v0 = vand.u32 2139095040, %v10727_v53 }
 0x1e0   :  { %vm10826_vm2 = vcmp.le.f32.partialorder %v17907_v63, 0.7853982  ;;  %v17910_v3 = vshll.u32 %v10406_v27, %v10630_v50  ;;  %v1551_v1 = vsel %vm8078_vm1, 0, %v8077_v16  ;;  %v17911_v52 = vsub.s32 4, %v10202_v19 }
 0x1e1   :  { %v10840_v30 = vmul.u32.u64.low %v10820_v43, %v1839_v35  ;;  %v10841_v48 = vmul.u32.u64.high %v10820_v43, %v1839_v35, %v10840_v30  ;;  %v17912_v12 = vand.u32 2147483647, %v17906_v31  ;;  %v1458_v10 = vcvt.s32.f32 %v1451_v2 }
 0x1e2   :  { %v1347_v47 = vor.u32 %v1346_v17, %v17910_v3  ;;  %v1255_v22 = vsel %vm1170_vm12, %v17911_v52, %v10202_v19  ;;  %v1462_v27 = vsub.s32 4, %v10424_v18  ;;  %v10855_v50 = vadd.s32 %v1747_v20, %v1743_v4  ;;  %v17919_v30 = vld [vmem:[#allocation23_spill] sm:$0xff] }
 0x1e3   :  { %vm10850_vm5 = vcmp.le.f32.partialorder %v17912_v12, 0.7853982  ;;  %v17915_v16 = vand.u32 2147483647, %v10621_v33  ;;  %v17916_v17 = vcvt.s32.f32 %v10614_v25  ;;  %v1352_v46 = vand.u32 2147483647, %v1351_v34 }
 0x1e4   :  { %v8081_v35 = vadd.s32 4294967294, %v1652_v61  ;;  %vm1907_vm7 = vcmp.gt.s32.totalorder %v1906_v41, 0  ;;  %v1459_v19 = vmul.f32 %v1458_v10, %v1456_v49  ;;  %v1552_v11 = vsub.s32 32, %v1551_v1  ;;  %v17918_v34 = vld [vmem:[#allocation17_spill] sm:$0xff] }
 0x1e5   :  { %v1147_v37 = vmul.f32 %v17916_v17, %v17915_v16  ;;  %v1829_v63 = vsel %vm1827_vm10, %v1817_v40, 2102212464  ;;  %v2004_v3 = vshrl.u32 %v2003_v0, 23  ;;  %v17917_v2 = vxor.u32 2147483648, %v10639_v58 }
 0x1e6   :  { %v1354_v20 = vcvt.s32.f32 %v1347_v47  ;;  %v1556_v33 = vsub.s32 4294967266, %v1551_v1  ;;  %v1808_v25 = vshrl.u32 %v17841_v8, %v10716_v21  ;;  %vm17542_vm14 = vcmp.lt.s32.totalorder %v17918_v34, 0 }
 0x1e7   :  { %v1253_v4 = vsel %vm1170_vm12, %v17917_v2, %v10639_v58  ;;  %v1463_v49 = vsel %vm1378_vm0, %v1462_v27, %v10424_v18  ;;  %v1536_v40 = vadd.s32 %v10482_v54, %v10490_v32  ;;  %v1749_v61 = vadd.s32 536870912, %v10855_v50 }
 0x1e8   :  { %v1908_v0 = vsel %vm1907_vm7, %v1906_v41, 0  ;;  %vm17541_vm10 = vcmp.lt.s32.totalorder %v17919_v30, 0  ;;  %v1355_v58 = vmul.f32 %v1354_v20, %v1352_v46  ;;  %vm8082_vm12 = vcmp.lt.s32.totalorder %v8081_v35, 0 }
 0x1e9   :  { %v1828_v21 = vsel %vm1824_vm13, %v1808_v25, %v10766_v13  ;;  %v1830_v47 = vsel %vm1826_vm9, %v10768_v26, %v1829_v63  ;;  %v1460_v52 = vxor.u32 2147483648, %v1459_v19  ;;  %v1554_v18 = vshrl.u32 %v1536_v40, %v1552_v11 }
 0x1ea   :  { %v1850_v12 = vadd.s32 1, %v10832_v24  ;;  %v8095_v54 = vadd.s32 4294967169, %v2004_v3  ;;  %v1257_v32 = vsel %vm10826_vm2, 0, %v1255_v22  ;;  %v1557_v41 = vadd.s32 127, %v1556_v33 }
 0x1eb   :  { %vm1849_vm1 = vc.u32 %v10841_v48, %v10831_v23  ;;  %v1910_v10 = vand.u32 31, %v1908_v0  ;;  %v1553_v27 = vshll.u32 %v10678_v45, %v1551_v1  ;;  %v10890_v13 = vsel %vm8082_vm12, 0, %v8081_v35 }
 0x1ec   :  { %v10892_v16 = vshrl.u32 %v1749_v61, 30  ;;  %v1831_v26 = vsel %vm1825_vm15, %v1828_v21, %v1830_v47  ;;  %v1148_v17 = vxor.u32 2147483648, %v1147_v37  ;;  %v1256_v46 = vsel %vm10826_vm2, %v17903_v29, %v1253_v4 }
 0x1ed   :  { %v1356_v22 = vxor.u32 2147483648, %v1355_v58  ;;  %v1465_v11 = vsel %vm10850_vm5, 0, %v1463_v49  ;;  %v1461_v63 = vsel %vm1378_vm0, %v1460_v52, %v1459_v19  ;;  %v10903_v45 = vor.u32 %v1554_v18, %v1553_v27  ;;  %v10950_v18 = vpop.f32.mrb[22].mxu0 }
 0x1ee   :  { %17920 = vst [vmem:[#allocation43_spill] sm:$0xff] %v10892_v16  ;;  %v1851_v1 = vsel %vm1849_vm1, %v1850_v12, %v10832_v24  ;;  %v2010_v35 = vadd.s32 1, %v8095_v54  ;;  %v1558_v3 = vshll.u32 %v1557_v41, 23  ;;  %v1660_v15 = vsub.s32 4294967266, %v10890_v13  ;;  %17927 = vst [vmem:[#allocation48_spill] sm:$0xff] %v10950_v18 }
 0x1ef   :  { %v1847_v2 = vmul.u32 %v10820_v43, %v1831_v26  ;;  %v10908_v20 = vsub.s32 32, %v1910_v10  ;;  %8734 = vcosq.f32 %v1256_v46  ;;  %v10910_v14 = vadd.s32 3, %v1257_v32 }
 0x1f0   :  { %v1751_v4 = vshll.u32 %v10892_v16, 30  ;;  %v17533_v33 = vand.u32 2147483647, %v10720_v62  ;;  %v10916_v19 = vsel %vm17542_vm14, %v1148_v17, %v1147_v37  ;;  %8736 = vsinq.f32 %v1256_v46 }
 0x1f1   :  { %17921 = vst [vmem:[#allocation44_spill] sm:$0xff] %v10910_v14  ;;  %17922 = vst [vmem:[#allocation45_spill] sm:$0xff] %v10916_v19  ;;  %v10918_v24 = vadd.s32 3, %v1465_v11  ;;  %v10920_v25 = vadd.s32 %v1851_v1, %v1847_v2  ;;  %v10924_v43 = vsel %vm17541_vm10, %v1356_v22, %v1355_v58  ;;  %v10929_v49 = vsel %vm10850_vm5, %v17906_v31, %v1461_v63 }
 0x1f2   :  { %17924 = vst [vmem:[#allocation47_spill] sm:$0xff] %v10924_v43  ;;  %v1640_v40 = vadd.s32 %v10552_v60, %v10561_v28  ;;  %vm2011_vm13 = vcmp.gt.s32.totalorder %v2010_v35, 0  ;;  %v10933_v37 = vor.u32 4788187, %v1558_v3  ;;  %v1661_v21 = vadd.s32 127, %v1660_v15  ;;  %v17925_v60 = vld [vmem:[#allocation31_spill] sm:$0xff] }
 0x1f3   :  { %17923 = vst [vmem:[#allocation46_spill] sm:$0xff] %v10918_v24  ;;  %v1923_v47 = vshrl.u32 %v17837_v36, %v10908_v20  ;;  %v10940_v52 = vsub.s32 %v10855_v50, %v1751_v4  ;;  %v10944_v55 = vand.u32 8388607, %v17533_v33  ;;  %v10948_v28 = vadd.f32 %v17925_v60, %v17873_v5 }
 0x1f4   :  { %v1853_v12 = vadd.s32 536870912, %v10920_v25  ;;  %v1914_v54 = vshrl.u32 %v17830_v59, %v10908_v20  ;;  %v1922_v32 = vshll.u32 %v17870_v42, %v1910_v10  ;;  %v2012_v41 = vsel %vm2011_vm13, %v2010_v35, 0 }
 0x1f5   :  { %17926 = vst [vmem:[#allocation31_spill] sm:$0xff] %v10948_v28  ;;  %v1656_v50 = vsub.s32 32, %v10890_v13  ;;  %v10957_v27 = vshrl.u32 %v1908_v0, 5  ;;  %v1917_v26 = vshrl.u32 %v17871_v39, %v10908_v20  ;;  %v1920_v17 = vshrl.u32 %v17870_v42, %v10908_v20 }
 0x1f6   :  { %v1662_v46 = vshll.u32 %v1661_v21, 23  ;;  %v1913_v22 = vshll.u32 %v17841_v8, %v1910_v10  ;;  %v1924_v11 = vor.u32 %v1923_v47, %v1922_v32  ;;  %v1926_v63 = vshrl.u32 %v17838_v9, %v10908_v20 }
 0x1f7   :  { %v1754_v1 = vsub.s32 0, %v10940_v52  ;;  %v1916_v35 = vshll.u32 %v17830_v59, %v1910_v10  ;;  %v1919_v0 = vshll.u32 %v17871_v39, %v1910_v10  ;;  %v2014_v3 = vand.u32 31, %v2012_v41 }
 0x1f8   :  { %v10969_v15 = vshrl.u32 %v1853_v12, 30  ;;  %v10971_v2 = vor.u32 %v1914_v54, %v1913_v22  ;;  %v1925_v4 = vshll.u32 %v17837_v36, %v1910_v10  ;;  %v2107_v21 = vand.u32 2139095040, %v10948_v28 }
 0x1f9   :  { %v10975_v60 = vpop.eup %8734  ;;  %v10977_v47 = vor.u32 %v1917_v26, %v1916_v35  ;;  %v10979_v32 = vor.u32 %v1920_v17, %v1919_v0  ;;  %vm1931_vm9 = vcmp.lt.s32.totalorder %v10957_v27, 4  ;;  %v10982_v33 = vsub.s32 32, %v2014_v3 }
 0x1fa   :  { %17928 = vst [vmem:[#allocation49_spill] sm:$0xff] %v10975_v60  ;;  %v10984_v58 = vpop.eup %8736  ;;  %v1560_v12 = vand.u32 2147483647, %v10933_v37  ;;  %v1927_v54 = vor.u32 %v1926_v63, %v1925_v4  ;;  %v1937_v10 = vsel %vm1931_vm9, %v1924_v11, 920167782  ;;  %v1657_v26 = vshll.u32 %v10731_v56, %v10890_v13 }
 0x1fb   :  { %17929 = vst [vmem:[#allocation50_spill] sm:$0xff] %v10984_v58  ;;  %v17539_v22 = vand.u32 2147483647, %v10727_v53  ;;  %v1658_v35 = vshrl.u32 %v1640_v40, %v1656_v50  ;;  %v10992_v17 = vor.u32 4788187, %v1662_v46  ;;  %v8084_v0 = vmin.u32 %v1754_v1, %v10940_v52 }
 0x1fc   :  { %v1855_v61 = vshll.u32 %v10969_v15, 30  ;;  %v1904_v16 = vor.u32 8388608, %v10944_v55  ;;  %vm1928_vm15 = vcmp.lt.s32.totalorder %v10957_v27, 1  ;;  %vm1930_vm0 = vcmp.lt.s32.totalorder %v10957_v27, 3 }
 0x1fd   :  { %v1936_v37 = vsel %vm1928_vm15, %v10971_v2, %v10977_v47  ;;  %v1938_v56 = vsel %vm1930_vm0, %v10979_v32, %v1937_v10  ;;  %v2027_v13 = vshrl.u32 %v17837_v36, %v10982_v33  ;;  %v2108_v40 = vshrl.u32 %v2107_v21, 23 }
 0x1fe   :  { %v1941_v55 = vsel %vm1931_vm9, %v1927_v54, 1326507024  ;;  %v11010_v50 = vshrl.u32 %v2012_v41, 5  ;;  %v2026_v46 = vshll.u32 %v17870_v42, %v2014_v3  ;;  %v2030_v63 = vshrl.u32 %v17838_v9, %v10982_v33 }
 0x1ff   :  { %v2018_v1 = vshrl.u32 %v17830_v59, %v10982_v33  ;;  %v2021_v4 = vshrl.u32 %v17871_v39, %v10982_v33  ;;  %v2024_v10 = vshrl.u32 %v17870_v42, %v10982_v33  ;;  %v2029_v21 = vshll.u32 %v17837_v36, %v2014_v3 }
 0x200   :  { %v11023_v54 = vsub.s32 %v10920_v25, %v1855_v61  ;;  %vm1929_vm2 = vcmp.lt.s32.totalorder %v10957_v27, 2  ;;  %v2007_v41 = vand.u32 8388607, %v17539_v22  ;;  %v2028_v43 = vor.u32 %v2027_v13, %v2026_v46 }
 0x201   :  { %v2017_v30 = vshll.u32 %v17841_v8, %v2014_v3  ;;  %v2020_v31 = vshll.u32 %v17830_v59, %v2014_v3  ;;  %v2023_v24 = vshll.u32 %v17871_v39, %v2014_v3  ;;  %v2031_v19 = vor.u32 %v2030_v63, %v2029_v21 }
 0x202   :  { %v1939_v34 = vsel %vm1929_vm2, %v1936_v37, %v1938_v56  ;;  %v1940_v25 = vsel %vm1928_vm15, %v10977_v47, %v10979_v32  ;;  %v1942_v61 = vsel %vm1930_vm0, %v1924_v11, %v1941_v55  ;;  %v8099_v22 = vadd.s32 4294967169, %v2108_v40 }
 0x203   :  { %vm1586_vm5 = vcmp.lt.s32.totalorder %v10355_v44, 0  ;;  %v11040_v13 = vor.u32 %v2018_v1, %v2017_v30  ;;  %v11042_v46 = vor.u32 %v2021_v4, %v2020_v31  ;;  %v2025_v3 = vor.u32 %v2024_v10, %v2023_v24 }
 0x204   :  { %vm2035_vm7 = vcmp.lt.s32.totalorder %v11010_v50, 4  ;;  %v1659_v63 = vor.u32 %v1658_v35, %v1657_v26  ;;  %v1664_v37 = vand.u32 2147483647, %v10992_v17  ;;  %v11046_v56 = vshll.u32 %v1904_v16, 8 }
 0x205   :  { %v2041_v21 = vsel %vm2035_vm7, %v2028_v43, 920167782  ;;  %v1756_v29 = vclz %v8084_v0  ;;  %v1858_v11 = vsub.s32 0, %v11023_v54  ;;  %v1943_v30 = vsel %vm1929_vm2, %v1940_v25, %v1942_v61 }
 0x206   :  { %v2045_v31 = vsel %vm2035_vm7, %v2031_v19, 1326507024  ;;  %v17930_v24 = vand.u32 2147483647, %v10355_v44  ;;  %v11062_v16 = vmul.u32.u64.low %v11046_v56, %v1939_v34  ;;  %v11063_v35 = vmul.u32.u64.high %v11046_v56, %v1939_v34, %v11062_v16 }
 0x207   :  { %vm2032_vm1 = vcmp.lt.s32.totalorder %v11010_v50, 1  ;;  %vm2034_vm13 = vcmp.lt.s32.totalorder %v11010_v50, 3  ;;  %v2008_v17 = vor.u32 8388608, %v2007_v41  ;;  %v2114_v40 = vadd.s32 1, %v8099_v22 }
 0x208   :  { %vm11057_vm12 = vcmp.le.f32.partialorder %v17930_v24, 0.7853982  ;;  %v2040_v19 = vsel %vm2032_vm1, %v11040_v13, %v11042_v46  ;;  %v2042_v0 = vsel %vm2034_vm13, %v2025_v3, %v2041_v21  ;;  %v2044_v34 = vsel %vm2032_vm1, %v11042_v46, %v2025_v3 }
 0x209   :  { %v11075_v55 = vmul.u32.u64.low %v11046_v56, %v1943_v30  ;;  %v11076_v1 = vmul.u32.u64.high %v11046_v56, %v1943_v30, %v11075_v55  ;;  %v2046_v4 = vsel %vm2034_vm13, %v2028_v43, %v2045_v31  ;;  %8738 = vcosq.f32 %v10929_v49  ;;  %v11092_v30 = vpop.f32.mrb[23].mxu0 }
 0x20a   :  { %v17933_v10 = vcvt.s32.f32 %v10903_v45  ;;  %vm2033_vm10 = vcmp.lt.s32.totalorder %v11010_v50, 2  ;;  %vm2115_vm14 = vcmp.gt.s32.totalorder %v2114_v40, 0  ;;  %v1666_v22 = vcvt.s32.f32 %v1659_v63  ;;  %17934 = vst [vmem:[#allocation51_spill] sm:$0xff] %v11092_v30 }
 0x20b   :  { %v8088_v25 = vmin.u32 %v1858_v11, %v11023_v54  ;;  %v2043_v61 = vsel %vm2033_vm10, %v2040_v19, %v2042_v0  ;;  %v2116_v21 = vsel %vm2115_vm14, %v2114_v40, 0  ;;  %v8085_v24 = vadd.s32 4294967294, %v1756_v29  ;;  %v17936_v19 = vld [vmem:[#allocation6_spill] sm:$0xff] }
 0x20c   :  { %v11086_v41 = vmul.f32 %v17933_v10, %v1560_v12  ;;  %v2047_v43 = vsel %vm2033_vm10, %v2044_v34, %v2046_v4  ;;  %v11096_v31 = vshll.u32 %v2008_v17, 8  ;;  %v2118_v45 = vand.u32 31, %v2116_v21  ;;  %v17937_v0 = vld [vmem:[#allocation34_spill] sm:$0xff] }
 0x20d   :  { %8740 = vsinq.f32 %v10929_v49  ;;  %v1667_v12 = vmul.f32 %v1666_v22, %v1664_v37  ;;  %v17935_v63 = vsub.s32 4, %v10680_v38  ;;  %v11108_v40 = vadd.f32 %v17937_v0, %v17936_v19 }
 0x20e   :  { %v1912_v29 = vshrl.u32 %v17841_v8, %v10908_v20  ;;  %v1933_v17 = vsel %vm1931_vm9, %v10979_v32, 2102212464  ;;  %v11116_v49 = vmul.u32.u64.low %v11096_v31, %v2043_v61  ;;  %v11117_v37 = vmul.u32.u64.high %v11096_v31, %v2043_v61, %v11116_v49 }
 0x20f   :  { %v11104_v11 = vsel %vm1586_vm5, %v17935_v63, %v10680_v38  ;;  %17938 = vst [vmem:[#allocation6_spill] sm:$0xff] %v11108_v40  ;;  %v1860_v55 = vclz %v8088_v25  ;;  %v11121_v38 = vmul.u32.u64.low %v11096_v31, %v2047_v43  ;;  %v11122_v34 = vmul.u32.u64.high %v11096_v31, %v2047_v43, %v11121_v38 }
 0x210   :  { %v11124_v4 = vsub.s32 32, %v2118_v45  ;;  %vm8086_vm14 = vcmp.lt.s32.totalorder %v8085_v24, 0  ;;  %v1954_v32 = vadd.s32 1, %v11063_v35  ;;  %v1932_v22 = vsel %vm1928_vm15, %v1912_v29, %v10971_v2 }
 0x211   :  { %v1934_v25 = vsel %vm1930_vm0, %v10977_v47, %v1933_v17  ;;  %vm1953_vm9 = vc.u32 %v11076_v1, %v11062_v16  ;;  %v2211_v61 = vand.u32 2139095040, %v11108_v40  ;;  %v1668_v43 = vxor.u32 2147483648, %v1667_v12 }
 0x212   :  { %v1744_v63 = vadd.s32 %v10752_v6, %v10738_v51  ;;  %v2016_v0 = vshrl.u32 %v17841_v8, %v10982_v33  ;;  %v2037_v38 = vsel %vm2035_vm7, %v2025_v3, 2102212464  ;;  %v11146_v2 = vsel %vm8086_vm14, 0, %v8085_v24 }
 0x213   :  { %v8089_v29 = vadd.s32 4294967294, %v1860_v55  ;;  %v2131_v17 = vshrl.u32 %v17837_v36, %v11124_v4  ;;  %v11151_v10 = vpop.eup %8738  ;;  %v1935_v20 = vsel %vm1929_vm2, %v1932_v22, %v1934_v25  ;;  %v1955_v51 = vsel %vm1953_vm9, %v1954_v32, %v11063_v35 }
 0x214   :  { %17939 = vst [vmem:[#allocation34_spill] sm:$0xff] %v11151_v10  ;;  %v2036_v6 = vsel %vm2032_vm1, %v2016_v0, %v11040_v13  ;;  %v2134_v33 = vshrl.u32 %v17838_v9, %v11124_v4  ;;  %v2038_v3 = vsel %vm2034_vm13, %v11042_v46, %v2037_v38  ;;  %v11164_v24 = vshrl.u32 %v2116_v21, 5 }
 0x215   :  { %v2130_v55 = vshll.u32 %v17870_v42, %v2118_v45  ;;  %v2212_v47 = vshrl.u32 %v2211_v61, 23  ;;  %v2122_v27 = vshrl.u32 %v17830_v59, %v11124_v4  ;;  %v2125_v35 = vshrl.u32 %v17871_v39, %v11124_v4 }
 0x216   :  { %v2128_v13 = vshrl.u32 %v17870_v42, %v11124_v4  ;;  %v2133_v32 = vshll.u32 %v17837_v36, %v2118_v45  ;;  %v1951_v46 = vmul.u32 %v11046_v56, %v1935_v20  ;;  %vm2057_vm15 = vc.u32 %v11122_v34, %v11116_v49 }
 0x217   :  { %v11174_v22 = vpop.eup %8740  ;;  %v2058_v21 = vadd.s32 1, %v11117_v37  ;;  %v2132_v25 = vor.u32 %v2131_v17, %v2130_v55  ;;  %v2121_v61 = vshll.u32 %v17841_v8, %v2118_v45  ;;  %v2124_v0 = vshll.u32 %v17830_v59, %v2118_v45  ;;  %v11210_v55 = vpop.f32.mrb[24].mxu0 }
 0x218   :  { %17940 = vst [vmem:[#allocation52_spill] sm:$0xff] %v11174_v22  ;;  %v2127_v38 = vshll.u32 %v17871_v39, %v2118_v45  ;;  %v2135_v10 = vor.u32 %v2134_v33, %v2133_v32  ;;  %v11183_v60 = vadd.s32 %v1955_v51, %v1951_v46  ;;  %v2039_v22 = vsel %vm2033_vm10, %v2036_v6, %v2038_v3 }
 0x219   :  { %v17941_v56 = vand.u32 2147483647, %v10948_v28  ;;  %v8103_v58 = vadd.s32 4294967169, %v2212_v47  ;;  %v11189_v14 = vor.u32 %v2122_v27, %v2121_v61  ;;  %v11191_v62 = vor.u32 %v2125_v35, %v2124_v0  ;;  %17942 = vst [vmem:[#allocation53_spill] sm:$0xff] %v11210_v55 }
 0x21a   :  { %v2129_v17 = vor.u32 %v2128_v13, %v2127_v38  ;;  %vm2139_vm0 = vcmp.lt.s32.totalorder %v11164_v24, 4  ;;  %v1669_v45 = vsel %vm1586_vm5, %v1668_v43, %v1667_v12  ;;  %v1760_v51 = vsub.s32 32, %v11146_v2 }
 0x21b   :  { %v2111_v20 = vand.u32 8388607, %v17941_v56  ;;  %v2059_v50 = vsel %vm2057_vm15, %v2058_v21, %v11117_v37  ;;  %v2145_v47 = vsel %vm2139_vm0, %v2132_v25, 920167782  ;;  %v1764_v6 = vsub.s32 4294967266, %v11146_v2 }
 0x21c   :  { %vm8090_vm10 = vcmp.lt.s32.totalorder %v8089_v29, 0  ;;  %v2055_v33 = vmul.u32 %v11096_v31, %v2039_v22  ;;  %v2149_v3 = vsel %vm2139_vm0, %v2135_v10, 1326507024  ;;  %v1957_v12 = vadd.s32 536870912, %v11183_v60 }
 0x21d   :  { %vm2136_vm2 = vcmp.lt.s32.totalorder %v11164_v24, 1  ;;  %vm2138_vm5 = vcmp.lt.s32.totalorder %v11164_v24, 3  ;;  %v2218_v43 = vadd.s32 1, %v8103_v58  ;;  %v2112_v27 = vor.u32 8388608, %v2111_v20 }
 0x21e   :  { %v11212_v37 = vadd.s32 %v2059_v50, %v2055_v33  ;;  %v2144_v31 = vsel %vm2136_vm2, %v11189_v14, %v11191_v62  ;;  %v2146_v10 = vsel %vm2138_vm5, %v2129_v17, %v2145_v47  ;;  %v1762_v35 = vshrl.u32 %v1744_v63, %v1760_v51  ;;  %v17944_v33 = vld [vmem:[#allocation40_spill] sm:$0xff] }
 0x21f   :  { %v2148_v13 = vsel %vm2136_vm2, %v11191_v62, %v2129_v17  ;;  %v2150_v58 = vsel %vm2138_vm5, %v2132_v25, %v2149_v3  ;;  %vm2219_vm7 = vcmp.gt.s32.totalorder %v2218_v43, 0  ;;  %v11228_v32 = vsel %vm11057_vm12, %v10355_v44, %v1669_v45 }
 0x220   :  { %v11231_v22 = vsel %vm8090_vm10, 0, %v8089_v29  ;;  %vm2137_vm1 = vcmp.lt.s32.totalorder %v11164_v24, 2  ;;  %v2220_v46 = vsel %vm2219_vm7, %v2218_v43, 0  ;;  %v1761_v63 = vshll.u32 %v10940_v52, %v11146_v2 }
 0x221   :  { %v11236_v21 = vshrl.u32 %v1957_v12, 30  ;;  %v2147_v25 = vsel %vm2137_vm1, %v2144_v31, %v2146_v10  ;;  %v17549_v61 = vand.u32 2147483647, %v11108_v40  ;;  %v2061_v0 = vadd.s32 536870912, %v11212_v37 }
 0x222   :  { %v2151_v38 = vsel %vm2137_vm1, %v2148_v13, %v2150_v58  ;;  %v11244_v29 = vshll.u32 %v2112_v27, 8  ;;  %v2222_v56 = vand.u32 31, %v2220_v46  ;;  %v11246_v20 = vor.u32 %v1762_v35, %v1761_v63 }
 0x223   :  { %17943 = vst [vmem:[#allocation54_spill] sm:$0xff] %v11236_v21  ;;  %v11248_v45 = vadd.s32 127, %v1764_v6  ;;  %v1848_v52 = vadd.s32 %v10831_v23, %v10841_v48  ;;  %v1868_v2 = vsub.s32 4294967266, %v11231_v22  ;;  %v11262_v3 = vadd.f32 %v17944_v33, %v17873_v5 }
 0x224   :  { %v11254_v51 = vmul.u32.u64.low %v11244_v29, %v2147_v25  ;;  %v11255_v50 = vmul.u32.u64.high %v11244_v29, %v2147_v25, %v11254_v51  ;;  %v11258_v47 = vsub.s32 32, %v2222_v56  ;;  %v1959_v12 = vshll.u32 %v11236_v21, 30 }
 0x225   :  { %17945 = vst [vmem:[#allocation40_spill] sm:$0xff] %v11262_v3  ;;  %v11266_v6 = vmul.u32.u64.low %v11244_v29, %v2151_v38  ;;  %v11267_v43 = vmul.u32.u64.high %v11244_v29, %v2151_v38, %v11266_v6  ;;  %v2215_v23 = vand.u32 8388607, %v17549_v61  ;;  %v11271_v48 = vshrl.u32 %v2061_v0, 30 }
 0x226   :  { %v2141_v27 = vsel %vm2139_vm0, %v2129_v17, 2102212464  ;;  %v11275_v31 = vshrl.u32 %v2220_v46, 5  ;;  %v2226_v10 = vshrl.u32 %v17830_v59, %v11258_v47  ;;  %v2229_v35 = vshrl.u32 %v17871_v39, %v11258_v47 }
 0x227   :  { %v2232_v13 = vshrl.u32 %v17870_v42, %v11258_v47  ;;  %v2234_v58 = vshll.u32 %v17870_v42, %v2222_v56  ;;  %v2235_v63 = vshrl.u32 %v17837_v36, %v11258_v47  ;;  %v2120_v25 = vshrl.u32 %v17841_v8, %v11124_v4 }
 0x228   :  { %v2225_v17 = vshll.u32 %v17841_v8, %v2222_v56  ;;  %v2228_v46 = vshll.u32 %v17830_v59, %v2222_v56  ;;  %v2315_v0 = vand.u32 2139095040, %v11262_v3  ;;  %v2231_v38 = vshll.u32 %v17871_v39, %v2222_v56 }
 0x229   :  { %v2236_v33 = vor.u32 %v2235_v63, %v2234_v58  ;;  %v2237_v6 = vshll.u32 %v17837_v36, %v2222_v56  ;;  %v2238_v61 = vshrl.u32 %v17838_v9, %v11258_v47  ;;  %v2063_v21 = vshll.u32 %v11271_v48, 30 }
 0x22a   :  { %v2140_v4 = vsel %vm2136_vm2, %v2120_v25, %v11189_v14  ;;  %v2142_v44 = vsel %vm2138_vm5, %v11191_v62, %v2141_v27  ;;  %v2227_v28 = vor.u32 %v2226_v10, %v2225_v17  ;;  %v2230_v55 = vor.u32 %v2229_v35, %v2228_v46  ;;  %v11346_v17 = vpop.f32.mrb[25].mxu0 }
 0x22b   :  { %v2233_v40 = vor.u32 %v2232_v13, %v2231_v38  ;;  %v2239_v30 = vor.u32 %v2238_v61, %v2237_v6  ;;  %vm2243_vm13 = vcmp.lt.s32.totalorder %v11275_v31, 4  ;;  %v1864_v56 = vsub.s32 32, %v11231_v22  ;;  %17947 = vst [vmem:[#allocation55_spill] sm:$0xff] %v11346_v17 }
 0x22c   :  { %v2162_v58 = vadd.s32 1, %v11255_v50  ;;  %v2249_v63 = vsel %vm2243_vm13, %v2236_v33, 920167782  ;;  %v2316_v18 = vshrl.u32 %v2315_v0, 23  ;;  %v1766_v14 = vshll.u32 %v11248_v45, 23 }
 0x22d   :  { %v1869_v25 = vadd.s32 127, %v1868_v2  ;;  %v11309_v53 = vsub.s32 %v11183_v60, %v1959_v12  ;;  %vm2161_vm14 = vc.u32 %v11267_v43, %v11254_v51  ;;  %v2143_v62 = vsel %vm2137_vm1, %v2140_v4, %v2142_v44  ;;  %v17946_v12 = vld [vmem:[#allocation32_spill] sm:$0xff] }
 0x22e   :  { %vm2240_vm9 = vcmp.lt.s32.totalorder %v11275_v31, 1  ;;  %vm2242_vm15 = vcmp.lt.s32.totalorder %v11275_v31, 3  ;;  %v2253_v61 = vsel %vm2243_vm13, %v2239_v30, 1326507024  ;;  %v11320_v27 = vsub.s32 %v11212_v37, %v2063_v21 }
 0x22f   :  { %v2216_v45 = vor.u32 8388608, %v2215_v23  ;;  %v2248_v60 = vsel %vm2240_vm9, %v2227_v28, %v2230_v55  ;;  %v2250_v2 = vsel %vm2242_vm15, %v2233_v40, %v2249_v63  ;;  %vm17592_vm0 = vcmp.lt.s32.totalorder %v17946_v12, 0 }
 0x230   :  { %v1865_v44 = vshll.u32 %v11023_v54, %v11231_v22  ;;  %v1866_v24 = vshrl.u32 %v1848_v52, %v1864_v56  ;;  %v2163_v10 = vsel %vm2161_vm14, %v2162_v58, %v11255_v50  ;;  %v8107_v35 = vadd.s32 4294967169, %v2316_v18 }
 0x231   :  { %vm1794_vm10 = vcmp.lt.s32.totalorder %v10605_v7, 0  ;;  %v2159_v30 = vmul.u32 %v11244_v29, %v2143_v62  ;;  %vm2241_vm2 = vcmp.lt.s32.totalorder %v11275_v31, 2  ;;  %v2252_v37 = vsel %vm2240_vm9, %v2230_v55, %v2233_v40 }
 0x232   :  { %v2254_v21 = vsel %vm2242_vm15, %v2236_v33, %v2253_v61  ;;  %v1870_v23 = vshll.u32 %v1869_v25, 23  ;;  %v1962_v13 = vsub.s32 0, %v11309_v53  ;;  %v2251_v54 = vsel %vm2241_vm2, %v2248_v60, %v2250_v2 }
 0x233   :  { %v2322_v22 = vadd.s32 1, %v8107_v35  ;;  %v1878_v18 = vsub.s32 4, %v10969_v15  ;;  %v2066_v52 = vsub.s32 0, %v11320_v27  ;;  %v11342_v29 = vadd.s32 %v2163_v10, %v2159_v30 }
 0x234   :  { %v11344_v50 = vshll.u32 %v2216_v45, 8  ;;  %v11348_v46 = vor.u32 4788187, %v1766_v14  ;;  %v1867_v0 = vor.u32 %v1866_v24, %v1865_v44  ;;  %v2255_v38 = vsel %vm2241_vm2, %v2252_v37, %v2254_v21 }
 0x235   :  { %vm2323_vm5 = vcmp.gt.s32.totalorder %v2322_v22, 0  ;;  %v2245_v33 = vsel %vm2243_vm13, %v2233_v40, 2102212464  ;;  %v1871_v58 = vor.u32 4788187, %v1870_v23  ;;  %v8092_v63 = vmin.u32 %v1962_v13, %v11309_v53 }
 0x236   :  { %v11355_v6 = vmul.u32.u64.low %v11344_v50, %v2251_v54  ;;  %v11356_v4 = vmul.u32.u64.high %v11344_v50, %v2251_v54, %v11355_v6  ;;  %v2324_v56 = vsel %vm2323_vm5, %v2322_v22, 0  ;;  %v2224_v14 = vshrl.u32 %v17841_v8, %v11258_v47 }
 0x237   :  { %v2326_v25 = vand.u32 31, %v2324_v56  ;;  %v8096_v62 = vmin.u32 %v2066_v52, %v11320_v27  ;;  %v2165_v61 = vadd.s32 536870912, %v11342_v29  ;;  %v17948_v60 = vsel %vm11057_vm12, 0, %v11104_v11 }
 0x238   :  { %v11365_v45 = vmul.u32.u64.low %v11344_v50, %v2255_v38  ;;  %v11366_v40 = vmul.u32.u64.high %v11344_v50, %v2255_v38, %v11365_v45  ;;  %v11372_v2 = vadd.s32 3, %v17948_v60  ;;  %v2244_v44 = vsel %vm2240_vm9, %v2224_v14, %v2227_v28  ;;  %v17956_v38 = vld [vmem:[#allocation16_spill] sm:$0xff] }
 0x239   :  { %v2246_v47 = vsel %vm2242_vm15, %v2230_v55, %v2245_v33  ;;  %v11378_v24 = vsub.s32 32, %v2326_v25  ;;  %v17950_v10 = vxor.u32 2147483648, %v11086_v41  ;;  %8742 = vcosq.f32 %v11228_v32 }
 0x23a   :  { %17949 = vst [vmem:[#allocation56_spill] sm:$0xff] %v11372_v2  ;;  %v1770_v26 = vcvt.s32.f32 %v11246_v20  ;;  %v17559_v11 = vand.u32 2147483647, %v11262_v3  ;;  %v1768_v28 = vand.u32 2147483647, %v11348_v46  ;;  %v1874_v37 = vcvt.s32.f32 %v1867_v0 }
 0x23b   :  { %v11385_v35 = vsel %vm17592_vm0, %v17950_v10, %v11086_v41  ;;  %v1872_v30 = vand.u32 2147483647, %v1871_v58  ;;  %v11394_v55 = vsel %vm1794_vm10, %v1878_v18, %v10969_v15  ;;  %v1964_v21 = vclz %v8092_v63 }
 0x23c   :  { %17951 = vst [vmem:[#allocation57_spill] sm:$0xff] %v11385_v35  ;;  %v2068_v23 = vclz %v8096_v62  ;;  %v11396_v13 = vshrl.u32 %v2165_v61, 30  ;;  %v2247_v41 = vsel %vm2241_vm2, %v2244_v44, %v2246_v47  ;;  %v2330_v20 = vshrl.u32 %v17830_v59, %v11378_v24 }
 0x23d   :  { %v2333_v54 = vshrl.u32 %v17871_v39, %v11378_v24  ;;  %v2336_v22 = vshrl.u32 %v17870_v42, %v11378_v24  ;;  %v2339_v15 = vshrl.u32 %v17837_v36, %v11378_v24  ;;  %v17953_v18 = vand.u32 2147483647, %v10605_v7 }
 0x23e   :  { %17952 = vst [vmem:[#allocation58_spill] sm:$0xff] %v11396_v13  ;;  %v2266_v31 = vadd.s32 1, %v11356_v4  ;;  %v2319_v46 = vand.u32 8388607, %v17559_v11  ;;  %v2338_v0 = vshll.u32 %v17870_v42, %v2326_v25  ;;  %v11420_v33 = vadd.f32 %v17956_v38, %v17936_v19 }
 0x23f   :  { %vm11410_vm12 = vcmp.le.f32.partialorder %v17953_v18, 0.7853982  ;;  %v11422_v58 = vshrl.u32 %v2324_v56, 5  ;;  %v2329_v63 = vshll.u32 %v17841_v8, %v2326_v25  ;;  %v2332_v14 = vshll.u32 %v17830_v59, %v2326_v25 }
 0x240   :  { %17957 = vst [vmem:[#allocation16_spill] sm:$0xff] %v11420_v33  ;;  %v2335_v62 = vshll.u32 %v17871_v39, %v2326_v25  ;;  %vm2265_vm7 = vc.u32 %v11366_v40, %v11355_v6  ;;  %v2340_v61 = vor.u32 %v2339_v15, %v2338_v0  ;;  %v2341_v45 = vshll.u32 %v17837_v36, %v2326_v25 }
 0x241   :  { %v2342_v60 = vshrl.u32 %v17838_v9, %v11378_v24  ;;  %v1875_v44 = vmul.f32 %v1874_v37, %v1872_v30  ;;  %v2331_v47 = vor.u32 %v2330_v20, %v2329_v63  ;;  %v2334_v10 = vor.u32 %v2333_v54, %v2332_v14  ;;  %v11480_v14 = vpop.f32.mrb[26].mxu0 }
 0x242   :  { %v2337_v56 = vor.u32 %v2336_v22, %v2335_v62  ;;  %v8093_v18 = vadd.s32 4294967294, %v1964_v21  ;;  %v8097_v38 = vadd.s32 4294967294, %v2068_v23  ;;  %v2167_v11 = vshll.u32 %v11396_v13, 30  ;;  %v17959_v23 = vld [vmem:[#allocation42_spill] sm:$0xff]  ;;  %17961 = vst [vmem:[#allocation60_spill] sm:$0xff] %v11480_v14 }
 0x243   :  { %v2343_v35 = vor.u32 %v2342_v60, %v2341_v45  ;;  %v2263_v12 = vmul.u32 %v11344_v50, %v2247_v41  ;;  %v2267_v2 = vsel %vm2265_vm7, %v2266_v31, %v11356_v4  ;;  %v2320_v17 = vor.u32 8388608, %v2319_v46  ;;  %v11436_v25 = vpop.eup %8742 }
 0x244   :  { %vm2347_vm1 = vcmp.lt.s32.totalorder %v11422_v58, 4  ;;  %17958 = vst [vmem:[#allocation59_spill] sm:$0xff] %v11436_v25  ;;  %vm2344_vm13 = vcmp.lt.s32.totalorder %v11422_v58, 1  ;;  %vm2346_vm14 = vcmp.lt.s32.totalorder %v11422_v58, 3  ;;  %v2419_v37 = vand.u32 2139095040, %v11420_v33 }
 0x245   :  { %v2353_v30 = vsel %vm2347_vm1, %v2340_v61, 920167782  ;;  %v2352_v21 = vsel %vm2344_vm13, %v2331_v47, %v2334_v10  ;;  %v2357_v4 = vsel %vm2347_vm1, %v2343_v35, 1326507024  ;;  %v11451_v41 = vadd.f32 %v17959_v23, %v17873_v5 }
 0x246   :  { %v2354_v50 = vsel %vm2346_vm14, %v2337_v56, %v2353_v30  ;;  %v11454_v20 = vsub.s32 %v11342_v29, %v2167_v11  ;;  %v11456_v54 = vadd.s32 %v2267_v2, %v2263_v12  ;;  %v2356_v22 = vsel %vm2344_vm13, %v2334_v10, %v2337_v56 }
 0x247   :  { %17960 = vst [vmem:[#allocation42_spill] sm:$0xff] %v11451_v41  ;;  %v2358_v15 = vsel %vm2346_vm14, %v2340_v61, %v2357_v4  ;;  %8744 = vsinq.f32 %v11228_v32  ;;  %vm8094_vm9 = vcmp.lt.s32.totalorder %v8093_v18, 0  ;;  %vm2345_vm15 = vcmp.lt.s32.totalorder %v11422_v58, 2 }
 0x248   :  { %v11467_v31 = vmul.f32 %v1770_v26, %v1768_v28  ;;  %vm8098_vm2 = vcmp.lt.s32.totalorder %v8097_v38, 0  ;;  %v2355_v12 = vsel %vm2345_vm15, %v2352_v21, %v2354_v50  ;;  %v2420_v29 = vshrl.u32 %v2419_v37, 23 }
 0x249   :  { %v1876_v2 = vxor.u32 2147483648, %v1875_v44  ;;  %v2359_v11 = vsel %vm2345_vm15, %v2356_v22, %v2358_v15  ;;  %v11473_v46 = vshll.u32 %v2320_v17, 8  ;;  %v2523_v32 = vand.u32 2139095040, %v11451_v41 }
 0x24a   :  { %v11476_v0 = vsel %vm8094_vm9, 0, %v8093_v18  ;;  %v2170_v63 = vsub.s32 0, %v11454_v20  ;;  %v2269_v26 = vadd.s32 536870912, %v11456_v54  ;;  %v8111_v28 = vadd.s32 4294967169, %v2420_v29 }
 0x24b   :  { %v11482_v62 = vsel %vm8098_vm2, 0, %v8097_v38  ;;  %v11485_v61 = vmul.u32.u64.low %v11473_v46, %v2355_v12  ;;  %v11486_v45 = vmul.u32.u64.high %v11473_v46, %v2355_v12, %v11485_v61  ;;  %v17561_v17 = vand.u32 2147483647, %v11420_v33 }
 0x24c   :  { %v11492_v18 = vmul.u32.u64.low %v11473_v46, %v2359_v11  ;;  %v11493_v30 = vmul.u32.u64.high %v11473_v46, %v2359_v11, %v11492_v18  ;;  %v2524_v37 = vshrl.u32 %v2523_v32, 23  ;;  %v1968_v21 = vsub.s32 32, %v11476_v0 }
 0x24d   :  { %17962 = vst [vmem:[#allocation61_spill] sm:$0xff] %v11485_v61  ;;  %v1972_v50 = vsub.s32 4294967266, %v11476_v0  ;;  %v2349_v38 = vsel %vm2347_vm1, %v2337_v56, 2102212464  ;;  %v2426_v4 = vadd.s32 1, %v8111_v28  ;;  %v2076_v23 = vsub.s32 4294967266, %v11482_v62 }
 0x24e   :  { %v8100_v22 = vmin.u32 %v2170_v63, %v11454_v20  ;;  %v11501_v15 = vshrl.u32 %v2269_v26, 30  ;;  %v2328_v12 = vshrl.u32 %v17841_v8, %v11378_v24  ;;  %v11507_v29 = vsel %vm1794_vm10, %v1876_v2, %v1875_v44 }
 0x24f   :  { %v1952_v11 = vadd.s32 %v11062_v16, %v11076_v1  ;;  %v2423_v56 = vand.u32 8388607, %v17561_v17  ;;  %vm2427_vm5 = vcmp.gt.s32.totalorder %v2426_v4, 0  ;;  %v2350_v63 = vsel %vm2346_vm14, %v2334_v10, %v2349_v38 }
 0x250   :  { %v2348_v32 = vsel %vm2344_vm13, %v2328_v12, %v2331_v47  ;;  %v2428_v26 = vsel %vm2427_vm5, %v2426_v4, 0  ;;  %v8115_v28 = vadd.s32 4294967169, %v2524_v37  ;;  %v11521_v44 = vadd.s32 127, %v1972_v50 }
 0x251   :  { %v11517_v24 = vpop.eup %8744  ;;  %v11519_v18 = vshrl.u32 %v1952_v11, %v1968_v21  ;;  %v2056_v16 = vadd.s32 %v11116_v49, %v11122_v34  ;;  %v2430_v1 = vand.u32 31, %v2428_v26  ;;  %v2072_v2 = vsub.s32 32, %v11482_v62 }
 0x252   :  { %17963 = vst [vmem:[#allocation62_spill] sm:$0xff] %v11517_v24  ;;  %v11526_v17 = vadd.s32 127, %v2076_v23  ;;  %v2172_v47 = vclz %v8100_v22  ;;  %v2271_v12 = vshll.u32 %v11501_v15, 30  ;;  %v2351_v10 = vsel %vm2345_vm15, %v2348_v32, %v2350_v63 }
 0x253   :  { %v2370_v37 = vadd.s32 1, %v11486_v45  ;;  %v2424_v21 = vor.u32 8388608, %v2423_v56  ;;  %v2431_v38 = vsub.s32 32, %v2430_v1  ;;  %vm2369_vm10 = vc.u32 %v11493_v30, %v11485_v61 }
 0x254   :  { %v2429_v50 = vshrl.u32 %v2428_v26, 5  ;;  %v2433_v49 = vshll.u32 %v17841_v8, %v2430_v1  ;;  %v2530_v34 = vadd.s32 1, %v8115_v28  ;;  %v2436_v23 = vshll.u32 %v17830_v59, %v2430_v1 }
 0x255   :  { %v2434_v4 = vshrl.u32 %v17830_v59, %v2431_v38  ;;  %v2437_v22 = vshrl.u32 %v17871_v39, %v2431_v38  ;;  %v2439_v58 = vshll.u32 %v17871_v39, %v2430_v1  ;;  %v2440_v11 = vshrl.u32 %v17870_v42, %v2431_v38 }
 0x256   :  { %v2442_v56 = vshll.u32 %v17870_v42, %v2430_v1  ;;  %v2443_v32 = vshrl.u32 %v17837_v36, %v2431_v38  ;;  %v2446_v63 = vshrl.u32 %v17838_v9, %v2431_v38  ;;  %v2371_v26 = vsel %vm2369_vm10, %v2370_v37, %v11486_v45 }
 0x257   :  { %v2435_v60 = vor.u32 %v2434_v4, %v2433_v49  ;;  %v2438_v28 = vor.u32 %v2437_v22, %v2436_v23  ;;  %v2445_v35 = vshll.u32 %v17837_v36, %v2430_v1  ;;  %v8101_v13 = vadd.s32 4294967294, %v2172_v47  ;;  %v17964_v49 = vld [vmem:[#allocation5_spill] sm:$0xff] }
 0x258   :  { %v2367_v25 = vmul.u32 %v11473_v46, %v2351_v10  ;;  %v2441_v24 = vor.u32 %v2440_v11, %v2439_v58  ;;  %v2444_v14 = vor.u32 %v2443_v32, %v2442_v56  ;;  %v11547_v3 = vsub.s32 %v11456_v54, %v2271_v12  ;;  %v11556_v54 = vpop.f32.mrb[27].mxu0 }
 0x259   :  { %v2447_v33 = vor.u32 %v2446_v63, %v2445_v35  ;;  %vm2448_vm7 = vcmp.lt.s32.totalorder %v2429_v50, 1  ;;  %vm2531_vm1 = vcmp.gt.s32.totalorder %v2530_v34, 0  ;;  %vm2451_vm13 = vcmp.lt.s32.totalorder %v2429_v50, 4 }
 0x25a   :  { %v11549_v61 = vadd.s32 %v2371_v26, %v2367_v25  ;;  %v2456_v45 = vsel %vm2448_vm7, %v2435_v60, %v2438_v28  ;;  %v2464_v37 = vshll.u32 %v2424_v21, 8  ;;  %vm17581_vm14 = vcmp.lt.s32.totalorder %v17964_v49, 0 }
 0x25b   :  { %v2432_v1 = vshrl.u32 %v17841_v8, %v2431_v38  ;;  %vm2450_vm9 = vcmp.lt.s32.totalorder %v2429_v50, 3  ;;  %v2453_v46 = vsel %vm2451_vm13, %v2441_v24, 2102212464  ;;  %v2457_v47 = vsel %vm2451_vm13, %v2444_v14, 920167782 }
 0x25c   :  { %vm2449_vm15 = vcmp.lt.s32.totalorder %v2429_v50, 2  ;;  %v2458_v35 = vsel %vm2450_vm9, %v2441_v24, %v2457_v47  ;;  %v2460_v25 = vsel %vm2448_vm7, %v2438_v28, %v2441_v24  ;;  %v2532_v12 = vsel %vm2531_vm1, %v2530_v34, 0 }
 0x25d   :  { %v2274_v10 = vsub.s32 0, %v11547_v3  ;;  %v2452_v21 = vsel %vm2448_vm7, %v2432_v1, %v2435_v60  ;;  %v2459_v4 = vsel %vm2449_vm15, %v2456_v45, %v2458_v35  ;;  %v2461_v38 = vsel %vm2451_vm13, %v2447_v33, 1326507024 }
 0x25e   :  { %v2454_v23 = vsel %vm2450_vm9, %v2438_v28, %v2453_v46  ;;  %v2462_v22 = vsel %vm2450_vm9, %v2444_v14, %v2461_v38  ;;  %v11563_v58 = vmul.u32.u64.low %v2464_v37, %v2459_v4  ;;  %v11564_v11 = vmul.u32.u64.high %v2464_v37, %v2459_v4, %v11563_v58 }
 0x25f   :  { %v2074_v56 = vshrl.u32 %v2056_v16, %v2072_v2  ;;  %v2373_v32 = vadd.s32 536870912, %v11549_v61  ;;  %v2463_v24 = vsel %vm2449_vm15, %v2460_v25, %v2462_v22  ;;  %v2534_v34 = vand.u32 31, %v2532_v12 }
 0x260   :  { %v1969_v63 = vshll.u32 %v11309_v53, %v11476_v0  ;;  %v2078_v60 = vshll.u32 %v11526_v17, 23  ;;  %v11572_v26 = vmul.u32.u64.low %v2464_v37, %v2463_v24  ;;  %v11573_v45 = vmul.u32.u64.high %v2464_v37, %v2463_v24, %v11572_v26 }
 0x261   :  { %v11579_v33 = vsel %vm11410_vm12, %v10605_v7, %v11507_v29  ;;  %v2073_v14 = vshll.u32 %v11320_v27, %v11482_v62  ;;  %v8104_v16 = vmin.u32 %v2274_v10, %v11547_v3  ;;  %v2455_v2 = vsel %vm2449_vm15, %v2452_v21, %v2454_v23 }
 0x262   :  { %v11586_v53 = vor.u32 %v11519_v18, %v1969_v63  ;;  %v1974_v0 = vshll.u32 %v11521_v44, 23  ;;  %vm8102_vm2 = vcmp.lt.s32.totalorder %v8101_v13, 0  ;;  %v2474_v17 = vadd.s32 1, %v11564_v11 }
 0x263   :  { %v17965_v29 = vsel %vm11410_vm12, 0, %v11394_v55  ;;  %v2075_v1 = vor.u32 %v2074_v56, %v2073_v14  ;;  %v11596_v27 = vshrl.u32 %v2373_v32, 30  ;;  %v11598_v62 = vsub.s32 32, %v2534_v34 }
 0x264   :  { %v11594_v28 = vadd.s32 3, %v17965_v29  ;;  %v17968_v18 = vxor.u32 2147483648, %v11467_v31  ;;  %v2079_v50 = vor.u32 4788187, %v2078_v60  ;;  %v2471_v46 = vmul.u32 %v2464_v37, %v2455_v2  ;;  %v17971_v60 = vld [vmem:[#allocation27_spill] sm:$0xff] }
 0x265   :  { %17967 = vst [vmem:[#allocation64_spill] sm:$0xff] %v11596_v27  ;;  %vm2473_vm5 = vc.u32 %v11573_v45, %v11563_v58  ;;  %8746 = vcosq.f32 %v11579_v33  ;;  %v11610_v55 = vsel %vm8102_vm2, 0, %v8101_v13  ;;  %v2276_v52 = vclz %v8104_v16 }
 0x266   :  { %17966 = vst [vmem:[#allocation63_spill] sm:$0xff] %v11594_v28  ;;  %v11605_v44 = vsel %vm17581_vm14, %v17968_v18, %v11467_v31  ;;  %v2475_v47 = vsel %vm2473_vm5, %v2474_v17, %v11564_v11  ;;  %v1975_v35 = vor.u32 4788187, %v1974_v0  ;;  %v1978_v25 = vcvt.s32.f32 %v11586_v53 }
 0x267   :  { %17969 = vst [vmem:[#allocation65_spill] sm:$0xff] %v11605_v44  ;;  %v2086_v10 = vsub.s32 4, %v11271_v48  ;;  %v2476_v21 = vadd.s32 %v2475_v47, %v2471_v46  ;;  %v2082_v31 = vcvt.s32.f32 %v2075_v1  ;;  %v2375_v4 = vshll.u32 %v11596_v27, 30 }
 0x268   :  { %v2547_v37 = vshrl.u32 %v17837_v36, %v11598_v62  ;;  %v11620_v38 = vadd.f32 %v10790_v57, %v17936_v19  ;;  %v2080_v13 = vand.u32 2147483647, %v2079_v50  ;;  %v2180_v23 = vsub.s32 4294967266, %v11610_v55 }
 0x269   :  { %v17571_v22 = vand.u32 2147483647, %v11451_v41  ;;  %v2550_v11 = vshrl.u32 %v17838_v9, %v11598_v62  ;;  %v8105_v56 = vadd.s32 4294967294, %v2276_v52  ;;  %v2477_v32 = vadd.s32 536870912, %v2476_v21 }
 0x26a   :  { %17970 = vst [vmem:[#allocation66_spill] sm:$0xff] %v11620_v38  ;;  %v2546_v24 = vshll.u32 %v17870_v42, %v2534_v34  ;;  %v2549_v63 = vshll.u32 %v17837_v36, %v2534_v34  ;;  %vm2002_vm12 = vcmp.lt.s32.totalorder %v17971_v60, 0  ;;  %v11629_v26 = vshrl.u32 %v2532_v12, 5 }
 0x26b   :  { %v2538_v57 = vshrl.u32 %v17830_v59, %v11598_v62  ;;  %v2541_v14 = vshrl.u32 %v17871_v39, %v11598_v62  ;;  %v2544_v16 = vshrl.u32 %v17870_v42, %v11598_v62  ;;  %v11638_v2 = vsub.s32 %v11549_v61, %v2375_v4 }
 0x26c   :  { %v2548_v53 = vor.u32 %v2547_v37, %v2546_v24  ;;  %v2551_v0 = vor.u32 %v2550_v11, %v2549_v63  ;;  %v2627_v17 = vand.u32 2139095040, %v11620_v38  ;;  %v2527_v12 = vand.u32 8388607, %v17571_v22 }
 0x26d   :  { %v2537_v29 = vshll.u32 %v17841_v8, %v2534_v34  ;;  %v2540_v1 = vshll.u32 %v17830_v59, %v2534_v34  ;;  %v2543_v18 = vshll.u32 %v17871_v39, %v2534_v34  ;;  %v1976_v50 = vand.u32 2147483647, %v1975_v35 }
 0x26e   :  { %v2083_v46 = vmul.f32 %v2082_v31, %v2080_v13  ;;  %vm8106_vm10 = vcmp.lt.s32.totalorder %v8105_v56, 0  ;;  %v11646_v52 = vshrl.u32 %v2477_v32, 30  ;;  %vm2555_vm7 = vcmp.lt.s32.totalorder %v11629_v26, 4 }
 0x26f   :  { %v11648_v61 = vor.u32 %v2538_v57, %v2537_v29  ;;  %v11650_v47 = vor.u32 %v2541_v14, %v2540_v1  ;;  %v2545_v4 = vor.u32 %v2544_v16, %v2543_v18  ;;  %v11653_v37 = vpop.eup %8746  ;;  %v2378_v11 = vsub.s32 0, %v11638_v2 }
 0x270   :  { %17972 = vst [vmem:[#allocation67_spill] sm:$0xff] %v11653_v37  ;;  %v2561_v24 = vsel %vm2555_vm7, %v2548_v53, 920167782  ;;  %v2565_v34 = vsel %vm2555_vm7, %v2551_v0, 1326507024  ;;  %v2628_v35 = vshrl.u32 %v2627_v17, 23  ;;  %v2160_v22 = vadd.s32 %v11254_v51, %v11267_v43 }
 0x271   :  { %v17973_v31 = vand.u32 2147483647, %v17971_v60  ;;  %v2176_v32 = vsub.s32 32, %v11610_v55  ;;  %v2181_v63 = vadd.s32 127, %v2180_v23  ;;  %v11667_v57 = vsel %vm8106_vm10, 0, %v8105_v56 }
 0x272   :  { %v2528_v14 = vor.u32 8388608, %v2527_v12  ;;  %v2479_v16 = vshll.u32 %v11646_v52, 30  ;;  %vm2552_vm13 = vcmp.lt.s32.totalorder %v11629_v26, 1  ;;  %vm2554_vm9 = vcmp.lt.s32.totalorder %v11629_v26, 3 }
 0x273   :  { %vm11662_vm1 = vcmp.le.f32.partialorder %v17973_v31, 0.7853982  ;;  %v8119_v0 = vadd.s32 4294967169, %v2628_v35  ;;  %v2560_v17 = vsel %vm2552_vm13, %v11648_v61, %v11650_v47  ;;  %v2562_v29 = vsel %vm2554_vm9, %v2545_v4, %v2561_v24 }
 0x274   :  { %v2564_v23 = vsel %vm2552_vm13, %v11650_v47, %v2545_v4  ;;  %v2566_v56 = vsel %vm2554_vm9, %v2548_v53, %v2565_v34  ;;  %v11686_v12 = vsel %vm2002_vm12, %v2086_v10, %v11271_v48  ;;  %v2284_v1 = vsub.s32 4294967266, %v11667_v57  ;;  %v11701_v10 = vpop.f32.mrb[28].mxu0 }
 0x275   :  { %v8108_v18 = vmin.u32 %v2378_v11, %v11638_v2  ;;  %v2634_v35 = vadd.s32 1, %v8119_v0  ;;  %v11690_v31 = vmul.f32 %v1978_v25, %v1976_v50  ;;  %v2084_v24 = vxor.u32 2147483648, %v2083_v46 }
 0x276   :  { %vm2553_vm15 = vcmp.lt.s32.totalorder %v11629_v26, 2  ;;  %v11695_v27 = vsub.s32 %v2476_v21, %v2479_v16  ;;  %v2178_v11 = vshrl.u32 %v2160_v22, %v2176_v32  ;;  %v2182_v25 = vshll.u32 %v2181_v63, 23 }
 0x277   :  { %v2563_v53 = vsel %vm2553_vm15, %v2560_v17, %v2562_v29  ;;  %v2567_v48 = vsel %vm2553_vm15, %v2564_v23, %v2566_v56  ;;  %vm2635_vm2 = vcmp.gt.s32.totalorder %v2634_v35, 0  ;;  %v11703_v50 = vshll.u32 %v2528_v14, 8 }
 0x278   :  { %v2636_v34 = vsel %vm2635_vm2, %v2634_v35, 0  ;;  %v2280_v51 = vsub.s32 32, %v11667_v57  ;;  %v2285_v43 = vadd.s32 127, %v2284_v1  ;;  %v2380_v0 = vclz %v8108_v18 }
 0x279   :  { %v2638_v21 = vand.u32 31, %v2636_v34  ;;  %v11707_v16 = vmul.u32.u64.low %v11703_v50, %v2567_v48  ;;  %v11708_v44 = vmul.u32.u64.high %v11703_v50, %v2567_v48, %v11707_v16  ;;  %8748 = vsinq.f32 %v11579_v33 }
 0x27a   :  { %v11711_v17 = vmul.u32.u64.low %v11703_v50, %v2563_v53  ;;  %v11712_v29 = vmul.u32.u64.high %v11703_v50, %v2563_v53, %v11711_v17  ;;  %v2177_v32 = vshll.u32 %v11454_v20, %v11610_v55  ;;  %v2482_v63 = vsub.s32 0, %v11695_v27 }
 0x27b   :  { %v2264_v23 = vadd.s32 %v11355_v6, %v11366_v40  ;;  %v2557_v56 = vsel %vm2555_vm7, %v2545_v4, 2102212464  ;;  %v11727_v1 = vsub.s32 32, %v2638_v21  ;;  %v11731_v33 = vsel %vm2002_vm12, %v2084_v24, %v2083_v46  ;;  %v17976_v24 = vld [vmem:[#allocation48_spill] sm:$0xff] }
 0x27c   :  { %v11733_v18 = vor.u32 %v2178_v11, %v2177_v32  ;;  %v11735_v35 = vor.u32 4788187, %v2182_v25  ;;  %v2536_v20 = vshrl.u32 %v17841_v8, %v11598_v62  ;;  %v2286_v53 = vshll.u32 %v2285_v43, 23 }
 0x27d   :  { %v2282_v55 = vshrl.u32 %v2264_v23, %v2280_v51  ;;  %v8109_v48 = vadd.s32 4294967294, %v2380_v0  ;;  %v17578_v6 = vand.u32 2147483647, %v11620_v38  ;;  %v8112_v40 = vmin.u32 %v2482_v63, %v11695_v27 }
 0x27e   :  { %v2556_v4 = vsel %vm2552_vm13, %v2536_v20, %v11648_v61  ;;  %v2558_v46 = vsel %vm2554_vm9, %v11650_v47, %v2557_v56  ;;  %v11749_v11 = vadd.f32 %v17976_v24, %v17873_v5  ;;  %v11751_v62 = vshrl.u32 %v2636_v34, 5 }
 0x27f   :  { %v2642_v25 = vshrl.u32 %v17830_v59, %v11727_v1  ;;  %v2650_v51 = vshll.u32 %v17870_v42, %v2638_v21  ;;  %v2651_v43 = vshrl.u32 %v17837_v36, %v11727_v1  ;;  %v2645_v61 = vshrl.u32 %v17871_v39, %v11727_v1 }
 0x280   :  { %17977 = vst [vmem:[#allocation48_spill] sm:$0xff] %v11749_v11  ;;  %v2648_v47 = vshrl.u32 %v17870_v42, %v11727_v1  ;;  %v2653_v0 = vshll.u32 %v17837_v36, %v2638_v21  ;;  %v2654_v34 = vshrl.u32 %v17838_v9, %v11727_v1  ;;  %vm2577_vm5 = vc.u32 %v11708_v44, %v11711_v17 }
 0x281   :  { %v2578_v16 = vadd.s32 1, %v11712_v29  ;;  %v2631_v32 = vand.u32 8388607, %v17578_v6  ;;  %v2652_v63 = vor.u32 %v2651_v43, %v2650_v51  ;;  %v2641_v23 = vshll.u32 %v17841_v8, %v2638_v21 }
 0x282   :  { %v2644_v56 = vshll.u32 %v17830_v59, %v2638_v21  ;;  %v2647_v20 = vshll.u32 %v17871_v39, %v2638_v21  ;;  %v2655_v24 = vor.u32 %v2654_v34, %v2653_v0  ;;  %v2281_v14 = vshll.u32 %v11547_v3, %v11667_v57  ;;  %v11793_v57 = vpop.f32.mrb[29].mxu0 }
 0x283   :  { %v2484_v22 = vclz %v8112_v40  ;;  %v2559_v49 = vsel %vm2553_vm15, %v2556_v4, %v2558_v46  ;;  %v2731_v7 = vand.u32 2139095040, %v11749_v11  ;;  %v11778_v37 = vpop.eup %8748  ;;  %v11780_v6 = vor.u32 %v2642_v25, %v2641_v23  ;;  %17979 = vst [vmem:[#allocation69_spill] sm:$0xff] %v11793_v57 }
 0x284   :  { %17978 = vst [vmem:[#allocation68_spill] sm:$0xff] %v11778_v37  ;;  %v11782_v51 = vor.u32 %v2645_v61, %v2644_v56  ;;  %v11784_v43 = vor.u32 %v2648_v47, %v2647_v20  ;;  %vm2659_vm12 = vcmp.lt.s32.totalorder %v11751_v62, 4  ;;  %v2283_v21 = vor.u32 %v2282_v55, %v2281_v14  ;;  %v17980_v14 = vld [vmem:[#allocation51_spill] sm:$0xff]  ;;  %v17983_v61 = vld [vmem:[#allocation6_spill] sm:$0xff] }
 0x285   :  { %v2287_v0 = vor.u32 4788187, %v2286_v53  ;;  %v2579_v3 = vsel %vm2577_vm5, %v2578_v16, %v11712_v29  ;;  %v2665_v26 = vsel %vm2659_vm12, %v2652_v63, 920167782  ;;  %vm8110_vm10 = vcmp.lt.s32.totalorder %v8109_v48, 0  ;;  %v17982_v53 = vld [vmem:[#allocation24_spill] sm:$0xff] }
 0x286   :  { %v2575_v40 = vmul.u32 %v11703_v50, %v2559_v49  ;;  %v2632_v4 = vor.u32 8388608, %v2631_v32  ;;  %v2669_v46 = vsel %vm2659_vm12, %v2655_v24, 1326507024  ;;  %v8113_v25 = vadd.s32 4294967294, %v2484_v22 }
 0x287   :  { %vm2656_vm7 = vcmp.lt.s32.totalorder %v11751_v62, 1  ;;  %vm2658_vm13 = vcmp.lt.s32.totalorder %v11751_v62, 3  ;;  %v11802_v29 = vadd.f32 %v17980_v14, %v17936_v19  ;;  %v2732_v22 = vshrl.u32 %v2731_v7, 23 }
 0x288   :  { %v11804_v55 = vadd.s32 %v2579_v3, %v2575_v40  ;;  %v2664_v49 = vsel %vm2656_vm7, %v11780_v6, %v11782_v51  ;;  %v2666_v50 = vsel %vm2658_vm13, %v11784_v43, %v2665_v26  ;;  %vm17591_vm9 = vcmp.lt.s32.totalorder %v17982_v53, 0 }
 0x289   :  { %17981 = vst [vmem:[#allocation51_spill] sm:$0xff] %v11802_v29  ;;  %vm2210_vm15 = vcmp.lt.s32.totalorder %v17983_v61, 0  ;;  %v2288_v47 = vand.u32 2147483647, %v2287_v0  ;;  %v2383_v34 = vsel %vm8110_vm10, 0, %v8109_v48  ;;  %v2668_v16 = vsel %vm2656_vm7, %v11782_v51, %v11784_v43 }
 0x28a   :  { %v2670_v32 = vsel %vm2658_vm13, %v2652_v63, %v2669_v46  ;;  %v2088_v23 = vsel %vm11662_vm1, %v17971_v60, %v11731_v33  ;;  %v2294_v7 = vsub.s32 4, %v11501_v15  ;;  %vm2657_vm2 = vcmp.lt.s32.totalorder %v11751_v62, 2 }
 0x28b   :  { %v8123_v56 = vadd.s32 4294967169, %v2732_v22  ;;  %v2290_v20 = vcvt.s32.f32 %v2283_v21  ;;  %vm8114_vm5 = vcmp.lt.s32.totalorder %v8113_v25, 0  ;;  %v2667_v48 = vsel %vm2657_vm2, %v2664_v49, %v2666_v50 }
 0x28c   :  { %v2835_v24 = vand.u32 2139095040, %v11802_v29  ;;  %v17984_v0 = vand.u32 2147483647, %v17983_v61  ;;  %v2388_v3 = vsub.s32 4294967266, %v2383_v34  ;;  %v2581_v33 = vadd.s32 536870912, %v11804_v55 }
 0x28d   :  { %v2671_v26 = vsel %vm2657_vm2, %v2668_v16, %v2670_v32  ;;  %v11839_v40 = vshll.u32 %v2632_v4, 8  ;;  %v2184_v21 = vand.u32 2147483647, %v11735_v35  ;;  %v2186_v46 = vcvt.s32.f32 %v11733_v18 }
 0x28e   :  { %vm11832_vm10 = vcmp.le.f32.partialorder %v17984_v0, 0.7853982  ;;  %v2291_v14 = vmul.f32 %v2290_v20, %v2288_v47  ;;  %v2738_v49 = vadd.s32 1, %v8123_v56  ;;  %v2384_v50 = vsub.s32 32, %v2383_v34  ;;  %v17990_v56 = vld [vmem:[#allocation61_spill] sm:$0xff] }
 0x28f   :  { %v11843_v22 = vsel %vm8114_vm5, 0, %v8113_v25  ;;  %v11846_v0 = vmul.u32.u64.low %v11839_v40, %v2667_v48  ;;  %v11847_v60 = vmul.u32.u64.high %v11839_v40, %v2667_v48, %v11846_v0  ;;  %v2836_v4 = vshrl.u32 %v2835_v24, 23 }
 0x290   :  { %v11851_v37 = vmul.u32.u64.low %v11839_v40, %v2671_v26  ;;  %v11852_v28 = vmul.u32.u64.high %v11839_v40, %v2671_v26, %v11851_v37  ;;  %vm2739_vm14 = vcmp.gt.s32.totalorder %v2738_v49, 0  ;;  %v17987_v18 = vsel %vm11662_vm1, 0, %v11686_v12 }
 0x291   :  { %v11858_v35 = vadd.s32 3, %v17987_v18  ;;  %v2389_v47 = vadd.s32 127, %v2388_v3  ;;  %v11860_v25 = vshrl.u32 %v2581_v33, 30  ;;  %v2740_v16 = vsel %vm2739_vm14, %v2738_v49, 0 }
 0x292   :  { %v11862_v32 = vmul.f32 %v2186_v46, %v2184_v21  ;;  %v2368_v20 = vadd.s32 %v17990_v56, %v11493_v30  ;;  %v2492_v48 = vsub.s32 4294967266, %v11843_v22  ;;  %v2742_v37 = vand.u32 31, %v2740_v16 }
 0x293   :  { %17988 = vst [vmem:[#allocation70_spill] sm:$0xff] %v11858_v35  ;;  %17989 = vst [vmem:[#allocation71_spill] sm:$0xff] %v11860_v25  ;;  %v17991_v24 = vxor.u32 2147483648, %v11690_v31  ;;  %8750 = vcosq.f32 %v2088_v23  ;;  %v2292_v12 = vxor.u32 2147483648, %v2291_v14  ;;  %v11877_v3 = vsel %vm2210_vm15, %v2294_v7, %v11501_v15 }
 0x294   :  { %8752 = vsinq.f32 %v2088_v23  ;;  %v2386_v33 = vshrl.u32 %v2368_v20, %v2384_v50  ;;  %v2661_v30 = vsel %vm2659_vm12, %v11784_v43, 2102212464  ;;  %v8127_v26 = vadd.s32 4294967169, %v2836_v4 }
 0x295   :  { %v11872_v13 = vsel %vm17591_vm9, %v17991_v24, %v11690_v31  ;;  %v2390_v21 = vshll.u32 %v2389_v47, 23  ;;  %v2583_v46 = vshll.u32 %v11860_v25, 30  ;;  %v2640_v31 = vshrl.u32 %v17841_v8, %v11727_v1 }
 0x296   :  { %17992 = vst [vmem:[#allocation61_spill] sm:$0xff] %v11872_v13  ;;  %v11885_v49 = vsub.s32 32, %v2742_v37  ;;  %v2385_v23 = vshll.u32 %v11638_v2, %v2383_v34  ;;  %v2493_v7 = vadd.s32 127, %v2492_v48  ;;  %v11894_v43 = vsel %vm2210_vm15, %v2292_v12, %v2291_v14 }
 0x297   :  { %v2660_v50 = vsel %vm2656_vm7, %v2640_v31, %v11780_v6  ;;  %v2662_v1 = vsel %vm2658_vm13, %v11782_v51, %v2661_v30  ;;  %v2682_v4 = vadd.s32 1, %v11847_v60  ;;  %v2472_v2 = vadd.s32 %v11563_v58, %v11573_v45 }
 0x298   :  { %v11903_v47 = vor.u32 %v2386_v33, %v2385_v23  ;;  %vm2681_vm14 = vc.u32 %v11852_v28, %v11846_v0  ;;  %v2842_v34 = vadd.s32 1, %v8127_v26  ;;  %v11909_v14 = vor.u32 4788187, %v2390_v21 }
 0x299   :  { %v11913_v6 = vsub.s32 %v11804_v55, %v2583_v46  ;;  %v2755_v51 = vshrl.u32 %v17837_v36, %v11885_v49  ;;  %v2488_v20 = vsub.s32 32, %v11843_v22  ;;  %v2494_v48 = vshll.u32 %v2493_v7, 23 }
 0x29a   :  { %v2663_v58 = vsel %vm2657_vm2, %v2660_v50, %v2662_v1  ;;  %v17584_v45 = vand.u32 2147483647, %v11749_v11  ;;  %v2683_v24 = vsel %vm2681_vm14, %v2682_v4, %v11847_v60  ;;  %v11922_v12 = vshrl.u32 %v2740_v16, 5 }
 0x29b   :  { %v2754_v33 = vshll.u32 %v17870_v42, %v2742_v37  ;;  %v2758_v55 = vshrl.u32 %v17838_v9, %v11885_v49  ;;  %v2746_v30 = vshrl.u32 %v17830_v59, %v11885_v49  ;;  %v2749_v26 = vshrl.u32 %v17871_v39, %v11885_v49 }
 0x29c   :  { %v2752_v62 = vshrl.u32 %v17870_v42, %v11885_v49  ;;  %vm2843_vm1 = vcmp.gt.s32.totalorder %v2842_v34, 0  ;;  %v2586_v60 = vsub.s32 0, %v11913_v6  ;;  %v2679_v16 = vmul.u32 %v11839_v40, %v2663_v58 }
 0x29d   :  { %v11933_v21 = vpop.eup %8750  ;;  %v2756_v46 = vor.u32 %v2755_v51, %v2754_v33  ;;  %v2757_v31 = vshll.u32 %v17837_v36, %v2742_v37  ;;  %v2735_v7 = vand.u32 8388607, %v17584_v45  ;;  %v2745_v50 = vshll.u32 %v17841_v8, %v2742_v37  ;;  %v11954_v33 = vpop.f32.mrb[30].mxu0 }
 0x29e   :  { %17993 = vst [vmem:[#allocation72_spill] sm:$0xff] %v11933_v21  ;;  %v11938_v23 = vpop.eup %8752  ;;  %v2748_v1 = vshll.u32 %v17830_v59, %v2742_v37  ;;  %v2751_v4 = vshll.u32 %v17871_v39, %v2742_v37  ;;  %v2490_v18 = vshrl.u32 %v2472_v2, %v2488_v20  ;;  %v11945_v15 = vadd.s32 %v2683_v24, %v2679_v16 }
 0x29f   :  { %17994 = vst [vmem:[#allocation73_spill] sm:$0xff] %v11938_v23  ;;  %v2759_v56 = vor.u32 %v2758_v55, %v2757_v31  ;;  %v2844_v25 = vsel %vm2843_vm1, %v2842_v34, 0  ;;  %v11947_v40 = vor.u32 %v2746_v30, %v2745_v50  ;;  %vm2763_vm12 = vcmp.lt.s32.totalorder %v11922_v12, 4  ;;  %17995 = vst [vmem:[#allocation74_spill] sm:$0xff] %v11954_v33  ;;  %v17996_v55 = vld [vmem:[#allocation53_spill] sm:$0xff] }
 0x2a0   :  { %v11949_v51 = vor.u32 %v2749_v26, %v2748_v1  ;;  %v11951_v58 = vor.u32 %v2752_v62, %v2751_v4  ;;  %v11956_v45 = vor.u32 4788187, %v2494_v48  ;;  %v8116_v13 = vmin.u32 %v2586_v60, %v11913_v6 }
 0x2a1   :  { %v2769_v37 = vsel %vm2763_vm12, %v2756_v46, 920167782  ;;  %v17585_v2 = vand.u32 2147483647, %v11802_v29  ;;  %v2489_v34 = vshll.u32 %v11695_v27, %v11843_v22  ;;  %v2736_v20 = vor.u32 8388608, %v2735_v7 }
 0x2a2   :  { %v2846_v24 = vand.u32 31, %v2844_v25  ;;  %v11966_v30 = vadd.f32 %v17996_v55, %v17873_v5  ;;  %v2685_v26 = vadd.s32 536870912, %v11945_v15  ;;  %vm2760_vm7 = vcmp.lt.s32.totalorder %v11922_v12, 1 }
 0x2a3   :  { %vm2762_vm13 = vcmp.lt.s32.totalorder %v11922_v12, 3  ;;  %v2773_v48 = vsel %vm2763_vm12, %v2759_v56, 1326507024  ;;  %v2491_v62 = vor.u32 %v2490_v18, %v2489_v34  ;;  %v2768_v27 = vsel %vm2760_vm7, %v11947_v40, %v11949_v51 }
 0x2a4   :  { %17997 = vst [vmem:[#allocation53_spill] sm:$0xff] %v11966_v30  ;;  %v2770_v22 = vsel %vm2762_vm13, %v11951_v58, %v2769_v37  ;;  %v11980_v60 = vsub.s32 32, %v2846_v24  ;;  %v2496_v16 = vand.u32 2147483647, %v11956_v45  ;;  %v2588_v31 = vclz %v8116_v13 }
 0x2a5   :  { %vm2761_vm15 = vcmp.lt.s32.totalorder %v11922_v12, 2  ;;  %v2839_v56 = vand.u32 8388607, %v17585_v2  ;;  %v2772_v18 = vsel %vm2760_vm7, %v11949_v51, %v11951_v58  ;;  %v2774_v7 = vsel %vm2762_vm13, %v2756_v46, %v2773_v48  ;;  %v17998_v2 = vld [vmem:[#allocation16_spill] sm:$0xff] }
 0x2a6   :  { %v2850_v50 = vshrl.u32 %v17830_v59, %v11980_v60  ;;  %v2853_v45 = vshrl.u32 %v17871_v39, %v11980_v60  ;;  %v11996_v13 = vshrl.u32 %v2685_v26, 30  ;;  %v2771_v1 = vsel %vm2761_vm15, %v2768_v27, %v2770_v22 }
 0x2a7   :  { %v12000_v4 = vshll.u32 %v2736_v20, 8  ;;  %v2849_v37 = vshll.u32 %v17841_v8, %v2846_v24  ;;  %v12003_v34 = vshrl.u32 %v2844_v25, 5  ;;  %v2852_v55 = vshll.u32 %v17830_v59, %v2846_v24 }
 0x2a8   :  { %v2855_v46 = vshll.u32 %v17871_v39, %v2846_v24  ;;  %v2856_v48 = vshrl.u32 %v17870_v42, %v11980_v60  ;;  %vm2418_vm2 = vcmp.lt.s32.totalorder %v17998_v2, 0  ;;  %v2775_v26 = vsel %vm2761_vm15, %v2772_v18, %v2774_v7 }
 0x2a9   :  { %v12012_v53 = vor.u32 %v2850_v50, %v2849_v37  ;;  %v2858_v20 = vshll.u32 %v17870_v42, %v2846_v24  ;;  %v2859_v25 = vshrl.u32 %v17837_v36, %v11980_v60  ;;  %v12017_v27 = vor.u32 %v2853_v45, %v2852_v55 }
 0x2aa   :  { %v12019_v22 = vor.u32 %v2856_v48, %v2855_v46  ;;  %v2861_v21 = vshll.u32 %v17837_v36, %v2846_v24  ;;  %v2862_v23 = vshrl.u32 %v17838_v9, %v11980_v60  ;;  %v2687_v35 = vshll.u32 %v11996_v13, 30 }
 0x2ab   :  { %v12026_v18 = vmul.u32.u64.low %v12000_v4, %v2771_v1  ;;  %v12027_v7 = vmul.u32.u64.high %v12000_v4, %v2771_v1, %v12026_v18  ;;  %v2860_v50 = vor.u32 %v2859_v25, %v2858_v20  ;;  %vm2867_vm5 = vcmp.lt.s32.totalorder %v12003_v34, 4 }
 0x2ac   :  { %v12031_v37 = vmul.u32.u64.low %v12000_v4, %v2775_v26  ;;  %v12032_v11 = vmul.u32.u64.high %v12000_v4, %v2775_v26, %v12031_v37  ;;  %v2863_v45 = vor.u32 %v2862_v23, %v2861_v21  ;;  %vm2864_vm14 = vcmp.lt.s32.totalorder %v12003_v34, 1 }
 0x2ad   :  { %vm2866_vm1 = vcmp.lt.s32.totalorder %v12003_v34, 3  ;;  %v2873_v24 = vsel %vm2867_vm5, %v2860_v50, 920167782  ;;  %v2939_v55 = vand.u32 2139095040, %v11966_v30  ;;  %v17999_v1 = vand.u32 2147483647, %v17998_v2 }
 0x2ae   :  { %v2840_v48 = vor.u32 8388608, %v2839_v56  ;;  %v2872_v21 = vsel %vm2864_vm14, %v12012_v53, %v12017_v27  ;;  %v2874_v23 = vsel %vm2866_vm1, %v12019_v22, %v2873_v24  ;;  %v2877_v26 = vsel %vm2867_vm5, %v2863_v45, 1326507024 }
 0x2af   :  { %vm12042_vm9 = vcmp.le.f32.partialorder %v17999_v1, 0.7853982  ;;  %v2394_v20 = vcvt.s32.f32 %v11903_v47  ;;  %v2498_v25 = vcvt.s32.f32 %v2491_v62  ;;  %v8117_v37 = vadd.s32 4294967294, %v2588_v31  ;;  %v18002_v1 = vld [vmem:[#allocation31_spill] sm:$0xff] }
 0x2b0   :  { %v2876_v56 = vsel %vm2864_vm14, %v12017_v27, %v12019_v22  ;;  %vm2106_vm0 = vcmp.lt.s32.totalorder %v18002_v1, 0  ;;  %v12062_v33 = vsub.s32 %v11945_v15, %v2687_v35  ;;  %v2765_v24 = vsel %vm2763_vm12, %v11951_v58, 2102212464  ;;  %v12075_v35 = vpop.f32.mrb[31].mxu0 }
 0x2b1   :  { %vm2865_vm11 = vcmp.lt.s32.totalorder %v12003_v34, 2  ;;  %v2878_v47 = vsel %vm2866_vm1, %v2860_v50, %v2877_v26  ;;  %v2392_v62 = vand.u32 2147483647, %v11909_v14  ;;  %v2744_v31 = vshrl.u32 %v17841_v8, %v11885_v49 }
 0x2b2   :  { %v2875_v45 = vsel %vm2865_vm11, %v2872_v21, %v2874_v23  ;;  %v2940_v57 = vshrl.u32 %v2939_v55, 23  ;;  %v2499_v15 = vmul.f32 %v2498_v25, %v2496_v16  ;;  %v18003_v58 = vsub.s32 4, %v11646_v52 }
 0x2b3   :  { %v2879_v50 = vsel %vm2865_vm11, %v2876_v56, %v2878_v47  ;;  %v12084_v14 = vshll.u32 %v2840_v48, 8  ;;  %vm8118_vm12 = vcmp.lt.s32.totalorder %v8117_v37, 0  ;;  %v2764_v49 = vsel %vm2760_vm7, %v2744_v31, %v11947_v40  ;;  %v18004_v48 = vld [vmem:[#allocation40_spill] sm:$0xff] }
 0x2b4   :  { %v2503_v29 = vsel %vm2418_vm2, %v18003_v58, %v11646_v52  ;;  %v2766_v16 = vsel %vm2762_vm13, %v11949_v51, %v2765_v24  ;;  %v8131_v55 = vadd.s32 4294967169, %v2940_v57  ;;  %v2690_v21 = vsub.s32 0, %v12062_v33 }
 0x2b5   :  { %v2786_v23 = vadd.s32 1, %v12027_v7  ;;  %v12095_v52 = vmul.u32.u64.low %v12084_v14, %v2875_v45  ;;  %v12096_v26 = vmul.u32.u64.high %v12084_v14, %v2875_v45, %v12095_v52  ;;  %vm2314_vm6 = vcmp.lt.s32.totalorder %v18004_v48, 0 }
 0x2b6   :  { %vm2785_vm3 = vc.u32 %v12032_v11, %v12026_v18  ;;  %v12103_v40 = vmul.u32.u64.low %v12084_v14, %v2879_v50  ;;  %v12104_v25 = vmul.u32.u64.high %v12084_v14, %v2879_v50, %v12103_v40  ;;  %v2946_v51 = vadd.s32 1, %v8131_v55  ;;  %v18007_v50 = vld [vmem:[#allocation55_spill] sm:$0xff] }
 0x2b7   :  { %v2296_v57 = vsel %vm11832_vm10, %v17983_v61, %v11894_v43  ;;  %v18005_v56 = vsel %vm11832_vm10, 0, %v11877_v3  ;;  %v2395_v47 = vmul.f32 %v2394_v20, %v2392_v62  ;;  %v2767_v31 = vsel %vm2761_vm15, %v2764_v49, %v2766_v16 }
 0x2b8   :  { %v12114_v24 = vadd.s32 3, %v18005_v56  ;;  %v2500_v45 = vxor.u32 2147483648, %v2499_v15  ;;  %v2505_v58 = vsel %vm12042_vm9, 0, %v2503_v29  ;;  %vm2947_vm7 = vcmp.gt.s32.totalorder %v2946_v51, 0 }
 0x2b9   :  { %v12122_v55 = vadd.f32 %v18007_v50, %v17936_v19  ;;  %v12125_v43 = vsel %vm8118_vm12, 0, %v8117_v37  ;;  %v8120_v63 = vmin.u32 %v2690_v21, %v12062_v33  ;;  %v2787_v3 = vsel %vm2785_vm3, %v2786_v23, %v12027_v7 }
 0x2ba   :  { %18006 = vst [vmem:[#allocation75_spill] sm:$0xff] %v12114_v24  ;;  %v2948_v20 = vsel %vm2947_vm7, %v2946_v51, 0  ;;  %v18009_v12 = vxor.u32 2147483648, %v11862_v32  ;;  %8754 = vcosq.f32 %v2296_v57  ;;  %v2783_v29 = vmul.u32 %v12000_v4, %v2767_v31 }
 0x2bb   :  { %18008 = vst [vmem:[#allocation55_spill] sm:$0xff] %v12122_v55  ;;  %v2950_v49 = vand.u32 31, %v2948_v20  ;;  %8756 = vsinq.f32 %v2296_v57  ;;  %v2396_v16 = vxor.u32 2147483648, %v2395_v47  ;;  %v12137_v37 = vadd.s32 3, %v2505_v58 }
 0x2bc   :  { %v12134_v62 = vsel %vm2106_vm0, %v18009_v12, %v11862_v32  ;;  %v2869_v7 = vsel %vm2867_vm5, %v12019_v22, 2102212464  ;;  %v2501_v21 = vsel %vm2418_vm2, %v2500_v45, %v2499_v15  ;;  %v2592_v23 = vsub.s32 32, %v12125_v43 }
 0x2bd   :  { %18010 = vst [vmem:[#allocation76_spill] sm:$0xff] %v12134_v62  ;;  %18011 = vst [vmem:[#allocation77_spill] sm:$0xff] %v12137_v37  ;;  %v12145_v40 = vadd.s32 %v2787_v3, %v2783_v29  ;;  %v2848_v32 = vshrl.u32 %v17841_v8, %v11980_v60  ;;  %v2576_v4 = vadd.s32 %v11711_v17, %v11708_v44  ;;  %v2692_v51 = vclz %v8120_v63 }
 0x2be   :  { %v2890_v57 = vadd.s32 1, %v12096_v26  ;;  %v3043_v56 = vand.u32 2139095040, %v12122_v55  ;;  %v2870_v15 = vsel %vm2866_vm1, %v12017_v27, %v2869_v7  ;;  %vm2889_vm3 = vc.u32 %v12104_v25, %v12095_v52 }
 0x2bf   :  { %v2868_v22 = vsel %vm2864_vm14, %v2848_v32, %v12012_v53  ;;  %v12161_v60 = vsub.s32 32, %v2950_v49  ;;  %v12165_v44 = vsel %vm2314_vm6, %v2396_v16, %v2395_v47  ;;  %v12170_v17 = vsel %vm12042_vm9, %v17998_v2, %v2501_v21  ;;  %v18013_v53 = vld [vmem:[#allocation60_spill] sm:$0xff] }
 0x2c0   :  { %18012 = vst [vmem:[#allocation78_spill] sm:$0xff] %v12165_v44  ;;  %v12174_v31 = vadd.f32 %v18013_v53, %v17873_v5  ;;  %v12178_v27 = vadd.f32 %v11556_v54, %v17936_v19  ;;  %v2594_v45 = vshrl.u32 %v2576_v4, %v2592_v23  ;;  %v2596_v58 = vsub.s32 4294967266, %v12125_v43 }
 0x2c1   :  { %v2789_v50 = vadd.s32 536870912, %v12145_v40  ;;  %v8121_v63 = vadd.s32 4294967294, %v2692_v51  ;;  %v2871_v46 = vsel %vm2865_vm11, %v2868_v22, %v2870_v15  ;;  %v2891_v3 = vsel %vm2889_vm3, %v2890_v57, %v12096_v26 }
 0x2c2   :  { %18014 = vst [vmem:[#allocation60_spill] sm:$0xff] %v12174_v31  ;;  %18015 = vst [vmem:[#allocation79_spill] sm:$0xff] %v12178_v27  ;;  %v3044_v12 = vshrl.u32 %v3043_v56, 23  ;;  %v12186_v29 = vshrl.u32 %v2948_v20, 5  ;;  %v2954_v54 = vshrl.u32 %v17830_v59, %v12161_v60  ;;  %v2962_v16 = vshll.u32 %v17870_v42, %v2950_v49 }
 0x2c3   :  { %v2963_v7 = vshrl.u32 %v17837_v36, %v12161_v60  ;;  %v2957_v21 = vshrl.u32 %v17871_v39, %v12161_v60  ;;  %v2960_v34 = vshrl.u32 %v17870_v42, %v12161_v60  ;;  %v2965_v23 = vshll.u32 %v17837_v36, %v2950_v49 }
 0x2c4   :  { %v2966_v26 = vshrl.u32 %v17838_v9, %v12161_v60  ;;  %v12200_v20 = vpop.eup %8754  ;;  %v2597_v32 = vadd.s32 127, %v2596_v58  ;;  %v12202_v4 = vshrl.u32 %v2789_v50, 30  ;;  %v2887_v51 = vmul.u32 %v12084_v14, %v2871_v46 }
 0x2c5   :  { %18016 = vst [vmem:[#allocation80_spill] sm:$0xff] %v12200_v20  ;;  %v2964_v57 = vor.u32 %v2963_v7, %v2962_v16  ;;  %v12205_v56 = vpop.eup %8756  ;;  %v2953_v22 = vshll.u32 %v17841_v8, %v2950_v49  ;;  %v2956_v15 = vshll.u32 %v17830_v59, %v2950_v49  ;;  %v2959_v53 = vshll.u32 %v17871_v39, %v2950_v49 }
 0x2c6   :  { %18017 = vst [vmem:[#allocation81_spill] sm:$0xff] %v12202_v4  ;;  %18018 = vst [vmem:[#allocation82_spill] sm:$0xff] %v12205_v56  ;;  %v2967_v47 = vor.u32 %v2966_v26, %v2965_v23  ;;  %vm8122_vm11 = vcmp.lt.s32.totalorder %v8121_v63, 0  ;;  %v12210_v44 = vadd.s32 %v2891_v3, %v2887_v51  ;;  %v18019_v48 = vand.u32 2147483647, %v11966_v30  ;;  %v12244_v23 = vpop.f32.mrb[32].mxu0 }
 0x2c7   :  { %v8135_v50 = vadd.s32 4294967169, %v3044_v12  ;;  %v12214_v62 = vor.u32 %v2954_v54, %v2953_v22  ;;  %v12216_v14 = vor.u32 %v2957_v21, %v2956_v15  ;;  %v12218_v46 = vor.u32 %v2960_v34, %v2959_v53  ;;  %18020 = vst [vmem:[#allocation83_spill] sm:$0xff] %v12244_v23 }
 0x2c8   :  { %v2943_v58 = vand.u32 8388607, %v18019_v48  ;;  %vm2971_vm9 = vcmp.lt.s32.totalorder %v12186_v29, 4  ;;  %8758 = vcosq.f32 %v12170_v17  ;;  %v2593_v49 = vshll.u32 %v11913_v6, %v12125_v43 }
 0x2c9   :  { %v2598_v16 = vshll.u32 %v2597_v32, 23  ;;  %v2977_v3 = vsel %vm2971_vm9, %v2964_v57, 920167782  ;;  %v12226_v7 = vsel %vm8122_vm11, 0, %v8121_v63  ;;  %v2791_v48 = vshll.u32 %v12202_v4, 30 }
 0x2ca   :  { %v2981_v12 = vsel %vm2971_vm9, %v2967_v47, 1326507024  ;;  %v17599_v54 = vand.u32 2147483647, %v12122_v55  ;;  %v12232_v21 = vor.u32 %v2594_v45, %v2593_v49  ;;  %v2944_v34 = vor.u32 8388608, %v2943_v58 }
 0x2cb   :  { %vm2968_vm10 = vcmp.lt.s32.totalorder %v12186_v29, 1  ;;  %vm2970_vm13 = vcmp.lt.s32.totalorder %v12186_v29, 3  ;;  %v2893_v6 = vadd.s32 536870912, %v12210_v44  ;;  %v3050_v63 = vadd.s32 1, %v8135_v50 }
 0x2cc   :  { %v2976_v43 = vsel %vm2968_vm10, %v12214_v62, %v12216_v14  ;;  %v2978_v47 = vsel %vm2970_vm13, %v12218_v46, %v2977_v3  ;;  %v12246_v45 = vor.u32 4788187, %v2598_v16  ;;  %v2700_v26 = vsub.s32 4294967266, %v12226_v7 }
 0x2cd   :  { %v2980_v32 = vsel %vm2968_vm10, %v12216_v14, %v12218_v46  ;;  %v2982_v51 = vsel %vm2970_vm13, %v2964_v57, %v2981_v12  ;;  %v12256_v22 = vsub.s32 %v12145_v40, %v2791_v48  ;;  %vm2969_vm15 = vcmp.lt.s32.totalorder %v12186_v29, 2 }
 0x2ce   :  { %v3047_v15 = vand.u32 8388607, %v17599_v54  ;;  %vm3051_vm2 = vcmp.gt.s32.totalorder %v3050_v63, 0  ;;  %v12264_v58 = vadd.s32 %v11846_v0, %v11852_v28  ;;  %v2979_v50 = vsel %vm2969_vm15, %v2976_v43, %v2978_v47 }
 0x2cf   :  { %v3052_v49 = vsel %vm3051_vm2, %v3050_v63, 0  ;;  %v12268_v57 = vshrl.u32 %v2893_v6, 30  ;;  %v2983_v40 = vsel %vm2969_vm15, %v2980_v32, %v2982_v51  ;;  %v12272_v16 = vshll.u32 %v2944_v34, 8 }
 0x2d0   :  { %v3147_v3 = vand.u32 2139095040, %v12174_v31  ;;  %v12276_v12 = vadd.s32 127, %v2700_v26  ;;  %v3054_v0 = vand.u32 31, %v3052_v49  ;;  %v2794_v54 = vsub.s32 0, %v12256_v22 }
 0x2d1   :  { %v12281_v43 = vmul.u32.u64.low %v12272_v16, %v2979_v50  ;;  %v12282_v6 = vmul.u32.u64.high %v12272_v16, %v2979_v50, %v12281_v43  ;;  %v3048_v47 = vor.u32 8388608, %v3047_v15  ;;  %v2952_v34 = vshrl.u32 %v17841_v8, %v12161_v60 }
 0x2d2   :  { %v12285_v63 = vpop.eup %8758  ;;  %v12290_v32 = vmul.u32.u64.low %v12272_v16, %v2983_v40  ;;  %v12291_v26 = vmul.u32.u64.high %v12272_v16, %v2983_v40, %v12290_v32  ;;  %v3055_v51 = vsub.s32 32, %v3054_v0  ;;  %v2895_v53 = vshll.u32 %v12268_v57, 30 }
 0x2d3   :  { %18021 = vst [vmem:[#allocation84_spill] sm:$0xff] %v12285_v63  ;;  %v3057_v48 = vshll.u32 %v17841_v8, %v3054_v0  ;;  %v3060_v28 = vshll.u32 %v17830_v59, %v3054_v0  ;;  %v3148_v50 = vshrl.u32 %v3147_v3, 23  ;;  %v3063_v1 = vshll.u32 %v17871_v39, %v3054_v0 }
 0x2d4   :  { %v3058_v4 = vshrl.u32 %v17830_v59, %v3055_v51  ;;  %v3061_v15 = vshrl.u32 %v17871_v39, %v3055_v51  ;;  %v3064_v60 = vshrl.u32 %v17870_v42, %v3055_v51  ;;  %v3053_v2 = vshrl.u32 %v3052_v49, 5 }
 0x2d5   :  { %v3066_v40 = vshll.u32 %v17870_v42, %v3054_v0  ;;  %v3067_v32 = vshrl.u32 %v17837_v36, %v3055_v51  ;;  %v3069_v63 = vshll.u32 %v17837_v36, %v3054_v0  ;;  %v3070_v3 = vshrl.u32 %v17838_v9, %v3055_v51 }
 0x2d6   :  { %v3059_v37 = vor.u32 %v3058_v4, %v3057_v48  ;;  %v3062_v61 = vor.u32 %v3061_v15, %v3060_v28  ;;  %v3065_v20 = vor.u32 %v3064_v60, %v3063_v1  ;;  %v2696_v56 = vsub.s32 32, %v12226_v7 }
 0x2d7   :  { %v2702_v24 = vshll.u32 %v12276_v12, 23  ;;  %v12307_v30 = vmin.u32 %v2794_v54, %v12256_v22  ;;  %v3068_v23 = vor.u32 %v3067_v32, %v3066_v40  ;;  %v12310_v49 = vsub.s32 %v12210_v44, %v2895_v53 }
 0x2d8   :  { %v2972_v0 = vsel %vm2968_vm10, %v2952_v34, %v12214_v62  ;;  %v3071_v4 = vor.u32 %v3070_v3, %v3069_v63  ;;  %v3088_v48 = vshll.u32 %v3048_v47, 8  ;;  %v2973_v1 = vsel %vm2971_vm9, %v12218_v46, 2102212464  ;;  %v12325_v46 = vpop.f32.mrb[33].mxu0 }
 0x2d9   :  { %vm3072_vm5 = vcmp.lt.s32.totalorder %v3053_v2, 1  ;;  %vm3075_vm14 = vcmp.lt.s32.totalorder %v3053_v2, 4  ;;  %v8139_v12 = vadd.s32 4294967169, %v3148_v50  ;;  %vm3074_vm1 = vcmp.lt.s32.totalorder %v3053_v2, 3 }
 0x2da   :  { %v3077_v54 = vsel %vm3075_vm14, %v3065_v20, 2102212464  ;;  %v3080_v28 = vsel %vm3072_vm5, %v3059_v37, %v3062_v61  ;;  %v3081_v44 = vsel %vm3075_vm14, %v3068_v23, 920167782  ;;  %vm2626_vm12 = vcmp.lt.s32.totalorder %v11620_v38, 0 }
 0x2db   :  { %v3056_v62 = vshrl.u32 %v17841_v8, %v3055_v51  ;;  %vm3073_vm7 = vcmp.lt.s32.totalorder %v3053_v2, 2  ;;  %v3082_v53 = vsel %vm3074_vm1, %v3065_v20, %v3081_v44  ;;  %v3084_v47 = vsel %vm3072_vm5, %v3062_v61, %v3065_v20 }
 0x2dc   :  { %v2974_v63 = vsel %vm2970_vm13, %v12216_v14, %v2973_v1  ;;  %v2994_v34 = vadd.s32 1, %v12282_v6  ;;  %v3083_v50 = vsel %vm3073_vm7, %v3080_v28, %v3082_v53  ;;  %v3085_v15 = vsel %vm3075_vm14, %v3071_v4, 1326507024 }
 0x2dd   :  { %v3076_v60 = vsel %vm3072_vm5, %v3056_v62, %v3059_v37  ;;  %v3078_v51 = vsel %vm3074_vm1, %v3062_v61, %v3077_v54  ;;  %v3086_v40 = vsel %vm3074_vm1, %v3068_v23, %v3085_v15  ;;  %v3154_v32 = vadd.s32 1, %v8139_v12  ;;  %v8713_v54 = vld [vmem:[%s17449_s3] sm:$0xff]  }
 0x2de   :  { %vm2993_vm3 = vc.u32 %v12291_v26, %v12281_v43  ;;  %v3087_v20 = vsel %vm3073_vm7, %v3084_v47, %v3086_v40  ;;  %v12339_v3 = vmul.u32.u64.low %v3088_v48, %v3083_v50  ;;  %v12340_v14 = vmul.u32.u64.high %v3088_v48, %v3083_v50, %v12339_v3 }
 0x2df   :  { %v2975_v1 = vsel %vm2969_vm15, %v2972_v0, %v2974_v63  ;;  %v12345_v4 = vmul.u32.u64.low %v3088_v48, %v3087_v20  ;;  %v12346_v28 = vmul.u32.u64.high %v3088_v48, %v3087_v20, %v12345_v4  ;;  %vm3155_vm11 = vcmp.gt.s32.totalorder %v3154_v32, 0 }
 0x2e0   :  { %v2697_v61 = vshll.u32 %v12062_v33, %v12226_v7  ;;  %v2698_v37 = vshrl.u32 %v12264_v58, %v2696_v56  ;;  %v3079_v23 = vsel %vm3073_vm7, %v3076_v60, %v3078_v51  ;;  %v3156_v12 = vsel %vm3155_vm11, %v3154_v32, 0 }
 0x2e1   :  { %v2703_v44 = vor.u32 4788187, %v2702_v24  ;;  %v2796_v29 = vclz %v12307_v30  ;;  %v2995_v0 = vsel %vm2993_vm3, %v2994_v34, %v12282_v6  ;;  %v3158_v62 = vand.u32 31, %v3156_v12  ;;  %v8714_v34 = vld [vmem:[%s17449_s3 + $0x8] sm:$0xff]  }
 0x2e2   :  { %v2898_v53 = vsub.s32 0, %v12310_v49  ;;  %v2991_v47 = vmul.u32 %v12272_v16, %v2975_v1  ;;  %v3098_v33 = vadd.s32 1, %v12340_v14  ;;  %v18022_v2 = vand.u32 2147483647, %v11620_v38 }
 0x2e3   :  { %v3095_v7 = vmul.u32 %v3088_v48, %v3079_v23  ;;  %vm3097_vm10 = vc.u32 %v12346_v28, %v12339_v3  ;;  %v17610_v30 = vand.u32 2147483647, %v12174_v31  ;;  %v12369_v24 = vsub.s32 32, %v3158_v62 }
 0x2e4   :  { %vm12362_vm9 = vcmp.le.f32.partialorder %v18022_v2, 0.7853982  ;;  %v17612_v58 = vmov 0   ;;  %8760 = vsinq.f32 %v12170_v17  ;;  %v18025_v16 = vsub.s32 4, %v11996_v13 }
 0x2e5   :  { %7320 = vmatprep.subr.bf16.mxu1 %v17612_v58  ;;  %v12380_v48 = vadd.s32 %v2995_v0, %v2991_v47  ;;  %v3099_v63 = vsel %vm3097_vm10, %v3098_v33, %v12340_v14  ;;  %v18026_v50 = vand.u32 2147483647, %v12246_v45  ;;  %v18027_v17 = vcvt.s32.f32 %v12232_v21 }
 0x2e6   :  { %v12378_v6 = vsel %vm2626_vm12, %v18025_v16, %v11996_v13  ;;  %7321 = vmatpush1.bf16.msra.mxu1 %v8713_v54  ;;  %v2699_v60 = vor.u32 %v2698_v37, %v2697_v61  ;;  %v2704_v51 = vand.u32 2147483647, %v2703_v44  ;;  %v3100_v40 = vadd.s32 %v3099_v63, %v3095_v7  ;;  %v8715_v44 = vld [vmem:[%s17449_s3 + $0x10] sm:$0xff]  }
 0x2e7   :  { %v12390_v15 = vmul.f32 %v18027_v17, %v18026_v50  ;;  %7322 = vmatprep.subr.bf16.mxu1 %v17612_v58  ;;  %v8125_v13 = vadd.s32 4294967294, %v2796_v29  ;;  %v8128_v32 = vmin.u32 %v2898_v53, %v12310_v49  ;;  %v3162_v20 = vshrl.u32 %v17830_v59, %v12369_v24 }
 0x2e8   :  { %v3165_v14 = vshrl.u32 %v17871_v39, %v12369_v24  ;;  %v3101_v1 = vadd.s32 536870912, %v3100_v40  ;;  %v3151_v21 = vand.u32 8388607, %v17610_v30  ;;  %v3161_v45 = vshll.u32 %v17841_v8, %v3158_v62  ;;  %v8716_v30 = vld [vmem:[%s17449_s3 + $0x18] sm:$0xff]  }
 0x2e9   :  { %v3164_v4 = vshll.u32 %v17830_v59, %v3158_v62  ;;  %v2997_v61 = vadd.s32 536870912, %v12380_v48  ;;  %v3168_v37 = vshrl.u32 %v17870_v42, %v12369_v24  ;;  %v3170_v23 = vshll.u32 %v17870_v42, %v3158_v62 }
 0x2ea   :  { %v3171_v54 = vshrl.u32 %v17837_v36, %v12369_v24  ;;  %7323 = vmatpush1.bf16.msra.mxu1 %v8714_v34  ;;  %v12411_v29 = vshrl.u32 %v3156_v12, 5  ;;  %v12413_v0 = vor.u32 %v3162_v20, %v3161_v45  ;;  %v3167_v47 = vshll.u32 %v17871_v39, %v3158_v62 }
 0x2eb   :  { %v12415_v53 = vor.u32 %v3165_v14, %v3164_v4  ;;  %7324 = vmatprep.subr.bf16.mxu1 %v17612_v58  ;;  %v12419_v33 = vshrl.u32 %v3101_v1, 30  ;;  %v3173_v7 = vshll.u32 %v17837_v36, %v3158_v62  ;;  %v3174_v16 = vshrl.u32 %v17838_v9, %v12369_v24 }
 0x2ec   :  { %v3172_v2 = vor.u32 %v3171_v54, %v3170_v23  ;;  %v2706_v63 = vcvt.s32.f32 %v2699_v60  ;;  %v2900_v34 = vclz %v8128_v32  ;;  %v3152_v12 = vor.u32 8388608, %v3151_v21 }
 0x2ed   :  { %v3251_v50 = vand.u32 2139095040, %v12178_v27  ;;  %vm2522_vm13 = vcmp.lt.s32.totalorder %v11451_v41, 0  ;;  %v2604_v17 = vxor.u32 2147483648, %v12390_v15  ;;  %v2713_v20 = vsel %vm12362_vm9, 0, %v12378_v6 }
 0x2ee   :  { %v3169_v14 = vor.u32 %v3168_v37, %v3167_v47  ;;  %v3175_v1 = vor.u32 %v3174_v16, %v3173_v7  ;;  %7325 = vmatpush1.bf16.msra.mxu1 %v8715_v44  ;;  %v2707_v62 = vmul.f32 %v2706_v63, %v2704_v51  ;;  %v12430_v45 = vshrl.u32 %v2997_v61, 30  ;;  %v12435_v60 = vpop.eup %8760 }
 0x2ef   :  { %vm3176_vm15 = vcmp.lt.s32.totalorder %v12411_v29, 1  ;;  %vm3179_vm2 = vcmp.lt.s32.totalorder %v12411_v29, 4  ;;  %7326 = vmatprep.subr.bf16.mxu1 %v17612_v58  ;;  %18029 = vst [vmem:[#allocation86_spill] sm:$0xff] %v12435_v60  ;;  %vm8126_vm5 = vcmp.lt.s32.totalorder %v8125_v13, 0  ;;  %v3103_v32 = vshll.u32 %v12419_v33, 30 }
 0x2f0   :  { %18028 = vst [vmem:[#allocation85_spill] sm:$0xff] %v12430_v45  ;;  %v3184_v6 = vsel %vm3176_vm15, %v12413_v0, %v12415_v53  ;;  %v3185_v51 = vsel %vm3179_vm2, %v3172_v2, 920167782  ;;  %v8129_v21 = vadd.s32 4294967294, %v2900_v34  ;;  %vm3178_vm14 = vcmp.lt.s32.totalorder %v12411_v29, 3 }
 0x2f1   :  { %v12445_v4 = vshll.u32 %v3152_v12, 8  ;;  %v3252_v61 = vshrl.u32 %v3251_v50, 23  ;;  %vm3177_vm1 = vcmp.lt.s32.totalorder %v12411_v29, 2  ;;  %v3186_v37 = vsel %vm3178_vm14, %v3169_v14, %v3185_v51 }
 0x2f2   :  { %v3188_v23 = vsel %vm3176_vm15, %v12415_v53, %v3169_v14  ;;  %v3189_v54 = vsel %vm3179_vm2, %v3175_v1, 1326507024  ;;  %v2799_v44 = vsel %vm8126_vm5, 0, %v8125_v13  ;;  %v2999_v47 = vshll.u32 %v12430_v45, 30  ;;  %7327 = vmatpush1.bf16.msra.mxu1 %v8716_v30 }
 0x2f3   :  { %v3187_v7 = vsel %vm3177_vm1, %v3184_v6, %v3186_v37  ;;  %v3190_v16 = vsel %vm3178_vm14, %v3172_v2, %v3189_v54  ;;  %v12460_v63 = vsub.s32 %v3100_v40, %v3103_v32  ;;  %v2708_v1 = vxor.u32 2147483648, %v2707_v62 }
 0x2f4   :  { %v3191_v34 = vsel %vm3177_vm1, %v3188_v23, %v3190_v16  ;;  %v12465_v12 = vmul.u32.u64.low %v12445_v4, %v3187_v7  ;;  %v12466_v50 = vmul.u32.u64.high %v12445_v4, %v3187_v7, %v12465_v12  ;;  %vm8130_vm7 = vcmp.lt.s32.totalorder %v8129_v21, 0  ;;  %v12490_v7 = vpop.f32.mrb[34].mxu0 }
 0x2f5   :  { %v12470_v13 = vmul.u32.u64.low %v12445_v4, %v3191_v34  ;;  %v12471_v51 = vmul.u32.u64.high %v12445_v4, %v3191_v34, %v12470_v13  ;;  %v12473_v6 = vadd.s32 3, %v2713_v20  ;;  %v2800_v37 = vsub.s32 32, %v2799_v44  ;;  %18033 = vst [vmem:[#allocation90_spill] sm:$0xff] %v12490_v7 }
 0x2f6   :  { %v3181_v40 = vsel %vm3179_vm2, %v3169_v14, 2102212464  ;;  %v8143_v2 = vadd.s32 4294967169, %v3252_v61  ;;  %v12480_v32 = vsel %vm2522_vm13, %v2604_v17, %v12390_v15  ;;  %v2784_v23 = vadd.s32 %v12026_v18, %v12032_v11 }
 0x2f7   :  { %18030 = vst [vmem:[#allocation87_spill] sm:$0xff] %v12473_v6  ;;  %18031 = vst [vmem:[#allocation88_spill] sm:$0xff] %v12480_v32  ;;  %v3160_v54 = vshrl.u32 %v17841_v8, %v12369_v24  ;;  %v12488_v20 = vadd.f32 %v11701_v10, %v17873_v5  ;;  %v12492_v16 = vsel %vm8130_vm7, 0, %v8129_v21  ;;  %v12495_v14 = vsub.s32 %v12380_v48, %v2999_v47  ;;  %v18034_v32 = vld [vmem:[#allocation51_spill] sm:$0xff] }
 0x2f8   :  { %v3106_v15 = vsub.s32 0, %v12460_v63  ;;  %v3258_v17 = vadd.s32 1, %v8143_v2  ;;  %v2709_v11 = vsel %vm2626_vm12, %v2708_v1, %v2707_v62  ;;  %v2804_v18 = vsub.s32 4294967266, %v2799_v44 }
 0x2f9   :  { %18032 = vst [vmem:[#allocation89_spill] sm:$0xff] %v12488_v20  ;;  %v3180_v24 = vsel %vm3176_vm15, %v3160_v54, %v12413_v0  ;;  %v3182_v10 = vsel %vm3178_vm14, %v12415_v53, %v3181_v40  ;;  %v2801_v21 = vshll.u32 %v12256_v22, %v2799_v44  ;;  %v2802_v61 = vshrl.u32 %v2784_v23, %v2800_v37 }
 0x2fa   :  { %v3202_v48 = vadd.s32 1, %v12466_v50  ;;  %vm3259_vm3 = vcmp.gt.s32.totalorder %v3258_v17, 0  ;;  %v2908_v47 = vsub.s32 4294967266, %v12492_v16  ;;  %vm3201_vm12 = vc.u32 %v12471_v51, %v12465_v12 }
 0x2fb   :  { %v17611_v62 = vand.u32 2147483647, %v12178_v27  ;;  %v3355_v34 = vand.u32 2139095040, %v12488_v20  ;;  %v3002_v0 = vsub.s32 0, %v12495_v14  ;;  %v8136_v1 = vmin.u32 %v3106_v15, %v12460_v63 }
 0x2fc   :  { %v3183_v22 = vsel %vm3177_vm1, %v3180_v24, %v3182_v10  ;;  %v3260_v53 = vsel %vm3259_vm3, %v3258_v17, 0  ;;  %v12520_v44 = vsel %vm12362_vm9, %v11620_v38, %v2709_v11  ;;  %v12522_v13 = vadd.s32 127, %v2804_v18 }
 0x2fd   :  { %v2888_v37 = vadd.s32 %v12095_v52, %v12104_v25  ;;  %v12527_v2 = vor.u32 %v2802_v61, %v2801_v21  ;;  %v2904_v23 = vsub.s32 32, %v12492_v16  ;;  %v3203_v29 = vsel %vm3201_vm12, %v3202_v48, %v12466_v50 }
 0x2fe   :  { %v3262_v54 = vand.u32 31, %v3260_v53  ;;  %v2905_v15 = vshll.u32 %v12310_v49, %v12492_v16  ;;  %v2909_v56 = vadd.s32 127, %v2908_v47  ;;  %v3199_v17 = vmul.u32 %v12445_v4, %v3183_v22 }
 0x2ff   :  { %v3356_v11 = vshrl.u32 %v3355_v34, 23  ;;  %v8132_v18 = vmin.u32 %v3002_v0, %v12495_v14  ;;  %v3108_v24 = vclz %v8136_v1  ;;  %v3255_v52 = vand.u32 8388607, %v17611_v62 }
 0x300   :  { %v12537_v25 = vsub.s32 32, %v3262_v54  ;;  %v12539_v10 = vadd.s32 %v3203_v29, %v3199_v17  ;;  %v12541_v21 = vshrl.u32 %v3260_v53, 5  ;;  %v3265_v50 = vshll.u32 %v17841_v8, %v3262_v54 }
 0x301   :  { %v3268_v49 = vshll.u32 %v17830_v59, %v3262_v54  ;;  %v3271_v61 = vshll.u32 %v17871_v39, %v3262_v54  ;;  %v3274_v47 = vshll.u32 %v17870_v42, %v3262_v54  ;;  %v3277_v0 = vshll.u32 %v17837_v36, %v3262_v54 }
 0x302   :  { %v3266_v4 = vshrl.u32 %v17830_v59, %v12537_v25  ;;  %v3269_v16 = vshrl.u32 %v17871_v39, %v12537_v25  ;;  %v3272_v48 = vshrl.u32 %v17870_v42, %v12537_v25  ;;  %v3275_v34 = vshrl.u32 %v17837_v36, %v12537_v25 }
 0x303   :  { %v8147_v1 = vadd.s32 4294967169, %v3356_v11  ;;  %v3278_v17 = vshrl.u32 %v17838_v9, %v12537_v25  ;;  %v2906_v62 = vshrl.u32 %v2888_v37, %v2904_v23  ;;  %v2910_v40 = vshll.u32 %v2909_v56, 23  ;;  %v12567_v37 = vpop.f32.mrb[35].mxu0 }
 0x304   :  { %v3267_v22 = vor.u32 %v3266_v4, %v3265_v50  ;;  %v3270_v53 = vor.u32 %v3269_v16, %v3268_v49  ;;  %v3273_v29 = vor.u32 %v3272_v48, %v3271_v61  ;;  %v3004_v58 = vclz %v8132_v18  ;;  %18035 = vst [vmem:[#allocation91_spill] sm:$0xff] %v12567_v37 }
 0x305   :  { %v3276_v45 = vor.u32 %v3275_v34, %v3274_v47  ;;  %vm2834_vm11 = vcmp.lt.s32.totalorder %v18034_v32, 0  ;;  %v8137_v41 = vadd.s32 4294967294, %v3108_v24  ;;  %v3256_v38 = vor.u32 8388608, %v3255_v52 }
 0x306   :  { %v3279_v54 = vor.u32 %v3278_v17, %v3277_v0  ;;  %vm3280_vm9 = vcmp.lt.s32.totalorder %v12541_v21, 1  ;;  %v3205_v11 = vadd.s32 536870912, %v12539_v10  ;;  %vm3283_vm10 = vcmp.lt.s32.totalorder %v12541_v21, 4 }
 0x307   :  { %v3288_v50 = vsel %vm3280_vm9, %v3267_v22, %v3270_v53  ;;  %v3362_v49 = vadd.s32 1, %v8147_v1  ;;  %v18036_v23 = vmov 0   ;;  %vm3282_vm15 = vcmp.lt.s32.totalorder %v12541_v21, 3 }
 0x308   :  { %7328 = vmatprep.subr.bf16.mxu1 %v18036_v23  ;;  %v3289_v56 = vsel %vm3283_vm10, %v3276_v45, 920167782  ;;  %v3292_v30 = vsel %vm3280_vm9, %v3270_v53, %v3273_v29  ;;  %v3293_v18 = vsel %vm3283_vm10, %v3279_v54, 1326507024  ;;  %v2911_v24 = vor.u32 4788187, %v2910_v40 }
 0x309   :  { %v8133_v52 = vadd.s32 4294967294, %v3004_v58  ;;  %vm3281_vm2 = vcmp.lt.s32.totalorder %v12541_v21, 2  ;;  %v3290_v4 = vsel %vm3282_vm15, %v3273_v29, %v3289_v56  ;;  %vm8138_vm5 = vcmp.lt.s32.totalorder %v8137_v41, 0 }
 0x30a   :  { %v3291_v16 = vsel %vm3281_vm2, %v3288_v50, %v3290_v4  ;;  %v3294_v61 = vsel %vm3282_vm15, %v3276_v45, %v3293_v18  ;;  %v3296_v48 = vshll.u32 %v3256_v38, 8  ;;  %v2806_v47 = vshll.u32 %v12522_v13, 23 }
 0x30b   :  { %v2907_v34 = vor.u32 %v2906_v62, %v2905_v15  ;;  %v3295_v40 = vsel %vm3281_vm2, %v3292_v30, %v3294_v61  ;;  %vm3363_vm14 = vcmp.gt.s32.totalorder %v3362_v49, 0  ;;  %v12587_v58 = vshrl.u32 %v3205_v11, 30 }
 0x30c   :  { %v12589_v0 = vmul.u32.u64.low %v3296_v48, %v3295_v40  ;;  %v12590_v1 = vmul.u32.u64.high %v3296_v48, %v3295_v40, %v12589_v0  ;;  %v3364_v17 = vsel %vm3363_vm14, %v3362_v49, 0  ;;  %vm8134_vm1 = vcmp.lt.s32.totalorder %v8133_v52, 0 }
 0x30d   :  { %18037 = vst [vmem:[#allocation92_spill] sm:$0xff] %v12587_v58  ;;  %v12592_v54 = vsel %vm8138_vm5, 0, %v8137_v41  ;;  %v12594_v50 = vmul.u32.u64.low %v3296_v48, %v3291_v16  ;;  %v12595_v56 = vmul.u32.u64.high %v3296_v48, %v3291_v16, %v12594_v50  ;;  %8762 = vcosq.f32 %v12520_v44 }
 0x30e   :  { %v2912_v38 = vand.u32 2147483647, %v2911_v24  ;;  %v3285_v45 = vsel %vm3283_vm10, %v3273_v29, 2102212464  ;;  %v3366_v62 = vand.u32 31, %v3364_v17  ;;  %8764 = vsinq.f32 %v12520_v44 }
 0x30f   :  { %v12602_v13 = vor.u32 4788187, %v2806_v47  ;;  %v18038_v15 = vsub.s32 4, %v12268_v57  ;;  %v3264_v11 = vshrl.u32 %v17841_v8, %v12537_v25  ;;  %v2914_v49 = vcvt.s32.f32 %v2907_v34 }
 0x310   :  { %v12613_v30 = vsel %vm8134_vm1, 0, %v8133_v52  ;;  %v3116_v29 = vsub.s32 4294967266, %v12592_v54  ;;  %v3207_v18 = vshll.u32 %v12587_v58, 30  ;;  %v3286_v4 = vsel %vm3282_vm15, %v3270_v53, %v3285_v45  ;;  %v18039_v53 = vld [vmem:[#allocation69_spill] sm:$0xff] }
 0x311   :  { %v12609_v41 = vsel %vm2834_vm11, %v18038_v15, %v12268_v57  ;;  %v3284_v24 = vsel %vm3280_vm9, %v3264_v11, %v3267_v22  ;;  %v12622_v57 = vsub.s32 32, %v3366_v62  ;;  %v12624_v16 = vmul.f32 %v2914_v49, %v2912_v38 }
 0x312   :  { %v2992_v25 = vadd.s32 %v12281_v43, %v12291_v26  ;;  %v3096_v52 = vadd.s32 %v12339_v3, %v12346_v28  ;;  %v3306_v61 = vadd.s32 1, %v12595_v56  ;;  %v3012_v47 = vsub.s32 4294967266, %v12613_v30 }
 0x313   :  { %vm3305_vm7 = vc.u32 %v12590_v1, %v12594_v50  ;;  %v17623_v22 = vand.u32 2147483647, %v12488_v20  ;;  %v12637_v34 = vadd.f32 %v18039_v53, %v17936_v19  ;;  %v3117_v40 = vadd.s32 127, %v3116_v29 }
 0x314   :  { %v12640_v0 = vsub.s32 %v12539_v10, %v3207_v18  ;;  %v3287_v43 = vsel %vm3281_vm2, %v3284_v24, %v3286_v4  ;;  %v12644_v26 = vshrl.u32 %v3364_v17, 5  ;;  %v3373_v3 = vshrl.u32 %v17871_v39, %v12622_v57 }
 0x315   :  { %18040 = vst [vmem:[#allocation69_spill] sm:$0xff] %v12637_v34  ;;  %v3376_v28 = vshrl.u32 %v17870_v42, %v12622_v57  ;;  %v3378_v38 = vshll.u32 %v17870_v42, %v3366_v62  ;;  %v3379_v45 = vshrl.u32 %v17837_v36, %v12622_v57  ;;  %v3307_v15 = vsel %vm3305_vm7, %v3306_v61, %v12595_v56 }
 0x316   :  { %v3370_v10 = vshrl.u32 %v17830_v59, %v12622_v57  ;;  %v3381_v21 = vshll.u32 %v17837_v36, %v3366_v62  ;;  %v3382_v17 = vshrl.u32 %v17838_v9, %v12622_v57  ;;  %v3303_v11 = vmul.u32 %v3296_v48, %v3287_v43 }
 0x317   :  { %v3372_v49 = vshll.u32 %v17830_v59, %v3366_v62  ;;  %v3375_v29 = vshll.u32 %v17871_v39, %v3366_v62  ;;  %v3380_v18 = vor.u32 %v3379_v45, %v3378_v38  ;;  %v12661_v24 = vpop.eup %8762  ;;  %v3210_v4 = vsub.s32 0, %v12640_v0 }
 0x318   :  { %18041 = vst [vmem:[#allocation93_spill] sm:$0xff] %v12661_v24  ;;  %v3359_v56 = vand.u32 8388607, %v17623_v22  ;;  %v3369_v61 = vshll.u32 %v17841_v8, %v3366_v62  ;;  %v3383_v53 = vor.u32 %v3382_v17, %v3381_v21  ;;  %v12667_v44 = vpop.eup %8764  ;;  %v12669_v58 = vadd.s32 %v3307_v15, %v3303_v11 }
 0x319   :  { %18042 = vst [vmem:[#allocation94_spill] sm:$0xff] %v12667_v44  ;;  %v12671_v48 = vor.u32 %v3373_v3, %v3372_v49  ;;  %v3377_v43 = vor.u32 %v3376_v28, %v3375_v29  ;;  %v3459_v6 = vand.u32 2139095040, %v12637_v34  ;;  %v3008_v38 = vsub.s32 32, %v12613_v30  ;;  %v18043_v29 = vld [vmem:[#allocation74_spill] sm:$0xff] }
 0x31a   :  { %v3112_v45 = vsub.s32 32, %v12592_v54  ;;  %v3371_v24 = vor.u32 %v3370_v10, %v3369_v61  ;;  %vm3387_vm3 = vcmp.lt.s32.totalorder %v12644_v26, 4  ;;  %v3013_v22 = vadd.s32 127, %v3012_v47 }
 0x31b   :  { %v3118_v60 = vshll.u32 %v3117_v40, 23  ;;  %v3393_v62 = vsel %vm3387_vm3, %v3380_v18, 920167782  ;;  %v3397_v15 = vsel %vm3387_vm3, %v3383_v53, 1326507024  ;;  %v8140_v3 = vmin.u32 %v3210_v4, %v12640_v0 }
 0x31c   :  { %v3360_v28 = vor.u32 8388608, %v3359_v56  ;;  %vm3384_vm12 = vcmp.lt.s32.totalorder %v12644_v26, 1  ;;  %vm3386_vm9 = vcmp.lt.s32.totalorder %v12644_v26, 3  ;;  %v3309_v21 = vadd.s32 536870912, %v12669_v58 }
 0x31d   :  { %v3396_v47 = vsel %vm3384_vm12, %v12671_v48, %v3377_v43  ;;  %v3398_v40 = vsel %vm3386_vm9, %v3380_v18, %v3397_v15  ;;  %v3460_v10 = vshrl.u32 %v3459_v6, 23  ;;  %v3114_v17 = vshrl.u32 %v3096_v52, %v3112_v45 }
 0x31e   :  { %v3392_v11 = vsel %vm3384_vm12, %v3371_v24, %v12671_v48  ;;  %v3394_v49 = vsel %vm3386_vm9, %v3377_v43, %v3393_v62  ;;  %v12697_v4 = vadd.f32 %v18043_v29, %v17873_v5  ;;  %v2916_v56 = vxor.u32 2147483648, %v12624_v16 }
 0x31f   :  { %v3119_v61 = vor.u32 4788187, %v3118_v60  ;;  %vm3385_vm10 = vcmp.lt.s32.totalorder %v12644_v26, 2  ;;  %v8151_v53 = vadd.s32 4294967169, %v3460_v10  ;;  %v3010_v18 = vshrl.u32 %v2992_v25, %v3008_v38  ;;  %v12711_v60 = vpop.f32.mrb[36].mxu0 }
 0x320   :  { %18044 = vst [vmem:[#allocation74_spill] sm:$0xff] %v12697_v4  ;;  %v3113_v6 = vshll.u32 %v12460_v63, %v12592_v54  ;;  %v3212_v52 = vclz %v8140_v3  ;;  %v3399_v45 = vsel %vm3385_vm10, %v3396_v47, %v3398_v40  ;;  %v12705_v15 = vshrl.u32 %v3309_v21, 30  ;;  %18045 = vst [vmem:[#allocation95_spill] sm:$0xff] %v12711_v60 }
 0x321   :  { %v3395_v62 = vsel %vm3385_vm10, %v3392_v11, %v3394_v49  ;;  %v12709_v29 = vshll.u32 %v3360_v28, 8  ;;  %v3466_v44 = vadd.s32 1, %v8151_v53  ;;  %v3014_v20 = vshll.u32 %v3013_v22, 23 }
 0x322   :  { %v3115_v10 = vor.u32 %v3114_v17, %v3113_v6  ;;  %v17628_v25 = vand.u32 2147483647, %v12637_v34  ;;  %v3563_v63 = vand.u32 2139095040, %v12697_v4  ;;  %v3120_v54 = vand.u32 2147483647, %v3119_v61 }
 0x323   :  { %v12716_v38 = vmul.u32.u64.low %v12709_v29, %v3399_v45  ;;  %v12717_v3 = vmul.u32.u64.high %v12709_v29, %v3399_v45, %v12716_v38  ;;  %vm3467_vm15 = vcmp.gt.s32.totalorder %v3466_v44, 0  ;;  %v8141_v21 = vadd.s32 4294967294, %v3212_v52 }
 0x324   :  { %v12720_v47 = vmul.u32.u64.low %v12709_v29, %v3395_v62  ;;  %v12721_v28 = vmul.u32.u64.high %v12709_v29, %v3395_v62, %v12720_v47  ;;  %v3468_v40 = vsel %vm3467_vm15, %v3466_v44, 0  ;;  %v3009_v17 = vshll.u32 %v12495_v14, %v12613_v30 }
 0x325   :  { %v3311_v11 = vshll.u32 %v12705_v15, 30  ;;  %v3470_v49 = vand.u32 31, %v3468_v40  ;;  %v3122_v61 = vcvt.s32.f32 %v3115_v10  ;;  %v3368_v53 = vshrl.u32 %v17841_v8, %v12622_v57 }
 0x326   :  { %v3389_v6 = vsel %vm3387_vm3, %v3377_v43, 2102212464  ;;  %v3564_v52 = vshrl.u32 %v3563_v63, 23  ;;  %v12735_v44 = vsel %vm2834_vm11, %v2916_v56, %v12624_v16  ;;  %v12737_v45 = vor.u32 %v3010_v18, %v3009_v17 }
 0x327   :  { %v12739_v62 = vor.u32 4788187, %v3014_v20  ;;  %v12741_v14 = vsub.s32 32, %v3470_v49  ;;  %v12743_v30 = vmul.f32 %v3122_v61, %v3120_v54  ;;  %vm8142_vm2 = vcmp.lt.s32.totalorder %v8141_v21, 0 }
 0x328   :  { %v3388_v57 = vsel %vm3384_vm12, %v3368_v53, %v3371_v24  ;;  %v3463_v43 = vand.u32 8388607, %v17628_v25  ;;  %v12750_v10 = vsub.s32 %v12669_v58, %v3311_v11  ;;  %v3390_v16 = vsel %vm3386_vm9, %v12671_v48, %v3389_v6 }
 0x329   :  { %v3474_v20 = vshrl.u32 %v17830_v59, %v12741_v14  ;;  %v3477_v56 = vshrl.u32 %v17871_v39, %v12741_v14  ;;  %v3473_v18 = vshll.u32 %v17841_v8, %v3470_v49  ;;  %v3476_v24 = vshll.u32 %v17830_v59, %v3470_v49 }
 0x32a   :  { %v3480_v63 = vshrl.u32 %v17870_v42, %v12741_v14  ;;  %v8155_v54 = vadd.s32 4294967169, %v3564_v52  ;;  %v12763_v58 = vshrl.u32 %v3468_v40, 5  ;;  %v3479_v38 = vshll.u32 %v17871_v39, %v3470_v49 }
 0x32b   :  { %v3482_v48 = vshll.u32 %v17870_v42, %v3470_v49  ;;  %v3483_v17 = vshrl.u32 %v17837_v36, %v12741_v14  ;;  %vm3409_vm11 = vc.u32 %v12717_v3, %v12720_v47  ;;  %v3410_v11 = vadd.s32 1, %v12721_v28 }
 0x32c   :  { %v12772_v61 = vor.u32 %v3474_v20, %v3473_v18  ;;  %v12774_v53 = vor.u32 %v3477_v56, %v3476_v24  ;;  %v18046_v6 = vand.u32 2147483647, %v18034_v32  ;;  %v3481_v52 = vor.u32 %v3480_v63, %v3479_v38  ;;  %v8717_v24 = vld [vmem:[%s17449_s3 + $0x20] sm:$0xff]  }
 0x32d   :  { %v3484_v25 = vor.u32 %v3483_v17, %v3482_v48  ;;  %v3485_v22 = vshll.u32 %v17837_v36, %v3470_v49  ;;  %v3486_v60 = vshrl.u32 %v17838_v9, %v12741_v14  ;;  %v3124_v37 = vxor.u32 2147483648, %v12743_v30  ;;  %7329 = vmatpush1.bf16.msra.mxu1 %v8717_v24 }
 0x32e   :  { %vm12778_vm5 = vcmp.le.f32.partialorder %v18046_v6, 0.7853982  ;;  %v3126_v20 = vsub.s32 4, %v12419_v33  ;;  %v12788_v56 = vsel %vm8142_vm2, 0, %v8141_v21  ;;  %v3391_v18 = vsel %vm3385_vm10, %v3388_v57, %v3390_v16  ;;  %v12814_v57 = vpop.f32.mrb[37].mxu0  ;;  %7330 = vmatprep.subr.bf16.mxu1 %v18036_v23 }
 0x32f   :  { %v3464_v63 = vor.u32 8388608, %v3463_v43  ;;  %v3487_v38 = vor.u32 %v3486_v60, %v3485_v22  ;;  %vm3488_vm14 = vcmp.lt.s32.totalorder %v12763_v58, 1  ;;  %v3570_v49 = vadd.s32 1, %v8155_v54  ;;  %18049 = vst [vmem:[#allocation96_spill] sm:$0xff] %v12814_v57  ;;  %v18050_v57 = vld [vmem:[#allocation48_spill] sm:$0xff] }
 0x330   :  { %v3314_v48 = vsub.s32 0, %v12750_v10  ;;  %v3411_v21 = vsel %vm3409_vm11, %v3410_v11, %v12721_v28  ;;  %vm3491_vm1 = vcmp.lt.s32.totalorder %v12763_v58, 4  ;;  %v3496_v26 = vsel %vm3488_vm14, %v12772_v61, %v12774_v53 }
 0x331   :  { %vm3490_vm7 = vcmp.lt.s32.totalorder %v12763_v58, 3  ;;  %v3497_v60 = vsel %vm3491_vm1, %v3484_v25, 920167782  ;;  %v3500_v22 = vsel %vm3488_vm14, %v12774_v53, %v3481_v52  ;;  %v3501_v28 = vsel %vm3491_vm1, %v3487_v38, 1326507024 }
 0x332   :  { %v3220_v43 = vsub.s32 4294967266, %v12788_v56  ;;  %v3407_v16 = vmul.u32 %v12709_v29, %v3391_v18  ;;  %vm3489_vm3 = vcmp.lt.s32.totalorder %v12763_v58, 2  ;;  %v3498_v54 = vsel %vm3490_vm7, %v3481_v52, %v3497_v60 }
 0x333   :  { %v3499_v17 = vsel %vm3489_vm3, %v3496_v26, %v3498_v54  ;;  %v3502_v11 = vsel %vm3490_vm7, %v3484_v25, %v3501_v28  ;;  %v3504_v6 = vshll.u32 %v3464_v63, 8  ;;  %vm3571_vm12 = vcmp.gt.s32.totalorder %v3570_v49, 0 }
 0x334   :  { %v8144_v24 = vmin.u32 %v3314_v48, %v12750_v10  ;;  %v12827_v38 = vadd.s32 %v3411_v21, %v3407_v16  ;;  %v3503_v29 = vsel %vm3489_vm3, %v3500_v22, %v3502_v11  ;;  %v3572_v18 = vsel %vm3571_vm12, %v3570_v49, 0 }
 0x335   :  { %vm2730_vm9 = vcmp.lt.s32.totalorder %v18050_v57, 0  ;;  %v12832_v34 = vmul.u32.u64.low %v3504_v6, %v3503_v29  ;;  %v12833_v60 = vmul.u32.u64.high %v3504_v6, %v3503_v29, %v12832_v34  ;;  %v18051_v25 = vand.u32 2147483647, %v12602_v13 }
 0x336   :  { %v12835_v7 = vmul.u32.u64.low %v3504_v6, %v3499_v17  ;;  %v12836_v26 = vmul.u32.u64.high %v3504_v6, %v3499_v17, %v12835_v7  ;;  %v18052_v63 = vcvt.s32.f32 %v12527_v2  ;;  %v2921_v21 = vsel %vm12778_vm5, 0, %v12609_v41 }
 0x337   :  { %v18053_v49 = vand.u32 2147483647, %v12122_v55  ;;  %vm3042_vm15 = vcmp.lt.s32.totalorder %v12122_v55, 0  ;;  %v2920_v13 = vsel %vm12778_vm5, %v18034_v32, %v12735_v44  ;;  %v3016_v2 = vand.u32 2147483647, %v12739_v62 }
 0x338   :  { %v2811_v48 = vmul.f32 %v18052_v63, %v18051_v25  ;;  %v3018_v34 = vcvt.s32.f32 %v12737_v45  ;;  %v3493_v41 = vsel %vm3491_vm1, %v3481_v52, 2102212464  ;;  %v3127_v28 = vsel %vm3042_vm15, %v3126_v20, %v12419_v33 }
 0x339   :  { %vm12848_vm10 = vcmp.le.f32.partialorder %v18053_v49, 0.7853982  ;;  %v3413_v16 = vadd.s32 536870912, %v12827_v38  ;;  %v3472_v54 = vshrl.u32 %v17841_v8, %v12741_v14  ;;  %v3574_v17 = vand.u32 31, %v3572_v18 }
 0x33a   :  { %v3125_v11 = vsel %vm3042_vm15, %v3124_v37, %v12743_v30  ;;  %v3216_v40 = vsub.s32 32, %v12788_v56  ;;  %v3221_v44 = vadd.s32 127, %v3220_v43  ;;  %v3316_v29 = vclz %v8144_v24 }
 0x33b   :  { %v2812_v62 = vxor.u32 2147483648, %v2811_v48  ;;  %8766 = vcosq.f32 %v2920_v13  ;;  %v3492_v45 = vsel %vm3488_vm14, %v3472_v54, %v12772_v61  ;;  %v3494_v33 = vsel %vm3490_vm7, %v12774_v53, %v3493_v41 }
 0x33c   :  { %v12873_v52 = vmul.f32 %v3018_v34, %v3016_v2  ;;  %v3129_v14 = vsel %vm12848_vm10, 0, %v3127_v28  ;;  %v3200_v37 = vadd.s32 %v12465_v12, %v12471_v51  ;;  %v3514_v30 = vadd.s32 1, %v12836_v26 }
 0x33d   :  { %v12883_v20 = vsel %vm12848_vm10, %v12122_v55, %v3125_v11  ;;  %v12885_v61 = vshrl.u32 %v3413_v16, 30  ;;  %vm3513_vm2 = vc.u32 %v12833_v60, %v12835_v7  ;;  %v12889_v53 = vsub.s32 32, %v3574_v17 }
 0x33e   :  { %v3218_v43 = vshrl.u32 %v3200_v37, %v3216_v40  ;;  %v3222_v24 = vshll.u32 %v3221_v44, 23  ;;  %v8145_v25 = vadd.s32 4294967294, %v3316_v29  ;;  %v3495_v12 = vsel %vm3489_vm3, %v3492_v45, %v3494_v33 }
 0x33f   :  { %18056 = vst [vmem:[#allocation97_spill] sm:$0xff] %v12885_v61  ;;  %v12895_v51 = vsel %vm2730_vm9, %v2812_v62, %v2811_v48  ;;  %8768 = vsinq.f32 %v2920_v13  ;;  %v12897_v63 = vadd.s32 3, %v2921_v21  ;;  %v12899_v49 = vadd.s32 3, %v3129_v14 }
 0x340   :  { %18057 = vst [vmem:[#allocation98_spill] sm:$0xff] %v12895_v51  ;;  %v3217_v2 = vshll.u32 %v12640_v0, %v12788_v56  ;;  %v3515_v34 = vsel %vm3513_vm2, %v3514_v30, %v12836_v26  ;;  %v12907_v58 = vadd.f32 %v12075_v35, %v17936_v19  ;;  %8770 = vcosq.f32 %v12883_v20 }
 0x341   :  { %18058 = vst [vmem:[#allocation99_spill] sm:$0xff] %v12897_v63  ;;  %18059 = vst [vmem:[#allocation100_spill] sm:$0xff] %v12899_v49  ;;  %v3415_v48 = vshll.u32 %v12885_v61, 30  ;;  %v3511_v13 = vmul.u32 %v3504_v6, %v3495_v12  ;;  %v3587_v21 = vshrl.u32 %v17837_v36, %v12889_v53  ;;  %v3223_v28 = vor.u32 4788187, %v3222_v24 }
 0x342   :  { %18060 = vst [vmem:[#allocation101_spill] sm:$0xff] %v12907_v58  ;;  %v3219_v41 = vor.u32 %v3218_v43, %v3217_v2  ;;  %vm8146_vm11 = vcmp.lt.s32.totalorder %v8145_v25, 0  ;;  %v17631_v16 = vand.u32 2147483647, %v12697_v4  ;;  %v3578_v56 = vshrl.u32 %v17830_v59, %v12889_v53 }
 0x343   :  { %v12914_v0 = vadd.s32 %v3515_v34, %v3511_v13  ;;  %v3586_v35 = vshll.u32 %v17870_v42, %v3574_v17  ;;  %v3590_v26 = vshrl.u32 %v17838_v9, %v12889_v53  ;;  %v12921_v54 = vshrl.u32 %v3572_v18, 5 }
 0x344   :  { %v3581_v6 = vshrl.u32 %v17871_v39, %v12889_v53  ;;  %v3584_v11 = vshrl.u32 %v17870_v42, %v12889_v53  ;;  %v3667_v40 = vand.u32 2139095040, %v12907_v58  ;;  %v12931_v29 = vsub.s32 %v12827_v38, %v3415_v48  ;;  %v18062_v38 = vld [vmem:[#allocation83_spill] sm:$0xff] }
 0x345   :  { %v12928_v44 = vpop.eup %8766  ;;  %v3577_v62 = vshll.u32 %v17841_v8, %v3574_v17  ;;  %v3588_v45 = vor.u32 %v3587_v21, %v3586_v35  ;;  %v3589_v33 = vshll.u32 %v17837_v36, %v3574_v17  ;;  %v3319_v18 = vsel %vm8146_vm11, 0, %v8145_v25 }
 0x346   :  { %18061 = vst [vmem:[#allocation102_spill] sm:$0xff] %v12928_v44  ;;  %v3567_v14 = vand.u32 8388607, %v17631_v16  ;;  %v3580_v37 = vshll.u32 %v17830_v59, %v3574_v17  ;;  %v3583_v30 = vshll.u32 %v17871_v39, %v3574_v17  ;;  %v3517_v43 = vadd.s32 536870912, %v12914_v0 }
 0x347   :  { %v12940_v24 = vor.u32 %v3578_v56, %v3577_v62  ;;  %v3591_v12 = vor.u32 %v3590_v26, %v3589_v33  ;;  %v12944_v2 = vadd.f32 %v18062_v38, %v17873_v5  ;;  %vm3595_vm5 = vcmp.lt.s32.totalorder %v12921_v54, 4 }
 0x348   :  { %v12946_v34 = vor.u32 %v3581_v6, %v3580_v37  ;;  %v3585_v48 = vor.u32 %v3584_v11, %v3583_v30  ;;  %v3668_v25 = vshrl.u32 %v3667_v40, 23  ;;  %v3304_v17 = vadd.s32 %v12594_v50, %v12590_v1 }
 0x349   :  { %18063 = vst [vmem:[#allocation83_spill] sm:$0xff] %v12944_v2  ;;  %v12949_v13 = vpop.eup %8768  ;;  %v3320_v21 = vsub.s32 32, %v3319_v18  ;;  %v3418_v56 = vsub.s32 0, %v12931_v29  ;;  %v3601_v35 = vsel %vm3595_vm5, %v3588_v45, 920167782  ;;  %v3226_v62 = vcvt.s32.f32 %v3219_v41 }
 0x34a   :  { %18064 = vst [vmem:[#allocation103_spill] sm:$0xff] %v12949_v13  ;;  %v3224_v26 = vand.u32 2147483647, %v3223_v28  ;;  %v3568_v33 = vor.u32 8388608, %v3567_v14  ;;  %v8159_v6 = vadd.s32 4294967169, %v3668_v25  ;;  %v12956_v37 = vpop.eup %8770  ;;  %v12958_v11 = vshrl.u32 %v3517_v43, 30 }
 0x34b   :  { %18065 = vst [vmem:[#allocation104_spill] sm:$0xff] %v12956_v37  ;;  %vm3592_vm14 = vcmp.lt.s32.totalorder %v12921_v54, 1  ;;  %vm3594_vm1 = vcmp.lt.s32.totalorder %v12921_v54, 3  ;;  %v3605_v1 = vsel %vm3595_vm5, %v3591_v12, 1326507024  ;;  %v3771_v40 = vand.u32 2139095040, %v12944_v2 }
 0x34c   :  { %v3600_v50 = vsel %vm3592_vm14, %v12940_v24, %v12946_v34  ;;  %v3602_v41 = vsel %vm3594_vm1, %v3585_v48, %v3601_v35  ;;  %v3674_v28 = vadd.s32 1, %v8159_v6  ;;  %v12971_v14 = vpop.f32.mrb[38].mxu0  ;;  %v3322_v30 = vshrl.u32 %v3304_v17, %v3320_v21 }
 0x34d   :  { %v3324_v43 = vsub.s32 4294967266, %v3319_v18  ;;  %v8148_v38 = vmin.u32 %v3418_v56, %v12931_v29  ;;  %vm3593_vm7 = vcmp.lt.s32.totalorder %v12921_v54, 2  ;;  %v3604_v12 = vsel %vm3592_vm14, %v12946_v34, %v3585_v48 }
 0x34e   :  { %v3606_v35 = vsel %vm3594_vm1, %v3588_v45, %v3605_v1  ;;  %vm3675_vm3 = vcmp.gt.s32.totalorder %v3674_v28, 0  ;;  %v3321_v6 = vshll.u32 %v12750_v10, %v3319_v18  ;;  %v3519_v16 = vshll.u32 %v12958_v11, 30 }
 0x34f   :  { %v3603_v17 = vsel %vm3593_vm7, %v3600_v50, %v3602_v41  ;;  %v3676_v21 = vsel %vm3675_vm3, %v3674_v28, 0  ;;  %v12985_v56 = vmul.f32 %v3226_v62, %v3224_v26  ;;  %v12987_v22 = vshll.u32 %v3568_v33, 8 }
 0x350   :  { %v3678_v25 = vand.u32 31, %v3676_v21  ;;  %v3772_v61 = vshrl.u32 %v3771_v40, 23  ;;  %v12989_v55 = vor.u32 %v3322_v30, %v3321_v6  ;;  %v3325_v37 = vadd.s32 127, %v3324_v43 }
 0x351   :  { %v3607_v10 = vsel %vm3593_vm7, %v3604_v12, %v3606_v35  ;;  %v3420_v18 = vclz %v8148_v38  ;;  %v12995_v1 = vmul.u32.u64.low %v12987_v22, %v3603_v17  ;;  %v12996_v49 = vmul.u32.u64.high %v12987_v22, %v3603_v17, %v12995_v1 }
 0x352   :  { %v18066_v26 = vand.u32 2147483647, %v12907_v58  ;;  %v13002_v33 = vsub.s32 %v12914_v0, %v3519_v16  ;;  %v3576_v50 = vshrl.u32 %v17841_v8, %v12889_v53  ;;  %v3597_v41 = vsel %vm3595_vm5, %v3585_v48, 2102212464 }
 0x353   :  { %v13008_v28 = vsub.s32 32, %v3678_v25  ;;  %v13011_v40 = vmul.u32.u64.low %v12987_v22, %v3607_v10  ;;  %v13012_v30 = vmul.u32.u64.high %v12987_v22, %v3607_v10, %v13011_v40  ;;  %v3681_v43 = vshll.u32 %v17841_v8, %v3678_v25 }
 0x354   :  { %v3671_v62 = vand.u32 8388607, %v18066_v26  ;;  %v8163_v38 = vadd.s32 4294967169, %v3772_v61  ;;  %v3684_v16 = vshll.u32 %v17830_v59, %v3678_v25  ;;  %v13022_v48 = vshrl.u32 %v3676_v21, 5 }
 0x355   :  { %v3682_v12 = vshrl.u32 %v17830_v59, %v13008_v28  ;;  %v3685_v53 = vshrl.u32 %v17871_v39, %v13008_v28  ;;  %v3688_v0 = vshrl.u32 %v17870_v42, %v13008_v28  ;;  %v3687_v35 = vshll.u32 %v17871_v39, %v3678_v25 }
 0x356   :  { %v3690_v6 = vshll.u32 %v17870_v42, %v3678_v25  ;;  %v3691_v61 = vshrl.u32 %v17837_v36, %v13008_v28  ;;  %v3326_v17 = vshll.u32 %v3325_v37, 23  ;;  %v8149_v10 = vadd.s32 4294967294, %v3420_v18 }
 0x357   :  { %v13028_v26 = vor.u32 %v3682_v12, %v3681_v43  ;;  %v13030_v40 = vor.u32 %v3685_v53, %v3684_v16  ;;  %v3596_v45 = vsel %vm3592_vm14, %v3576_v50, %v12940_v24  ;;  %v3598_v21 = vsel %vm3594_vm1, %v12946_v34, %v3597_v41  ;;  %v8718_v43 = vld [vmem:[%s17449_s3 + $0x28] sm:$0xff]   ;;  %v18067_v12 = vld [vmem:[#allocation53_spill] sm:$0xff]  ;;  %v13062_v16 = vpop.f32.mrb[39].mxu0 }
 0x358   :  { %v3689_v51 = vor.u32 %v3688_v0, %v3687_v35  ;;  %v3692_v57 = vor.u32 %v3691_v61, %v3690_v6  ;;  %v3522_v32 = vsub.s32 0, %v13002_v33  ;;  %v3672_v44 = vor.u32 8388608, %v3671_v62  ;;  %7331 = vmatpush1.bf16.msra.mxu1 %v8718_v43 }
 0x359   :  { %v3693_v37 = vshll.u32 %v17837_v36, %v3678_v25  ;;  %v3694_v18 = vshrl.u32 %v17838_v9, %v13008_v28  ;;  %vm17763_vm12 = vcmp.lt.s32.totalorder %v18067_v12, 0  ;;  %vm3250_vm10 = vcmp.lt.s32.totalorder %v12178_v27, 0  ;;  %7332 = vmatprep.subr.bf16.mxu1 %v18036_v23 }
 0x35a   :  { %v3618_v24 = vadd.s32 1, %v12996_v49  ;;  %vm3696_vm15 = vcmp.lt.s32.totalorder %v13022_v48, 1  ;;  %vm3699_vm2 = vcmp.lt.s32.totalorder %v13022_v48, 4  ;;  %v3778_v34 = vadd.s32 1, %v8163_v38 }
 0x35b   :  { %v3695_v62 = vor.u32 %v3694_v18, %v3693_v37  ;;  %vm3698_vm11 = vcmp.lt.s32.totalorder %v13022_v48, 3  ;;  %v3704_v25 = vsel %vm3696_vm15, %v13028_v26, %v13030_v40  ;;  %v3705_v50 = vsel %vm3699_vm2, %v3692_v57, 920167782 }
 0x35c   :  { %v3327_v41 = vor.u32 4788187, %v3326_v17  ;;  %vm3617_vm5 = vc.u32 %v13012_v30, %v12995_v1  ;;  %vm3697_vm14 = vcmp.lt.s32.totalorder %v13022_v48, 2  ;;  %v3706_v38 = vsel %vm3698_vm11, %v3689_v51, %v3705_v50 }
 0x35d   :  { %v3599_v53 = vsel %vm3593_vm7, %v3596_v45, %v3598_v21  ;;  %v3707_v0 = vsel %vm3697_vm14, %v3704_v25, %v3706_v38  ;;  %v3708_v35 = vsel %vm3696_vm15, %v13030_v40, %v3689_v51  ;;  %v3709_v6 = vsel %vm3699_vm2, %v3695_v62, 1326507024 }
 0x35e   :  { %vm8150_vm1 = vcmp.lt.s32.totalorder %v8149_v10, 0  ;;  %v8152_v61 = vmin.u32 %v3522_v32, %v13002_v33  ;;  %v3710_v17 = vsel %vm3698_vm11, %v3692_v57, %v3709_v6  ;;  %v13077_v37 = vshll.u32 %v3672_v44, 8 }
 0x35f   :  { %v3330_v54 = vcvt.s32.f32 %v12989_v55  ;;  %v3619_v45 = vsel %vm3617_vm5, %v3618_v24, %v12996_v49  ;;  %v3711_v21 = vsel %vm3697_vm14, %v3708_v35, %v3710_v17  ;;  %vm3779_vm7 = vcmp.gt.s32.totalorder %v3778_v34, 0 }
 0x360   :  { %v3328_v18 = vand.u32 2147483647, %v3327_v41  ;;  %v3615_v43 = vmul.u32 %v12987_v22, %v3599_v53  ;;  %v13085_v62 = vmul.u32.u64.low %v13077_v37, %v3707_v0  ;;  %v13086_v25 = vmul.u32.u64.high %v13077_v37, %v3707_v0, %v13085_v62 }
 0x361   :  { %v13089_v32 = vsel %vm8150_vm1, 0, %v8149_v10  ;;  %v13092_v57 = vmul.u32.u64.low %v13077_v37, %v3711_v21  ;;  %v13093_v44 = vmul.u32.u64.high %v13077_v37, %v3711_v21, %v13092_v57  ;;  %v3780_v55 = vsel %vm3779_vm7, %v3778_v34, 0 }
 0x362   :  { %v3524_v49 = vclz %v8152_v61  ;;  %v13095_v24 = vadd.s32 %v3619_v45, %v3615_v43  ;;  %v17640_v50 = vand.u32 2147483647, %v12944_v2  ;;  %v3782_v41 = vand.u32 31, %v3780_v55 }
 0x363   :  { %v18068_v22 = vxor.u32 2147483648, %v12873_v52  ;;  %8772 = vsinq.f32 %v12883_v20  ;;  %v18070_v34 = vsub.s32 4, %v12705_v15  ;;  %v13114_v0 = vmul.f32 %v3330_v54, %v3328_v18 }
 0x364   :  { %v3408_v35 = vadd.s32 %v12720_v47, %v12717_v3  ;;  %v3701_v20 = vsel %vm3699_vm2, %v3689_v51, 2102212464  ;;  %v3424_v6 = vsub.s32 32, %v13089_v32  ;;  %v3428_v61 = vsub.s32 4294967266, %v13089_v32 }
 0x365   :  { %v13103_v38 = vsel %vm17763_vm12, %v18068_v22, %v12873_v52  ;;  %v13112_v53 = vsel %vm3250_vm10, %v18070_v34, %v12705_v15  ;;  %v3680_v52 = vshrl.u32 %v17841_v8, %v13008_v28  ;;  %v13124_v17 = vsub.s32 32, %v3782_v41 }
 0x366   :  { %18069 = vst [vmem:[#allocation105_spill] sm:$0xff] %v13103_v38  ;;  %v13128_v15 = vadd.f32 %v12325_v46, %v17936_v19  ;;  %v8153_v54 = vadd.s32 4294967294, %v3524_v49  ;;  %v3621_v45 = vadd.s32 536870912, %v13095_v24  ;;  %v3775_v47 = vand.u32 8388607, %v17640_v50 }
 0x367   :  { %v3700_v3 = vsel %vm3696_vm15, %v3680_v52, %v13028_v26  ;;  %v3702_v51 = vsel %vm3698_vm11, %v13030_v40, %v3701_v20  ;;  %v13139_v28 = vshrl.u32 %v3780_v55, 5  ;;  %v3786_v46 = vshrl.u32 %v17830_v59, %v13124_v17 }
 0x368   :  { %18071 = vst [vmem:[#allocation106_spill] sm:$0xff] %v13128_v15  ;;  %v3789_v21 = vshrl.u32 %v17871_v39, %v13124_v17  ;;  %v3722_v18 = vadd.s32 1, %v13086_v25  ;;  %v3785_v43 = vshll.u32 %v17841_v8, %v3782_v41  ;;  %v3788_v26 = vshll.u32 %v17830_v59, %v3782_v41 }
 0x369   :  { %v3792_v57 = vshrl.u32 %v17870_v42, %v13124_v17  ;;  %vm3721_vm3 = vc.u32 %v13093_v44, %v13085_v62  ;;  %v3791_v40 = vshll.u32 %v17871_v39, %v3782_v41  ;;  %v3794_v55 = vshll.u32 %v17870_v42, %v3782_v41 }
 0x36a   :  { %v3795_v49 = vshrl.u32 %v17837_v36, %v13124_v17  ;;  %v13156_v22 = vshrl.u32 %v3621_v45, 30  ;;  %v3703_v34 = vsel %vm3697_vm14, %v3700_v3, %v3702_v51  ;;  %v3787_v52 = vor.u32 %v3786_v46, %v3785_v43 }
 0x36b   :  { %v3790_v20 = vor.u32 %v3789_v21, %v3788_v26  ;;  %v3793_v50 = vor.u32 %v3792_v57, %v3791_v40  ;;  %v3797_v38 = vshll.u32 %v17837_v36, %v3782_v41  ;;  %v3798_v12 = vshrl.u32 %v17838_v9, %v13124_v17 }
 0x36c   :  { %18072 = vst [vmem:[#allocation107_spill] sm:$0xff] %v13156_v22  ;;  %v3796_v10 = vor.u32 %v3795_v49, %v3794_v55  ;;  %vm17718_vm15 = vcmp.lt.s32.totalorder %v12174_v31, 0  ;;  %v3429_v13 = vadd.s32 127, %v3428_v61  ;;  %vm8154_vm2 = vcmp.lt.s32.totalorder %v8153_v54, 0 }
 0x36d   :  { %v3723_v63 = vsel %vm3721_vm3, %v3722_v18, %v13086_v25  ;;  %v3776_v45 = vor.u32 8388608, %v3775_v47  ;;  %v13165_v2 = vpop.eup %8772  ;;  %v3719_v48 = vmul.u32 %v13077_v37, %v3703_v34  ;;  %v3799_v3 = vor.u32 %v3798_v12, %v3797_v38 }
 0x36e   :  { %18073 = vst [vmem:[#allocation108_spill] sm:$0xff] %v13165_v2  ;;  %vm3800_vm11 = vcmp.lt.s32.totalorder %v13139_v28, 1  ;;  %vm3803_vm5 = vcmp.lt.s32.totalorder %v13139_v28, 4  ;;  %v3623_v41 = vshll.u32 %v13156_v22, 30  ;;  %vm3802_vm14 = vcmp.lt.s32.totalorder %v13139_v28, 3 }
 0x36f   :  { %v3808_v61 = vsel %vm3800_vm11, %v3787_v52, %v3790_v20  ;;  %v3809_v25 = vsel %vm3803_vm5, %v3796_v10, 920167782  ;;  %v18074_v47 = vand.u32 2147483647, %v12178_v27  ;;  %v13182_v12 = vadd.s32 %v3723_v63, %v3719_v48 }
 0x370   :  { %vm3801_vm7 = vcmp.lt.s32.totalorder %v13139_v28, 2  ;;  %v3810_v37 = vsel %vm3802_vm14, %v3793_v50, %v3809_v25  ;;  %v3875_v38 = vand.u32 2139095040, %v13128_v15  ;;  %v3332_v46 = vxor.u32 2147483648, %v13114_v0 }
 0x371   :  { %vm13178_vm1 = vcmp.le.f32.partialorder %v18074_v47, 0.7853982  ;;  %v3430_v21 = vshll.u32 %v3429_v13, 23  ;;  %v3811_v18 = vsel %vm3801_vm7, %v3808_v61, %v3810_v37  ;;  %v3816_v43 = vshll.u32 %v3776_v45, 8 }
 0x372   :  { %v3426_v26 = vshrl.u32 %v3408_v35, %v3424_v6  ;;  %v13192_v57 = vsel %vm8154_vm2, 0, %v8153_v54  ;;  %v3812_v63 = vsel %vm3800_vm11, %v3790_v20, %v3793_v50  ;;  %v3813_v40 = vsel %vm3803_vm5, %v3799_v3, 1326507024 }
 0x373   :  { %v13199_v55 = vsub.s32 %v13095_v24, %v3623_v41  ;;  %v3814_v13 = vsel %vm3802_vm14, %v3796_v10, %v3813_v40  ;;  %v13203_v49 = vmul.u32.u64.low %v3816_v43, %v3811_v18  ;;  %v13204_v34 = vmul.u32.u64.high %v3816_v43, %v3811_v18, %v13203_v49  ;;  %v13233_v18 = vpop.f32.mrb[40].mxu0 }
 0x374   :  { %v3425_v35 = vshll.u32 %v12931_v29, %v13089_v32  ;;  %v3725_v6 = vadd.s32 536870912, %v13182_v12  ;;  %v3815_v54 = vsel %vm3801_vm7, %v3812_v63, %v3814_v13  ;;  %v3876_v45 = vshrl.u32 %v3875_v38, 23  ;;  %v18079_v38 = vld [vmem:[#allocation90_spill] sm:$0xff]  ;;  %18081 = vst [vmem:[#allocation110_spill] sm:$0xff] %v13233_v18 }
 0x375   :  { %v3431_v48 = vor.u32 4788187, %v3430_v21  ;;  %v3805_v24 = vsel %vm3803_vm5, %v3793_v50, 2102212464  ;;  %v13214_v3 = vmul.u32.u64.low %v3816_v43, %v3815_v54  ;;  %v13215_v41 = vmul.u32.u64.high %v3816_v43, %v3815_v54, %v13214_v3 }
 0x376   :  { %v18077_v10 = vxor.u32 2147483648, %v12985_v56  ;;  %v3532_v29 = vsub.s32 4294967266, %v13192_v57  ;;  %v3784_v32 = vshrl.u32 %v17841_v8, %v13124_v17  ;;  %v8167_v25 = vadd.s32 4294967169, %v3876_v45 }
 0x377   :  { %v3427_v47 = vor.u32 %v3426_v26, %v3425_v35  ;;  %v3626_v37 = vsub.s32 0, %v13199_v55  ;;  %v17645_v50 = vand.u32 2147483647, %v13128_v15  ;;  %v13231_v21 = vadd.f32 %v18079_v38, %v17873_v5 }
 0x378   :  { %v13222_v61 = vsel %vm17718_vm15, %v18077_v10, %v12985_v56  ;;  %v13235_v63 = vshrl.u32 %v3725_v6, 30  ;;  %v3804_v56 = vsel %vm3800_vm11, %v3784_v32, %v3787_v52  ;;  %v3806_v17 = vsel %vm3802_vm14, %v3790_v20, %v3805_v24 }
 0x379   :  { %18078 = vst [vmem:[#allocation109_spill] sm:$0xff] %v13222_v61  ;;  %18080 = vst [vmem:[#allocation90_spill] sm:$0xff] %v13231_v21  ;;  %v3882_v40 = vadd.s32 1, %v8167_v25  ;;  %v3333_v26 = vsel %vm3250_vm10, %v3332_v46, %v13114_v0  ;;  %v3432_v35 = vand.u32 2147483647, %v3431_v48  ;;  %v3826_v54 = vadd.s32 1, %v13204_v34 }
 0x37a   :  { %v3528_v6 = vsub.s32 32, %v13192_v57  ;;  %v13249_v45 = vadd.s32 127, %v3532_v29  ;;  %vm3825_vm3 = vc.u32 %v13215_v41, %v13203_v49  ;;  %v8156_v52 = vmin.u32 %v3626_v37, %v13199_v55 }
 0x37b   :  { %vm3883_vm2 = vcmp.gt.s32.totalorder %v3882_v40, 0  ;;  %v3807_v0 = vsel %vm3801_vm7, %v3804_v56, %v3806_v17  ;;  %v3979_v46 = vand.u32 2139095040, %v13231_v21  ;;  %v3434_v24 = vcvt.s32.f32 %v3427_v47 }
 0x37c   :  { %v3884_v20 = vsel %vm3883_vm2, %v3882_v40, 0  ;;  %v3512_v48 = vadd.s32 %v12835_v7, %v12833_v60  ;;  %v3727_v3 = vshll.u32 %v13235_v63, 30  ;;  %v3879_v10 = vand.u32 8388607, %v17645_v50 }
 0x37d   :  { %v13265_v29 = vsel %vm13178_vm1, %v12178_v27, %v3333_v26  ;;  %v3827_v32 = vsel %vm3825_vm3, %v3826_v54, %v13204_v34  ;;  %v3886_v25 = vand.u32 31, %v3884_v20  ;;  %v13269_v37 = vmul.f32 %v3434_v24, %v3432_v35 }
 0x37e   :  { %v3529_v7 = vshll.u32 %v13002_v33, %v13192_v57  ;;  %v3530_v60 = vshrl.u32 %v3512_v48, %v3528_v6  ;;  %v3823_v47 = vmul.u32 %v3816_v43, %v3807_v0  ;;  %v3534_v38 = vshll.u32 %v13249_v45, 23 }
 0x37f   :  { %v3628_v56 = vclz %v8156_v52  ;;  %v3887_v17 = vsub.s32 32, %v3886_v25  ;;  %v3980_v40 = vshrl.u32 %v3979_v46, 23  ;;  %v13275_v26 = vsub.s32 %v13182_v12, %v3727_v3 }
 0x380   :  { %v13277_v50 = vadd.s32 %v3827_v32, %v3823_v47  ;;  %v3880_v28 = vor.u32 8388608, %v3879_v10  ;;  %v3885_v34 = vshrl.u32 %v3884_v20, 5  ;;  %v3889_v35 = vshll.u32 %v17841_v8, %v3886_v25  ;;  %v8719_v32 = vld [vmem:[%s17449_s3 + $0x30] sm:$0xff]  }
 0x381   :  { %v3890_v54 = vshrl.u32 %v17830_v59, %v3887_v17  ;;  %v3892_v33 = vshll.u32 %v17830_v59, %v3886_v25  ;;  %v3893_v43 = vshrl.u32 %v17871_v39, %v3887_v17  ;;  %v3895_v57 = vshll.u32 %v17871_v39, %v3886_v25  ;;  %7333 = vmatpush1.bf16.msra.mxu1 %v8719_v32 }
 0x382   :  { %v3896_v6 = vshrl.u32 %v17870_v42, %v3887_v17  ;;  %v3898_v45 = vshll.u32 %v17870_v42, %v3886_v25  ;;  %v3899_v12 = vshrl.u32 %v17837_v36, %v3887_v17  ;;  %v8157_v52 = vadd.s32 4294967294, %v3628_v56  ;;  %v18082_v56 = vld [vmem:[#allocation69_spill] sm:$0xff]  ;;  %7334 = vmatprep.subr.bf16.mxu1 %v18036_v23 }
 0x383   :  { %v3891_v0 = vor.u32 %v3890_v54, %v3889_v35  ;;  %v3894_v46 = vor.u32 %v3893_v43, %v3892_v33  ;;  %v8171_v20 = vadd.s32 4294967169, %v3980_v40  ;;  %v3901_v3 = vshll.u32 %v17837_v36, %v3886_v25 }
 0x384   :  { %v3897_v24 = vor.u32 %v3896_v6, %v3895_v57  ;;  %v3900_v48 = vor.u32 %v3899_v12, %v3898_v45  ;;  %v3902_v10 = vshrl.u32 %v17838_v9, %v3887_v17  ;;  %v3730_v47 = vsub.s32 0, %v13275_v26  ;;  %v13298_v57 = vpop.f32.mrb[41].mxu0 }
 0x385   :  { %v3829_v13 = vadd.s32 536870912, %v13277_v50  ;;  %vm3904_vm10 = vcmp.lt.s32.totalorder %v3885_v34, 1  ;;  %v3920_v22 = vshll.u32 %v3880_v28, 8  ;;  %vm3458_vm11 = vcmp.lt.s32.totalorder %v18082_v56, 0  ;;  %18083 = vst [vmem:[#allocation111_spill] sm:$0xff] %v13298_v57 }
 0x386   :  { %v3888_v40 = vshrl.u32 %v17841_v8, %v3887_v17  ;;  %v3903_v35 = vor.u32 %v3902_v10, %v3901_v3  ;;  %vm3907_vm5 = vcmp.lt.s32.totalorder %v3885_v34, 4  ;;  %v3912_v25 = vsel %vm3904_vm10, %v3891_v0, %v3894_v46 }
 0x387   :  { %vm3906_vm14 = vcmp.lt.s32.totalorder %v3885_v34, 3  ;;  %v3909_v54 = vsel %vm3907_vm5, %v3897_v24, 2102212464  ;;  %v3913_v33 = vsel %vm3907_vm5, %v3900_v48, 920167782  ;;  %v3916_v43 = vsel %vm3904_vm10, %v3894_v46, %v3897_v24 }
 0x388   :  { %vm3905_vm7 = vcmp.lt.s32.totalorder %v3885_v34, 2  ;;  %v3914_v28 = vsel %vm3906_vm14, %v3897_v24, %v3913_v33  ;;  %v3917_v6 = vsel %vm3907_vm5, %v3903_v35, 1326507024  ;;  %v3986_v45 = vadd.s32 1, %v8171_v20 }
 0x389   :  { %v13301_v12 = vshrl.u32 %v3829_v13, 30  ;;  %v3908_v17 = vsel %vm3904_vm10, %v3888_v40, %v3891_v0  ;;  %v3915_v3 = vsel %vm3905_vm7, %v3912_v25, %v3914_v28  ;;  %v3918_v10 = vsel %vm3906_vm14, %v3900_v48, %v3917_v6 }
 0x38a   :  { %v3910_v32 = vsel %vm3906_vm14, %v3894_v46, %v3909_v54  ;;  %v3919_v61 = vsel %vm3905_vm7, %v3916_v43, %v3918_v10  ;;  %v13306_v31 = vmul.u32.u64.low %v3920_v22, %v3915_v3  ;;  %v13307_v27 = vmul.u32.u64.high %v3920_v22, %v3915_v3, %v13306_v31 }
 0x38b   :  { %18084 = vst [vmem:[#allocation112_spill] sm:$0xff] %v13301_v12  ;;  %v3531_v2 = vor.u32 %v3530_v60, %v3529_v7  ;;  %v3535_v57 = vor.u32 4788187, %v3534_v38  ;;  %v13310_v18 = vmul.u32.u64.low %v3920_v22, %v3919_v61  ;;  %v13311_v24 = vmul.u32.u64.high %v3920_v22, %v3919_v61, %v13310_v18 }
 0x38c   :  { %8774 = vcosq.f32 %v13265_v29  ;;  %v18085_v13 = vsel %vm13178_vm1, 0, %v13112_v53  ;;  %vm8158_vm3 = vcmp.lt.s32.totalorder %v8157_v52, 0  ;;  %vm3987_vm2 = vcmp.gt.s32.totalorder %v3986_v45, 0 }
 0x38d   :  { %v13318_v0 = vadd.s32 3, %v18085_v13  ;;  %v8160_v46 = vmin.u32 %v3730_v47, %v13275_v26  ;;  %v3911_v20 = vsel %vm3905_vm7, %v3908_v17, %v3910_v32  ;;  %v17653_v7 = vand.u32 2147483647, %v13231_v21 }
 0x38e   :  { %v3988_v60 = vsel %vm3987_vm2, %v3986_v45, 0  ;;  %8776 = vsinq.f32 %v13265_v29  ;;  %v18087_v61 = vand.u32 2147483647, %v18082_v56  ;;  %v3831_v53 = vshll.u32 %v13301_v12, 30 }
 0x38f   :  { %18086 = vst [vmem:[#allocation113_spill] sm:$0xff] %v13318_v0  ;;  %v3930_v51 = vadd.s32 1, %v13307_v27  ;;  %v3990_v38 = vand.u32 31, %v3988_v60  ;;  %v3536_v34 = vand.u32 2147483647, %v3535_v57  ;;  %v3538_v47 = vcvt.s32.f32 %v3531_v2  ;;  %v18091_v57 = vld [vmem:[#allocation91_spill] sm:$0xff] }
 0x390   :  { %vm13326_vm10 = vcmp.le.f32.partialorder %v18087_v61, 0.7853982  ;;  %v18090_v40 = vsub.s32 4, %v12958_v11  ;;  %v13341_v35 = vsel %vm8158_vm3, 0, %v8157_v52  ;;  %v3927_v25 = vmul.u32 %v3920_v22, %v3911_v20 }
 0x391   :  { %vm3929_vm1 = vc.u32 %v13311_v24, %v13306_v31  ;;  %v13345_v54 = vsub.s32 32, %v3990_v38  ;;  %v3732_v33 = vclz %v8160_v46  ;;  %v3983_v2 = vand.u32 8388607, %v17653_v7 }
 0x392   :  { %v13338_v29 = vsel %vm3458_vm11, %v18090_v40, %v12958_v11  ;;  %v3931_v43 = vsel %vm3929_vm1, %v3930_v51, %v13307_v27  ;;  %v13352_v28 = vadd.f32 %v18091_v57, %v17936_v19  ;;  %v13355_v11 = vsub.s32 %v13277_v50, %v3831_v53 }
 0x393   :  { %v3932_v52 = vadd.s32 %v3931_v43, %v3927_v25  ;;  %v3994_v22 = vshrl.u32 %v17830_v59, %v13345_v54  ;;  %v3997_v6 = vshrl.u32 %v17871_v39, %v13345_v54  ;;  %v3993_v45 = vshll.u32 %v17841_v8, %v3990_v38 }
 0x394   :  { %18092 = vst [vmem:[#allocation91_spill] sm:$0xff] %v13352_v28  ;;  %v3996_v27 = vshll.u32 %v17830_v59, %v3990_v38  ;;  %v3999_v17 = vshll.u32 %v17871_v39, %v3990_v38  ;;  %v4000_v3 = vshrl.u32 %v17870_v42, %v13345_v54  ;;  %v13366_v32 = vshrl.u32 %v3988_v60, 5 }
 0x395   :  { %v3933_v10 = vadd.s32 536870912, %v3932_v52  ;;  %v4002_v50 = vshll.u32 %v17870_v42, %v3990_v38  ;;  %v4003_v13 = vshrl.u32 %v17837_v36, %v13345_v54  ;;  %v8161_v46 = vadd.s32 4294967294, %v3732_v33 }
 0x396   :  { %v13371_v20 = vor.u32 %v3994_v22, %v3993_v45  ;;  %v13373_v61 = vor.u32 %v3997_v6, %v3996_v27  ;;  %v4001_v53 = vor.u32 %v4000_v3, %v3999_v17  ;;  %v13375_v51 = vpop.eup %8774  ;;  %v4005_v43 = vshll.u32 %v17837_v36, %v3990_v38 }
 0x397   :  { %18093 = vst [vmem:[#allocation114_spill] sm:$0xff] %v13375_v51  ;;  %v13377_v40 = vshrl.u32 %v3933_v10, 30  ;;  %v4004_v25 = vor.u32 %v4003_v13, %v4002_v50  ;;  %v4006_v60 = vshrl.u32 %v17838_v9, %v13345_v54  ;;  %v3539_v57 = vmul.f32 %v3538_v47, %v3536_v34 }
 0x398   :  { %v3545_v33 = vsel %vm13326_vm10, 0, %v13338_v29  ;;  %v3636_v22 = vsub.s32 4294967266, %v13341_v35  ;;  %v3984_v6 = vor.u32 8388608, %v3983_v2  ;;  %v13386_v45 = vpop.eup %8776  ;;  %v3834_v27 = vsub.s32 0, %v13355_v11 }
 0x399   :  { %18094 = vst [vmem:[#allocation115_spill] sm:$0xff] %v13386_v45  ;;  %v4007_v17 = vor.u32 %v4006_v60, %v4005_v43  ;;  %vm4008_vm5 = vcmp.lt.s32.totalorder %v13366_v32, 1  ;;  %vm4011_vm14 = vcmp.lt.s32.totalorder %v13366_v32, 4  ;;  %v3935_v38 = vshll.u32 %v13377_v40, 30 }
 0x39a   :  { %vm4010_vm7 = vcmp.lt.s32.totalorder %v13366_v32, 3  ;;  %v4016_v34 = vsel %vm4008_vm5, %v13371_v20, %v13373_v61  ;;  %v4017_v47 = vsel %vm4011_vm14, %v4004_v25, 920167782  ;;  %vm8162_vm3 = vcmp.lt.s32.totalorder %v8161_v46, 0 }
 0x39b   :  { %vm4009_vm2 = vcmp.lt.s32.totalorder %v13366_v32, 2  ;;  %v4018_v29 = vsel %vm4010_vm7, %v4001_v53, %v4017_v47  ;;  %v4083_v2 = vand.u32 2139095040, %v13352_v28  ;;  %v3616_v3 = vadd.s32 %v12995_v1, %v13012_v30 }
 0x39c   :  { %v3632_v10 = vsub.s32 32, %v13341_v35  ;;  %v3637_v50 = vadd.s32 127, %v3636_v22  ;;  %v4019_v13 = vsel %vm4009_vm2, %v4016_v34, %v4018_v29  ;;  %v3540_v43 = vxor.u32 2147483648, %v3539_v57  ;;  %v18095_v22 = vld [vmem:[#allocation89_spill] sm:$0xff] }
 0x39d   :  { %v4020_v60 = vsel %vm4008_vm5, %v13373_v61, %v4001_v53  ;;  %v4021_v7 = vsel %vm4011_vm14, %v4007_v17, 1326507024  ;;  %v13413_v47 = vshll.u32 %v3984_v6, 8  ;;  %v3735_v48 = vsel %vm8162_vm3, 0, %v8161_v46 }
 0x39e   :  { %v8164_v12 = vmin.u32 %v3834_v27, %v13355_v11  ;;  %v13416_v1 = vsub.s32 %v3932_v52, %v3935_v38  ;;  %v4022_v30 = vsel %vm4010_vm7, %v4004_v25, %v4021_v7  ;;  %vm17666_vm1 = vcmp.lt.s32.totalorder %v18095_v22, 0 }
 0x39f   :  { %v4023_v34 = vsel %vm4009_vm2, %v4020_v60, %v4022_v30  ;;  %v13424_v29 = vmul.u32.u64.low %v13413_v47, %v4019_v13  ;;  %v13425_v51 = vmul.u32.u64.high %v13413_v47, %v4019_v13, %v13424_v29  ;;  %v4084_v6 = vshrl.u32 %v4083_v2, 23  ;;  %v18097_v2 = vld [vmem:[#allocation95_spill] sm:$0xff] }
 0x3a0   :  { %v3634_v17 = vshrl.u32 %v3616_v3, %v3632_v10  ;;  %v3638_v46 = vshll.u32 %v3637_v50, 23  ;;  %v13429_v27 = vmul.u32.u64.low %v13413_v47, %v4023_v34  ;;  %v13430_v52 = vmul.u32.u64.high %v13413_v47, %v4023_v34, %v13429_v27  ;;  %v13442_v10 = vpop.f32.mrb[42].mxu0 }
 0x3a1   :  { %v13432_v38 = vadd.s32 3, %v3545_v33  ;;  %v3736_v7 = vsub.s32 32, %v3735_v48  ;;  %v3740_v25 = vsub.s32 4294967266, %v3735_v48  ;;  %v8175_v45 = vadd.s32 4294967169, %v4084_v6 }
 0x3a2   :  { %v3541_v60 = vsel %vm3458_vm11, %v3540_v43, %v3539_v57  ;;  %v3633_v13 = vshll.u32 %v13199_v55, %v13341_v35  ;;  %v3836_v30 = vclz %v8164_v12  ;;  %v13440_v3 = vadd.f32 %v18097_v2, %v17873_v5 }
 0x3a3   :  { %18096 = vst [vmem:[#allocation116_spill] sm:$0xff] %v13432_v38  ;;  %v3720_v33 = vadd.s32 %v13085_v62, %v13093_v44  ;;  %v3938_v50 = vsub.s32 0, %v13416_v1  ;;  %v17658_v34 = vand.u32 2147483647, %v13352_v28  ;;  %v4090_v6 = vadd.s32 1, %v8175_v45 }
 0x3a4   :  { %18098 = vst [vmem:[#allocation95_spill] sm:$0xff] %v13440_v3  ;;  %v13448_v27 = vor.u32 %v3634_v17, %v3633_v13  ;;  %v13450_v57 = vor.u32 4788187, %v3638_v46  ;;  %v3992_v55 = vshrl.u32 %v17841_v8, %v13345_v54  ;;  %v4013_v12 = vsel %vm4011_vm14, %v4001_v53, 2102212464 }
 0x3a5   :  { %v3737_v35 = vshll.u32 %v13275_v26, %v3735_v48  ;;  %v3738_v43 = vshrl.u32 %v3720_v33, %v3736_v7  ;;  %v13457_v2 = vadd.s32 127, %v3740_v25  ;;  %vm4091_vm11 = vcmp.gt.s32.totalorder %v4090_v6, 0 }
 0x3a6   :  { %v13459_v62 = vadd.s32 4294967294, %v3836_v30  ;;  %v4012_v44 = vsel %vm4008_vm5, %v3992_v55, %v13371_v20  ;;  %v4092_v45 = vsel %vm4091_vm11, %v4090_v6, 0  ;;  %v4187_v17 = vand.u32 2139095040, %v13440_v3 }
 0x3a7   :  { %v8168_v54 = vmin.u32 %v3938_v50, %v13416_v1  ;;  %v4014_v53 = vsel %vm4010_vm7, %v13373_v61, %v4013_v12  ;;  %v4034_v26 = vadd.s32 1, %v13425_v51  ;;  %v4087_v48 = vand.u32 8388607, %v17658_v34 }
 0x3a8   :  { %v18099_v46 = vxor.u32 2147483648, %v13269_v37  ;;  %v13482_v7 = vsel %vm13326_vm10, %v18082_v56, %v3541_v60  ;;  %vm4033_vm5 = vc.u32 %v13430_v52, %v13424_v29  ;;  %v4094_v61 = vand.u32 31, %v4092_v45 }
 0x3a9   :  { %v3640_v25 = vand.u32 2147483647, %v13450_v57  ;;  %v3642_v13 = vcvt.s32.f32 %v13448_v27  ;;  %v13488_v30 = vor.u32 %v3738_v43, %v3737_v35  ;;  %v4015_v50 = vsel %vm4009_vm2, %v4012_v44, %v4014_v53 }
 0x3aa   :  { %v13477_v20 = vsel %vm17666_vm1, %v18099_v46, %v13269_v37  ;;  %v3742_v37 = vshll.u32 %v13457_v2, 23  ;;  %v4095_v18 = vsub.s32 32, %v4094_v61  ;;  %v4188_v60 = vshrl.u32 %v4187_v17, 23 }
 0x3ab   :  { %18100 = vst [vmem:[#allocation117_spill] sm:$0xff] %v13477_v20  ;;  %vm8166_vm10 = vcmp.lt.s32.totalorder %v13459_v62, 0  ;;  %v3940_v6 = vclz %v8168_v54  ;;  %v4035_v55 = vsel %vm4033_vm5, %v4034_v26, %v13425_v51  ;;  %v4088_v12 = vor.u32 8388608, %v4087_v48  ;;  %v8720_v20 = vld [vmem:[%s17449_s3 + $0x38] sm:$0xff]  }
 0x3ac   :  { %v4093_v57 = vshrl.u32 %v4092_v45, 5  ;;  %v4097_v27 = vshll.u32 %v17841_v8, %v4094_v61  ;;  %v4098_v35 = vshrl.u32 %v17830_v59, %v4095_v18  ;;  %v4100_v43 = vshll.u32 %v17830_v59, %v4094_v61  ;;  %7335 = vmatpush1.bf16.msra.mxu1 %v8720_v20 }
 0x3ad   :  { %v4101_v2 = vshrl.u32 %v17871_v39, %v4095_v18  ;;  %v4103_v32 = vshll.u32 %v17871_v39, %v4094_v61  ;;  %v4104_v44 = vshrl.u32 %v17870_v42, %v4095_v18  ;;  %v4106_v17 = vshll.u32 %v17870_v42, %v4094_v61  ;;  %7336 = vmatprep.subr.bf16.mxu1 %v18036_v23 }
 0x3ae   :  { %v4107_v54 = vshrl.u32 %v17837_v36, %v4095_v18  ;;  %v4031_v51 = vmul.u32 %v13413_v47, %v4015_v50  ;;  %v4099_v53 = vor.u32 %v4098_v35, %v4097_v27  ;;  %v8179_v26 = vadd.s32 4294967169, %v4188_v60 }
 0x3af   :  { %v4102_v45 = vor.u32 %v4101_v2, %v4100_v43  ;;  %v4105_v48 = vor.u32 %v4104_v44, %v4103_v32  ;;  %v4109_v34 = vshll.u32 %v17837_v36, %v4094_v61  ;;  %v4110_v33 = vshrl.u32 %v17838_v9, %v4095_v18  ;;  %v13516_v43 = vpop.f32.mrb[43].mxu0 }
 0x3b0   :  { %v4108_v46 = vor.u32 %v4107_v54, %v4106_v17  ;;  %v8169_v22 = vadd.s32 4294967294, %v3940_v6  ;;  %v13510_v56 = vadd.s32 %v4035_v55, %v4031_v51  ;;  %vm4112_vm14 = vcmp.lt.s32.totalorder %v4093_v57, 1 }
 0x3b1   :  { %v4128_v38 = vshll.u32 %v4088_v12, 8  ;;  %vm3666_vm7 = vcmp.lt.s32.totalorder %v12907_v58, 0  ;;  %v4096_v47 = vshrl.u32 %v17841_v8, %v4095_v18  ;;  %v4111_v50 = vor.u32 %v4110_v33, %v4109_v34 }
 0x3b2   :  { %vm4115_vm3 = vcmp.lt.s32.totalorder %v4093_v57, 4  ;;  %v4120_v60 = vsel %vm4112_vm14, %v4099_v53, %v4102_v45  ;;  %vm4114_vm2 = vcmp.lt.s32.totalorder %v4093_v57, 3  ;;  %v4124_v35 = vsel %vm4112_vm14, %v4102_v45, %v4105_v48 }
 0x3b3   :  { %v4117_v61 = vsel %vm4115_vm3, %v4105_v48, 2102212464  ;;  %v4121_v27 = vsel %vm4115_vm3, %v4108_v46, 920167782  ;;  %vm4113_vm11 = vcmp.lt.s32.totalorder %v4093_v57, 2  ;;  %v4194_v12 = vadd.s32 1, %v8179_v26 }
 0x3b4   :  { %v4122_v6 = vsel %vm4114_vm2, %v4105_v48, %v4121_v27  ;;  %v4125_v55 = vsel %vm4115_vm3, %v4111_v50, 1326507024  ;;  %v3743_v2 = vor.u32 4788187, %v3742_v37  ;;  %v4116_v34 = vsel %vm4112_vm14, %v4096_v47, %v4099_v53 }
 0x3b5   :  { %v4123_v33 = vsel %vm4113_vm11, %v4120_v60, %v4122_v6  ;;  %v4126_v18 = vsel %vm4114_vm2, %v4108_v46, %v4125_v55  ;;  %v4118_v20 = vsel %vm4114_vm2, %v4102_v45, %v4117_v61  ;;  %v13529_v23 = vsel %vm8166_vm10, 0, %v13459_v62 }
 0x3b6   :  { %v4127_v32 = vsel %vm4113_vm11, %v4124_v35, %v4126_v18  ;;  %v13522_v44 = vmul.u32.u64.low %v4128_v38, %v4123_v33  ;;  %v13523_v17 = vmul.u32.u64.high %v4128_v38, %v4123_v33, %v13522_v44  ;;  %v4037_v54 = vadd.s32 536870912, %v13510_v56 }
 0x3b7   :  { %v13532_v37 = vmul.u32.u64.low %v4128_v38, %v4127_v32  ;;  %v13533_v51 = vmul.u32.u64.high %v4128_v38, %v4127_v32, %v13532_v37  ;;  %8778 = vcosq.f32 %v13482_v7  ;;  %v13536_v53 = vmul.f32 %v3642_v13, %v3640_v25 }
 0x3b8   :  { %vm8170_vm5 = vcmp.lt.s32.totalorder %v8169_v22, 0  ;;  %vm4195_vm14 = vcmp.gt.s32.totalorder %v4194_v12, 0  ;;  %8780 = vsinq.f32 %v13482_v7  ;;  %v3744_v45 = vand.u32 2147483647, %v3743_v2 }
 0x3b9   :  { %v4119_v26 = vsel %vm4113_vm11, %v4116_v34, %v4118_v20  ;;  %v4196_v48 = vsel %vm4195_vm14, %v4194_v12, 0  ;;  %v3844_v62 = vsub.s32 4294967266, %v13529_v23  ;;  %v4138_v46 = vadd.s32 1, %v13523_v17 }
 0x3ba   :  { %v17661_v47 = vand.u32 2147483647, %v13440_v3  ;;  %v4198_v50 = vand.u32 31, %v4196_v48  ;;  %v3746_v60 = vcvt.s32.f32 %v13488_v30  ;;  %v18101_v25 = vsub.s32 4, %v13235_v63 }
 0x3bb   :  { %v13551_v7 = vsel %vm8170_vm5, 0, %v8169_v22  ;;  %v13553_v57 = vshrl.u32 %v4037_v54, 30  ;;  %v4135_v27 = vmul.u32 %v4128_v38, %v4119_v26  ;;  %vm4137_vm10 = vc.u32 %v13533_v51, %v13522_v44  ;;  %v18103_v26 = vld [vmem:[#allocation96_spill] sm:$0xff] }
 0x3bc   :  { %v13549_v13 = vsel %vm3666_vm7, %v18101_v25, %v13235_v63  ;;  %v13558_v35 = vsub.s32 32, %v4198_v50  ;;  %v13560_v30 = vmul.f32 %v3746_v60, %v3744_v45  ;;  %v3824_v6 = vadd.s32 %v13203_v49, %v13215_v41 }
 0x3bd   :  { %18102 = vst [vmem:[#allocation118_spill] sm:$0xff] %v13553_v57  ;;  %v3840_v63 = vsub.s32 32, %v13529_v23  ;;  %v4139_v22 = vsel %vm4137_vm10, %v4138_v46, %v13523_v17  ;;  %v3845_v55 = vadd.s32 127, %v3844_v62  ;;  %v3948_v12 = vsub.s32 4294967266, %v13551_v7 }
 0x3be   :  { %v4140_v2 = vadd.s32 %v4139_v22, %v4135_v27  ;;  %v4191_v38 = vand.u32 8388607, %v17661_v47  ;;  %v4039_v34 = vshll.u32 %v13553_v57, 30  ;;  %v4202_v33 = vshrl.u32 %v17830_v59, %v13558_v35 }
 0x3bf   :  { %v4205_v18 = vshrl.u32 %v17871_v39, %v13558_v35  ;;  %v4208_v49 = vshrl.u32 %v17870_v42, %v13558_v35  ;;  %v13576_v20 = vshrl.u32 %v4196_v48, 5  ;;  %v4210_v32 = vshll.u32 %v17870_v42, %v4198_v50 }
 0x3c0   :  { %v4141_v41 = vadd.s32 536870912, %v4140_v2  ;;  %v4211_v17 = vshrl.u32 %v17837_v36, %v13558_v35  ;;  %v4201_v54 = vshll.u32 %v17841_v8, %v4198_v50  ;;  %v4204_v37 = vshll.u32 %v17830_v59, %v4198_v50 }
 0x3c1   :  { %v4207_v45 = vshll.u32 %v17871_v39, %v4198_v50  ;;  %v13586_v62 = vadd.f32 %v18103_v26, %v17936_v19  ;;  %v13588_v46 = vpop.eup %8778  ;;  %v4213_v25 = vshll.u32 %v17837_v36, %v4198_v50  ;;  %v4214_v27 = vshrl.u32 %v17838_v9, %v13558_v35 }
 0x3c2   :  { %18105 = vst [vmem:[#allocation119_spill] sm:$0xff] %v13588_v46  ;;  %v13590_v60 = vshrl.u32 %v4141_v41, 30  ;;  %v4212_v48 = vor.u32 %v4211_v17, %v4210_v32  ;;  %v13595_v22 = vpop.eup %8780  ;;  %v13598_v47 = vsub.s32 %v13510_v56, %v4039_v34  ;;  %v4203_v61 = vor.u32 %v4202_v33, %v4201_v54 }
 0x3c3   :  { %18104 = vst [vmem:[#allocation96_spill] sm:$0xff] %v13586_v62  ;;  %18106 = vst [vmem:[#allocation120_spill] sm:$0xff] %v13595_v22  ;;  %v4206_v57 = vor.u32 %v4205_v18, %v4204_v37  ;;  %v4209_v0 = vor.u32 %v4208_v49, %v4207_v45  ;;  %v3841_v26 = vshll.u32 %v13355_v11, %v13529_v23  ;;  %v3949_v46 = vadd.s32 127, %v3948_v12 }
 0x3c4   :  { %v4215_v41 = vor.u32 %v4214_v27, %v4213_v25  ;;  %vm4219_vm3 = vcmp.lt.s32.totalorder %v13576_v20, 4  ;;  %v3842_v32 = vshrl.u32 %v3824_v6, %v3840_v63  ;;  %v3846_v50 = vshll.u32 %v3845_v55, 23 }
 0x3c5   :  { %v4143_v17 = vshll.u32 %v13590_v60, 30  ;;  %v4225_v22 = vsel %vm4219_vm3, %v4212_v48, 920167782  ;;  %v18107_v56 = vand.u32 2147483647, %v12907_v58  ;;  %v3944_v33 = vsub.s32 32, %v13551_v7 }
 0x3c6   :  { %vm4216_vm11 = vcmp.lt.s32.totalorder %v13576_v20, 1  ;;  %vm4218_vm5 = vcmp.lt.s32.totalorder %v13576_v20, 3  ;;  %v4291_v11 = vand.u32 2139095040, %v13586_v62  ;;  %v4042_v23 = vsub.s32 0, %v13598_v47 }
 0x3c7   :  { %vm13608_vm2 = vcmp.le.f32.partialorder %v18107_v56, 0.7853982  ;;  %v4192_v6 = vor.u32 8388608, %v4191_v38  ;;  %v4224_v63 = vsel %vm4216_vm11, %v4203_v61, %v4206_v57  ;;  %v4226_v55 = vsel %vm4218_vm5, %v4209_v0, %v4225_v22 }
 0x3c8   :  { %v3928_v12 = vadd.s32 %v13306_v31, %v13311_v24  ;;  %v3950_v18 = vshll.u32 %v3949_v46, 23  ;;  %v4228_v49 = vsel %vm4216_vm11, %v4206_v57, %v4209_v0  ;;  %v4229_v54 = vsel %vm4219_vm3, %v4215_v41, 1326507024 }
 0x3c9   :  { %v3748_v37 = vxor.u32 2147483648, %v13560_v30  ;;  %v13628_v45 = vsub.s32 %v4140_v2, %v4143_v17  ;;  %vm4217_vm14 = vcmp.lt.s32.totalorder %v13576_v20, 2  ;;  %v4230_v38 = vsel %vm4218_vm5, %v4212_v48, %v4229_v54 }
 0x3ca   :  { %vm17716_vm10 = vcmp.lt.s32.totalorder %v12697_v4, 0  ;;  %v3843_v25 = vor.u32 %v3842_v32, %v3841_v26  ;;  %v3946_v31 = vshrl.u32 %v3928_v12, %v3944_v33  ;;  %v4227_v24 = vsel %vm4217_vm14, %v4224_v63, %v4226_v55 }
 0x3cb   :  { %v4292_v46 = vshrl.u32 %v4291_v11, 23  ;;  %v3847_v27 = vor.u32 4788187, %v3846_v50  ;;  %v8172_v22 = vmin.u32 %v4042_v23, %v13598_v47  ;;  %v4231_v2 = vsel %vm4217_vm14, %v4228_v49, %v4230_v38  ;;  %v13654_v23 = vpop.f32.mrb[44].mxu0 }
 0x3cc   :  { %v13639_v41 = vshll.u32 %v4192_v6, 8  ;;  %v3945_v17 = vshll.u32 %v13416_v1, %v13551_v7  ;;  %v3951_v48 = vor.u32 4788187, %v3950_v18  ;;  %v13645_v26 = vadd.f32 %v12971_v14, %v17873_v5 }
 0x3cd   :  { %v8183_v56 = vadd.s32 4294967169, %v4292_v46  ;;  %v4146_v32 = vsub.s32 0, %v13628_v45  ;;  %v17667_v11 = vand.u32 2147483647, %v13586_v62  ;;  %v3749_v14 = vsel %vm3666_vm7, %v3748_v37, %v13560_v30 }
 0x3ce   :  { %18110 = vst [vmem:[#allocation121_spill] sm:$0xff] %v13645_v26  ;;  %v13649_v50 = vmul.u32.u64.low %v13639_v41, %v4227_v24  ;;  %v13650_v33 = vmul.u32.u64.high %v13639_v41, %v4227_v24, %v13649_v50  ;;  %v3947_v6 = vor.u32 %v3946_v31, %v3945_v17  ;;  %v3753_v55 = vsel %vm13608_vm2, 0, %v13549_v13 }
 0x3cf   :  { %v13657_v1 = vmul.u32.u64.low %v13639_v41, %v4231_v2  ;;  %v13658_v7 = vmul.u32.u64.high %v13639_v41, %v4231_v2, %v13657_v1  ;;  %v4298_v63 = vadd.s32 1, %v8183_v56  ;;  %v4044_v12 = vclz %v8172_v22 }
 0x3d0   :  { %v4221_v18 = vsel %vm4219_vm3, %v4209_v0, 2102212464  ;;  %v3848_v49 = vand.u32 2147483647, %v3847_v27  ;;  %v3952_v54 = vand.u32 2147483647, %v3951_v48  ;;  %v4200_v38 = vshrl.u32 %v17841_v8, %v13558_v35 }
 0x3d1   :  { %vm4299_vm1 = vcmp.gt.s32.totalorder %v4298_v63, 0  ;;  %v3850_v31 = vcvt.s32.f32 %v3843_v25  ;;  %v8176_v24 = vmin.u32 %v4146_v32, %v13628_v45  ;;  %v4395_v30 = vand.u32 2139095040, %v13645_v26 }
 0x3d2   :  { %v4300_v46 = vsel %vm4299_vm1, %v4298_v63, 0  ;;  %v3954_v37 = vcvt.s32.f32 %v3947_v6  ;;  %v4220_v13 = vsel %vm4216_vm11, %v4200_v38, %v4203_v61  ;;  %v4222_v22 = vsel %vm4218_vm5, %v4206_v57, %v4221_v18 }
 0x3d3   :  { %v4295_v0 = vand.u32 8388607, %v17667_v11  ;;  %v18111_v35 = vxor.u32 2147483648, %v13536_v53  ;;  %v13685_v27 = vadd.s32 3, %v3753_v55  ;;  %v8173_v2 = vadd.s32 4294967294, %v4044_v12 }
 0x3d4   :  { %v4302_v17 = vand.u32 31, %v4300_v46  ;;  %v3752_v61 = vsel %vm13608_vm2, %v12907_v58, %v3749_v14  ;;  %v13690_v48 = vmul.f32 %v3850_v31, %v3848_v49  ;;  %v13692_v57 = vmul.f32 %v3954_v37, %v3952_v54 }
 0x3d5   :  { %v13683_v25 = vsel %vm17716_vm10, %v18111_v35, %v13536_v53  ;;  %18113 = vst [vmem:[#allocation123_spill] sm:$0xff] %v13685_v27  ;;  %v4148_v32 = vclz %v8176_v24  ;;  %v4223_v6 = vsel %vm4217_vm14, %v4220_v13, %v4222_v22  ;;  %v4396_v1 = vshrl.u32 %v4395_v30, 23 }
 0x3d6   :  { %18112 = vst [vmem:[#allocation122_spill] sm:$0xff] %v13683_v25  ;;  %v4303_v53 = vsub.s32 32, %v4302_v17  ;;  %vm4241_vm1 = vc.u32 %v13658_v7, %v13649_v50  ;;  %v4242_v63 = vadd.s32 1, %v13650_v33  ;;  %v4296_v55 = vor.u32 8388608, %v4295_v0 }
 0x3d7   :  { %v4301_v34 = vshrl.u32 %v4300_v46, 5  ;;  %vm8174_vm7 = vcmp.lt.s32.totalorder %v8173_v2, 0  ;;  %v4305_v14 = vshll.u32 %v17841_v8, %v4302_v17  ;;  %v4308_v18 = vshll.u32 %v17830_v59, %v4302_v17 }
 0x3d8   :  { %v4306_v12 = vshrl.u32 %v17830_v59, %v4303_v53  ;;  %v4309_v49 = vshrl.u32 %v17871_v39, %v4303_v53  ;;  %v4311_v20 = vshll.u32 %v17871_v39, %v4302_v17  ;;  %v4312_v54 = vshrl.u32 %v17870_v42, %v4303_v53 }
 0x3d9   :  { %v4314_v38 = vshll.u32 %v17870_v42, %v4302_v17  ;;  %v4315_v31 = vshrl.u32 %v17837_v36, %v4303_v53  ;;  %v4239_v24 = vmul.u32 %v13639_v41, %v4223_v6  ;;  %v8187_v37 = vadd.s32 4294967169, %v4396_v1 }
 0x3da   :  { %v4307_v46 = vor.u32 %v4306_v12, %v4305_v14  ;;  %v4310_v30 = vor.u32 %v4309_v49, %v4308_v18  ;;  %v4313_v13 = vor.u32 %v4312_v54, %v4311_v20  ;;  %v4317_v0 = vshll.u32 %v17837_v36, %v4302_v17  ;;  %v13719_v18 = vpop.f32.mrb[45].mxu0 }
 0x3db   :  { %v4316_v22 = vor.u32 %v4315_v31, %v4314_v38  ;;  %v4318_v35 = vshrl.u32 %v17838_v9, %v4303_v53  ;;  %vm3874_vm3 = vcmp.lt.s32.totalorder %v13128_v15, 0  ;;  %v8177_v11 = vadd.s32 4294967294, %v4148_v32  ;;  %18114 = vst [vmem:[#allocation124_spill] sm:$0xff] %v13719_v18 }
 0x3dc   :  { %v4243_v56 = vsel %vm4241_vm1, %v4242_v63, %v13650_v33  ;;  %vm4320_vm2 = vcmp.lt.s32.totalorder %v4301_v34, 1  ;;  %v4336_v25 = vshll.u32 %v4296_v55, 8  ;;  %v4304_v41 = vshrl.u32 %v17841_v8, %v4303_v53 }
 0x3dd   :  { %v4319_v6 = vor.u32 %v4318_v35, %v4317_v0  ;;  %vm4323_vm11 = vcmp.lt.s32.totalorder %v4301_v34, 4  ;;  %v4328_v1 = vsel %vm4320_vm2, %v4307_v46, %v4310_v30  ;;  %vm4322_vm5 = vcmp.lt.s32.totalorder %v4301_v34, 3 }
 0x3de   :  { %v4325_v17 = vsel %vm4323_vm11, %v4313_v13, 2102212464  ;;  %v4329_v14 = vsel %vm4323_vm11, %v4316_v22, 920167782  ;;  %v4332_v12 = vsel %vm4320_vm2, %v4310_v30, %v4313_v13  ;;  %vm4321_vm14 = vcmp.lt.s32.totalorder %v4301_v34, 2 }
 0x3df   :  { %v4330_v32 = vsel %vm4322_vm5, %v4313_v13, %v4329_v14  ;;  %v4333_v49 = vsel %vm4323_vm11, %v4319_v6, 1326507024  ;;  %v4402_v20 = vadd.s32 1, %v8187_v37  ;;  %v13721_v33 = vadd.s32 %v4243_v56, %v4239_v24 }
 0x3e0   :  { %v4324_v63 = vsel %vm4320_vm2, %v4304_v41, %v4307_v46  ;;  %v4331_v53 = vsel %vm4321_vm14, %v4328_v1, %v4330_v32  ;;  %v4334_v55 = vsel %vm4322_vm5, %v4316_v22, %v4333_v49  ;;  %v4326_v54 = vsel %vm4322_vm5, %v4310_v30, %v4325_v17 }
 0x3e1   :  { %v4335_v38 = vsel %vm4321_vm14, %v4332_v12, %v4334_v55  ;;  %v13726_v31 = vmul.u32.u64.low %v4336_v25, %v4331_v53  ;;  %v13727_v0 = vmul.u32.u64.high %v4336_v25, %v4331_v53, %v13726_v31  ;;  %8782 = vcosq.f32 %v3752_v61 }
 0x3e2   :  { %v3956_v35 = vxor.u32 2147483648, %v13692_v57  ;;  %v13731_v13 = vmul.u32.u64.low %v4336_v25, %v4335_v38  ;;  %v13732_v6 = vmul.u32.u64.high %v4336_v25, %v4335_v38, %v13731_v13  ;;  %8784 = vsinq.f32 %v3752_v61 }
 0x3e3   :  { %v13735_v56 = vsel %vm8174_vm7, 0, %v8173_v2  ;;  %vm8178_vm1 = vcmp.lt.s32.totalorder %v8177_v11, 0  ;;  %vm4403_vm2 = vcmp.gt.s32.totalorder %v4402_v20, 0  ;;  %v4245_v24 = vadd.s32 536870912, %v13721_v33 }
 0x3e4   :  { %v4327_v46 = vsel %vm4321_vm14, %v4324_v63, %v4326_v54  ;;  %v17668_v30 = vand.u32 2147483647, %v13645_v26  ;;  %v4404_v37 = vsel %vm4403_vm2, %v4402_v20, 0  ;;  %v18115_v41 = vsub.s32 4, %v13377_v40 }
 0x3e5   :  { %v4346_v2 = vadd.s32 1, %v13727_v0  ;;  %v4406_v1 = vand.u32 31, %v4404_v37  ;;  %v13752_v34 = vsel %vm3874_vm3, %v3956_v35, %v13692_v57  ;;  %v4032_v17 = vadd.s32 %v13424_v29, %v13430_v52 }
 0x3e6   :  { %v13746_v61 = vsel %vm3874_vm3, %v18115_v41, %v13377_v40  ;;  %v4048_v14 = vsub.s32 32, %v13735_v56  ;;  %v13757_v12 = vsel %vm8178_vm1, 0, %v8177_v11  ;;  %v4052_v32 = vsub.s32 4294967266, %v13735_v56 }
 0x3e7   :  { %v4343_v49 = vmul.u32 %v4336_v25, %v4327_v46  ;;  %vm4345_vm7 = vc.u32 %v13732_v6, %v13726_v31  ;;  %v13762_v40 = vsub.s32 32, %v4406_v1  ;;  %v13764_v20 = vshrl.u32 %v4245_v24, 30 }
 0x3e8   :  { %v4347_v57 = vsel %vm4345_vm7, %v4346_v2, %v13727_v0  ;;  %v4399_v63 = vand.u32 8388607, %v17668_v30  ;;  %v13771_v29 = vadd.f32 %v13062_v16, %v17936_v19  ;;  %v4156_v52 = vsub.s32 4294967266, %v13757_v12 }
 0x3e9   :  { %18116 = vst [vmem:[#allocation125_spill] sm:$0xff] %v13764_v20  ;;  %v4348_v11 = vadd.s32 %v4347_v57, %v4343_v49  ;;  %v4410_v25 = vshrl.u32 %v17830_v59, %v13762_v40  ;;  %v4413_v53 = vshrl.u32 %v17871_v39, %v13762_v40  ;;  %v4409_v55 = vshll.u32 %v17841_v8, %v4406_v1 }
 0x3ea   :  { %18117 = vst [vmem:[#allocation126_spill] sm:$0xff] %v13771_v29  ;;  %v4412_v54 = vshll.u32 %v17830_v59, %v4406_v1  ;;  %v4415_v38 = vshll.u32 %v17871_v39, %v4406_v1  ;;  %v4416_v0 = vshrl.u32 %v17870_v42, %v13762_v40  ;;  %v13783_v35 = vshrl.u32 %v4404_v37, 5 }
 0x3eb   :  { %v4349_v16 = vadd.s32 536870912, %v4348_v11  ;;  %v4418_v13 = vshll.u32 %v17870_v42, %v4406_v1  ;;  %v4419_v24 = vshrl.u32 %v17837_v36, %v13762_v40  ;;  %v13788_v46 = vpop.eup %8782  ;;  %v4247_v41 = vshll.u32 %v13764_v20, 30 }
 0x3ec   :  { %18118 = vst [vmem:[#allocation127_spill] sm:$0xff] %v13788_v46  ;;  %v4411_v2 = vor.u32 %v4410_v25, %v4409_v55  ;;  %v4414_v49 = vor.u32 %v4413_v53, %v4412_v54  ;;  %v4417_v57 = vor.u32 %v4416_v0, %v4415_v38  ;;  %v13791_v30 = vpop.eup %8784  ;;  %v4421_v37 = vshll.u32 %v17837_v36, %v4406_v1 }
 0x3ed   :  { %18119 = vst [vmem:[#allocation128_spill] sm:$0xff] %v13791_v30  ;;  %v13793_v22 = vshrl.u32 %v4349_v16, 30  ;;  %v4420_v4 = vor.u32 %v4419_v24, %v4418_v13  ;;  %v4422_v58 = vshrl.u32 %v17838_v9, %v13762_v40  ;;  %v4049_v27 = vshll.u32 %v13598_v47, %v13735_v56 }
 0x3ee   :  { %v4050_v26 = vshrl.u32 %v4032_v17, %v4048_v14  ;;  %v4053_v46 = vadd.s32 127, %v4052_v32  ;;  %v4400_v18 = vor.u32 8388608, %v4399_v63  ;;  %v4157_v20 = vadd.s32 127, %v4156_v52 }
 0x3ef   :  { %v4423_v25 = vor.u32 %v4422_v58, %v4421_v37  ;;  %vm4424_vm3 = vcmp.lt.s32.totalorder %v13783_v35, 1  ;;  %vm4427_vm11 = vcmp.lt.s32.totalorder %v13783_v35, 4  ;;  %v13803_v53 = vsub.s32 %v13721_v33, %v4247_v41  ;;  %v18123_v41 = vld [vmem:[#allocation83_spill] sm:$0xff] }
 0x3f0   :  { %vm4426_vm5 = vcmp.lt.s32.totalorder %v13783_v35, 3  ;;  %v4432_v1 = vsel %vm4424_vm3, %v4411_v2, %v4414_v49  ;;  %v4433_v47 = vsel %vm4427_vm11, %v4420_v4, 920167782  ;;  %v18120_v56 = vand.u32 2147483647, %v13128_v15 }
 0x3f1   :  { %v4351_v58 = vshll.u32 %v13793_v22, 30  ;;  %vm4425_vm1 = vcmp.lt.s32.totalorder %v13783_v35, 2  ;;  %v4434_v33 = vsel %vm4426_vm5, %v4417_v57, %v4433_v47  ;;  %v4499_v14 = vand.u32 2139095040, %v13771_v29 }
 0x3f2   :  { %vm13812_vm14 = vcmp.le.f32.partialorder %v18120_v56, 0.7853982  ;;  %v4136_v32 = vadd.s32 %v13522_v44, %v13533_v51  ;;  %v4152_v63 = vsub.s32 32, %v13757_v12  ;;  %v4435_v52 = vsel %vm4425_vm1, %v4432_v1, %v4434_v33 }
 0x3f3   :  { %v4440_v55 = vshll.u32 %v4400_v18, 8  ;;  %v4054_v54 = vshll.u32 %v4053_v46, 23  ;;  %v4158_v38 = vshll.u32 %v4157_v20, 23  ;;  %v4436_v0 = vsel %vm4424_vm3, %v4414_v49, %v4417_v57 }
 0x3f4   :  { %v4437_v16 = vsel %vm4427_vm11, %v4423_v25, 1326507024  ;;  %v4250_v13 = vsub.s32 0, %v13803_v53  ;;  %vm17679_vm2 = vcmp.lt.s32.totalorder %v18123_v41, 0  ;;  %v4051_v18 = vor.u32 %v4050_v26, %v4049_v27 }
 0x3f5   :  { %v4438_v24 = vsel %vm4426_vm5, %v4420_v4, %v4437_v16  ;;  %v13833_v44 = vmul.u32.u64.low %v4440_v55, %v4435_v52  ;;  %v13834_v51 = vmul.u32.u64.high %v4440_v55, %v4435_v52, %v13833_v44  ;;  %v13838_v46 = vsub.s32 %v4348_v11, %v4351_v58  ;;  %v18124_v58 = vld [vmem:[#allocation110_spill] sm:$0xff] }
 0x3f6   :  { %v4439_v20 = vsel %vm4425_vm1, %v4436_v0, %v4438_v24  ;;  %v4500_v37 = vshrl.u32 %v4499_v14, 23  ;;  %v4154_v1 = vshrl.u32 %v4136_v32, %v4152_v63  ;;  %v4429_v25 = vsel %vm4427_vm11, %v4417_v57, 2102212464 }
 0x3f7   :  { %v13844_v47 = vmul.u32.u64.low %v4440_v55, %v4439_v20  ;;  %v13845_v56 = vmul.u32.u64.high %v4440_v55, %v4439_v20, %v13844_v47  ;;  %v4055_v4 = vor.u32 4788187, %v4054_v54  ;;  %v4159_v33 = vor.u32 4788187, %v4158_v38 }
 0x3f8   :  { %v4408_v52 = vshrl.u32 %v17841_v8, %v13762_v40  ;;  %v8191_v16 = vadd.s32 4294967169, %v4500_v37  ;;  %v4153_v26 = vshll.u32 %v13628_v45, %v13757_v12  ;;  %v8180_v27 = vmin.u32 %v4250_v13, %v13803_v53 }
 0x3f9   :  { %v17678_v11 = vand.u32 2147483647, %v13771_v29  ;;  %v13855_v14 = vadd.f32 %v18124_v58, %v17873_v5  ;;  %v4354_v57 = vsub.s32 0, %v13838_v46  ;;  %v4430_v40 = vsel %vm4426_vm5, %v4414_v49, %v4429_v25 }
 0x3fa   :  { %v4428_v32 = vsel %vm4424_vm3, %v4408_v52, %v4411_v2  ;;  %v4506_v63 = vadd.s32 1, %v8191_v16  ;;  %v13866_v45 = vsel %vm13812_vm14, %v13128_v15, %v13752_v34  ;;  %v3961_v12 = vsel %vm13812_vm14, 0, %v13746_v61 }
 0x3fb   :  { %18125 = vst [vmem:[#allocation110_spill] sm:$0xff] %v13855_v14  ;;  %v4155_v54 = vor.u32 %v4154_v1, %v4153_v26  ;;  %v4450_v38 = vadd.s32 1, %v13834_v51  ;;  %v4056_v0 = vand.u32 2147483647, %v4055_v4  ;;  %v4160_v13 = vand.u32 2147483647, %v4159_v33 }
 0x3fc   :  { %vm4449_vm7 = vc.u32 %v13845_v56, %v13833_v44  ;;  %vm4507_vm3 = vcmp.gt.s32.totalorder %v4506_v63, 0  ;;  %v4252_v2 = vclz %v8180_v27  ;;  %v4431_v49 = vsel %vm4425_vm1, %v4428_v32, %v4430_v40 }
 0x3fd   :  { %v4508_v24 = vsel %vm4507_vm3, %v4506_v63, 0  ;;  %v4603_v34 = vand.u32 2139095040, %v13855_v14  ;;  %v13877_v20 = vadd.s32 3, %v3961_v12  ;;  %v4058_v17 = vcvt.s32.f32 %v4051_v18 }
 0x3fe   :  { %v8184_v61 = vmin.u32 %v4354_v57, %v13838_v46  ;;  %v4503_v37 = vand.u32 8388607, %v17678_v11  ;;  %v18127_v1 = vxor.u32 2147483648, %v13690_v48  ;;  %v4162_v35 = vcvt.s32.f32 %v4155_v54 }
 0x3ff   :  { %18126 = vst [vmem:[#allocation129_spill] sm:$0xff] %v13877_v20  ;;  %v4451_v47 = vsel %vm4449_vm7, %v4450_v38, %v13834_v51  ;;  %v4510_v4 = vand.u32 31, %v4508_v24  ;;  %8786 = vcosq.f32 %v13866_v45  ;;  %v13891_v33 = vmul.f32 %v4058_v17, %v4056_v0 }
 0x400   :  { %v13887_v25 = vsel %vm17679_vm2, %v18127_v1, %v13690_v48  ;;  %v4166_v18 = vsub.s32 4, %v13590_v60  ;;  %v4447_v52 = vmul.u32 %v4440_v55, %v4431_v49  ;;  %v13894_v16 = vmul.f32 %v4162_v35, %v4160_v13 }
 0x401   :  { %18128 = vst [vmem:[#allocation130_spill] sm:$0xff] %v13887_v25  ;;  %v8181_v26 = vadd.s32 4294967294, %v4252_v2  ;;  %v4511_v27 = vsub.s32 32, %v4510_v4  ;;  %v4604_v58 = vshrl.u32 %v4603_v34, 23  ;;  %v4356_v57 = vclz %v8184_v61 }
 0x402   :  { %v13896_v32 = vadd.s32 %v4451_v47, %v4447_v52  ;;  %v4504_v48 = vor.u32 8388608, %v4503_v37  ;;  %v4509_v40 = vshrl.u32 %v4508_v24, 5  ;;  %v4513_v51 = vshll.u32 %v17841_v8, %v4510_v4 }
 0x403   :  { %v4514_v63 = vshrl.u32 %v17830_v59, %v4511_v27  ;;  %v4516_v12 = vshll.u32 %v17830_v59, %v4510_v4  ;;  %v4517_v54 = vshrl.u32 %v17871_v39, %v4511_v27  ;;  %vm4082_vm11 = vcmp.lt.s32.totalorder %v13352_v28, 0 }
 0x404   :  { %v4519_v55 = vshll.u32 %v17871_v39, %v4510_v4  ;;  %v4520_v38 = vshrl.u32 %v17870_v42, %v4511_v27  ;;  %v4522_v0 = vshll.u32 %v17870_v42, %v4510_v4  ;;  %v4523_v13 = vshrl.u32 %v17837_v36, %v4511_v27 }
 0x405   :  { %vm8182_vm5 = vcmp.lt.s32.totalorder %v8181_v26, 0  ;;  %v4515_v2 = vor.u32 %v4514_v63, %v4513_v51  ;;  %v4518_v49 = vor.u32 %v4517_v54, %v4516_v12  ;;  %v8195_v24 = vadd.s32 4294967169, %v4604_v58 }
 0x406   :  { %v4521_v34 = vor.u32 %v4520_v38, %v4519_v55  ;;  %v4524_v17 = vor.u32 %v4523_v13, %v4522_v0  ;;  %v4525_v61 = vshll.u32 %v17837_v36, %v4510_v4  ;;  %v4526_v37 = vshrl.u32 %v17838_v9, %v4511_v27 }
 0x407   :  { %v18129_v1 = vand.u32 2147483647, %v13352_v28  ;;  %v8185_v47 = vadd.s32 4294967294, %v4356_v57  ;;  %v4453_v52 = vadd.s32 536870912, %v13896_v32  ;;  %vm4528_vm1 = vcmp.lt.s32.totalorder %v4509_v40, 1 }
 0x408   :  { %v4544_v11 = vshll.u32 %v4504_v48, 8  ;;  %v4512_v51 = vshrl.u32 %v17841_v8, %v4511_v27  ;;  %v4527_v58 = vor.u32 %v4526_v37, %v4525_v61  ;;  %vm4531_vm7 = vcmp.lt.s32.totalorder %v4509_v40, 4 }
 0x409   :  { %vm13911_vm14 = vcmp.le.f32.partialorder %v18129_v1, 0.7853982  ;;  %v4536_v63 = vsel %vm4528_vm1, %v4515_v2, %v4518_v49  ;;  %vm4530_vm3 = vcmp.lt.s32.totalorder %v4509_v40, 3  ;;  %v4533_v4 = vsel %vm4531_vm7, %v4521_v34, 2102212464  ;;  %v13919_v55 = vpop.eup %8786 }
 0x40a   :  { %v4537_v12 = vsel %vm4531_vm7, %v4524_v17, 920167782  ;;  %v4540_v54 = vsel %vm4528_vm1, %v4518_v49, %v4521_v34  ;;  %18132 = vst [vmem:[#allocation131_spill] sm:$0xff] %v13919_v55  ;;  %vm4529_vm2 = vcmp.lt.s32.totalorder %v4509_v40, 2  ;;  %v4541_v57 = vsel %vm4531_vm7, %v4527_v58, 1326507024 }
 0x40b   :  { %v4538_v38 = vsel %vm4530_vm3, %v4521_v34, %v4537_v12  ;;  %v4610_v0 = vadd.s32 1, %v8195_v24  ;;  %v13921_v13 = vshrl.u32 %v4453_v52, 30  ;;  %v4532_v48 = vsel %vm4528_vm1, %v4512_v51, %v4515_v2 }
 0x40c   :  { %v4539_v27 = vsel %vm4529_vm2, %v4536_v63, %v4538_v38  ;;  %v4542_v61 = vsel %vm4530_vm3, %v4524_v17, %v4541_v57  ;;  %v4534_v37 = vsel %vm4530_vm3, %v4518_v49, %v4533_v4  ;;  %v4164_v15 = vxor.u32 2147483648, %v13894_v16 }
 0x40d   :  { %18133 = vst [vmem:[#allocation132_spill] sm:$0xff] %v13921_v13  ;;  %v4543_v1 = vsel %vm4529_vm2, %v4540_v54, %v4542_v61  ;;  %v13926_v25 = vmul.u32.u64.low %v4544_v11, %v4539_v27  ;;  %v13927_v41 = vmul.u32.u64.high %v4544_v11, %v4539_v27, %v13926_v25  ;;  %v13934_v24 = vsel %vm4082_vm11, %v4166_v18, %v13590_v60 }
 0x40e   :  { %v13936_v34 = vmul.u32.u64.low %v4544_v11, %v4543_v1  ;;  %v13937_v52 = vmul.u32.u64.high %v4544_v11, %v4543_v1, %v13936_v34  ;;  %8788 = vsinq.f32 %v13866_v45  ;;  %v13941_v2 = vsel %vm8182_vm5, 0, %v8181_v26 }
 0x40f   :  { %vm8186_vm1 = vcmp.lt.s32.totalorder %v8185_v47, 0  ;;  %vm4611_vm7 = vcmp.gt.s32.totalorder %v4610_v0, 0  ;;  %v4455_v49 = vshll.u32 %v13921_v13, 30  ;;  %v4535_v17 = vsel %vm4529_vm2, %v4532_v48, %v4534_v37 }
 0x410   :  { %v17683_v51 = vand.u32 2147483647, %v13855_v14  ;;  %v4612_v58 = vsel %vm4611_vm7, %v4610_v0, 0  ;;  %v4554_v45 = vadd.s32 1, %v13927_v41  ;;  %v13954_v26 = vsel %vm4082_vm11, %v4164_v15, %v13894_v16 }
 0x411   :  { %v4614_v63 = vand.u32 31, %v4612_v58  ;;  %v4240_v40 = vadd.s32 %v13649_v50, %v13658_v7  ;;  %v4256_v4 = vsub.s32 32, %v13941_v2  ;;  %v13959_v12 = vsel %vm8186_vm1, 0, %v8185_v47  ;;  %v18134_v7 = vld [vmem:[#allocation111_spill] sm:$0xff] }
 0x412   :  { %v4260_v54 = vsub.s32 4294967266, %v13941_v2  ;;  %v4551_v38 = vmul.u32 %v4544_v11, %v4535_v17  ;;  %vm4553_vm2 = vc.u32 %v13937_v52, %v13926_v25  ;;  %v13967_v0 = vsub.s32 %v13896_v32, %v4455_v49 }
 0x413   :  { %v13964_v57 = vsub.s32 32, %v4614_v63  ;;  %v4555_v15 = vsel %vm4553_vm2, %v4554_v45, %v13927_v41  ;;  %v4607_v50 = vand.u32 8388607, %v17683_v51  ;;  %v13974_v16 = vadd.f32 %v18134_v7, %v17936_v19 }
 0x414   :  { %v4364_v47 = vsub.s32 4294967266, %v13959_v12  ;;  %v4556_v11 = vadd.s32 %v4555_v15, %v4551_v38  ;;  %v4617_v32 = vshll.u32 %v17841_v8, %v4614_v63  ;;  %v4620_v41 = vshll.u32 %v17830_v59, %v4614_v63 }
 0x415   :  { %18135 = vst [vmem:[#allocation111_spill] sm:$0xff] %v13974_v16  ;;  %v4618_v48 = vshrl.u32 %v17830_v59, %v13964_v57  ;;  %v4621_v27 = vshrl.u32 %v17871_v39, %v13964_v57  ;;  %v4623_v61 = vshll.u32 %v17871_v39, %v4614_v63  ;;  %v4624_v37 = vshrl.u32 %v17870_v42, %v13964_v57 }
 0x416   :  { %v4557_v1 = vadd.s32 536870912, %v4556_v11  ;;  %v13986_v34 = vshrl.u32 %v4612_v58, 5  ;;  %v4626_v49 = vshll.u32 %v17870_v42, %v4614_v63  ;;  %v4627_v17 = vshrl.u32 %v17837_v36, %v13964_v57 }
 0x417   :  { %v4458_v45 = vsub.s32 0, %v13967_v0  ;;  %v4619_v38 = vor.u32 %v4618_v48, %v4617_v32  ;;  %v4622_v15 = vor.u32 %v4621_v27, %v4620_v41  ;;  %v4625_v7 = vor.u32 %v4624_v37, %v4623_v61 }
 0x418   :  { %v13992_v51 = vpop.eup %8788  ;;  %v13994_v60 = vshrl.u32 %v4557_v1, 30  ;;  %v4628_v18 = vor.u32 %v4627_v17, %v4626_v49  ;;  %v4629_v13 = vshll.u32 %v17837_v36, %v4614_v63  ;;  %v4630_v58 = vshrl.u32 %v17838_v9, %v13964_v57 }
 0x419   :  { %18136 = vst [vmem:[#allocation133_spill] sm:$0xff] %v13992_v51  ;;  %v4257_v55 = vshll.u32 %v13803_v53, %v13941_v2  ;;  %v4258_v20 = vshrl.u32 %v4240_v40, %v4256_v4  ;;  %v4261_v30 = vadd.s32 127, %v4260_v54  ;;  %v4608_v14 = vor.u32 8388608, %v4607_v50 }
 0x41a   :  { %v4365_v29 = vadd.s32 127, %v4364_v47  ;;  %v4631_v48 = vor.u32 %v4630_v58, %v4629_v13  ;;  %vm4632_vm11 = vcmp.lt.s32.totalorder %v13986_v34, 1  ;;  %vm4635_vm5 = vcmp.lt.s32.totalorder %v13986_v34, 4 }
 0x41b   :  { %v8188_v27 = vmin.u32 %v4458_v45, %v13967_v0  ;;  %vm4634_vm3 = vcmp.lt.s32.totalorder %v13986_v34, 3  ;;  %v4640_v63 = vsel %vm4632_vm11, %v4619_v38, %v4622_v15  ;;  %v4641_v32 = vsel %vm4635_vm5, %v4628_v18, 920167782 }
 0x41c   :  { %v4559_v53 = vshll.u32 %v13994_v60, 30  ;;  %vm4633_vm1 = vcmp.lt.s32.totalorder %v13986_v34, 2  ;;  %v4642_v13 = vsel %vm4634_vm3, %v4625_v7, %v4641_v32  ;;  %v4707_v2 = vand.u32 2139095040, %v13974_v16 }
 0x41d   :  { %v4344_v40 = vadd.s32 %v13726_v31, %v13732_v6  ;;  %v4360_v4 = vsub.s32 32, %v13959_v12  ;;  %v4643_v54 = vsel %vm4633_vm1, %v4640_v63, %v4642_v13  ;;  %v4648_v50 = vshll.u32 %v4608_v14, 8 }
 0x41e   :  { %v4262_v47 = vshll.u32 %v4261_v30, 23  ;;  %v4366_v41 = vshll.u32 %v4365_v29, 23  ;;  %v4644_v61 = vsel %vm4632_vm11, %v4622_v15, %v4625_v7  ;;  %v4645_v37 = vsel %vm4635_vm5, %v4631_v48, 1326507024 }
 0x41f   :  { %v4460_v1 = vclz %v8188_v27  ;;  %v4646_v49 = vsel %vm4634_vm3, %v4628_v18, %v4645_v37  ;;  %v14025_v17 = vmul.u32.u64.low %v4648_v50, %v4643_v54  ;;  %v14026_v31 = vmul.u32.u64.high %v4648_v50, %v4643_v54, %v14025_v17 }
 0x420   :  { %vm17693_vm7 = vcmp.lt.s32.totalorder %v13231_v21, 0  ;;  %v4259_v6 = vor.u32 %v4258_v20, %v4257_v55  ;;  %v14030_v14 = vsub.s32 %v4556_v11, %v4559_v53  ;;  %v4647_v30 = vsel %vm4633_vm1, %v4644_v61, %v4646_v49 }
 0x421   :  { %v4708_v29 = vshrl.u32 %v4707_v2, 23  ;;  %vm4290_vm2 = vcmp.lt.s32.totalorder %v13586_v62, 0  ;;  %v4362_v45 = vshrl.u32 %v4344_v40, %v4360_v4  ;;  %v4637_v58 = vsel %vm4635_vm5, %v4625_v7, 2102212464 }
 0x422   :  { %v14037_v18 = vmul.u32.u64.low %v4648_v50, %v4647_v30  ;;  %v14038_v48 = vmul.u32.u64.high %v4648_v50, %v4647_v30, %v14037_v18  ;;  %v4263_v27 = vor.u32 4788187, %v4262_v47  ;;  %v4616_v63 = vshrl.u32 %v17841_v8, %v13964_v57 }
 0x423   :  { %v8199_v20 = vadd.s32 4294967169, %v4708_v29  ;;  %v14044_v55 = vadd.f32 %v13442_v10, %v17873_v5  ;;  %v4361_v11 = vshll.u32 %v13838_v46, %v13959_v12  ;;  %v4367_v32 = vor.u32 4788187, %v4366_v41 }
 0x424   :  { %v8189_v53 = vadd.s32 4294967294, %v4460_v1  ;;  %v17692_v13 = vand.u32 2147483647, %v13974_v16  ;;  %v4562_v7 = vsub.s32 0, %v14030_v14  ;;  %v4636_v2 = vsel %vm4632_vm11, %v4616_v63, %v4619_v38 }
 0x425   :  { %18137 = vst [vmem:[#allocation134_spill] sm:$0xff] %v14044_v55  ;;  %v4638_v57 = vsel %vm4634_vm3, %v4622_v15, %v4637_v58  ;;  %v4714_v40 = vadd.s32 1, %v8199_v20  ;;  %v14058_v10 = vsel %vm13911_vm14, %v13352_v28, %v13954_v26  ;;  %v18138_v46 = vsel %vm13911_vm14, 0, %v13934_v24 }
 0x426   :  { %v14064_v12 = vadd.s32 3, %v18138_v46  ;;  %v4363_v4 = vor.u32 %v4362_v45, %v4361_v11  ;;  %v4658_v54 = vadd.s32 1, %v14026_v31  ;;  %v4264_v38 = vand.u32 2147483647, %v4263_v27 }
 0x427   :  { %v4374_v47 = vsub.s32 4, %v13793_v22  ;;  %vm4657_vm11 = vc.u32 %v14038_v48, %v14025_v17  ;;  %vm4715_vm5 = vcmp.gt.s32.totalorder %v4714_v40, 0  ;;  %v4368_v15 = vand.u32 2147483647, %v4367_v32 }
 0x428   :  { %18139 = vst [vmem:[#allocation135_spill] sm:$0xff] %v14064_v12  ;;  %v4639_v26 = vsel %vm4633_vm1, %v4636_v2, %v4638_v57  ;;  %v4716_v41 = vsel %vm4715_vm5, %v4714_v40, 0  ;;  %v4811_v35 = vand.u32 2139095040, %v14044_v55  ;;  %v4266_v24 = vcvt.s32.f32 %v4259_v6 }
 0x429   :  { %vm8190_vm14 = vcmp.lt.s32.totalorder %v8189_v53, 0  ;;  %v8192_v61 = vmin.u32 %v4562_v7, %v14030_v14  ;;  %v4711_v37 = vand.u32 8388607, %v17692_v13  ;;  %v18140_v1 = vxor.u32 2147483648, %v13891_v33 }
 0x42a   :  { %v4370_v30 = vcvt.s32.f32 %v4363_v4  ;;  %v4659_v34 = vsel %vm4657_vm11, %v4658_v54, %v14026_v31  ;;  %v4718_v29 = vand.u32 31, %v4716_v41  ;;  %8790 = vcosq.f32 %v14058_v10 }
 0x42b   :  { %v14081_v49 = vsel %vm17693_vm7, %v18140_v1, %v13891_v33  ;;  %v14085_v6 = vmul.f32 %v4266_v24, %v4264_v38  ;;  %v14090_v45 = vsel %vm4290_vm2, %v4374_v47, %v13793_v22  ;;  %v4655_v58 = vmul.u32 %v4648_v50, %v4639_v26 }
 0x42c   :  { %18141 = vst [vmem:[#allocation136_spill] sm:$0xff] %v14081_v49  ;;  %v14092_v18 = vmul.f32 %v4370_v30, %v4368_v15  ;;  %v14094_v27 = vsel %vm8190_vm14, 0, %v8189_v53  ;;  %v4719_v33 = vsub.s32 32, %v4718_v29  ;;  %v4812_v63 = vshrl.u32 %v4811_v35, 23 }
 0x42d   :  { %v4564_v20 = vclz %v8192_v61  ;;  %v14096_v11 = vadd.s32 %v4659_v34, %v4655_v58  ;;  %v4712_v31 = vor.u32 8388608, %v4711_v37  ;;  %v4717_v32 = vshrl.u32 %v4716_v41, 5 }
 0x42e   :  { %v4721_v7 = vshll.u32 %v17841_v8, %v4718_v29  ;;  %v4722_v2 = vshrl.u32 %v17830_v59, %v4719_v33  ;;  %v4724_v57 = vshll.u32 %v17830_v59, %v4718_v29  ;;  %v4725_v22 = vshrl.u32 %v17871_v39, %v4719_v33 }
 0x42f   :  { %v4727_v50 = vshll.u32 %v17871_v39, %v4718_v29  ;;  %v4728_v53 = vshrl.u32 %v17870_v42, %v4719_v33  ;;  %v4730_v40 = vshll.u32 %v17870_v42, %v4718_v29  ;;  %v4731_v46 = vshrl.u32 %v17837_v36, %v4719_v33 }
 0x430   :  { %v4723_v4 = vor.u32 %v4722_v2, %v4721_v7  ;;  %v4726_v54 = vor.u32 %v4725_v22, %v4724_v57  ;;  %v17694_v38 = vand.u32 2147483647, %v14044_v55  ;;  %v8203_v47 = vadd.s32 4294967169, %v4812_v63 }
 0x431   :  { %v4729_v15 = vor.u32 %v4728_v53, %v4727_v50  ;;  %v4732_v26 = vor.u32 %v4731_v46, %v4730_v40  ;;  %v4733_v41 = vshll.u32 %v17837_v36, %v4718_v29  ;;  %v4734_v35 = vshrl.u32 %v17838_v9, %v4719_v33 }
 0x432   :  { %v8193_v24 = vadd.s32 4294967294, %v4564_v20  ;;  %v4661_v61 = vadd.s32 536870912, %v14096_v11  ;;  %vm4736_vm3 = vcmp.lt.s32.totalorder %v4717_v32, 1  ;;  %v4752_v37 = vshll.u32 %v4712_v31, 8 }
 0x433   :  { %v18142_v1 = vand.u32 2147483647, %v13586_v62  ;;  %v4720_v34 = vshrl.u32 %v17841_v8, %v4719_v33  ;;  %v4735_v58 = vor.u32 %v4734_v35, %v4733_v41  ;;  %vm4739_vm11 = vcmp.lt.s32.totalorder %v4717_v32, 4 }
 0x434   :  { %v4744_v63 = vsel %vm4736_vm3, %v4723_v4, %v4726_v54  ;;  %vm4738_vm5 = vcmp.lt.s32.totalorder %v4717_v32, 3  ;;  %v4741_v29 = vsel %vm4739_vm11, %v4729_v15, 2102212464  ;;  %v4745_v7 = vsel %vm4739_vm11, %v4732_v26, 920167782  ;;  %v14119_v2 = vpop.eup %8790 }
 0x435   :  { %vm14112_vm1 = vcmp.le.f32.partialorder %v18142_v1, 0.7853982  ;;  %v4748_v20 = vsel %vm4736_vm3, %v4726_v54, %v4729_v15  ;;  %18145 = vst [vmem:[#allocation137_spill] sm:$0xff] %v14119_v2  ;;  %vm4737_vm14 = vcmp.lt.s32.totalorder %v4717_v32, 2  ;;  %v4746_v31 = vsel %vm4738_vm5, %v4729_v15, %v4745_v7  ;;  %v18176_v2 = vld [vmem:[#allocation13_spill] sm:$0xff] }
 0x436   :  { %v4749_v57 = vsel %vm4739_vm11, %v4735_v58, 1326507024  ;;  %v4818_v22 = vadd.s32 1, %v8203_v47  ;;  %v14121_v50 = vshrl.u32 %v4661_v61, 30  ;;  %v4740_v53 = vsel %vm4736_vm3, %v4720_v34, %v4723_v4  ;;  %v14134_v47 = vpop.f32.mrb[46].mxu0 }
 0x437   :  { %v4747_v33 = vsel %vm4737_vm14, %v4744_v63, %v4746_v31  ;;  %v4750_v40 = vsel %vm4738_vm5, %v4732_v26, %v4749_v57  ;;  %v4742_v46 = vsel %vm4738_vm5, %v4726_v54, %v4741_v29  ;;  %v4372_v13 = vxor.u32 2147483648, %v14092_v18 }
 0x438   :  { %18146 = vst [vmem:[#allocation138_spill] sm:$0xff] %v14121_v50  ;;  %v4751_v41 = vsel %vm4737_vm14, %v4748_v20, %v4750_v40  ;;  %v14126_v35 = vmul.u32.u64.low %v4752_v37, %v4747_v33  ;;  %v14127_v1 = vmul.u32.u64.high %v4752_v37, %v4747_v33, %v14126_v35  ;;  %vm8194_vm7 = vcmp.lt.s32.totalorder %v8193_v24, 0 }
 0x439   :  { %v14131_v15 = vmul.u32.u64.low %v4752_v37, %v4751_v41  ;;  %v14132_v58 = vmul.u32.u64.high %v4752_v37, %v4751_v41, %v14131_v15  ;;  %v4448_v26 = vadd.s32 %v13833_v44, %v13845_v56  ;;  %v4464_v54 = vsub.s32 32, %v14094_v27 }
 0x43a   :  { %vm4819_vm3 = vcmp.gt.s32.totalorder %v4818_v22, 0  ;;  %v4468_v61 = vsub.s32 4294967266, %v14094_v27  ;;  %v4743_v34 = vsel %vm4737_vm14, %v4740_v53, %v4742_v46  ;;  %v4815_v63 = vand.u32 8388607, %v17694_v38 }
 0x43b   :  { %v4820_v29 = vsel %vm4819_vm3, %v4818_v22, 0  ;;  %v14144_v7 = vsel %vm8194_vm7, 0, %v8193_v24  ;;  %v4663_v20 = vshll.u32 %v14121_v50, 30  ;;  %v4762_v31 = vadd.s32 1, %v14127_v1 }
 0x43c   :  { %v4822_v57 = vand.u32 31, %v4820_v29  ;;  %v14151_v44 = vsel %vm4290_vm2, %v4372_v13, %v14092_v18  ;;  %v4552_v24 = vadd.s32 %v13926_v25, %v13937_v52  ;;  %v14160_v22 = vshrl.u32 %v4448_v26, %v4464_v54 }
 0x43d   :  { %v4759_v53 = vmul.u32 %v4752_v37, %v4743_v34  ;;  %vm4761_vm7 = vc.u32 %v14132_v58, %v14126_v35  ;;  %v14164_v40 = vadd.s32 127, %v4468_v61  ;;  %v4572_v13 = vsub.s32 4294967266, %v14144_v7 }
 0x43e   :  { %v4823_v33 = vsub.s32 32, %v4822_v57  ;;  %v4763_v18 = vsel %vm4761_vm7, %v4762_v31, %v14127_v1  ;;  %v4816_v46 = vor.u32 8388608, %v4815_v63  ;;  %v14169_v41 = vsub.s32 %v14096_v11, %v4663_v20 }
 0x43f   :  { %v4764_v15 = vadd.s32 %v4763_v18, %v4759_v53  ;;  %v4825_v37 = vshll.u32 %v17841_v8, %v4822_v57  ;;  %v4828_v26 = vshll.u32 %v17830_v59, %v4822_v57  ;;  %v4831_v54 = vshll.u32 %v17871_v39, %v4822_v57 }
 0x440   :  { %v4826_v25 = vshrl.u32 %v17830_v59, %v4823_v33  ;;  %v4829_v52 = vshrl.u32 %v17871_v39, %v4823_v33  ;;  %v4832_v61 = vshrl.u32 %v17870_v42, %v4823_v33  ;;  %v4821_v38 = vshrl.u32 %v4820_v29, 5 }
 0x441   :  { %v4765_v34 = vadd.s32 536870912, %v4764_v15  ;;  %v4834_v1 = vshll.u32 %v17870_v42, %v4822_v57  ;;  %v4835_v11 = vshrl.u32 %v17837_v36, %v4823_v33  ;;  %v14181_v53 = vadd.f32 %v13516_v43, %v17936_v19 }
 0x442   :  { %v4827_v63 = vor.u32 %v4826_v25, %v4825_v37  ;;  %v4830_v20 = vor.u32 %v4829_v52, %v4828_v26  ;;  %v4833_v31 = vor.u32 %v4832_v61, %v4831_v54  ;;  %v4837_v56 = vshll.u32 %v17837_v36, %v4822_v57 }
 0x443   :  { %18147 = vst [vmem:[#allocation139_spill] sm:$0xff] %v14181_v53  ;;  %v14183_v18 = vshrl.u32 %v4765_v34, 30  ;;  %v4836_v4 = vor.u32 %v4835_v11, %v4834_v1  ;;  %v4838_v32 = vshrl.u32 %v17838_v9, %v4823_v33  ;;  %v4470_v29 = vshll.u32 %v14164_v40, 23 }
 0x444   :  { %v4573_v50 = vadd.s32 127, %v4572_v13  ;;  %v4666_v49 = vsub.s32 0, %v14169_v41  ;;  %v14189_v21 = vshll.u32 %v4816_v46, 8  ;;  %vm4840_vm2 = vcmp.lt.s32.totalorder %v4821_v38, 1 }
 0x445   :  { %v4767_v25 = vshll.u32 %v14183_v18, 30  ;;  %v4839_v52 = vor.u32 %v4838_v32, %v4837_v56  ;;  %vm4843_vm11 = vcmp.lt.s32.totalorder %v4821_v38, 4  ;;  %v4568_v43 = vsub.s32 32, %v14144_v7 }
 0x446   :  { %vm4842_vm5 = vcmp.lt.s32.totalorder %v4821_v38, 3  ;;  %v4848_v37 = vsel %vm4840_vm2, %v4827_v63, %v4830_v20  ;;  %v4849_v57 = vsel %vm4843_vm11, %v4836_v4, 920167782  ;;  %vm4841_vm14 = vcmp.lt.s32.totalorder %v4821_v38, 2 }
 0x447   :  { %v14195_v26 = vsub.s32 %v4764_v15, %v4767_v25  ;;  %v4850_v40 = vsel %vm4842_vm5, %v4833_v31, %v4849_v57  ;;  %v4915_v13 = vand.u32 2139095040, %v14181_v53  ;;  %v4574_v46 = vshll.u32 %v4573_v50, 23 }
 0x448   :  { %v4824_v54 = vshrl.u32 %v17841_v8, %v4823_v33  ;;  %v4845_v56 = vsel %vm4843_vm11, %v4833_v31, 2102212464  ;;  %v4851_v32 = vsel %vm4841_vm14, %v4848_v37, %v4850_v40  ;;  %v8196_v61 = vmin.u32 %v4666_v49, %v14169_v41 }
 0x449   :  { %v4770_v34 = vsub.s32 0, %v14195_v26  ;;  %v4852_v1 = vsel %vm4840_vm2, %v4830_v20, %v4833_v31  ;;  %v4853_v15 = vsel %vm4843_vm11, %v4839_v52, 1326507024  ;;  %v4846_v37 = vsel %vm4842_vm5, %v4830_v20, %v4845_v56  ;;  %v8721_v31 = vld [vmem:[%s17449_s3 + $0x40] ss:$0 sps:$4 sm:$0x33]  }
 0x44a   :  { %v4844_v11 = vsel %vm4840_vm2, %v4824_v54, %v4827_v63  ;;  %v4854_v25 = vsel %vm4842_vm5, %v4836_v4, %v4853_v15  ;;  %v14209_v50 = vmul.u32.u64.low %v14189_v21, %v4851_v32  ;;  %v14210_v57 = vmul.u32.u64.high %v14189_v21, %v4851_v32, %v14209_v50 }
 0x44b   :  { %v8200_v33 = vmin.u32 %v4770_v34, %v14195_v26  ;;  %v4855_v49 = vsel %vm4841_vm14, %v4852_v1, %v4854_v25  ;;  %v4916_v40 = vshrl.u32 %v4915_v13, 23  ;;  %vm17709_vm3 = vcmp.lt.s32.totalorder %v13440_v3, 0 }
 0x44c   :  { %v4570_v63 = vshrl.u32 %v4552_v24, %v4568_v43  ;;  %v14221_v4 = vmul.u32.u64.low %v14189_v21, %v4855_v49  ;;  %v14222_v52 = vmul.u32.u64.high %v14189_v21, %v4855_v49, %v14221_v4  ;;  %v14226_v54 = vadd.f32 %v13654_v23, %v17873_v5 }
 0x44d   :  { %v4569_v20 = vshll.u32 %v14030_v14, %v14144_v7  ;;  %v4575_v56 = vor.u32 4788187, %v4574_v46  ;;  %v4772_v13 = vclz %v8200_v33  ;;  %v8207_v32 = vadd.s32 4294967169, %v4916_v40 }
 0x44e   :  { %18148 = vst [vmem:[#allocation140_spill] sm:$0xff] %v14226_v54  ;;  %v4668_v34 = vclz %v8196_v61  ;;  %v4847_v1 = vsel %vm4841_vm14, %v4844_v11, %v4846_v37  ;;  %v4866_v15 = vadd.s32 1, %v14210_v57  ;;  %vm7316_vm7 = vcmask 1041408  }
 0x44f   :  { %v4376_v24 = vsel %vm14112_vm1, %v13586_v62, %v14151_v44  ;;  %v17699_v23 = vand.u32 2147483647, %v14181_v53  ;;  %v4922_v43 = vadd.s32 1, %v8207_v32  ;;  %v7318_v25 = vsel %vm7316_vm7, %v8721_v31, 0 }
 0x450   :  { %v18149_v14 = vshll.u32 %v13967_v0, %v14094_v27  ;;  %v4571_v38 = vor.u32 %v4570_v63, %v4569_v20  ;;  %v8201_v46 = vadd.s32 4294967294, %v4772_v13  ;;  %vm4865_vm2 = vc.u32 %v14222_v52, %v14209_v50  ;;  %7337 = vmatpush1.bf16.msra.mxu1 %v7318_v25 }
 0x451   :  { %v14245_v61 = vor.u32 4788187, %v4470_v29  ;;  %v4863_v44 = vmul.u32 %v14189_v21, %v4847_v1  ;;  %v4867_v11 = vsel %vm4865_vm2, %v4866_v15, %v14210_v57  ;;  %vm4923_vm11 = vcmp.gt.s32.totalorder %v4922_v43, 0 }
 0x452   :  { %v14241_v7 = vor.u32 %v14160_v22, %v18149_v14  ;;  %v4576_v33 = vand.u32 2147483647, %v4575_v56  ;;  %v8197_v37 = vadd.s32 4294967294, %v4668_v34  ;;  %v4924_v49 = vsel %vm4923_vm11, %v4922_v43, 0 }
 0x453   :  { %v5019_v0 = vand.u32 2139095040, %v14226_v54  ;;  %8792 = vsinq.f32 %v14058_v10  ;;  %v18150_v27 = vsel %vm14112_vm1, 0, %v14090_v45  ;;  %v14257_v29 = vadd.s32 %v4867_v11, %v4863_v44 }
 0x454   :  { %v14255_v22 = vadd.s32 3, %v18150_v27  ;;  %v4919_v21 = vand.u32 8388607, %v17699_v23  ;;  %8794 = vcosq.f32 %v4376_v24  ;;  %v4578_v57 = vcvt.s32.f32 %v4571_v38  ;;  %v18156_v23 = vld [vmem:[#allocation126_spill] sm:$0xff] }
 0x455   :  { %vm8202_vm5 = vcmp.lt.s32.totalorder %v8201_v46, 0  ;;  %v4926_v40 = vand.u32 31, %v4924_v49  ;;  %v18152_v31 = vxor.u32 2147483648, %v14085_v6  ;;  %8796 = vsinq.f32 %v4376_v24 }
 0x456   :  { %18151 = vst [vmem:[#allocation141_spill] sm:$0xff] %v14255_v22  ;;  %v4472_v45 = vand.u32 2147483647, %v14245_v61  ;;  %v4474_v30 = vcvt.s32.f32 %v14241_v7  ;;  %v14270_v63 = vmul.f32 %v4578_v57, %v4576_v33  ;;  %vm8198_vm1 = vcmp.lt.s32.totalorder %v8197_v37, 0 }
 0x457   :  { %v14266_v10 = vsel %vm17709_vm3, %v18152_v31, %v14085_v6  ;;  %v4927_v4 = vsub.s32 32, %v4926_v40  ;;  %v5020_v20 = vshrl.u32 %v5019_v0, 23  ;;  %v14272_v56 = vsel %vm8202_vm5, 0, %v8201_v46 }
 0x458   :  { %18153 = vst [vmem:[#allocation142_spill] sm:$0xff] %v14266_v10  ;;  %v4869_v13 = vadd.s32 536870912, %v14257_v29  ;;  %v4920_v32 = vor.u32 8388608, %v4919_v21  ;;  %v4925_v34 = vshrl.u32 %v4924_v49, 5  ;;  %v4929_v1 = vshll.u32 %v17841_v8, %v4926_v40 }
 0x459   :  { %v4930_v6 = vshrl.u32 %v17830_v59, %v4927_v4  ;;  %v4932_v15 = vshll.u32 %v17830_v59, %v4926_v40  ;;  %v4933_v24 = vshrl.u32 %v17871_v39, %v4927_v4  ;;  %v4935_v43 = vshll.u32 %v17871_v39, %v4926_v40 }
 0x45a   :  { %v4936_v25 = vshrl.u32 %v17870_v42, %v4927_v4  ;;  %v4938_v14 = vshll.u32 %v17870_v42, %v4926_v40  ;;  %v4939_v7 = vshrl.u32 %v17837_v36, %v4927_v4  ;;  %v14283_v38 = vsel %vm8198_vm1, 0, %v8197_v37 }
 0x45b   :  { %v4931_v46 = vor.u32 %v4930_v6, %v4929_v1  ;;  %v4934_v61 = vor.u32 %v4933_v24, %v4932_v15  ;;  %v8211_v44 = vadd.s32 4294967169, %v5020_v20  ;;  %v4941_v49 = vshll.u32 %v17837_v36, %v4926_v40 }
 0x45c   :  { %v4937_v11 = vor.u32 %v4936_v25, %v4935_v43  ;;  %v4940_v33 = vor.u32 %v4939_v7, %v4938_v14  ;;  %v4942_v0 = vshrl.u32 %v17838_v9, %v4927_v4  ;;  %v4780_v27 = vsub.s32 4294967266, %v14272_v56 }
 0x45d   :  { %v14288_v21 = vshrl.u32 %v4869_v13, 30  ;;  %vm4944_vm14 = vcmp.lt.s32.totalorder %v4925_v34, 1  ;;  %v4960_v57 = vshll.u32 %v4920_v32, 8  ;;  %v14290_v31 = vpop.eup %8792  ;;  %vm4498_vm7 = vcmp.lt.s32.totalorder %v18156_v23, 0 }
 0x45e   :  { %18155 = vst [vmem:[#allocation144_spill] sm:$0xff] %v14290_v31  ;;  %v4928_v37 = vshrl.u32 %v17841_v8, %v4927_v4  ;;  %v4943_v1 = vor.u32 %v4942_v0, %v4941_v49  ;;  %vm4947_vm2 = vcmp.lt.s32.totalorder %v4925_v34, 4  ;;  %v4952_v20 = vsel %vm4944_vm14, %v4931_v46, %v4934_v61  ;;  %v14295_v6 = vpop.eup %8794 }
 0x45f   :  { %18154 = vst [vmem:[#allocation143_spill] sm:$0xff] %v14288_v21  ;;  %18157 = vst [vmem:[#allocation145_spill] sm:$0xff] %v14295_v6  ;;  %vm4946_vm11 = vcmp.lt.s32.totalorder %v4925_v34, 3  ;;  %v4949_v40 = vsel %vm4947_vm2, %v4937_v11, 2102212464  ;;  %v4956_v13 = vsel %vm4944_vm14, %v4934_v61, %v4937_v11  ;;  %v14298_v24 = vpop.eup %8796  ;;  %vm4945_vm5 = vcmp.lt.s32.totalorder %v4925_v34, 2 }
 0x460   :  { %v4953_v15 = vsel %vm4947_vm2, %v4940_v33, 920167782  ;;  %18158 = vst [vmem:[#allocation146_spill] sm:$0xff] %v14298_v24  ;;  %v4957_v43 = vsel %vm4947_vm2, %v4943_v1, 1326507024  ;;  %v5026_v25 = vadd.s32 1, %v8211_v44  ;;  %v4948_v4 = vsel %vm4944_vm14, %v4928_v37, %v4931_v46 }
 0x461   :  { %v4954_v32 = vsel %vm4946_vm11, %v4937_v11, %v4953_v15  ;;  %v4871_v14 = vshll.u32 %v14288_v21, 30  ;;  %v4958_v49 = vsel %vm4946_vm11, %v4940_v33, %v4957_v43  ;;  %v4950_v0 = vsel %vm4946_vm11, %v4934_v61, %v4949_v40  ;;  %v14317_v61 = vpop.f32.mrb[47].mxu0 }
 0x462   :  { %v4955_v7 = vsel %vm4945_vm5, %v4952_v20, %v4954_v32  ;;  %v4959_v10 = vsel %vm4945_vm5, %v4956_v13, %v4958_v49  ;;  %v4580_v6 = vxor.u32 2147483648, %v14270_v63  ;;  %v14313_v15 = vmul.f32 %v4474_v30, %v4472_v45 }
 0x463   :  { %v14304_v3 = vmul.u32.u64.low %v4960_v57, %v4955_v7  ;;  %v14305_v62 = vmul.u32.u64.high %v4960_v57, %v4955_v7, %v14304_v3  ;;  %v14310_v1 = vmul.u32.u64.low %v4960_v57, %v4959_v10  ;;  %v14311_v44 = vmul.u32.u64.high %v4960_v57, %v4959_v10, %v14310_v1 }
 0x464   :  { %v4676_v46 = vsub.s32 4294967266, %v14283_v38  ;;  %v17705_v33 = vand.u32 2147483647, %v14226_v54  ;;  %vm5027_vm1 = vcmp.gt.s32.totalorder %v5026_v25, 0  ;;  %v4776_v37 = vsub.s32 32, %v14272_v56 }
 0x465   :  { %v14321_v20 = vsub.s32 %v14257_v29, %v4871_v14  ;;  %v4951_v40 = vsel %vm4945_vm5, %v4948_v4, %v4950_v0  ;;  %v5028_v13 = vsel %vm5027_vm1, %v5026_v25, 0  ;;  %v4656_v10 = vadd.s32 %v14025_v17, %v14038_v48 }
 0x466   :  { %v4781_v45 = vadd.s32 127, %v4780_v27  ;;  %v4970_v30 = vadd.s32 1, %v14305_v62  ;;  %v5030_v32 = vand.u32 31, %v5028_v13  ;;  %v14330_v43 = vsel %vm4498_vm7, %v4580_v6, %v14270_v63 }
 0x467   :  { %v4672_v7 = vsub.s32 32, %v14283_v38  ;;  %v4760_v34 = vadd.s32 %v14126_v35, %v14132_v58  ;;  %v14337_v25 = vadd.s32 127, %v4676_v46  ;;  %v4967_v17 = vmul.u32 %v4960_v57, %v4951_v40 }
 0x468   :  { %vm4969_vm14 = vc.u32 %v14311_v44, %v14304_v3  ;;  %v5031_v48 = vsub.s32 32, %v5030_v32  ;;  %v4874_v14 = vsub.s32 0, %v14321_v20  ;;  %v5023_v6 = vand.u32 8388607, %v17705_v33 }
 0x469   :  { %v4778_v27 = vshrl.u32 %v4760_v34, %v4776_v37  ;;  %v4971_v63 = vsel %vm4969_vm14, %v4970_v30, %v14305_v62  ;;  %v4782_v4 = vshll.u32 %v4781_v45, 23  ;;  %v5033_v58 = vshll.u32 %v17841_v8, %v5030_v32 }
 0x46a   :  { %v4972_v49 = vadd.s32 %v4971_v63, %v4967_v17  ;;  %v5034_v0 = vshrl.u32 %v17830_v59, %v5031_v48  ;;  %v5037_v35 = vshrl.u32 %v17871_v39, %v5031_v48  ;;  %v5036_v57 = vshll.u32 %v17830_v59, %v5030_v32 }
 0x46b   :  { %v5039_v1 = vshll.u32 %v17871_v39, %v5030_v32  ;;  %v5040_v46 = vshrl.u32 %v17870_v42, %v5031_v48  ;;  %v14351_v40 = vshrl.u32 %v5028_v13, 5  ;;  %v5042_v62 = vshll.u32 %v17870_v42, %v5030_v32 }
 0x46c   :  { %v4973_v37 = vadd.s32 536870912, %v4972_v49  ;;  %v5043_v45 = vshrl.u32 %v17837_v36, %v5031_v48  ;;  %v8204_v30 = vmin.u32 %v4874_v14, %v14321_v20  ;;  %v5035_v34 = vor.u32 %v5034_v0, %v5033_v58 }
 0x46d   :  { %v5038_v17 = vor.u32 %v5037_v35, %v5036_v57  ;;  %v5041_v63 = vor.u32 %v5040_v46, %v5039_v1  ;;  %v5045_v11 = vshll.u32 %v17837_v36, %v5030_v32  ;;  %v5046_v21 = vshrl.u32 %v17838_v9, %v5031_v48  ;;  %v18162_v35 = vld [vmem:[#allocation124_spill] sm:$0xff] }
 0x46e   :  { %v14356_v33 = vshrl.u32 %v4973_v37, 30  ;;  %v5044_v29 = vor.u32 %v5043_v45, %v5042_v62  ;;  %v18159_v24 = vand.u32 2147483647, %v18156_v23  ;;  %v4777_v22 = vshll.u32 %v14195_v26, %v14272_v56 }
 0x46f   :  { %v4783_v14 = vor.u32 4788187, %v4782_v4  ;;  %v5024_v0 = vor.u32 8388608, %v5023_v6  ;;  %v14370_v58 = vadd.f32 %v18162_v35, %v17936_v19  ;;  %v5047_v32 = vor.u32 %v5046_v21, %v5045_v11 }
 0x470   :  { %vm14362_vm2 = vcmp.le.f32.partialorder %v18159_v24, 0.7853982  ;;  %v4975_v57 = vshll.u32 %v14356_v33, 30  ;;  %vm5048_vm11 = vcmp.lt.s32.totalorder %v14351_v40, 1  ;;  %vm5051_vm5 = vcmp.lt.s32.totalorder %v14351_v40, 4 }
 0x471   :  { %18163 = vst [vmem:[#allocation124_spill] sm:$0xff] %v14370_v58  ;;  %v4779_v24 = vor.u32 %v4778_v27, %v4777_v22  ;;  %vm5050_vm1 = vcmp.lt.s32.totalorder %v14351_v40, 3  ;;  %v5056_v1 = vsel %vm5048_vm11, %v5035_v34, %v5038_v17  ;;  %v5057_v26 = vsel %vm5051_vm5, %v5044_v29, 920167782 }
 0x472   :  { %v4876_v56 = vclz %v8204_v30  ;;  %v14380_v6 = vsub.s32 %v4972_v49, %v4975_v57  ;;  %vm5049_vm14 = vcmp.lt.s32.totalorder %v14351_v40, 2  ;;  %v5058_v21 = vsel %vm5050_vm1, %v5041_v63, %v5057_v26 }
 0x473   :  { %v4674_v11 = vshrl.u32 %v4656_v10, %v4672_v7  ;;  %v5059_v22 = vsel %vm5049_vm14, %v5056_v1, %v5058_v21  ;;  %v5064_v27 = vshll.u32 %v5024_v0, 8  ;;  %v5123_v4 = vand.u32 2139095040, %v14370_v58 }
 0x474   :  { %v4678_v46 = vshll.u32 %v14337_v25, 23  ;;  %v4784_v37 = vand.u32 2147483647, %v4783_v14  ;;  %v5060_v62 = vsel %vm5048_vm11, %v5038_v17, %v5041_v63  ;;  %v5061_v49 = vsel %vm5051_vm5, %v5047_v32, 1326507024 }
 0x475   :  { %v4786_v45 = vcvt.s32.f32 %v4779_v24  ;;  %v5062_v30 = vsel %vm5050_vm1, %v5044_v29, %v5061_v49  ;;  %v14395_v10 = vmul.u32.u64.low %v5064_v27, %v5059_v22  ;;  %v14396_v7 = vmul.u32.u64.high %v5064_v27, %v5059_v22, %v14395_v10 }
 0x476   :  { %v8205_v0 = vadd.s32 4294967294, %v4876_v56  ;;  %v4978_v35 = vsub.s32 0, %v14380_v6  ;;  %v5053_v25 = vsel %vm5051_vm5, %v5041_v63, 2102212464  ;;  %v5063_v14 = vsel %vm5049_vm14, %v5060_v62, %v5062_v30 }
 0x477   :  { %vm4706_vm3 = vcmp.lt.s32.totalorder %v13974_v16, 0  ;;  %v5032_v57 = vshrl.u32 %v17841_v8, %v5031_v48  ;;  %v14406_v32 = vmul.u32.u64.low %v5064_v27, %v5063_v14  ;;  %v14407_v24 = vmul.u32.u64.high %v5064_v27, %v5063_v14, %v14406_v32 }
 0x478   :  { %v5124_v29 = vshrl.u32 %v5123_v4, 23  ;;  %v18164_v1 = vsub.s32 4, %v13994_v60  ;;  %v4584_v63 = vsel %vm14362_vm2, %v18156_v23, %v14330_v43  ;;  %v4679_v56 = vor.u32 4788187, %v4678_v46  ;;  %v14428_v46 = vpop.f32.mrb[48].mxu0 }
 0x479   :  { %v4787_v21 = vmul.f32 %v4786_v45, %v4784_v37  ;;  %v18165_v48 = vshll.u32 %v14169_v41, %v14283_v38  ;;  %v5052_v4 = vsel %vm5048_vm11, %v5032_v57, %v5035_v34  ;;  %v5054_v62 = vsel %vm5050_vm1, %v5038_v17, %v5053_v25  ;;  %v14435_v34 = vpop.f32.mrb[49].mxu0 }
 0x47a   :  { %v4583_v26 = vsel %vm4498_vm7, %v18164_v1, %v13994_v60  ;;  %v8215_v49 = vadd.s32 4294967169, %v5124_v29  ;;  %vm8206_vm5 = vcmp.lt.s32.totalorder %v8205_v0, 0  ;;  %v8208_v60 = vmin.u32 %v4978_v35, %v14380_v6 }
 0x47b   :  { %v4675_v22 = vor.u32 %v4674_v11, %v18165_v48  ;;  %v5074_v30 = vadd.s32 1, %v14396_v7  ;;  %v17710_v43 = vand.u32 2147483647, %v14370_v58  ;;  %v4585_v41 = vsel %vm14362_vm2, 0, %v4583_v26 }
 0x47c   :  { %vm5073_vm7 = vc.u32 %v14407_v24, %v14395_v10  ;;  %v5130_v38 = vadd.s32 1, %v8215_v49  ;;  %v4680_v17 = vand.u32 2147483647, %v4679_v56  ;;  %v4788_v11 = vxor.u32 2147483648, %v4787_v21 }
 0x47d   :  { %v4790_v45 = vsub.s32 4, %v14183_v18  ;;  %v5055_v35 = vsel %vm5049_vm14, %v5052_v4, %v5054_v62  ;;  %8798 = vcosq.f32 %v4584_v63  ;;  %v4682_v25 = vcvt.s32.f32 %v4675_v22  ;;  %v18167_v4 = vld [vmem:[#allocation8_spill] sm:$0xff] }
 0x47e   :  { %v14441_v14 = vsel %vm8206_vm5, 0, %v8205_v0  ;;  %vm5131_vm11 = vcmp.gt.s32.totalorder %v5130_v38, 0  ;;  %v4980_v13 = vclz %v8208_v60  ;;  %v5075_v57 = vsel %vm5073_vm7, %v5074_v30, %v14396_v7 }
 0x47f   :  { %v5127_v32 = vand.u32 8388607, %v17710_v43  ;;  %v5132_v29 = vsel %vm5131_vm11, %v5130_v38, 0  ;;  %8800 = vsinq.f32 %v4584_v63  ;;  %v14446_v1 = vadd.s32 3, %v4585_v41 }
 0x480   :  { %v5071_v26 = vmul.u32 %v5064_v27, %v5055_v35  ;;  %v5134_v56 = vand.u32 31, %v5132_v29  ;;  %v14448_v40 = vmul.f32 %v4682_v25, %v4680_v17  ;;  %v14452_v48 = vsel %vm4706_vm3, %v4788_v11, %v4787_v21 }
 0x481   :  { %18166 = vst [vmem:[#allocation147_spill] sm:$0xff] %v14446_v1  ;;  %v14457_v0 = vsel %vm4706_vm3, %v4790_v45, %v14183_v18  ;;  %v14461_v7 = vadd.s32 %v14209_v50, %v14222_v52  ;;  %v4880_v63 = vsub.s32 32, %v14441_v14  ;;  %v18168_v62 = vand.u32 2147483647, %v18167_v4  ;;  %v18171_v18 = vld [vmem:[#allocation36_spill] sm:$0xff] }
 0x482   :  { %v14464_v22 = vadd.s32 %v5075_v57, %v5071_v26  ;;  %v5135_v27 = vsub.s32 32, %v5134_v56  ;;  %v8209_v21 = vadd.s32 4294967294, %v4980_v13  ;;  %v5128_v60 = vor.u32 8388608, %v5127_v32 }
 0x483   :  { %vm14468_vm2 = vcmp.le.f32.partialorder %v18168_v62, 0.7853982  ;;  %v5133_v30 = vshrl.u32 %v5132_v29, 5  ;;  %v5137_v52 = vshll.u32 %v17841_v8, %v5134_v56  ;;  %v5140_v38 = vshll.u32 %v17830_v59, %v5134_v56 }
 0x484   :  { %v632_v50 = vsel %vm14468_vm2, %v18167_v4, %v18171_v18  ;;  %v5138_v41 = vshrl.u32 %v17830_v59, %v5135_v27  ;;  %v5141_v17 = vshrl.u32 %v17871_v39, %v5135_v27  ;;  %v5143_v11 = vshll.u32 %v17871_v39, %v5134_v56 }
 0x485   :  { %v5144_v45 = vshrl.u32 %v17870_v42, %v5135_v27  ;;  %v5146_v35 = vshll.u32 %v17870_v42, %v5134_v56  ;;  %v5147_v25 = vshrl.u32 %v17837_v36, %v5135_v27  ;;  %v4884_v13 = vsub.s32 4294967266, %v14441_v14 }
 0x486   :  { %v5077_v57 = vadd.s32 536870912, %v14464_v22  ;;  %v5139_v32 = vor.u32 %v5138_v41, %v5137_v52  ;;  %v5142_v29 = vor.u32 %v5141_v17, %v5140_v38  ;;  %v18172_v26 = vand.u32 2147483647, %v13974_v16 }
 0x487   :  { %v5145_v18 = vor.u32 %v5144_v45, %v5143_v11  ;;  %v5148_v43 = vor.u32 %v5147_v25, %v5146_v35  ;;  %v5149_v37 = vshll.u32 %v17837_v36, %v5134_v56  ;;  %v5150_v23 = vshrl.u32 %v17838_v9, %v5135_v27  ;;  %v14494_v1 = vpop.eup %8798 }
 0x488   :  { %vm14488_vm3 = vcmp.le.f32.partialorder %v18172_v26, 0.7853982  ;;  %18175 = vst [vmem:[#allocation8_spill] sm:$0xff] %v14494_v1  ;;  %vm8210_vm1 = vcmp.lt.s32.totalorder %v8209_v21, 0  ;;  %v5168_v28 = vshll.u32 %v5128_v60, 8  ;;  %v630_v31 = vsub.s32 4, %v18176_v2 }
 0x489   :  { %8802 = vcosq.f32 %v632_v50  ;;  %v5136_v52 = vshrl.u32 %v17841_v8, %v5135_v27  ;;  %v5151_v41 = vor.u32 %v5150_v23, %v5149_v37  ;;  %vm5152_vm14 = vcmp.lt.s32.totalorder %v5133_v30, 1  ;;  %v14498_v38 = vpop.eup %8800  ;;  %v18179_v60 = vld [vmem:[#allocation121_spill] sm:$0xff]  ;;  %v18180_v23 = vld [vmem:[#allocation110_spill] sm:$0xff] }
 0x48a   :  { %vm5155_vm5 = vcmp.lt.s32.totalorder %v5133_v30, 4  ;;  %18177 = vst [vmem:[#allocation36_spill] sm:$0xff] %v14498_v38  ;;  %vm5154_vm7 = vcmp.lt.s32.totalorder %v5133_v30, 3  ;;  %v5160_v11 = vsel %vm5152_vm14, %v5139_v32, %v5142_v29  ;;  %v14500_v45 = vshrl.u32 %v5077_v57, 30 }
 0x48b   :  { %v5157_v17 = vsel %vm5155_vm5, %v5145_v18, 2102212464  ;;  %v5161_v56 = vsel %vm5155_vm5, %v5148_v43, 920167782  ;;  %vm5153_vm11 = vcmp.lt.s32.totalorder %v5133_v30, 2  ;;  %v5164_v25 = vsel %vm5152_vm14, %v5142_v29, %v5145_v18 }
 0x48c   :  { %18178 = vst [vmem:[#allocation13_spill] sm:$0xff] %v14500_v45  ;;  %v5162_v35 = vsel %vm5154_vm7, %v5145_v18, %v5161_v56  ;;  %vm17741_vm10 = vcmp.lt.s32.totalorder %v18179_v60, 0  ;;  %v5156_v26 = vsel %vm5152_vm14, %v5136_v52, %v5139_v32  ;;  %v5165_v27 = vsel %vm5155_vm5, %v5151_v41, 1326507024  ;;  %v18231_v60 = vld [vmem:[#allocation41_spill] sm:$0xff] }
 0x48d   :  { %v5163_v1 = vsel %vm5153_vm11, %v5160_v11, %v5162_v35  ;;  %8804 = vsinq.f32 %v632_v50  ;;  %vm17738_vm15 = vcmp.lt.s32.totalorder %v18180_v23, 0  ;;  %v5158_v37 = vsel %vm5154_vm7, %v5142_v29, %v5157_v17  ;;  %v18182_v11 = vld [vmem:[#allocation10_spill] sm:$0xff] }
 0x48e   :  { %v5166_v38 = vsel %vm5154_vm7, %v5148_v43, %v5165_v27  ;;  %v14505_v12 = vmul.u32.u64.low %v5168_v28, %v5163_v1  ;;  %v14506_v51 = vmul.u32.u64.high %v5168_v28, %v5163_v1, %v14505_v12  ;;  %v4885_v57 = vadd.s32 127, %v4884_v13  ;;  %v18181_v43 = vld [vmem:[#allocation18_spill] sm:$0xff] }
 0x48f   :  { %v14510_v54 = vsel %vm8210_vm1, 0, %v8209_v21  ;;  %v5167_v18 = vsel %vm5153_vm11, %v5164_v25, %v5166_v38  ;;  %v631_v32 = vsel %vm546_vm4, %v630_v31, %v18176_v2  ;;  %v5079_v50 = vshll.u32 %v14500_v45, 30 }
 0x490   :  { %v14517_v52 = vmul.u32.u64.low %v5168_v28, %v5167_v18  ;;  %v14518_v41 = vmul.u32.u64.high %v5168_v28, %v5167_v18, %v14517_v52  ;;  %v838_v29 = vsub.s32 4, %v18181_v43  ;;  %v4684_v1 = vxor.u32 2147483648, %v14448_v40 }
 0x491   :  { %v4793_v21 = vsel %vm14488_vm3, 0, %v14457_v0  ;;  %v4882_v13 = vshrl.u32 %v14461_v7, %v4880_v63  ;;  %v5159_v38 = vsel %vm5153_vm11, %v5156_v26, %v5158_v37  ;;  %v14531_v2 = vsel %vm14488_vm3, %v13974_v16, %v14452_v48  ;;  %v18186_v48 = vld [vmem:[#allocation39_spill] sm:$0xff] }
 0x492   :  { %v5178_v31 = vadd.s32 1, %v14506_v51  ;;  %v633_v17 = vsel %vm14468_vm2, 0, %v631_v32  ;;  %v18183_v56 = vand.u32 2147483647, %v18182_v11  ;;  %v4881_v7 = vshll.u32 %v14321_v20, %v14441_v14 }
 0x493   :  { %v8803_v0 = vpop.eup %8802  ;;  %v4886_v63 = vshll.u32 %v4885_v57, 23  ;;  %v4988_v30 = vsub.s32 4294967266, %v14510_v54  ;;  %v14550_v49 = vsub.s32 %v14464_v22, %v5079_v50  ;;  %v5175_v25 = vmul.u32 %v5168_v28, %v5159_v38  ;;  %v18191_v38 = vld [vmem:[#allocation7_spill] sm:$0xff] }
 0x494   :  { %vm14538_vm4 = vcmp.le.f32.partialorder %v18183_v56, 0.7853982  ;;  %vm5177_vm2 = vc.u32 %v14518_v41, %v14505_v12  ;;  %v839_v26 = vsel %vm754_vm8, %v838_v29, %v18181_v43  ;;  %8806 = vcosq.f32 %v14531_v2 }
 0x495   :  { %v840_v62 = vsel %vm14538_vm4, %v18182_v11, %v18186_v48  ;;  %v14558_v20 = vor.u32 %v4882_v13, %v4881_v7  ;;  %v5179_v14 = vsel %vm5177_vm2, %v5178_v31, %v14506_v51  ;;  %v637_v27 = vadd.s32 3, %v633_v17  ;;  %v18195_v31 = vld [vmem:[#allocation11_spill] sm:$0xff] }
 0x496   :  { %v18187_v37 = vxor.u32 2147483648, %v14313_v15  ;;  %v14568_v22 = vadd.s32 3, %v4793_v21  ;;  %v14570_v57 = vadd.s32 %v5179_v14, %v5175_v25  ;;  %8808 = vcosq.f32 %v840_v62 }
 0x497   :  { %v8805_v18 = vpop.eup %8804  ;;  %v14575_v32 = vsel %vm17738_vm15, %v4684_v1, %v14448_v40  ;;  %v14577_v51 = vor.u32 4788187, %v4886_v63  ;;  %v841_v50 = vsel %vm14538_vm4, 0, %v839_v26  ;;  %8810 = vsinq.f32 %v840_v62 }
 0x498   :  { %v14566_v28 = vsel %vm17741_vm10, %v18187_v37, %v14313_v15  ;;  %18189 = vst [vmem:[#allocation10_spill] sm:$0xff] %v14568_v22  ;;  %18190 = vst [vmem:[#allocation39_spill] sm:$0xff] %v14575_v32  ;;  %v4968_v15 = vadd.s32 %v14304_v3, %v14311_v44  ;;  %v4984_v52 = vsub.s32 32, %v14510_v54  ;;  %v4989_v43 = vadd.s32 127, %v4988_v30  ;;  %v18196_v44 = vld [vmem:[#allocation22_spill] sm:$0xff] }
 0x499   :  { %18188 = vst [vmem:[#allocation18_spill] sm:$0xff] %v14566_v28  ;;  %v5082_v29 = vsub.s32 0, %v14550_v49  ;;  %v638_v13 = vand.u32 3, %v637_v27  ;;  %v18192_v40 = vand.u32 2147483647, %v18191_v38  ;;  %v526_v17 = vsub.s32 4, %v18195_v31 }
 0x49a   :  { %v5181_v56 = vadd.s32 536870912, %v14570_v57  ;;  %v641_v35 = vxor.u32 2147483648, %v8805_v18  ;;  %v845_v3 = vadd.s32 3, %v841_v50  ;;  %v4888_v63 = vand.u32 2147483647, %v14577_v51 }
 0x49b   :  { %vm14588_vm8 = vcmp.le.f32.partialorder %v18192_v40, 0.7853982  ;;  %v644_v30 = vxor.u32 2147483648, %v8803_v0  ;;  %vm18197_vm3 = vcmp.lt.s32.totalorder %v18191_v38, 0  ;;  %v4985_v62 = vshll.u32 %v14380_v6, %v14510_v54 }
 0x49c   :  { %v528_v7 = vsel %vm14588_vm8, %v18191_v38, %v18196_v44  ;;  %v527_v48 = vsel %vm18197_vm3, %v526_v17, %v18195_v31  ;;  %v4986_v25 = vshrl.u32 %v4968_v15, %v4984_v52  ;;  %v4990_v26 = vshll.u32 %v4989_v43, 23  ;;  %v18198_v31 = vld [vmem:[#allocation9_spill] sm:$0xff]  ;;  %v18203_v43 = vld [vmem:[#allocation14_spill] sm:$0xff] }
 0x49d   :  { %8812 = vcosq.f32 %v528_v7  ;;  %v8212_v14 = vmin.u32 %v5082_v29, %v14550_v49  ;;  %vm636_vm1 = vweird.f32 %v18167_v4  ;;  %vm640_vm14 = vcmp.eq.s32.totalorder %v638_v13, 0  ;;  %v18204_v44 = vld [vmem:[#allocation38_spill] sm:$0xff] }
 0x49e   :  { %vm643_vm5 = vcmp.eq.s32.totalorder %v638_v13, 2  ;;  %v529_v27 = vsel %vm14588_vm8, 0, %v527_v48  ;;  %8814 = vsinq.f32 %v528_v7  ;;  %v14608_v37 = vshrl.u32 %v5181_v56, 30  ;;  %v14616_v6 = vpop.eup %8806 }
 0x49f   :  { %v642_v50 = vsel %vm640_vm14, %v8803_v0, %v641_v35  ;;  %v846_v40 = vand.u32 3, %v845_v3  ;;  %v18199_v17 = vand.u32 2147483647, %v18198_v31  ;;  %18202 = vst [vmem:[#allocation7_spill] sm:$0xff] %v14616_v6  ;;  %v645_v15 = vsel %vm643_vm5, %v644_v30, %v8805_v18  ;;  %v14626_v30 = vpop.f32.mrb[50].mxu0  ;;  %v18228_v6 = vld [vmem:[#allocation29_spill] sm:$0xff] }
 0x4a0   :  { %v533_v52 = vadd.s32 3, %v529_v27  ;;  %v734_v29 = vsub.s32 4, %v18203_v43  ;;  %v8809_v56 = vpop.eup %8808  ;;  %v4987_v0 = vor.u32 %v4986_v25, %v4985_v62  ;;  %v4991_v35 = vor.u32 4788187, %v4990_v26 }
 0x4a1   :  { %vm14612_vm7 = vcmp.le.f32.partialorder %v18199_v17, 0.7853982  ;;  %v5084_v3 = vclz %v8212_v14  ;;  %v8811_v7 = vpop.eup %8810  ;;  %vm639_vm11 = vcmp.lt.s32.totalorder %v638_v13, 2  ;;  %v852_v48 = vxor.u32 2147483648, %v8809_v56 }
 0x4a2   :  { %v736_v1 = vsel %vm14612_vm7, %v18198_v31, %v18204_v44  ;;  %vm18205_vm4 = vcmp.lt.s32.totalorder %v18198_v31, 0  ;;  %v5183_v27 = vshll.u32 %v14608_v37, 30  ;;  %v646_v17 = vsel %vm639_vm11, %v642_v50, %v645_v15 }
 0x4a3   :  { %8816 = vcosq.f32 %v736_v1  ;;  %v735_v18 = vsel %vm18205_vm4, %v734_v29, %v18203_v43  ;;  %v849_v21 = vxor.u32 2147483648, %v8811_v7  ;;  %vm851_vm2 = vcmp.eq.s32.totalorder %v846_v40, 2 }
 0x4a4   :  { %8818 = vsinq.f32 %v736_v1  ;;  %vm848_vm8 = vcmp.eq.s32.totalorder %v846_v40, 0  ;;  %v853_v62 = vsel %vm851_vm2, %v852_v48, %v8811_v7  ;;  %v534_v25 = vand.u32 3, %v533_v52 }
 0x4a5   :  { %v737_v26 = vsel %vm14612_vm7, 0, %v735_v18  ;;  %vm847_vm3 = vcmp.lt.s32.totalorder %v846_v40, 2  ;;  %v850_v13 = vsel %vm848_vm8, %v8809_v56, %v849_v21  ;;  %v14633_v43 = vadd.f32 %v14134_v47, %v17873_v5 }
 0x4a6   :  { %v741_v14 = vadd.s32 3, %v737_v26  ;;  %v4992_v44 = vand.u32 2147483647, %v4991_v35  ;;  %v8213_v1 = vadd.s32 4294967294, %v5084_v3  ;;  %vm844_vm14 = vweird.f32 %v18182_v11 }
 0x4a7   :  { %18206 = vst [vmem:[#allocation11_spill] sm:$0xff] %v14633_v43  ;;  %v8813_v29 = vpop.eup %8812  ;;  %v854_v50 = vsel %vm847_vm3, %v850_v13, %v853_v62  ;;  %v647_v15 = vsel %vm636_vm1, nan, %v646_v17  ;;  %vm17813_vm5 = vcmask 31744   ;;  %v14639_v21 = vsub.s32 %v14570_v57, %v5183_v27 }
 0x4a8   :  { %v855_v52 = vsel %vm844_vm14, nan, %v854_v50  ;;  %v540_v54 = vxor.u32 2147483648, %v8813_v29  ;;  %v8815_v7 = vpop.eup %8814  ;;  %vm539_vm7 = vcmp.eq.s32.totalorder %v534_v25, 2  ;;  %v5227_v47 = vand.u32 2139095040, %v14633_v43 }
 0x4a9   :  { %v7161_v40 = vpack.c.bf16 %v855_v52, %v647_v15  ;;  %v4994_v56 = vcvt.s32.f32 %v4987_v0  ;;  %v537_v35 = vxor.u32 2147483648, %v8815_v7  ;;  %v742_v48 = vand.u32 3, %v741_v14 }
 0x4aa   :  { %v541_v3 = vsel %vm539_vm7, %v540_v54, %v8815_v7  ;;  %vm4914_vm11 = vcmp.lt.s32.totalorder %v14181_v53, 0  ;;  %v4998_v4 = vsub.s32 4, %v14356_v33  ;;  %vm8214_vm1 = vcmp.lt.s32.totalorder %v8213_v1, 0 }
 0x4ab   :  { %8301 = vmatprep.mubr.msk.bf16.mxu1 %vm17813_vm5, %v7161_v40  ;;  %vm536_vm4 = vcmp.eq.s32.totalorder %v534_v25, 0  ;;  %v5228_v11 = vshrl.u32 %v5227_v47, 23  ;;  %v14645_v57 = vmul.f32 %v4994_v56, %v4992_v44  ;;  %v18207_v27 = vlaneseq }
 0x4ac   :  { %vm535_vm2 = vcmp.lt.s32.totalorder %v534_v25, 2  ;;  %v538_v0 = vsel %vm536_vm4, %v8813_v29, %v537_v35  ;;  %v5186_v26 = vsub.s32 0, %v14639_v21  ;;  %v14651_v15 = vsel %vm8214_vm1, 0, %v8213_v1 }
 0x4ad   :  { %v8817_v18 = vpop.eup %8816  ;;  %v14648_v17 = vand.u32 127, %v18207_v27  ;;  %v542_v13 = vsel %vm535_vm2, %v538_v0, %v541_v3  ;;  %v8219_v50 = vadd.s32 4294967169, %v5228_v11  ;;  %vm747_vm8 = vcmp.eq.s32.totalorder %v742_v48, 2 }
 0x4ae   :  { %v8819_v62 = vpop.eup %8818  ;;  %v748_v14 = vxor.u32 2147483648, %v8817_v18  ;;  %v17723_v54 = vand.u32 2147483647, %v14633_v43  ;;  %vm532_vm3 = vweird.f32 %v18191_v38  ;;  %vm744_vm14 = vcmp.eq.s32.totalorder %v742_v48, 0 }
 0x4af   :  { %v745_v52 = vxor.u32 2147483648, %v8819_v62  ;;  %v5234_v7 = vadd.s32 1, %v8219_v50  ;;  %vm17814_vm7 = vcmp.ge.s32.totalorder %v14648_v17, 6  ;;  %v543_v25 = vsel %vm532_vm3, nan, %v542_v13 }
 0x4b0   :  { %v749_v44 = vsel %vm747_vm8, %v748_v14, %v8819_v62  ;;  %vm743_vm4 = vcmp.lt.s32.totalorder %v742_v48, 2  ;;  %v8216_v40 = vmin.u32 %v5186_v26, %v14639_v21  ;;  %vm740_vm2 = vweird.f32 %v18198_v31 }
 0x4b1   :  { %v746_v29 = vsel %vm744_vm14, %v8817_v18, %v745_v52  ;;  %vm5235_vm1 = vcmp.gt.s32.totalorder %v5234_v7, 0  ;;  %8820 = vsinq.f32 %v14531_v2  ;;  %v5231_v56 = vand.u32 8388607, %v17723_v54 }
 0x4b2   :  { %v750_v1 = vsel %vm743_vm4, %v746_v29, %v749_v44  ;;  %v5236_v35 = vsel %vm5235_vm1, %v5234_v7, 0  ;;  %v18208_v3 = vcvt.s32.f32 %v14558_v20  ;;  %v7096_v48 = vsel %vm17814_vm7, %v543_v25, %v18191_v38 }
 0x4b3   :  { %v751_v47 = vsel %vm740_vm2, nan, %v750_v1  ;;  %v5238_v2 = vand.u32 31, %v5236_v35  ;;  %v4996_v27 = vxor.u32 2147483648, %v14645_v57  ;;  %v14677_v0 = vsel %vm4914_vm11, %v4998_v4, %v14356_v33 }
 0x4b4   :  { %v14665_v11 = vmul.f32 %v18208_v3, %v4888_v63  ;;  %v7098_v18 = vsel %vm17814_vm7, %v751_v47, %v18198_v31  ;;  %v5092_v20 = vsub.s32 4294967266, %v14651_v15  ;;  %v5188_v63 = vclz %v8216_v40 }
 0x4b5   :  { %v7160_v51 = vpack.c.bf16 %v7098_v18, %v7096_v48  ;;  %v5239_v62 = vsub.s32 32, %v5238_v2  ;;  %v14682_v38 = vadd.f32 %v14317_v61, %v17936_v19  ;;  %v14686_v31 = vadd.f32 %v14428_v46, %v17873_v5 }
 0x4b6   :  { %v5232_v26 = vor.u32 8388608, %v5231_v56  ;;  %v5237_v13 = vshrl.u32 %v5236_v35, 5  ;;  %v5241_v14 = vshll.u32 %v17841_v8, %v5238_v2  ;;  %v5244_v33 = vshll.u32 %v17830_v59, %v5238_v2 }
 0x4b7   :  { %18209 = vst [vmem:[#allocation22_spill] sm:$0xff] %v14682_v38  ;;  %18210 = vst [vmem:[#allocation9_spill] sm:$0xff] %v14686_v31  ;;  %7353 = vmatmul.mubr.bf16.vlgmr.msra.gmra.mrb[0].mxu1 %v7160_v51  ;;  %v5242_v4 = vshrl.u32 %v17830_v59, %v5239_v62  ;;  %v5245_v50 = vshrl.u32 %v17871_v39, %v5239_v62  ;;  %v5247_v52 = vshll.u32 %v17871_v39, %v5238_v2 }
 0x4b8   :  { %v5248_v61 = vshrl.u32 %v17870_v42, %v5239_v62  ;;  %v18211_v44 = vand.u32 2147483647, %v14181_v53  ;;  %v5250_v7 = vshll.u32 %v17870_v42, %v5238_v2  ;;  %v5251_v25 = vshrl.u32 %v17837_v36, %v5239_v62 }
 0x4b9   :  { %v5253_v29 = vshll.u32 %v17837_v36, %v5238_v2  ;;  %v5254_v40 = vshrl.u32 %v17838_v9, %v5239_v62  ;;  %v5243_v1 = vor.u32 %v5242_v4, %v5241_v14  ;;  %v5246_v47 = vor.u32 %v5245_v50, %v5244_v33 }
 0x4ba   :  { %vm14696_vm8 = vcmp.le.f32.partialorder %v18211_v44, 0.7853982  ;;  %v5249_v56 = vor.u32 %v5248_v61, %v5247_v52  ;;  %v5331_v35 = vand.u32 2139095040, %v14682_v38  ;;  %v5252_v3 = vor.u32 %v5251_v25, %v5250_v7 }
 0x4bb   :  { %v5255_v48 = vor.u32 %v5254_v40, %v5253_v29  ;;  %vm5256_vm3 = vcmp.lt.s32.totalorder %v5237_v13, 1  ;;  %vm5259_vm14 = vcmp.lt.s32.totalorder %v5237_v13, 4  ;;  %v5240_v18 = vshrl.u32 %v17841_v8, %v5239_v62  ;;  %v14707_v45 = vpop.eup %8820 }
 0x4bc   :  { %v5261_v51 = vsel %vm5259_vm14, %v5249_v56, 2102212464  ;;  %v5264_v44 = vsel %vm5256_vm3, %v5243_v1, %v5246_v47  ;;  %18214 = vst [vmem:[#allocation14_spill] sm:$0xff] %v14707_v45  ;;  %vm5258_vm4 = vcmp.lt.s32.totalorder %v5237_v13, 3  ;;  %v5265_v2 = vsel %vm5259_vm14, %v5252_v3, 920167782 }
 0x4bd   :  { %v5268_v16 = vsel %vm5256_vm3, %v5246_v47, %v5249_v56  ;;  %v5272_v14 = vshll.u32 %v5232_v26, 8  ;;  %vm5257_vm2 = vcmp.lt.s32.totalorder %v5237_v13, 2  ;;  %v5260_v33 = vsel %vm5256_vm3, %v5240_v18, %v5243_v1 }
 0x4be   :  { %v5266_v4 = vsel %vm5258_vm4, %v5249_v56, %v5265_v2  ;;  %v5269_v50 = vsel %vm5259_vm14, %v5255_v48, 1326507024  ;;  %v5262_v52 = vsel %vm5258_vm4, %v5246_v47, %v5261_v51  ;;  %v5332_v25 = vshrl.u32 %v5331_v35, 23 }
 0x4bf   :  { %v5267_v61 = vsel %vm5257_vm2, %v5264_v44, %v5266_v4  ;;  %v5270_v7 = vsel %vm5258_vm4, %v5252_v3, %v5269_v50  ;;  %v8217_v62 = vadd.s32 4294967294, %v5188_v63  ;;  %v18215_v1 = vand.u32 2147483647, %v14682_v38 }
 0x4c0   :  { %v5271_v29 = vsel %vm5257_vm2, %v5268_v16, %v5270_v7  ;;  %v14711_v40 = vmul.u32.u64.low %v5272_v14, %v5267_v61  ;;  %v14712_v54 = vmul.u32.u64.high %v5272_v14, %v5267_v61, %v14711_v40  ;;  %v8223_v26 = vadd.s32 4294967169, %v5332_v25 }
 0x4c1   :  { %v14715_v32 = vmul.u32.u64.low %v5272_v14, %v5271_v29  ;;  %v14716_v23 = vmul.u32.u64.high %v5272_v14, %v5271_v29, %v14715_v32  ;;  %v5335_v56 = vand.u32 8388607, %v18215_v1  ;;  %v5263_v63 = vsel %vm5257_vm2, %v5260_v33, %v5262_v52 }
 0x4c2   :  { %v5435_v16 = vand.u32 2139095040, %v14686_v31  ;;  %v4997_v3 = vsel %vm4914_vm11, %v4996_v27, %v14645_v57  ;;  %v5072_v32 = vadd.s32 %v14395_v10, %v14407_v24  ;;  %v5088_v48 = vsub.s32 32, %v14651_v15 }
 0x4c3   :  { %v5338_v18 = vadd.s32 1, %v8223_v26  ;;  %v14732_v51 = vadd.s32 127, %v5092_v20  ;;  %vm8218_vm1 = vcmp.lt.s32.totalorder %v8217_v62, 0  ;;  %v5282_v44 = vadd.s32 1, %v14712_v54 }
 0x4c4   :  { %v5436_v2 = vshrl.u32 %v5435_v16, 23  ;;  %v5279_v13 = vmul.u32 %v5272_v14, %v5263_v63  ;;  %vm5281_vm3 = vc.u32 %v14716_v23, %v14711_v40  ;;  %v5336_v33 = vor.u32 8388608, %v5335_v56 }
 0x4c5   :  { %vm5339_vm14 = vcmp.gt.s32.totalorder %v5338_v18, 0  ;;  %v5283_v57 = vsel %vm5281_vm3, %v5282_v44, %v14712_v54  ;;  %v14740_v10 = vadd.f32 %v14435_v34, %v17936_v19  ;;  %v14745_v24 = vsel %vm14696_vm8, %v14181_v53, %v4997_v3 }
 0x4c6   :  { %v5340_v27 = vsel %vm5339_vm14, %v5338_v18, 0  ;;  %v8227_v4 = vadd.s32 4294967169, %v5436_v2  ;;  %v5089_v20 = vshll.u32 %v14550_v49, %v14651_v15  ;;  %v5284_v14 = vadd.s32 %v5283_v57, %v5279_v13 }
 0x4c7   :  { %18216 = vst [vmem:[#allocation38_spill] sm:$0xff] %v14740_v10  ;;  %v5342_v50 = vand.u32 31, %v5340_v27  ;;  %v5090_v52 = vshrl.u32 %v5072_v32, %v5088_v48  ;;  %v5094_v61 = vshll.u32 %v14732_v51, 23  ;;  %v14751_v54 = vsel %vm8218_vm1, 0, %v8217_v62 }
 0x4c8   :  { %v5285_v34 = vadd.s32 536870912, %v5284_v14  ;;  %v5341_v25 = vshrl.u32 %v5340_v27, 5  ;;  %v14754_v26 = vshll.u32 %v5336_v33, 8  ;;  %v5442_v49 = vadd.s32 1, %v8227_v4  ;;  %v14770_v33 = vpop.f32.mrb[51].mxu0 }
 0x4c9   :  { %v5343_v29 = vsub.s32 32, %v5342_v50  ;;  %v5345_v1 = vshll.u32 %v17841_v8, %v5342_v50  ;;  %v5348_v56 = vshll.u32 %v17830_v59, %v5342_v50  ;;  %v5539_v15 = vand.u32 2139095040, %v14740_v10 }
 0x4ca   :  { %v5351_v62 = vshll.u32 %v17871_v39, %v5342_v50  ;;  %v5354_v3 = vshll.u32 %v17870_v42, %v5342_v50  ;;  %vm17734_vm11 = vcmp.lt.s32.totalorder %v14044_v55, 0  ;;  %v5357_v18 = vshll.u32 %v17837_v36, %v5342_v50 }
 0x4cb   :  { %v5346_v63 = vshrl.u32 %v17830_v59, %v5343_v29  ;;  %v5349_v16 = vshrl.u32 %v17871_v39, %v5343_v29  ;;  %v5352_v32 = vshrl.u32 %v17870_v42, %v5343_v29  ;;  %v5355_v48 = vshrl.u32 %v17837_v36, %v5343_v29 }
 0x4cc   :  { %v5358_v51 = vshrl.u32 %v17838_v9, %v5343_v29  ;;  %v14768_v44 = vshrl.u32 %v5285_v34, 30  ;;  %vm5360_vm4 = vcmp.lt.s32.totalorder %v5341_v25, 1  ;;  %v5344_v57 = vshrl.u32 %v17841_v8, %v5343_v29 }
 0x4cd   :  { %v5347_v2 = vor.u32 %v5346_v63, %v5345_v1  ;;  %v5350_v13 = vor.u32 %v5349_v16, %v5348_v56  ;;  %v5353_v27 = vor.u32 %v5352_v32, %v5351_v62  ;;  %v5356_v4 = vor.u32 %v5355_v48, %v5354_v3 }
 0x4ce   :  { %18217 = vst [vmem:[#allocation148_spill] sm:$0xff] %v14768_v44  ;;  %v5359_v35 = vor.u32 %v5358_v51, %v5357_v18  ;;  %vm5362_vm2 = vcmp.lt.s32.totalorder %v5341_v25, 3  ;;  %vm5363_vm1 = vcmp.lt.s32.totalorder %v5341_v25, 4  ;;  %vm5443_vm3 = vcmp.gt.s32.totalorder %v5442_v49, 0 }
 0x4cf   :  { %v5368_v47 = vsel %vm5360_vm4, %v5347_v2, %v5350_v13  ;;  %v5365_v50 = vsel %vm5363_vm1, %v5353_v27, 2102212464  ;;  %v5369_v7 = vsel %vm5363_vm1, %v5356_v4, 920167782  ;;  %v5372_v34 = vsel %vm5360_vm4, %v5350_v13, %v5353_v27 }
 0x4d0   :  { %v5373_v53 = vsel %vm5363_vm1, %v5359_v35, 1326507024  ;;  %v5287_v1 = vshll.u32 %v14768_v44, 30  ;;  %vm5361_vm14 = vcmp.lt.s32.totalorder %v5341_v25, 2  ;;  %v5370_v56 = vsel %vm5362_vm2, %v5353_v27, %v5369_v7 }
 0x4d1   :  { %v5374_v29 = vsel %vm5362_vm2, %v5356_v4, %v5373_v53  ;;  %v5371_v63 = vsel %vm5361_vm14, %v5368_v47, %v5370_v56  ;;  %v18218_v62 = vand.u32 2147483647, %v14686_v31  ;;  %v5444_v32 = vsel %vm5443_vm3, %v5442_v49, 0 }
 0x4d2   :  { %v5375_v16 = vsel %vm5361_vm14, %v5372_v34, %v5374_v29  ;;  %v5364_v48 = vsel %vm5360_vm4, %v5344_v57, %v5347_v2  ;;  %v5366_v18 = vsel %vm5362_vm2, %v5350_v13, %v5365_v50  ;;  %v5446_v53 = vand.u32 31, %v5444_v32 }
 0x4d3   :  { %v5439_v3 = vand.u32 8388607, %v18218_v62  ;;  %v14785_v35 = vmul.u32.u64.low %v14754_v26, %v5375_v16  ;;  %v14786_v51 = vmul.u32.u64.high %v14754_v26, %v5375_v16, %v14785_v35  ;;  %v5540_v47 = vshrl.u32 %v5539_v15, 23 }
 0x4d4   :  { %v14789_v7 = vmul.u32.u64.low %v14754_v26, %v5371_v63  ;;  %v14790_v27 = vmul.u32.u64.high %v14754_v26, %v5371_v63, %v14789_v7  ;;  %v18219_v4 = vxor.u32 2147483648, %v14665_v11  ;;  %8822 = vcosq.f32 %v14745_v24 }
 0x4d5   :  { %v18221_v2 = vsel %vm14696_vm8, 0, %v14677_v0  ;;  %v14807_v57 = vsub.s32 %v5284_v14, %v5287_v1  ;;  %v14809_v50 = vor.u32 %v5090_v52, %v5089_v20  ;;  %v14813_v15 = vadd.s32 %v14505_v12, %v14518_v41 }
 0x4d6   :  { %v14798_v49 = vsel %vm17734_vm11, %v18219_v4, %v14665_v11  ;;  %v14805_v13 = vadd.s32 3, %v18221_v2  ;;  %v5367_v34 = vsel %vm5361_vm14, %v5364_v48, %v5366_v18  ;;  %v5447_v11 = vsub.s32 32, %v5446_v53 }
 0x4d7   :  { %18220 = vst [vmem:[#allocation149_spill] sm:$0xff] %v14798_v49  ;;  %v14816_v56 = vor.u32 4788187, %v5094_v61  ;;  %v5196_v29 = vsub.s32 4294967266, %v14751_v54  ;;  %vm5385_vm8 = vc.u32 %v14786_v51, %v14789_v7  ;;  %v5440_v0 = vor.u32 8388608, %v5439_v3 }
 0x4d8   :  { %18222 = vst [vmem:[#allocation150_spill] sm:$0xff] %v14805_v13  ;;  %v5386_v46 = vadd.s32 1, %v14790_v27  ;;  %v5450_v20 = vshrl.u32 %v17830_v59, %v5447_v11  ;;  %v5453_v14 = vshrl.u32 %v17871_v39, %v5447_v11  ;;  %v8231_v52 = vadd.s32 4294967169, %v5540_v47 }
 0x4d9   :  { %v5290_v12 = vsub.s32 0, %v14807_v57  ;;  %v5383_v41 = vmul.u32 %v14754_v26, %v5367_v34  ;;  %v5456_v61 = vshrl.u32 %v17870_v42, %v5447_v11  ;;  %v5459_v25 = vshrl.u32 %v17837_v36, %v5447_v11 }
 0x4da   :  { %v5387_v1 = vsel %vm5385_vm8, %v5386_v46, %v14790_v27  ;;  %v5449_v63 = vshll.u32 %v17841_v8, %v5446_v53  ;;  %v5452_v16 = vshll.u32 %v17830_v59, %v5446_v53  ;;  %v5458_v62 = vshll.u32 %v17870_v42, %v5446_v53 }
 0x4db   :  { %v5388_v3 = vadd.s32 %v5387_v1, %v5383_v41  ;;  %v5445_v48 = vshrl.u32 %v5444_v32, 5  ;;  %v5455_v18 = vshll.u32 %v17871_v39, %v5446_v53  ;;  %v5461_v35 = vshll.u32 %v17837_v36, %v5446_v53 }
 0x4dc   :  { %v5451_v47 = vor.u32 %v5450_v20, %v5449_v63  ;;  %v5454_v26 = vor.u32 %v5453_v14, %v5452_v16  ;;  %v5460_v4 = vor.u32 %v5459_v25, %v5458_v62  ;;  %v5462_v2 = vshrl.u32 %v17838_v9, %v5447_v11 }
 0x4dd   :  { %v5096_v34 = vand.u32 2147483647, %v14816_v56  ;;  %v5098_v27 = vcvt.s32.f32 %v14809_v50  ;;  %v5389_v46 = vadd.s32 536870912, %v5388_v3  ;;  %v5457_v44 = vor.u32 %v5456_v61, %v5455_v18 }
 0x4de   :  { %v5192_v49 = vsub.s32 32, %v14751_v54  ;;  %v5197_v55 = vadd.s32 127, %v5196_v29  ;;  %v5463_v41 = vor.u32 %v5462_v2, %v5461_v35  ;;  %v14839_v1 = vpop.eup %8822  ;;  %vm5464_vm4 = vcmp.lt.s32.totalorder %v5445_v48, 1 }
 0x4df   :  { %18223 = vst [vmem:[#allocation151_spill] sm:$0xff] %v14839_v1  ;;  %v14841_v53 = vshrl.u32 %v5389_v46, 30  ;;  %vm5467_vm2 = vcmp.lt.s32.totalorder %v5445_v48, 4  ;;  %v5546_v20 = vadd.s32 1, %v8231_v52  ;;  %vm5122_vm1 = vcmp.lt.s32.totalorder %v14370_v58, 0 }
 0x4e0   :  { %v8220_v56 = vmin.u32 %v5290_v12, %v14807_v57  ;;  %v5472_v50 = vsel %vm5464_vm4, %v5451_v47, %v5454_v26  ;;  %v5473_v14 = vsel %vm5467_vm2, %v5460_v4, 920167782  ;;  %v5480_v61 = vshll.u32 %v5440_v0, 8 }
 0x4e1   :  { %v5391_v29 = vshll.u32 %v14841_v53, 30  ;;  %v5448_v25 = vshrl.u32 %v17841_v8, %v5447_v11  ;;  %vm5466_vm3 = vcmp.lt.s32.totalorder %v5445_v48, 3  ;;  %v5469_v63 = vsel %vm5467_vm2, %v5457_v44, 2102212464  ;;  %v14857_v11 = vpop.f32.mrb[52].mxu0 }
 0x4e2   :  { %vm5465_vm14 = vcmp.lt.s32.totalorder %v5445_v48, 2  ;;  %v5474_v16 = vsel %vm5466_vm3, %v5457_v44, %v5473_v14  ;;  %v5476_v62 = vsel %vm5464_vm4, %v5454_v26, %v5457_v44  ;;  %v5477_v18 = vsel %vm5467_vm2, %v5463_v41, 1326507024 }
 0x4e3   :  { %v14849_v52 = vsub.s32 %v5388_v3, %v5391_v29  ;;  %v5468_v35 = vsel %vm5464_vm4, %v5448_v25, %v5451_v47  ;;  %v5475_v12 = vsel %vm5465_vm14, %v5472_v50, %v5474_v16  ;;  %vm5547_vm8 = vcmp.gt.s32.totalorder %v5546_v20, 0 }
 0x4e4   :  { %v5470_v2 = vsel %vm5466_vm3, %v5454_v26, %v5469_v63  ;;  %v5478_v0 = vsel %vm5466_vm3, %v5460_v4, %v5477_v18  ;;  %v14853_v46 = vmul.u32.u64.low %v5480_v61, %v5475_v12  ;;  %v14854_v32 = vmul.u32.u64.high %v5480_v61, %v5475_v12, %v14853_v46  ;;  %v14869_v4 = vpop.f32.mrb[53].mxu0 }
 0x4e5   :  { %v18224_v14 = vand.u32 2147483647, %v14370_v58  ;;  %v5194_v3 = vshrl.u32 %v14813_v15, %v5192_v49  ;;  %v5206_v47 = vsub.s32 4, %v14608_v37  ;;  %v5394_v41 = vsub.s32 0, %v14849_v52 }
 0x4e6   :  { %v5479_v26 = vsel %vm5465_vm14, %v5476_v62, %v5478_v0  ;;  %v5198_v50 = vshll.u32 %v5197_v55, 23  ;;  %v5548_v63 = vsel %vm5547_vm8, %v5546_v20, 0  ;;  %v5471_v18 = vsel %vm5465_vm14, %v5468_v35, %v5470_v2 }
 0x4e7   :  { %vm14861_vm11 = vcmp.le.f32.partialorder %v18224_v14, 0.7853982  ;;  %v14871_v29 = vmul.u32.u64.low %v5480_v61, %v5479_v26  ;;  %v14872_v25 = vmul.u32.u64.high %v5480_v61, %v5479_v26, %v14871_v29  ;;  %v8224_v16 = vmin.u32 %v5394_v41, %v14849_v52 }
 0x4e8   :  { %v18227_v12 = vand.u32 2147483647, %v14740_v10  ;;  %v5550_v15 = vand.u32 31, %v5548_v63  ;;  %8824 = vsinq.f32 %v14745_v24  ;;  %v5193_v62 = vshll.u32 %v14639_v21, %v14751_v54 }
 0x4e9   :  { %v5292_v0 = vclz %v8220_v56  ;;  %v5490_v55 = vadd.s32 1, %v14854_v32  ;;  %v14882_v14 = vmul.f32 %v5098_v27, %v5096_v34  ;;  %v14887_v20 = vsel %vm5122_vm1, %v5206_v47, %v14608_v37 }
 0x4ea   :  { %v5543_v49 = vand.u32 8388607, %v18227_v12  ;;  %v5396_v48 = vclz %v8224_v16  ;;  %v5551_v35 = vsub.s32 32, %v5550_v15  ;;  %v5195_v2 = vor.u32 %v5194_v3, %v5193_v62 }
 0x4eb   :  { %v5199_v41 = vor.u32 4788187, %v5198_v50  ;;  %v5487_v26 = vmul.u32 %v5480_v61, %v5471_v18  ;;  %vm5489_vm4 = vc.u32 %v14872_v25, %v14853_v46  ;;  %v8221_v27 = vadd.s32 4294967294, %v5292_v0 }
 0x4ec   :  { %v8225_v24 = vadd.s32 4294967294, %v5396_v48  ;;  %v5491_v21 = vsel %vm5489_vm4, %v5490_v55, %v14854_v32  ;;  %v5544_v54 = vor.u32 8388608, %v5543_v49  ;;  %v5554_v34 = vshrl.u32 %v17830_v59, %v5551_v35 }
 0x4ed   :  { %v5492_v56 = vadd.s32 %v5491_v21, %v5487_v26  ;;  %v5557_v29 = vshrl.u32 %v17871_v39, %v5551_v35  ;;  %v5560_v37 = vshrl.u32 %v17870_v42, %v5551_v35  ;;  %v5553_v47 = vshll.u32 %v17841_v8, %v5550_v15 }
 0x4ee   :  { %v5556_v3 = vshll.u32 %v17830_v59, %v5550_v15  ;;  %v5559_v61 = vshll.u32 %v17871_v39, %v5550_v15  ;;  %v5563_v50 = vshrl.u32 %v17837_v36, %v5551_v35  ;;  %vm8226_vm2 = vcmp.lt.s32.totalorder %v8225_v24, 0 }
 0x4ef   :  { %v5549_v16 = vshrl.u32 %v5548_v63, 5  ;;  %v5562_v18 = vshll.u32 %v17870_v42, %v5550_v15  ;;  %v5493_v12 = vadd.s32 536870912, %v5492_v56  ;;  %v5555_v49 = vor.u32 %v5554_v34, %v5553_v47 }
 0x4f0   :  { %v5558_v62 = vor.u32 %v5557_v29, %v5556_v3  ;;  %v5561_v0 = vor.u32 %v5560_v37, %v5559_v61  ;;  %vm8222_vm3 = vcmp.lt.s32.totalorder %v8221_v27, 0  ;;  %v5565_v48 = vshll.u32 %v17837_v36, %v5550_v15 }
 0x4f1   :  { %v5564_v55 = vor.u32 %v5563_v50, %v5562_v18  ;;  %v5566_v26 = vshrl.u32 %v17838_v9, %v5551_v35  ;;  %v5200_v21 = vand.u32 2147483647, %v5199_v41  ;;  %v5202_v1 = vcvt.s32.f32 %v5195_v2 }
 0x4f2   :  { %v5584_v13 = vshll.u32 %v5544_v54, 8  ;;  %v1054_v45 = vand.u32 3, %v18228_v6  ;;  %v14906_v32 = vpop.eup %8824  ;;  %v14909_v63 = vsel %vm8226_vm2, 0, %v8225_v24  ;;  %vm5568_vm14 = vcmp.lt.s32.totalorder %v5549_v16, 1 }
 0x4f3   :  { %18229 = vst [vmem:[#allocation29_spill] sm:$0xff] %v14906_v32  ;;  %v5567_v22 = vor.u32 %v5566_v26, %v5565_v48  ;;  %vm5571_vm8 = vcmp.lt.s32.totalorder %v5549_v16, 4  ;;  %v14911_v34 = vsel %vm8222_vm3, 0, %v8221_v27  ;;  %v14913_v29 = vshrl.u32 %v5493_v12, 30 }
 0x4f4   :  { %v5573_v15 = vsel %vm5571_vm8, %v5561_v0, 2102212464  ;;  %v5576_v37 = vsel %vm5568_vm14, %v5555_v49, %v5558_v62  ;;  %v5552_v41 = vshrl.u32 %v17841_v8, %v5551_v35  ;;  %vm5570_vm4 = vcmp.lt.s32.totalorder %v5549_v16, 3 }
 0x4f5   :  { %18230 = vst [vmem:[#allocation152_spill] sm:$0xff] %v14913_v29  ;;  %v5577_v2 = vsel %vm5571_vm8, %v5564_v55, 920167782  ;;  %v5580_v54 = vsel %vm5568_vm14, %v5558_v62, %v5561_v0  ;;  %v5404_v6 = vsub.s32 4294967266, %v14909_v63  ;;  %vm5569_vm15 = vcmp.lt.s32.totalorder %v5549_v16, 2 }
 0x4f6   :  { %v5578_v47 = vsel %vm5570_vm4, %v5561_v0, %v5577_v2  ;;  %v5581_v24 = vsel %vm5571_vm8, %v5567_v22, 1326507024  ;;  %v5572_v3 = vsel %vm5568_vm14, %v5552_v41, %v5555_v49  ;;  %v5574_v61 = vsel %vm5570_vm4, %v5558_v62, %v5573_v15  ;;  %v18232_v62 = vld [vmem:[#allocation15_spill] sm:$0xff]  ;;  %v18234_v41 = vld [vmem:[#allocation44_spill] sm:$0xff]  ;;  %v18235_v2 = vld [vmem:[#allocation50_spill] sm:$0xff] }
 0x4f7   :  { %v5579_v50 = vsel %vm5569_vm15, %v5576_v37, %v5578_v47  ;;  %v5582_v18 = vsel %vm5570_vm4, %v5564_v55, %v5581_v24  ;;  %v5495_v27 = vshll.u32 %v14913_v29, 30  ;;  %v14922_v35 = vmul.f32 %v5202_v1, %v5200_v21  ;;  %v18233_v0 = vld [vmem:[#allocation19_spill] sm:$0xff] }
 0x4f8   :  { %v5583_v12 = vsel %vm5569_vm15, %v5580_v54, %v5582_v18  ;;  %v14918_v48 = vmul.u32.u64.low %v5584_v13, %v5579_v50  ;;  %v14919_v26 = vmul.u32.u64.high %v5584_v13, %v5579_v50, %v14918_v48  ;;  %v1057_v16 = vxor.u32 2147483648, %v18231_v60 }
 0x4f9   :  { %v14924_v32 = vmul.u32.u64.low %v5584_v13, %v5583_v12  ;;  %v14925_v28 = vmul.u32.u64.high %v5584_v13, %v5583_v12, %v14924_v32  ;;  %v5280_v22 = vadd.s32 %v14711_v40, %v14716_v23  ;;  %v5575_v49 = vsel %vm5569_vm15, %v5572_v3, %v5574_v61  ;;  %v18236_v3 = vld [vmem:[#allocation49_spill] sm:$0xff] }
 0x4fa   :  { %vm1052_vm2 = vweird.f32 %v18232_v62  ;;  %v1060_v55 = vxor.u32 2147483648, %v18233_v0  ;;  %v5300_v15 = vsub.s32 4294967266, %v14911_v34  ;;  %v5405_v37 = vadd.s32 127, %v5404_v6 }
 0x4fb   :  { %vm1056_vm3 = vcmp.eq.s32.totalorder %v1054_v45, 0  ;;  %v1262_v1 = vand.u32 3, %v18234_v41  ;;  %v14934_v21 = vsub.s32 %v5492_v56, %v5495_v27  ;;  %v5594_v32 = vadd.s32 1, %v14919_v26 }
 0x4fc   :  { %vm1059_vm14 = vcmp.eq.s32.totalorder %v1054_v45, 2  ;;  %v1265_v54 = vxor.u32 2147483648, %v18235_v2  ;;  %v5591_v47 = vmul.u32 %v5584_v13, %v5575_v49  ;;  %vm5593_vm15 = vc.u32 %v14925_v28, %v14918_v48  ;;  %v18237_v49 = vld [vmem:[#allocation12_spill] sm:$0xff] }
 0x4fd   :  { %v1058_v23 = vsel %vm1056_vm3, %v18233_v0, %v1057_v16  ;;  %v1061_v40 = vsel %vm1059_vm14, %v1060_v55, %v18231_v60  ;;  %v5296_v6 = vsub.s32 32, %v14911_v34  ;;  %v5384_v24 = vadd.s32 %v14789_v7, %v14786_v51  ;;  %v18241_v0 = vld [vmem:[#allocation21_spill] sm:$0xff] }
 0x4fe   :  { %v5595_v56 = vsel %vm5593_vm15, %v5594_v32, %v14919_v26  ;;  %v1268_v61 = vxor.u32 2147483648, %v18236_v3  ;;  %v5301_v50 = vadd.s32 127, %v5300_v15  ;;  %vm1055_vm8 = vcmp.lt.s32.totalorder %v1054_v45, 2  ;;  %v18242_v15 = vld [vmem:[#allocation25_spill] sm:$0xff] }
 0x4ff   :  { %v5596_v18 = vadd.s32 %v5595_v56, %v5591_v47  ;;  %vm1264_vm4 = vcmp.eq.s32.totalorder %v1262_v1, 0  ;;  %v5400_v13 = vsub.s32 32, %v14909_v63  ;;  %v5406_v27 = vshll.u32 %v5405_v37, 23  ;;  %v18252_v7 = vld [vmem:[#allocation45_spill] sm:$0xff] }
 0x500   :  { %v1062_v12 = vsel %vm1055_vm8, %v1058_v23, %v1061_v40  ;;  %v1266_v16 = vsel %vm1264_vm4, %v18236_v3, %v1265_v54  ;;  %v5498_v60 = vsub.s32 0, %v14934_v21  ;;  %vm1263_vm3 = vcmp.lt.s32.totalorder %v1262_v1, 2  ;;  %v18244_v54 = vld [vmem:[#allocation140_spill] sm:$0xff] }
 0x501   :  { %vm1267_vm14 = vcmp.eq.s32.totalorder %v1262_v1, 2  ;;  %v18238_v51 = vand.u32 2147483647, %v18237_v49  ;;  %v5597_v26 = vadd.s32 536870912, %v5596_v18  ;;  %v942_v55 = vsub.s32 4, %v18241_v0  ;;  %v18243_v1 = vld [vmem:[#allocation20_spill] sm:$0xff] }
 0x502   :  { %v1269_v45 = vsel %vm1267_vm14, %v1268_v61, %v18235_v2  ;;  %v1063_v41 = vsel %vm1052_vm2, nan, %v1062_v12  ;;  %vm1260_vm15 = vweird.f32 %v18243_v1  ;;  %vm17742_vm8 = vcmp.lt.s32.totalorder %v18244_v54, 0  ;;  %v15003_v1 = vpop.f32.mrb[54].mxu0 }
 0x503   :  { %vm14952_vm10 = vcmp.le.f32.partialorder %v18238_v51, 0.7853982  ;;  %v1270_v32 = vsel %vm1263_vm3, %v1266_v16, %v1269_v45  ;;  %v14966_v47 = vshrl.u32 %v5597_v26, 30  ;;  %vm18245_vm4 = vcmp.lt.s32.totalorder %v18237_v49, 0 }
 0x504   :  { %v944_v37 = vsel %vm14952_vm10, %v18237_v49, %v18242_v15  ;;  %v1271_v23 = vsel %vm1260_vm15, nan, %v1270_v32  ;;  %v943_v2 = vsel %vm18245_vm4, %v942_v55, %v18241_v0  ;;  %v5100_v40 = vxor.u32 2147483648, %v14882_v14  ;;  %v18247_v55 = vld [vmem:[#allocation17_spill] sm:$0xff] }
 0x505   :  { %8826 = vcosq.f32 %v944_v37  ;;  %v5204_v56 = vxor.u32 2147483648, %v14922_v35  ;;  %v18246_v62 = vsel %vm14861_vm11, 0, %v14887_v20  ;;  %v7163_v61 = vpack.c.bf16 %v1271_v23, %v1063_v41 }
 0x506   :  { %8828 = vsinq.f32 %v944_v37  ;;  %v14977_v3 = vadd.s32 3, %v18246_v62  ;;  %v5298_v12 = vshrl.u32 %v5280_v22, %v5296_v6  ;;  %v5402_v16 = vshrl.u32 %v5384_v24, %v5400_v13  ;;  %v18251_v37 = vld [vmem:[#allocation33_spill] sm:$0xff] }
 0x507   :  { %v5599_v51 = vshll.u32 %v14966_v47, 30  ;;  %v945_v26 = vsel %vm14952_vm10, 0, %v943_v2  ;;  %v5302_v45 = vshll.u32 %v5301_v50, 23  ;;  %v5401_v0 = vshll.u32 %v14849_v52, %v14909_v63  ;;  %8302 = vmatprep.mubr.msk.bf16.mxu1 %vm17813_vm5, %v7163_v61 }
 0x508   :  { %v18248_v15 = vand.u32 2147483647, %v18247_v55  ;;  %v1150_v22 = vsub.s32 4, %v18251_v37  ;;  %v5407_v6 = vor.u32 4788187, %v5406_v27  ;;  %v8228_v24 = vmin.u32 %v5498_v60, %v14934_v21 }
 0x509   :  { %v14993_v13 = vsub.s32 %v5596_v18, %v5599_v51  ;;  %v5414_v63 = vsub.s32 4, %v14841_v53  ;;  %v949_v50 = vadd.s32 3, %v945_v26  ;;  %vm18253_vm10 = vcmp.lt.s32.totalorder %v18247_v55, 0 }
 0x50a   :  { %vm14987_vm2 = vcmp.le.f32.partialorder %v18248_v15, 0.7853982  ;;  %v1151_v41 = vsel %vm18253_vm10, %v1150_v22, %v18251_v37  ;;  %v5297_v27 = vshll.u32 %v14807_v57, %v14911_v34  ;;  %vm5330_vm3 = vcmp.lt.s32.totalorder %v14682_v38, 0 }
 0x50b   :  { %v1152_v52 = vsel %vm14987_vm2, %v18247_v55, %v18252_v7  ;;  %v5403_v18 = vor.u32 %v5402_v16, %v5401_v0  ;;  %v5602_v60 = vsub.s32 0, %v14993_v13  ;;  %v5205_v32 = vsel %vm5122_vm1, %v5204_v56, %v14922_v35 }
 0x50c   :  { %8830 = vcosq.f32 %v1152_v52  ;;  %v5303_v23 = vor.u32 4788187, %v5302_v45  ;;  %v1153_v2 = vsel %vm14987_vm2, 0, %v1151_v41  ;;  %v5299_v62 = vor.u32 %v5298_v12, %v5297_v27 }
 0x50d   :  { %8832 = vsinq.f32 %v1152_v52  ;;  %v5408_v61 = vand.u32 2147483647, %v5407_v6  ;;  %v5500_v51 = vclz %v8228_v24  ;;  %v15016_v57 = vadd.f32 %v14626_v30, %v17873_v5 }
 0x50e   :  { %v15021_v16 = vsel %vm17742_vm8, %v5100_v40, %v14882_v14  ;;  %v5415_v35 = vsel %vm5330_vm3, %v5414_v63, %v14841_v53  ;;  %v950_v56 = vand.u32 3, %v949_v50  ;;  %v1157_v26 = vadd.s32 3, %v1153_v2 }
 0x50f   :  { %18254 = vst [vmem:[#allocation41_spill] sm:$0xff] %v15016_v57  ;;  %v8827_v34 = vpop.eup %8826  ;;  %18255 = vst [vmem:[#allocation15_spill] sm:$0xff] %v15021_v16  ;;  %v18256_v12 = vand.u32 2147483647, %v14682_v38  ;;  %v5410_v30 = vcvt.s32.f32 %v5403_v18  ;;  %v8232_v15 = vmin.u32 %v5602_v60, %v14993_v13  ;;  %v5208_v14 = vsel %vm14861_vm11, %v14370_v58, %v5205_v32 }
 0x510   :  { %v8829_v45 = vpop.eup %8828  ;;  %v956_v20 = vxor.u32 2147483648, %v8827_v34  ;;  %v5304_v40 = vand.u32 2147483647, %v5303_v23  ;;  %v5643_v53 = vand.u32 2139095040, %v15016_v57  ;;  %v5306_v22 = vcvt.s32.f32 %v5299_v62 }
 0x511   :  { %vm15028_vm1 = vcmp.le.f32.partialorder %v18256_v12, 0.7853982  ;;  %v953_v37 = vxor.u32 2147483648, %v8829_v45  ;;  %v15037_v6 = vmul.f32 %v5410_v30, %v5408_v61  ;;  %v8229_v7 = vadd.s32 4294967294, %v5500_v51 }
 0x512   :  { %v5417_v24 = vsel %vm15028_vm1, 0, %v5415_v35  ;;  %vm952_vm14 = vcmp.eq.s32.totalorder %v950_v56, 0  ;;  %vm955_vm15 = vcmp.eq.s32.totalorder %v950_v56, 2  ;;  %v1158_v52 = vand.u32 3, %v1157_v26 }
 0x513   :  { %v5644_v63 = vshrl.u32 %v5643_v53, 23  ;;  %8834 = vcosq.f32 %v5208_v14  ;;  %v5604_v50 = vclz %v8232_v15  ;;  %v954_v41 = vsel %vm952_vm14, %v8827_v34, %v953_v37 }
 0x514   :  { %v957_v44 = vsel %vm955_vm15, %v956_v20, %v8829_v45  ;;  %8836 = vsinq.f32 %v5208_v14  ;;  %v15041_v18 = vmul.f32 %v5306_v22, %v5304_v40  ;;  %v15043_v60 = vadd.s32 3, %v5417_v24 }
 0x515   :  { %v8235_v32 = vadd.s32 4294967169, %v5644_v63  ;;  %vm8230_vm11 = vcmp.lt.s32.totalorder %v8229_v7, 0  ;;  %vm951_vm4 = vcmp.lt.s32.totalorder %v950_v56, 2  ;;  %vm1163_vm2 = vcmp.eq.s32.totalorder %v1158_v52, 2 }
 0x516   :  { %v8831_v27 = vpop.eup %8830  ;;  %18259 = vst [vmem:[#allocation19_spill] sm:$0xff] %v15043_v60  ;;  %v958_v61 = vsel %vm951_vm4, %v954_v41, %v957_v44  ;;  %v15048_v34 = vadd.f32 %v14770_v33, %v17936_v19  ;;  %v8233_v35 = vadd.s32 4294967294, %v5604_v50  ;;  %v17743_v12 = vand.u32 2147483647, %v15016_v57 }
 0x517   :  { %v1164_v2 = vxor.u32 2147483648, %v8831_v27  ;;  %v8833_v62 = vpop.eup %8832  ;;  %v5650_v51 = vadd.s32 1, %v8235_v32  ;;  %v15051_v30 = vsel %vm8230_vm11, 0, %v8229_v7  ;;  %vm948_vm10 = vweird.f32 %v18237_v49 }
 0x518   :  { %18260 = vst [vmem:[#allocation44_spill] sm:$0xff] %v15048_v34  ;;  %v1161_v26 = vxor.u32 2147483648, %v8833_v62  ;;  %vm1160_vm14 = vcmp.eq.s32.totalorder %v1158_v52, 0  ;;  %v959_v56 = vsel %vm948_vm10, nan, %v958_v61  ;;  %vm1159_vm8 = vcmp.lt.s32.totalorder %v1158_v52, 2 }
 0x519   :  { %v1165_v45 = vsel %vm1163_vm2, %v1164_v2, %v8833_v62  ;;  %vm5651_vm15 = vcmp.gt.s32.totalorder %v5650_v51, 0  ;;  %vm1156_vm4 = vweird.f32 %v18247_v55  ;;  %v15057_v40 = vadd.f32 %v14857_v11, %v17873_v5 }
 0x51a   :  { %v1162_v15 = vsel %vm1160_vm14, %v8831_v27, %v1161_v26  ;;  %v5652_v20 = vsel %vm5651_vm15, %v5650_v51, 0  ;;  %vm8234_vm2 = vcmp.lt.s32.totalorder %v8233_v35, 0  ;;  %v5647_v53 = vand.u32 8388607, %v17743_v12 }
 0x51b   :  { %v1166_v14 = vsel %vm1159_vm8, %v1162_v15, %v1165_v45  ;;  %v5654_v33 = vand.u32 31, %v5652_v20  ;;  %18261 = vst [vmem:[#allocation50_spill] sm:$0xff] %v15057_v40  ;;  %v7100_v24 = vsel %vm17814_vm7, %v959_v56, %v18237_v49  ;;  %v5747_v63 = vand.u32 2139095040, %v15048_v34 }
 0x51c   :  { %v1167_v37 = vsel %vm1156_vm4, nan, %v1166_v14  ;;  %v5653_v41 = vshrl.u32 %v5652_v20, 5  ;;  %v5648_v56 = vor.u32 8388608, %v5647_v53 }
 0x51d   :  { %v7102_v7 = vsel %vm17814_vm7, %v1167_v37, %v18247_v55  ;;  %v5655_v52 = vsub.s32 32, %v5654_v33  ;;  %v15069_v11 = vpop.eup %8834  ;;  %v5657_v44 = vshll.u32 %v17841_v8, %v5654_v33  ;;  %v5660_v27 = vshll.u32 %v17830_v59, %v5654_v33 }
 0x51e   :  { %18262 = vst [vmem:[#allocation49_spill] sm:$0xff] %v15069_v11  ;;  %v7162_v50 = vpack.c.bf16 %v7102_v7, %v7100_v24  ;;  %v15073_v32 = vpop.eup %8836  ;;  %v5663_v62 = vshll.u32 %v17871_v39, %v5654_v33  ;;  %v5666_v61 = vshll.u32 %v17870_v42, %v5654_v33  ;;  %v5669_v26 = vshll.u32 %v17837_v36, %v5654_v33 }
 0x51f   :  { %18263 = vst [vmem:[#allocation12_spill] sm:$0xff] %v15073_v32  ;;  %v5658_v2 = vshrl.u32 %v17830_v59, %v5655_v52  ;;  %v5661_v49 = vshrl.u32 %v17871_v39, %v5655_v52  ;;  %v5664_v55 = vshrl.u32 %v17870_v42, %v5655_v52  ;;  %v5667_v51 = vshrl.u32 %v17837_v36, %v5655_v52 }
 0x520   :  { %7361 = vmatmul.mubr.bf16.gmra.mrb[4].mxu1 %v7162_v50  ;;  %v5670_v45 = vshrl.u32 %v17838_v9, %v5655_v52  ;;  %v15084_v37 = vsel %vm8234_vm2, 0, %v8233_v35  ;;  %vm5672_vm8 = vcmp.lt.s32.totalorder %v5653_v41, 1  ;;  %v5656_v50 = vshrl.u32 %v17841_v8, %v5655_v52 }
 0x521   :  { %v5659_v15 = vor.u32 %v5658_v2, %v5657_v44  ;;  %v5662_v20 = vor.u32 %v5661_v49, %v5660_v27  ;;  %v5665_v14 = vor.u32 %v5664_v55, %v5663_v62  ;;  %v5668_v24 = vor.u32 %v5667_v51, %v5666_v61 }
 0x522   :  { %v5671_v7 = vor.u32 %v5670_v45, %v5669_v26  ;;  %vm5675_vm11 = vcmp.lt.s32.totalorder %v5653_v41, 4  ;;  %v5748_v23 = vshrl.u32 %v5747_v63, 23  ;;  %vm5674_vm10 = vcmp.lt.s32.totalorder %v5653_v41, 3 }
 0x523   :  { %v5680_v12 = vsel %vm5672_vm8, %v5659_v15, %v5662_v20  ;;  %v5677_v22 = vsel %vm5675_vm11, %v5665_v14, 2102212464  ;;  %v5681_v33 = vsel %vm5675_vm11, %v5668_v24, 920167782  ;;  %v5684_v29 = vsel %vm5672_vm8, %v5662_v20, %v5665_v14 }
 0x524   :  { %vm5673_vm14 = vcmp.lt.s32.totalorder %v5653_v41, 2  ;;  %v5682_v53 = vsel %vm5674_vm10, %v5665_v14, %v5681_v33  ;;  %v5685_v44 = vsel %vm5675_vm11, %v5671_v7, 1326507024  ;;  %v5688_v27 = vshll.u32 %v5648_v56, 8 }
 0x525   :  { %v5676_v2 = vsel %vm5672_vm8, %v5656_v50, %v5659_v15  ;;  %v5678_v49 = vsel %vm5674_vm10, %v5662_v20, %v5677_v22  ;;  %v5683_v35 = vsel %vm5673_vm14, %v5680_v12, %v5682_v53  ;;  %v5686_v62 = vsel %vm5674_vm10, %v5668_v24, %v5685_v44 }
 0x526   :  { %v5508_v55 = vsub.s32 4294967266, %v15051_v30  ;;  %v5687_v61 = vsel %vm5673_vm14, %v5684_v29, %v5686_v62  ;;  %v15088_v51 = vmul.u32.u64.low %v5688_v27, %v5683_v35  ;;  %v15089_v52 = vmul.u32.u64.high %v5688_v27, %v5683_v35, %v15088_v51 }
 0x527   :  { %v5612_v63 = vsub.s32 4294967266, %v15084_v37  ;;  %v15093_v26 = vmul.u32.u64.low %v5688_v27, %v5687_v61  ;;  %v15094_v45 = vmul.u32.u64.high %v5688_v27, %v5687_v61, %v15093_v26  ;;  %v8239_v41 = vadd.s32 4294967169, %v5748_v23 }
 0x528   :  { %v5679_v56 = vsel %vm5673_vm14, %v5676_v2, %v5678_v49  ;;  %v18264_v22 = vand.u32 2147483647, %v15048_v34  ;;  %v5851_v15 = vand.u32 2139095040, %v15057_v40  ;;  %v5488_v29 = vadd.s32 %v14853_v46, %v14872_v25 }
 0x529   :  { %v5504_v20 = vsub.s32 32, %v15051_v30  ;;  %v15105_v24 = vadd.s32 %v14918_v48, %v14925_v28  ;;  %v5754_v7 = vadd.s32 1, %v8239_v41  ;;  %v18265_v23 = vxor.u32 2147483648, %v15037_v6 }
 0x52a   :  { %v5751_v12 = vand.u32 8388607, %v18264_v22  ;;  %v15114_v33 = vadd.s32 127, %v5508_v55  ;;  %v5698_v53 = vadd.s32 1, %v15089_v52  ;;  %v5852_v44 = vshrl.u32 %v5851_v15, 23 }
 0x52b   :  { %v15112_v50 = vsel %vm5330_vm3, %v18265_v23, %v15037_v6  ;;  %v15117_v46 = vadd.s32 127, %v5612_v63  ;;  %v5695_v25 = vmul.u32 %v5688_v27, %v5679_v56  ;;  %vm5697_vm15 = vc.u32 %v15094_v45, %v15088_v51 }
 0x52c   :  { %vm5755_vm4 = vcmp.gt.s32.totalorder %v5754_v7, 0  ;;  %v5699_v28 = vsel %vm5697_vm15, %v5698_v53, %v15089_v52  ;;  %v5752_v48 = vor.u32 8388608, %v5751_v12  ;;  %v8243_v49 = vadd.s32 4294967169, %v5852_v44 }
 0x52d   :  { %v5756_v2 = vsel %vm5755_vm4, %v5754_v7, 0  ;;  %v5505_v6 = vshll.u32 %v14934_v21, %v15051_v30  ;;  %v5506_v35 = vshrl.u32 %v5488_v29, %v5504_v20  ;;  %v5700_v62 = vadd.s32 %v5699_v28, %v5695_v25 }
 0x52e   :  { %v5758_v55 = vand.u32 31, %v5756_v2  ;;  %v5510_v61 = vshll.u32 %v15114_v33, 23  ;;  %v5608_v63 = vsub.s32 32, %v15084_v37  ;;  %v15129_v26 = vadd.f32 %v14869_v4, %v17936_v19 }
 0x52f   :  { %v5614_v52 = vshll.u32 %v15117_v46, 23  ;;  %v5701_v41 = vadd.s32 536870912, %v5700_v62  ;;  %v5757_v56 = vshrl.u32 %v5756_v2, 5  ;;  %v15134_v12 = vshll.u32 %v5752_v48, 8  ;;  %v15146_v48 = vpop.f32.mrb[55].mxu0 }
 0x530   :  { %18266 = vst [vmem:[#allocation21_spill] sm:$0xff] %v15129_v26  ;;  %v5759_v22 = vsub.s32 32, %v5758_v55  ;;  %v5761_v21 = vshll.u32 %v17841_v8, %v5758_v55  ;;  %v5764_v30 = vshll.u32 %v17830_v59, %v5758_v55  ;;  %v5858_v15 = vadd.s32 1, %v8243_v49 }
 0x531   :  { %v5767_v7 = vshll.u32 %v17871_v39, %v5758_v55  ;;  %v5770_v4 = vshll.u32 %v17870_v42, %v5758_v55  ;;  %v5773_v53 = vshll.u32 %v17837_v36, %v5758_v55  ;;  %v15144_v46 = vshrl.u32 %v5701_v41, 30 }
 0x532   :  { %v5762_v29 = vshrl.u32 %v17830_v59, %v5759_v22  ;;  %v5765_v20 = vshrl.u32 %v17871_v39, %v5759_v22  ;;  %v5768_v23 = vshrl.u32 %v17870_v42, %v5759_v22  ;;  %v5771_v33 = vshrl.u32 %v17837_v36, %v5759_v22 }
 0x533   :  { %v5774_v44 = vshrl.u32 %v17838_v9, %v5759_v22  ;;  %18267 = vst [vmem:[#allocation25_spill] sm:$0xff] %v15144_v46  ;;  %vm5776_vm3 = vcmp.lt.s32.totalorder %v5757_v56, 1  ;;  %v5760_v2 = vshrl.u32 %v17841_v8, %v5759_v22  ;;  %vm5778_vm2 = vcmp.lt.s32.totalorder %v5757_v56, 3 }
 0x534   :  { %v5763_v25 = vor.u32 %v5762_v29, %v5761_v21  ;;  %v5766_v28 = vor.u32 %v5765_v20, %v5764_v30  ;;  %v5769_v49 = vor.u32 %v5768_v23, %v5767_v7  ;;  %v5772_v14 = vor.u32 %v5771_v33, %v5770_v4 }
 0x535   :  { %v5775_v27 = vor.u32 %v5774_v44, %v5773_v53  ;;  %vm5779_vm8 = vcmp.lt.s32.totalorder %v5757_v56, 4  ;;  %vm5859_vm11 = vcmp.gt.s32.totalorder %v5858_v15, 0  ;;  %v5703_v21 = vshll.u32 %v15144_v46, 30 }
 0x536   :  { %v5784_v16 = vsel %vm5776_vm3, %v5763_v25, %v5766_v28  ;;  %v5781_v55 = vsel %vm5779_vm8, %v5769_v49, 2102212464  ;;  %v5785_v54 = vsel %vm5779_vm8, %v5772_v14, 920167782  ;;  %v5788_v41 = vsel %vm5776_vm3, %v5766_v28, %v5769_v49 }
 0x537   :  { %v5789_v58 = vsel %vm5779_vm8, %v5775_v27, 1326507024  ;;  %vm5777_vm10 = vcmp.lt.s32.totalorder %v5757_v56, 2  ;;  %v5786_v30 = vsel %vm5778_vm2, %v5769_v49, %v5785_v54  ;;  %v18268_v7 = vand.u32 2147483647, %v15057_v40 }
 0x538   :  { %v5790_v22 = vsel %vm5778_vm2, %v5772_v14, %v5789_v58  ;;  %v5787_v29 = vsel %vm5777_vm10, %v5784_v16, %v5786_v30  ;;  %v5860_v23 = vsel %vm5859_vm11, %v5858_v15, 0  ;;  %v5780_v33 = vsel %vm5776_vm3, %v5760_v2, %v5763_v25 }
 0x539   :  { %v5791_v20 = vsel %vm5777_vm10, %v5788_v41, %v5790_v22  ;;  %v5855_v4 = vand.u32 8388607, %v18268_v7  ;;  %v5782_v53 = vsel %vm5778_vm2, %v5766_v28, %v5781_v55  ;;  %vm5538_vm14 = vcmp.lt.s32.totalorder %v14740_v10, 0 }
 0x53a   :  { %v15161_v27 = vmul.u32.u64.low %v15134_v12, %v5791_v20  ;;  %v15162_v44 = vmul.u32.u64.high %v15134_v12, %v5791_v20, %v15161_v27  ;;  %v15166_v58 = vmul.u32.u64.low %v15134_v12, %v5787_v29  ;;  %v15167_v54 = vmul.u32.u64.high %v15134_v12, %v5787_v29, %v15166_v58 }
 0x53b   :  { %v5862_v16 = vand.u32 31, %v5860_v23  ;;  %v5955_v14 = vand.u32 2139095040, %v15129_v26  ;;  %v15175_v15 = vsel %vm15028_vm1, %v14682_v38, %v15112_v50  ;;  %v15177_v25 = vor.u32 %v5506_v35, %v5505_v6 }
 0x53c   :  { %v5622_v28 = vsub.s32 4, %v14966_v47  ;;  %v15180_v2 = vsub.s32 %v5700_v62, %v5703_v21  ;;  %v15182_v49 = vor.u32 4788187, %v5510_v61  ;;  %v5609_v55 = vshll.u32 %v14993_v13, %v15084_v37 }
 0x53d   :  { %v5783_v41 = vsel %vm5777_vm10, %v5780_v33, %v5782_v53  ;;  %v5863_v30 = vsub.s32 32, %v5862_v16  ;;  %v5610_v22 = vshrl.u32 %v15105_v24, %v5608_v63  ;;  %v15188_v29 = vor.u32 4788187, %v5614_v52 }
 0x53e   :  { %vm5801_vm1 = vc.u32 %v15162_v44, %v15166_v58  ;;  %v5856_v0 = vor.u32 8388608, %v5855_v4  ;;  %v5802_v50 = vadd.s32 1, %v15167_v54  ;;  %v5956_v62 = vshrl.u32 %v5955_v14, 23 }
 0x53f   :  { %v5866_v6 = vshrl.u32 %v17830_v59, %v5863_v30  ;;  %v5869_v35 = vshrl.u32 %v17871_v39, %v5863_v30  ;;  %v5706_v13 = vsub.s32 0, %v15180_v2  ;;  %v5799_v37 = vmul.u32 %v15134_v12, %v5783_v41 }
 0x540   :  { %v5872_v61 = vshrl.u32 %v17870_v42, %v5863_v30  ;;  %v5875_v24 = vshrl.u32 %v17837_v36, %v5863_v30  ;;  %v5803_v63 = vsel %vm5801_vm1, %v5802_v50, %v15167_v54  ;;  %v5865_v52 = vshll.u32 %v17841_v8, %v5862_v16 }
 0x541   :  { %v5868_v56 = vshll.u32 %v17830_v59, %v5862_v16  ;;  %v5874_v21 = vshll.u32 %v17870_v42, %v5862_v16  ;;  %v5804_v20 = vadd.s32 %v5803_v63, %v5799_v37  ;;  %v5861_v7 = vshrl.u32 %v5860_v23, 5 }
 0x542   :  { %v5871_v4 = vshll.u32 %v17871_v39, %v5862_v16  ;;  %v5877_v33 = vshll.u32 %v17837_v36, %v5862_v16  ;;  %v18269_v12 = vand.u32 2147483647, %v14740_v10  ;;  %v5867_v27 = vor.u32 %v5866_v6, %v5865_v52 }
 0x543   :  { %v5870_v54 = vor.u32 %v5869_v35, %v5868_v56  ;;  %v5876_v14 = vor.u32 %v5875_v24, %v5874_v21  ;;  %v5878_v41 = vshrl.u32 %v17838_v9, %v5863_v30  ;;  %v5512_v50 = vand.u32 2147483647, %v15182_v49 }
 0x544   :  { %vm15207_vm15 = vcmp.le.f32.partialorder %v18269_v12, 0.7853982  ;;  %v5623_v23 = vsel %vm5538_vm14, %v5622_v28, %v14966_v47  ;;  %v5805_v37 = vadd.s32 536870912, %v5804_v20  ;;  %v5873_v63 = vor.u32 %v5872_v61, %v5871_v4 }
 0x545   :  { %v5611_v16 = vor.u32 %v5610_v22, %v5609_v55  ;;  %v5616_v46 = vand.u32 2147483647, %v15188_v29  ;;  %v5879_v12 = vor.u32 %v5878_v41, %v5877_v33  ;;  %v8247_v38 = vadd.s32 4294967169, %v5956_v62 }
 0x546   :  { %vm17761_vm4 = vcmp.lt.s32.totalorder %v14633_v43, 0  ;;  %v15218_v6 = vshrl.u32 %v5805_v37, 30  ;;  %vm5880_vm3 = vcmp.lt.s32.totalorder %v5861_v7, 1  ;;  %vm5883_vm2 = vcmp.lt.s32.totalorder %v5861_v7, 4  ;;  %v15233_v37 = vpop.f32.mrb[56].mxu0  ;;  %v18276_v43 = vld [vmem:[#allocation46_spill] sm:$0xff] }
 0x547   :  { %v5896_v35 = vshll.u32 %v5856_v0, 8  ;;  %v8236_v49 = vmin.u32 %v5706_v13, %v15180_v2  ;;  %v5864_v24 = vshrl.u32 %v17841_v8, %v5863_v30  ;;  %v5888_v47 = vsel %vm5880_vm3, %v5867_v27, %v5870_v54 }
 0x548   :  { %v5889_v28 = vsel %vm5883_vm2, %v5876_v14, 920167782  ;;  %v5807_v55 = vshll.u32 %v15218_v6, 30  ;;  %vm5881_vm8 = vcmp.lt.s32.totalorder %v5861_v7, 2  ;;  %vm5882_vm11 = vcmp.lt.s32.totalorder %v5861_v7, 3 }
 0x549   :  { %v5885_v22 = vsel %vm5883_vm2, %v5873_v63, 2102212464  ;;  %v5890_v29 = vsel %vm5882_vm11, %v5873_v63, %v5889_v28  ;;  %v5892_v62 = vsel %vm5880_vm3, %v5870_v54, %v5873_v63  ;;  %v5893_v61 = vsel %vm5883_vm2, %v5879_v12, 1326507024 }
 0x54a   :  { %v5962_v52 = vadd.s32 1, %v8247_v38  ;;  %v5618_v56 = vcvt.s32.f32 %v5611_v16  ;;  %v15225_v21 = vsub.s32 %v5804_v20, %v5807_v55  ;;  %v5884_v0 = vsel %vm5880_vm3, %v5864_v24, %v5867_v27  ;;  %v15239_v16 = vpop.f32.mrb[57].mxu0 }
 0x54b   :  { %v5891_v30 = vsel %vm5881_vm8, %v5888_v47, %v5890_v29  ;;  %v5886_v13 = vsel %vm5882_vm11, %v5870_v54, %v5885_v22  ;;  %v5894_v4 = vsel %vm5882_vm11, %v5876_v14, %v5893_v61  ;;  %v5625_v63 = vsel %vm15207_vm15, 0, %v5623_v23 }
 0x54c   :  { %v15229_v33 = vmul.u32.u64.low %v5896_v35, %v5891_v30  ;;  %v15230_v41 = vmul.u32.u64.high %v5896_v35, %v5891_v30, %v15229_v33  ;;  %v5708_v12 = vclz %v8236_v49  ;;  %v5810_v38 = vsub.s32 0, %v15225_v21 }
 0x54d   :  { %v5895_v20 = vsel %vm5881_vm8, %v5892_v62, %v5894_v4  ;;  %v5619_v27 = vmul.f32 %v5618_v56, %v5616_v46  ;;  %vm5963_vm10 = vcmp.gt.s32.totalorder %v5962_v52, 0  ;;  %v5887_v47 = vsel %vm5881_vm8, %v5884_v0, %v5886_v13 }
 0x54e   :  { %v15241_v24 = vmul.u32.u64.low %v5896_v35, %v5895_v20  ;;  %v15242_v54 = vmul.u32.u64.high %v5896_v35, %v5895_v20, %v15241_v24  ;;  %v8240_v14 = vmin.u32 %v5810_v38, %v15225_v21  ;;  %v17753_v28 = vand.u32 2147483647, %v15129_v26 }
 0x54f   :  { %v5964_v55 = vsel %vm5963_vm10, %v5962_v52, 0  ;;  %v18272_v23 = vxor.u32 2147483648, %v15041_v18  ;;  %8838 = vcosq.f32 %v15175_v15  ;;  %v5906_v46 = vadd.s32 1, %v15230_v41 }
 0x550   :  { %v5966_v22 = vand.u32 31, %v5964_v55  ;;  %8840 = vsinq.f32 %v15175_v15  ;;  %v5514_v7 = vcvt.s32.f32 %v15177_v25  ;;  %v15258_v29 = vadd.s32 3, %v5625_v63 }
 0x551   :  { %v15252_v49 = vsel %vm17761_vm4, %v18272_v23, %v15041_v18  ;;  %v8237_v62 = vadd.s32 4294967294, %v5708_v12  ;;  %v5812_v61 = vclz %v8240_v14  ;;  %v5903_v52 = vmul.u32 %v5896_v35, %v5887_v47 }
 0x552   :  { %18273 = vst [vmem:[#allocation20_spill] sm:$0xff] %v15252_v49  ;;  %18274 = vst [vmem:[#allocation17_spill] sm:$0xff] %v15258_v29  ;;  %vm5905_vm1 = vc.u32 %v15242_v54, %v15229_v33  ;;  %v5967_v56 = vsub.s32 32, %v5966_v22  ;;  %v15262_v18 = vmul.f32 %v5514_v7, %v5512_v50  ;;  %v5620_v0 = vxor.u32 2147483648, %v5619_v27 }
 0x553   :  { %v5907_v30 = vsel %vm5905_vm1, %v5906_v46, %v15230_v41  ;;  %v5959_v13 = vand.u32 8388607, %v17753_v28  ;;  %v5969_v25 = vshll.u32 %v17841_v8, %v5966_v22  ;;  %v5972_v35 = vshll.u32 %v17830_v59, %v5966_v22 }
 0x554   :  { %v5908_v15 = vadd.s32 %v5907_v30, %v5903_v52  ;;  %v5970_v4 = vshrl.u32 %v17830_v59, %v5967_v56  ;;  %v5973_v63 = vshrl.u32 %v17871_v39, %v5967_v56  ;;  %v5975_v12 = vshll.u32 %v17871_v39, %v5966_v22 }
 0x555   :  { %v5976_v50 = vshrl.u32 %v17870_v42, %v5967_v56  ;;  %v5979_v38 = vshrl.u32 %v17837_v36, %v5967_v56  ;;  %vm8238_vm3 = vcmp.lt.s32.totalorder %v8237_v62, 0  ;;  %v8241_v41 = vadd.s32 4294967294, %v5812_v61 }
 0x556   :  { %v5909_v20 = vadd.s32 536870912, %v5908_v15  ;;  %v5978_v24 = vshll.u32 %v17870_v42, %v5966_v22  ;;  %v5965_v14 = vshrl.u32 %v5964_v55, 5  ;;  %v5971_v47 = vor.u32 %v5970_v4, %v5969_v25 }
 0x557   :  { %v5974_v23 = vor.u32 %v5973_v63, %v5972_v35  ;;  %v5977_v46 = vor.u32 %v5976_v50, %v5975_v12  ;;  %v5981_v30 = vshll.u32 %v17837_v36, %v5966_v22  ;;  %v5982_v28 = vshrl.u32 %v17838_v9, %v5967_v56 }
 0x558   :  { %v15275_v7 = vshrl.u32 %v5909_v20, 30  ;;  %v5980_v52 = vor.u32 %v5979_v38, %v5978_v24  ;;  %v15282_v49 = vsel %vm5538_vm14, %v5620_v0, %v5619_v27  ;;  %v5960_v61 = vor.u32 8388608, %v5959_v13 }
 0x559   :  { %v1470_v60 = vand.u32 3, %v18276_v43  ;;  %v15285_v55 = vpop.eup %8838  ;;  %v15288_v25 = vsel %vm8238_vm3, 0, %v8237_v62  ;;  %vm8242_vm2 = vcmp.lt.s32.totalorder %v8241_v41, 0  ;;  %v5983_v22 = vor.u32 %v5982_v28, %v5981_v30 }
 0x55a   :  { %18275 = vst [vmem:[#allocation33_spill] sm:$0xff] %v15275_v7  ;;  %18277 = vst [vmem:[#allocation45_spill] sm:$0xff] %v15285_v55  ;;  %v5911_v4 = vshll.u32 %v15275_v7, 30  ;;  %v15291_v63 = vpop.eup %8840  ;;  %v5968_v35 = vshrl.u32 %v17841_v8, %v5967_v56  ;;  %vm5984_vm8 = vcmp.lt.s32.totalorder %v5965_v14, 1  ;;  %vm5986_vm11 = vcmp.lt.s32.totalorder %v5965_v14, 3 }
 0x55b   :  { %18278 = vst [vmem:[#allocation46_spill] sm:$0xff] %v15291_v63  ;;  %vm5987_vm14 = vcmp.lt.s32.totalorder %v5965_v14, 4  ;;  %v5992_v43 = vsel %vm5984_vm8, %v5971_v47, %v5974_v23  ;;  %v15296_v12 = vsel %vm8242_vm2, 0, %v8241_v41  ;;  %vm5985_vm10 = vcmp.lt.s32.totalorder %v5965_v14, 2  ;;  %v18279_v41 = vld [vmem:[#allocation52_spill] sm:$0xff]  ;;  %v18280_v63 = vld [vmem:[#allocation34_spill] sm:$0xff] }
 0x55c   :  { %v15294_v27 = vsub.s32 %v5908_v15, %v5911_v4  ;;  %v5989_v0 = vsel %vm5987_vm14, %v5977_v46, 2102212464  ;;  %v5993_v13 = vsel %vm5987_vm14, %v5980_v52, 920167782  ;;  %v6000_v50 = vshll.u32 %v5960_v61, 8 }
 0x55d   :  { %v5994_v62 = vsel %vm5986_vm11, %v5977_v46, %v5993_v13  ;;  %v5988_v38 = vsel %vm5984_vm8, %v5968_v35, %v5971_v47  ;;  %v5996_v20 = vsel %vm5984_vm8, %v5974_v23, %v5977_v46  ;;  %v5997_v24 = vsel %vm5987_vm14, %v5983_v22, 1326507024  ;;  %v18281_v46 = vld [vmem:[#allocation30_spill] sm:$0xff]  ;;  %v18282_v22 = vld [vmem:[#allocation56_spill] sm:$0xff] }
 0x55e   :  { %v5995_v28 = vsel %vm5985_vm10, %v5992_v43, %v5994_v62  ;;  %v5990_v30 = vsel %vm5986_vm11, %v5974_v23, %v5989_v0  ;;  %v5998_v56 = vsel %vm5986_vm11, %v5980_v52, %v5997_v24  ;;  %v5914_v15 = vsub.s32 0, %v15294_v27  ;;  %v18283_v43 = vld [vmem:[#allocation62_spill] sm:$0xff] }
 0x55f   :  { %v15299_v29 = vmul.u32.u64.low %v6000_v50, %v5995_v28  ;;  %v15300_v7 = vmul.u32.u64.high %v6000_v50, %v5995_v28, %v15299_v29  ;;  %v5999_v4 = vsel %vm5985_vm10, %v5996_v20, %v5998_v56  ;;  %v1473_v55 = vxor.u32 2147483648, %v18279_v41  ;;  %v18284_v20 = vld [vmem:[#allocation59_spill] sm:$0xff] }
 0x560   :  { %v1476_v13 = vxor.u32 2147483648, %v18280_v63  ;;  %v5716_v47 = vsub.s32 4294967266, %v15288_v25  ;;  %v15308_v61 = vmul.u32.u64.low %v6000_v50, %v5999_v4  ;;  %v15309_v35 = vmul.u32.u64.high %v6000_v50, %v5999_v4, %v15308_v61 }
 0x561   :  { %vm1468_vm1 = vweird.f32 %v18281_v46  ;;  %v5820_v23 = vsub.s32 4294967266, %v15296_v12  ;;  %v5991_v52 = vsel %vm5985_vm10, %v5988_v38, %v5990_v30  ;;  %v1678_v0 = vand.u32 3, %v18282_v22 }
 0x562   :  { %v1681_v62 = vxor.u32 2147483648, %v18283_v43  ;;  %vm17811_vm3 = vcmp.lt.s32.totalorder %v14686_v31, 0  ;;  %v6010_v28 = vadd.s32 1, %v15300_v7  ;;  %vm1472_vm2 = vcmp.eq.s32.totalorder %v1470_v60, 0 }
 0x563   :  { %vm1475_vm8 = vcmp.eq.s32.totalorder %v1470_v60, 2  ;;  %v1684_v24 = vxor.u32 2147483648, %v18284_v20  ;;  %v8244_v56 = vmin.u32 %v5914_v15, %v15294_v27  ;;  %vm1471_vm11 = vcmp.lt.s32.totalorder %v1470_v60, 2 }
 0x564   :  { %v1474_v4 = vsel %vm1472_vm2, %v18280_v63, %v1473_v55  ;;  %v1477_v14 = vsel %vm1475_vm8, %v1476_v13, %v18279_v41  ;;  %v5800_v38 = vadd.s32 %v15166_v58, %v15162_v44  ;;  %v6007_v30 = vmul.u32 %v6000_v50, %v5991_v52  ;;  %v18285_v44 = vld [vmem:[#allocation35_spill] sm:$0xff]  ;;  %v18290_v52 = vld [vmem:[#allocation37_spill] sm:$0xff] }
 0x565   :  { %vm6009_vm14 = vc.u32 %v15309_v35, %v15299_v29  ;;  %vm1680_vm10 = vcmp.eq.s32.totalorder %v1678_v0, 0  ;;  %v5821_v61 = vadd.s32 127, %v5820_v23  ;;  %vm1683_vm4 = vcmp.eq.s32.totalorder %v1678_v0, 2  ;;  %v18286_v13 = vld [vmem:[#allocation23_spill] sm:$0xff] }
 0x566   :  { %v6011_v22 = vsel %vm6009_vm14, %v6010_v28, %v15300_v7  ;;  %v1682_v11 = vsel %vm1680_vm10, %v18284_v20, %v1681_v62  ;;  %v5717_v15 = vadd.s32 127, %v5716_v47  ;;  %v1478_v32 = vsel %vm1471_vm11, %v1474_v4, %v1477_v14  ;;  %v18291_v20 = vld [vmem:[#allocation47_spill] sm:$0xff] }
 0x567   :  { %v6012_v60 = vadd.s32 %v6011_v22, %v6007_v30  ;;  %v1685_v55 = vsel %vm1683_vm4, %v1684_v24, %v18283_v43  ;;  %v5816_v63 = vsub.s32 32, %v15296_v12  ;;  %v5916_v41 = vclz %v8244_v56 }
 0x568   :  { %vm1676_vm2 = vweird.f32 %v18285_v44  ;;  %vm1679_vm8 = vcmp.lt.s32.totalorder %v1678_v0, 2  ;;  %v18287_v23 = vand.u32 2147483647, %v18286_v13  ;;  %v1358_v47 = vsub.s32 4, %v18290_v52 }
 0x569   :  { %v6013_v58 = vadd.s32 536870912, %v6012_v60  ;;  %v1686_v50 = vsel %vm1679_vm8, %v1682_v11, %v1685_v55  ;;  %v5822_v62 = vshll.u32 %v5821_v61, 23  ;;  %v1479_v43 = vsel %vm1468_vm1, nan, %v1478_v32 }
 0x56a   :  { %vm15333_vm12 = vcmp.le.f32.partialorder %v18287_v23, 0.7853982  ;;  %v1687_v28 = vsel %vm1676_vm2, nan, %v1686_v50  ;;  %vm18292_vm4 = vcmp.lt.s32.totalorder %v18286_v13, 0  ;;  %v18293_v4 = vxor.u32 2147483648, %v15262_v18 }
 0x56b   :  { %v1360_v0 = vsel %vm15333_vm12, %v18286_v13, %v18291_v20  ;;  %v15344_v24 = vshrl.u32 %v6013_v58, 30  ;;  %v7165_v11 = vpack.c.bf16 %v1687_v28, %v1479_v43  ;;  %v1359_v56 = vsel %vm18292_vm4, %v1358_v47, %v18290_v52  ;;  %v18295_v58 = vld [vmem:[#allocation32_spill] sm:$0xff]  ;;  %v18300_v52 = vld [vmem:[#allocation57_spill] sm:$0xff]  ;;  %v15385_v47 = vpop.f32.mrb[58].mxu0 }
 0x56c   :  { %8842 = vcosq.f32 %v1360_v0  ;;  %v15354_v32 = vsel %vm17811_vm3, %v18293_v4, %v15262_v18  ;;  %v5712_v46 = vsub.s32 32, %v15288_v25  ;;  %v5718_v14 = vshll.u32 %v5717_v15, 23 }
 0x56d   :  { %18294 = vst [vmem:[#allocation52_spill] sm:$0xff] %v15354_v32  ;;  %8844 = vsinq.f32 %v1360_v0  ;;  %v5818_v30 = vshrl.u32 %v5800_v38, %v5816_v63  ;;  %v8245_v61 = vadd.s32 4294967294, %v5916_v41  ;;  %v6015_v22 = vshll.u32 %v15344_v24, 30  ;;  %8303 = vmatprep.mubr.msk.bf16.mxu1 %vm17813_vm5, %v7165_v11  ;;  %v18299_v63 = vld [vmem:[#allocation28_spill] sm:$0xff] }
 0x56e   :  { %v1361_v55 = vsel %vm15333_vm12, 0, %v1359_v56  ;;  %v5624_v44 = vsel %vm15207_vm15, %v14740_v10, %v15282_v49  ;;  %v5696_v18 = vadd.s32 %v15088_v51, %v15094_v45  ;;  %v18296_v15 = vand.u32 2147483647, %v18295_v58 }
 0x56f   :  { %v1566_v41 = vsub.s32 4, %v18299_v63  ;;  %v5817_v50 = vshll.u32 %v15225_v21, %v15296_v12  ;;  %v5823_v23 = vor.u32 4788187, %v5822_v62  ;;  %v15376_v7 = vsub.s32 %v6012_v60, %v6015_v22 }
 0x570   :  { %vm15369_vm1 = vcmp.le.f32.partialorder %v18296_v15, 0.7853982  ;;  %v5714_v51 = vshrl.u32 %v5696_v18, %v5712_v46  ;;  %v1365_v45 = vadd.s32 3, %v1361_v55  ;;  %vm18301_vm12 = vcmp.lt.s32.totalorder %v18295_v58, 0 }
 0x571   :  { %v1568_v53 = vsel %vm15369_vm1, %v18295_v58, %v18300_v52  ;;  %v1567_v49 = vsel %vm18301_vm12, %v1566_v41, %v18299_v63  ;;  %v5719_v43 = vor.u32 4788187, %v5718_v14  ;;  %v5819_v28 = vor.u32 %v5818_v30, %v5817_v50 }
 0x572   :  { %8846 = vcosq.f32 %v1568_v53  ;;  %vm8246_vm15 = vcmp.lt.s32.totalorder %v8245_v61, 0  ;;  %v6018_v21 = vsub.s32 0, %v15376_v7  ;;  %v5713_v12 = vshll.u32 %v15180_v2, %v15288_v25 }
 0x573   :  { %v5830_v60 = vsub.s32 4, %v15218_v6  ;;  %v1569_v62 = vsel %vm15369_vm1, 0, %v1567_v49  ;;  %8848 = vsinq.f32 %v1568_v53  ;;  %vm5746_vm11 = vcmp.lt.s32.totalorder %v15048_v34, 0 }
 0x574   :  { %v5824_v20 = vand.u32 2147483647, %v5823_v23  ;;  %v8248_v0 = vmin.u32 %v6018_v21, %v15376_v7  ;;  %v15397_v11 = vadd.f32 %v15003_v1, %v17873_v5  ;;  %v5715_v56 = vor.u32 %v5714_v51, %v5713_v12 }
 0x575   :  { %v18303_v4 = vand.u32 2147483647, %v15048_v34  ;;  %v15405_v25 = vsel %vm8246_vm15, 0, %v8245_v61  ;;  %v1366_v46 = vand.u32 3, %v1365_v45  ;;  %8850 = vcosq.f32 %v5624_v44 }
 0x576   :  { %18302 = vst [vmem:[#allocation34_spill] sm:$0xff] %v15397_v11  ;;  %v8843_v14 = vpop.eup %8842  ;;  %v5720_v30 = vand.u32 2147483647, %v5719_v43  ;;  %v5826_v22 = vcvt.s32.f32 %v5819_v28  ;;  %v1573_v55 = vadd.s32 3, %v1569_v62  ;;  %v15410_v1 = vsel %vm5746_vm11, %v5830_v60, %v15218_v6 }
 0x577   :  { %vm15401_vm14 = vcmp.le.f32.partialorder %v18303_v4, 0.7853982  ;;  %v8845_v18 = vpop.eup %8844  ;;  %v6020_v15 = vclz %v8248_v0  ;;  %v1372_v38 = vxor.u32 2147483648, %v8843_v14  ;;  %v6059_v63 = vand.u32 2139095040, %v15397_v11 }
 0x578   :  { %8852 = vsinq.f32 %v5624_v44  ;;  %v15413_v41 = vmul.f32 %v5826_v22, %v5824_v20  ;;  %v5924_v61 = vsub.s32 4294967266, %v15405_v25  ;;  %v1369_v50 = vxor.u32 2147483648, %v8845_v18 }
 0x579   :  { %v5722_v23 = vcvt.s32.f32 %v5715_v56  ;;  %vm1368_vm10 = vcmp.eq.s32.totalorder %v1366_v46, 0  ;;  %vm1371_vm2 = vcmp.eq.s32.totalorder %v1366_v46, 2  ;;  %v6060_v52 = vshrl.u32 %v6059_v63, 23 }
 0x57a   :  { %v1370_v6 = vsel %vm1368_vm10, %v8843_v14, %v1369_v50  ;;  %v1373_v51 = vsel %vm1371_vm2, %v1372_v38, %v8845_v18  ;;  %v1574_v45 = vand.u32 3, %v1573_v55  ;;  %v15423_v44 = vadd.s32 %v15229_v33, %v15242_v54 }
 0x57b   :  { %v15419_v43 = vmul.f32 %v5722_v23, %v5720_v30  ;;  %v8249_v28 = vadd.s32 4294967294, %v6020_v15  ;;  %v8251_v21 = vadd.s32 4294967169, %v6060_v52  ;;  %v15427_v62 = vadd.s32 127, %v5924_v61 }
 0x57c   :  { %v8847_v49 = vpop.eup %8846  ;;  %vm1367_vm8 = vcmp.lt.s32.totalorder %v1366_v46, 2  ;;  %vm1364_vm4 = vweird.f32 %v18286_v13  ;;  %vm1579_vm1 = vcmp.eq.s32.totalorder %v1574_v45, 2  ;;  %v17764_v33 = vand.u32 2147483647, %v15397_v11 }
 0x57d   :  { %v8849_v20 = vpop.eup %8848  ;;  %v1374_v0 = vsel %vm1367_vm8, %v1370_v6, %v1373_v51  ;;  %v1580_v56 = vxor.u32 2147483648, %v8847_v49  ;;  %v6066_v4 = vadd.s32 1, %v8251_v21  ;;  %v15433_v54 = vadd.f32 %v15146_v48, %v17936_v19 }
 0x57e   :  { %v1577_v14 = vxor.u32 2147483648, %v8849_v20  ;;  %vm8250_vm12 = vcmp.lt.s32.totalorder %v8249_v28, 0  ;;  %vm1576_vm15 = vcmp.eq.s32.totalorder %v1574_v45, 0  ;;  %v1375_v46 = vsel %vm1364_vm4, nan, %v1374_v0 }
 0x57f   :  { %18306 = vst [vmem:[#allocation30_spill] sm:$0xff] %v15433_v54  ;;  %v1581_v30 = vsel %vm1579_vm1, %v1580_v56, %v8849_v20  ;;  %vm6067_vm10 = vcmp.gt.s32.totalorder %v6066_v4, 0  ;;  %v15435_v22 = vpop.eup %8850  ;;  %vm1575_vm2 = vcmp.lt.s32.totalorder %v1574_v45, 2  ;;  %vm1572_vm8 = vweird.f32 %v18295_v58 }
 0x580   :  { %18307 = vst [vmem:[#allocation56_spill] sm:$0xff] %v15435_v22  ;;  %v1578_v55 = vsel %vm1576_vm15, %v8847_v49, %v1577_v14  ;;  %v6068_v18 = vsel %vm6067_vm10, %v6066_v4, 0  ;;  %v15440_v63 = vadd.f32 %v15233_v37, %v17873_v5  ;;  %v15444_v61 = vsel %vm8250_vm12, 0, %v8249_v28 }
 0x581   :  { %v1582_v15 = vsel %vm1575_vm2, %v1578_v55, %v1581_v30  ;;  %v6070_v38 = vand.u32 31, %v6068_v18  ;;  %v6063_v23 = vand.u32 8388607, %v17764_v33  ;;  %v7104_v6 = vsel %vm17814_vm7, %v1375_v46, %v18286_v13 }
 0x582   :  { %18308 = vst [vmem:[#allocation62_spill] sm:$0xff] %v15440_v63  ;;  %v15442_v48 = vpop.eup %8852  ;;  %v1583_v50 = vsel %vm1572_vm8, nan, %v1582_v15  ;;  %v6163_v45 = vand.u32 2139095040, %v15433_v54  ;;  %v6069_v28 = vshrl.u32 %v6068_v18, 5  ;;  %vm5954_vm8 = vcmp.lt.s32.totalorder %v15129_v26, 0 }
 0x583   :  { %v7106_v51 = vsel %vm17814_vm7, %v1583_v50, %v18295_v58  ;;  %v6071_v37 = vsub.s32 32, %v6070_v38  ;;  %v6073_v21 = vshll.u32 %v17841_v8, %v6070_v38  ;;  %v6076_v20 = vshll.u32 %v17830_v59, %v6070_v38 }
 0x584   :  { %v7164_v49 = vpack.c.bf16 %v7106_v51, %v7104_v6  ;;  %v6079_v4 = vshll.u32 %v17871_v39, %v6070_v38  ;;  %v6082_v58 = vshll.u32 %v17870_v42, %v6070_v38  ;;  %v6085_v30 = vshll.u32 %v17837_v36, %v6070_v38 }
 0x585   :  { %v6074_v0 = vshrl.u32 %v17830_v59, %v6071_v37  ;;  %v6077_v56 = vshrl.u32 %v17871_v39, %v6071_v37  ;;  %v6080_v13 = vshrl.u32 %v17870_v42, %v6071_v37  ;;  %v6083_v14 = vshrl.u32 %v17837_v36, %v6071_v37 }
 0x586   :  { %7369 = vmatmul.mubr.bf16.gmra.mrb[8].mxu1 %v7164_v49  ;;  %v6086_v46 = vshrl.u32 %v17838_v9, %v6071_v37  ;;  %v6064_v55 = vor.u32 8388608, %v6063_v23  ;;  %v6028_v6 = vsub.s32 4294967266, %v15444_v61  ;;  %vm6088_vm4 = vcmp.lt.s32.totalorder %v6069_v28, 1 }
 0x587   :  { %v6075_v18 = vor.u32 %v6074_v0, %v6073_v21  ;;  %v6078_v15 = vor.u32 %v6077_v56, %v6076_v20  ;;  %v6081_v50 = vor.u32 %v6080_v13, %v6079_v4  ;;  %v6084_v51 = vor.u32 %v6083_v14, %v6082_v58 }
 0x588   :  { %v6087_v33 = vor.u32 %v6086_v46, %v6085_v30  ;;  %v6072_v53 = vshrl.u32 %v17841_v8, %v6071_v37  ;;  %vm6091_vm1 = vcmp.lt.s32.totalorder %v6069_v28, 4  ;;  %v6164_v12 = vshrl.u32 %v6163_v45, 23 }
 0x589   :  { %v6096_v49 = vsel %vm6088_vm4, %v6075_v18, %v6078_v15  ;;  %vm6090_vm12 = vcmp.lt.s32.totalorder %v6069_v28, 3  ;;  %v6093_v60 = vsel %vm6091_vm1, %v6081_v50, 2102212464  ;;  %v6097_v52 = vsel %vm6091_vm1, %v6084_v51, 920167782 }
 0x58a   :  { %v6100_v38 = vsel %vm6088_vm4, %v6078_v15, %v6081_v50  ;;  %vm6089_vm15 = vcmp.lt.s32.totalorder %v6069_v28, 2  ;;  %v6098_v32 = vsel %vm6090_vm12, %v6081_v50, %v6097_v52  ;;  %v6101_v23 = vsel %vm6091_vm1, %v6087_v33, 1326507024 }
 0x58b   :  { %v6104_v21 = vshll.u32 %v6064_v55, 8  ;;  %v6092_v20 = vsel %vm6088_vm4, %v6072_v53, %v6075_v18  ;;  %v6094_v0 = vsel %vm6090_vm12, %v6078_v15, %v6093_v60  ;;  %v6099_v56 = vsel %vm6089_vm15, %v6096_v49, %v6098_v32 }
 0x58c   :  { %v6102_v4 = vsel %vm6090_vm12, %v6084_v51, %v6101_v23  ;;  %v6024_v13 = vsub.s32 32, %v15444_v61  ;;  %v6029_v45 = vadd.s32 127, %v6028_v6  ;;  %v8255_v31 = vadd.s32 4294967169, %v6164_v12 }
 0x58d   :  { %v6103_v58 = vsel %vm6089_vm15, %v6100_v38, %v6102_v4  ;;  %v15469_v14 = vmul.u32.u64.low %v6104_v21, %v6099_v56  ;;  %v15470_v37 = vmul.u32.u64.high %v6104_v21, %v6099_v56, %v15469_v14  ;;  %v6008_v33 = vadd.s32 %v15299_v29, %v15309_v35 }
 0x58e   :  { %v15473_v30 = vmul.u32.u64.low %v6104_v21, %v6103_v58  ;;  %v15474_v46 = vmul.u32.u64.high %v6104_v21, %v6103_v58, %v15473_v30  ;;  %v6095_v52 = vsel %vm6089_vm15, %v6092_v20, %v6094_v0  ;;  %v18309_v53 = vand.u32 2147483647, %v15433_v54 }
 0x58f   :  { %v6267_v60 = vand.u32 2139095040, %v15440_v63  ;;  %v5921_v28 = vshll.u32 %v15294_v27, %v15405_v25  ;;  %v18310_v55 = vsub.s32 32, %v15405_v25  ;;  %v5926_v15 = vshll.u32 %v15427_v62, 23 }
 0x590   :  { %v6167_v32 = vand.u32 8388607, %v18309_v53  ;;  %v6170_v50 = vadd.s32 1, %v8255_v31  ;;  %v6025_v12 = vshll.u32 %v15376_v7, %v15444_v61  ;;  %v6026_v29 = vshrl.u32 %v6008_v33, %v6024_v13 }
 0x591   :  { %v5922_v18 = vshrl.u32 %v15423_v44, %v18310_v55  ;;  %v6114_v35 = vadd.s32 1, %v15470_v37  ;;  %v6268_v6 = vshrl.u32 %v6267_v60, 23  ;;  %v6030_v51 = vshll.u32 %v6029_v45, 23 }
 0x592   :  { %v6111_v49 = vmul.u32 %v6104_v21, %v6095_v52  ;;  %vm6113_vm10 = vc.u32 %v15474_v46, %v15469_v14  ;;  %vm6171_vm2 = vcmp.gt.s32.totalorder %v6170_v50, 0  ;;  %v6168_v25 = vor.u32 8388608, %v6167_v32 }
 0x593   :  { %v6115_v27 = vsel %vm6113_vm10, %v6114_v35, %v15470_v37  ;;  %v6172_v44 = vsel %vm6171_vm2, %v6170_v50, 0  ;;  %v8259_v38 = vadd.s32 4294967169, %v6268_v6  ;;  %v15493_v62 = vor.u32 %v5922_v18, %v5921_v28 }
 0x594   :  { %v6038_v31 = vsub.s32 4, %v15344_v24  ;;  %v6116_v7 = vadd.s32 %v6115_v27, %v6111_v49  ;;  %v6174_v61 = vand.u32 31, %v6172_v44  ;;  %v15496_v23 = vor.u32 4788187, %v5926_v15 }
 0x595   :  { %v15498_v20 = vor.u32 %v6026_v29, %v6025_v12  ;;  %v17767_v21 = vand.u32 2147483647, %v15440_v63  ;;  %v15503_v0 = vadd.f32 %v15239_v16, %v17936_v19  ;;  %v15505_v56 = vor.u32 4788187, %v6030_v51  ;;  %v15522_v29 = vpop.f32.mrb[59].mxu0 }
 0x596   :  { %v6117_v4 = vadd.s32 536870912, %v6116_v7  ;;  %v6173_v13 = vshrl.u32 %v6172_v44, 5  ;;  %v6175_v58 = vsub.s32 32, %v6174_v61  ;;  %v6177_v37 = vshll.u32 %v17841_v8, %v6174_v61 }
 0x597   :  { %v6180_v45 = vshll.u32 %v17830_v59, %v6174_v61  ;;  %v15509_v30 = vshll.u32 %v6168_v25, 8  ;;  %v6274_v33 = vadd.s32 1, %v8259_v38  ;;  %v6183_v32 = vshll.u32 %v17871_v39, %v6174_v61 }
 0x598   :  { %v6178_v52 = vshrl.u32 %v17830_v59, %v6175_v58  ;;  %v6181_v53 = vshrl.u32 %v17871_v39, %v6175_v58  ;;  %v6186_v16 = vshll.u32 %v17870_v42, %v6174_v61  ;;  %v6184_v60 = vshrl.u32 %v17870_v42, %v6175_v58 }
 0x599   :  { %v6187_v28 = vshrl.u32 %v17837_v36, %v6175_v58  ;;  %v6189_v55 = vshll.u32 %v17837_v36, %v6174_v61  ;;  %v6190_v18 = vshrl.u32 %v17838_v9, %v6175_v58  ;;  %v15520_v15 = vshrl.u32 %v6117_v4, 30 }
 0x59a   :  { %v6179_v50 = vor.u32 %v6178_v52, %v6177_v37  ;;  %v6182_v12 = vor.u32 %v6181_v53, %v6180_v45  ;;  %vm6192_vm4 = vcmp.lt.s32.totalorder %v6173_v13, 1  ;;  %v6176_v35 = vshrl.u32 %v17841_v8, %v6175_v58 }
 0x59b   :  { %18311 = vst [vmem:[#allocation59_spill] sm:$0xff] %v15520_v15  ;;  %v6185_v6 = vor.u32 %v6184_v60, %v6183_v32  ;;  %v6188_v51 = vor.u32 %v6187_v28, %v6186_v16  ;;  %v6191_v49 = vor.u32 %v6190_v18, %v6189_v55  ;;  %vm6194_vm1 = vcmp.lt.s32.totalorder %v6173_v13, 3 }
 0x59c   :  { %vm6195_vm12 = vcmp.lt.s32.totalorder %v6173_v13, 4  ;;  %v6200_v27 = vsel %vm6192_vm4, %v6179_v50, %v6182_v12  ;;  %vm6275_vm15 = vcmp.gt.s32.totalorder %v6274_v33, 0  ;;  %v6119_v4 = vshll.u32 %v15520_v15, 30 }
 0x59d   :  { %v6197_v25 = vsel %vm6195_vm12, %v6185_v6, 2102212464  ;;  %v6201_v44 = vsel %vm6195_vm12, %v6188_v51, 920167782  ;;  %v6204_v38 = vsel %vm6192_vm4, %v6182_v12, %v6185_v6  ;;  %v6205_v61 = vsel %vm6195_vm12, %v6191_v49, 1326507024 }
 0x59e   :  { %vm6193_vm10 = vcmp.lt.s32.totalorder %v6173_v13, 2  ;;  %v6202_v37 = vsel %vm6194_vm1, %v6185_v6, %v6201_v44  ;;  %v6206_v58 = vsel %vm6194_vm1, %v6188_v51, %v6205_v61  ;;  %v6271_v53 = vand.u32 8388607, %v17767_v21 }
 0x59f   :  { %v6203_v45 = vsel %vm6193_vm10, %v6200_v27, %v6202_v37  ;;  %v6207_v52 = vsel %vm6193_vm10, %v6204_v38, %v6206_v58  ;;  %v6276_v32 = vsel %vm6275_vm15, %v6274_v33, 0  ;;  %v6196_v16 = vsel %vm6192_vm4, %v6176_v35, %v6179_v50 }
 0x5a0   :  { %v6198_v60 = vsel %vm6194_vm1, %v6182_v12, %v6197_v25  ;;  %v15537_v28 = vmul.u32.u64.low %v15509_v30, %v6207_v52  ;;  %v15538_v55 = vmul.u32.u64.high %v15509_v30, %v6207_v52, %v15537_v28  ;;  %v18312_v18 = vand.u32 2147483647, %v15129_v26 }
 0x5a1   :  { %v15547_v51 = vmul.u32.u64.low %v15509_v30, %v6203_v45  ;;  %v15548_v49 = vmul.u32.u64.high %v15509_v30, %v6203_v45, %v15547_v51  ;;  %v6278_v33 = vand.u32 31, %v6276_v32  ;;  %v6371_v50 = vand.u32 2139095040, %v15503_v0 }
 0x5a2   :  { %vm15542_vm2 = vcmp.le.f32.partialorder %v18312_v18, 0.7853982  ;;  %v18315_v35 = vxor.u32 2147483648, %v15413_v41  ;;  %v5930_v25 = vcvt.s32.f32 %v15493_v62  ;;  %v15559_v44 = vsub.s32 %v6116_v7, %v6119_v4 }
 0x5a3   :  { %v5928_v38 = vand.u32 2147483647, %v15496_v23  ;;  %v15567_v61 = vsel %vm5954_vm8, %v6038_v31, %v15344_v24  ;;  %v6199_v37 = vsel %vm6193_vm10, %v6196_v16, %v6198_v60  ;;  %v6279_v58 = vsub.s32 32, %v6278_v33 }
 0x5a4   :  { %v5829_v27 = vsel %vm5746_vm11, %v18315_v35, %v15413_v41  ;;  %v6032_v45 = vand.u32 2147483647, %v15505_v56  ;;  %v6034_v41 = vcvt.s32.f32 %v15498_v20  ;;  %vm6217_vm11 = vc.u32 %v15538_v55, %v15547_v51 }
 0x5a5   :  { %v6272_v62 = vor.u32 8388608, %v6271_v53  ;;  %v6218_v7 = vadd.s32 1, %v15548_v49  ;;  %v6282_v23 = vshrl.u32 %v17830_v59, %v6279_v58  ;;  %v6285_v4 = vshrl.u32 %v17871_v39, %v6279_v58 }
 0x5a6   :  { %v6372_v52 = vshrl.u32 %v6371_v50, 23  ;;  %v6122_v24 = vsub.s32 0, %v15559_v44  ;;  %v6215_v31 = vmul.u32 %v15509_v30, %v6199_v37  ;;  %v6288_v13 = vshrl.u32 %v17870_v42, %v6279_v58 }
 0x5a7   :  { %v6291_v56 = vshrl.u32 %v17837_v36, %v6279_v58  ;;  %v6219_v20 = vsel %vm6217_vm11, %v6218_v7, %v15548_v49  ;;  %v6281_v16 = vshll.u32 %v17841_v8, %v6278_v33  ;;  %v6284_v53 = vshll.u32 %v17830_v59, %v6278_v33 }
 0x5a8   :  { %v6290_v60 = vshll.u32 %v17870_v42, %v6278_v33  ;;  %v6220_v28 = vadd.s32 %v6219_v20, %v6215_v31  ;;  %v6277_v18 = vshrl.u32 %v6276_v32, 5  ;;  %v6287_v50 = vshll.u32 %v17871_v39, %v6278_v33 }
 0x5a9   :  { %v6293_v35 = vshll.u32 %v17837_v36, %v6278_v33  ;;  %v6283_v21 = vor.u32 %v6282_v23, %v6281_v16  ;;  %v6286_v30 = vor.u32 %v6285_v4, %v6284_v53  ;;  %v6294_v12 = vshrl.u32 %v17838_v9, %v6279_v58 }
 0x5aa   :  { %v6292_v37 = vor.u32 %v6291_v56, %v6290_v60  ;;  %v5832_v49 = vsel %vm15401_vm14, %v15048_v34, %v5829_v27  ;;  %v6041_v7 = vsel %vm15542_vm2, 0, %v15567_v61  ;;  %v6221_v15 = vadd.s32 536870912, %v6220_v28 }
 0x5ab   :  { %v6289_v31 = vor.u32 %v6288_v13, %v6287_v50  ;;  %v5931_v32 = vmul.f32 %v5930_v25, %v5928_v38  ;;  %v6035_v20 = vmul.f32 %v6034_v41, %v6032_v45  ;;  %v6295_v10 = vor.u32 %v6294_v12, %v6293_v35  ;;  %v15611_v50 = vpop.f32.mrb[60].mxu0 }
 0x5ac   :  { %v8263_v22 = vadd.s32 4294967169, %v6372_v52  ;;  %v8252_v33 = vmin.u32 %v6122_v24, %v15559_v44  ;;  %v15595_v23 = vshrl.u32 %v6221_v15, 30  ;;  %vm6296_vm4 = vcmp.lt.s32.totalorder %v6277_v18, 1 }
 0x5ad   :  { %vm6299_vm1 = vcmp.lt.s32.totalorder %v6277_v18, 4  ;;  %vm17785_vm12 = vcmp.lt.s32.totalorder %v15016_v57, 0  ;;  %vm17784_vm15 = vcmp.lt.s32.totalorder %v15057_v40, 0  ;;  %v6280_v27 = vshrl.u32 %v17841_v8, %v6279_v58  ;;  %v18323_v40 = vld [vmem:[#allocation63_spill] sm:$0xff] }
 0x5ae   :  { %v6304_v61 = vsel %vm6296_vm4, %v6283_v21, %v6286_v30  ;;  %v6305_v4 = vsel %vm6299_vm1, %v6292_v37, 920167782  ;;  %v6312_v13 = vshll.u32 %v6272_v62, 8  ;;  %v6223_v25 = vshll.u32 %v15595_v23, 30 }
 0x5af   :  { %vm6297_vm10 = vcmp.lt.s32.totalorder %v6277_v18, 2  ;;  %vm6298_vm11 = vcmp.lt.s32.totalorder %v6277_v18, 3  ;;  %v6301_v12 = vsel %vm6299_vm1, %v6289_v31, 2102212464  ;;  %v6308_v15 = vsel %vm6296_vm4, %v6286_v30, %v6289_v31 }
 0x5b0   :  { %v6306_v38 = vsel %vm6298_vm11, %v6289_v31, %v6305_v4  ;;  %v6309_v45 = vsel %vm6299_vm1, %v6295_v10, 1326507024  ;;  %v6378_v41 = vadd.s32 1, %v8263_v22  ;;  %v6124_v52 = vclz %v8252_v33 }
 0x5b1   :  { %v15603_v24 = vsub.s32 %v6220_v28, %v6223_v25  ;;  %v6300_v56 = vsel %vm6296_vm4, %v6280_v27, %v6283_v21  ;;  %v6307_v58 = vsel %vm6297_vm10, %v6304_v61, %v6306_v38  ;;  %v6302_v16 = vsel %vm6298_vm11, %v6286_v30, %v6301_v12  ;;  %v15615_v28 = vpop.f32.mrb[61].mxu0 }
 0x5b2   :  { %v6310_v53 = vsel %vm6298_vm11, %v6292_v37, %v6309_v45  ;;  %v15607_v62 = vmul.u32.u64.low %v6312_v13, %v6307_v58  ;;  %v15608_v60 = vmul.u32.u64.high %v6312_v13, %v6307_v58, %v15607_v62  ;;  %v5932_v35 = vxor.u32 2147483648, %v5931_v32 }
 0x5b3   :  { %v6036_v4 = vxor.u32 2147483648, %v6035_v20  ;;  %v6226_v10 = vsub.s32 0, %v15603_v24  ;;  %v6311_v22 = vsel %vm6297_vm10, %v6308_v15, %v6310_v53  ;;  %v17773_v30 = vand.u32 2147483647, %v15503_v0 }
 0x5b4   :  { %v15617_v31 = vmul.u32.u64.low %v6312_v13, %v6311_v22  ;;  %v15618_v21 = vmul.u32.u64.high %v6312_v13, %v6311_v22, %v15617_v31  ;;  %vm6379_vm4 = vcmp.gt.s32.totalorder %v6378_v41, 0  ;;  %v8253_v37 = vadd.s32 4294967294, %v6124_v52 }
 0x5b5   :  { %v8256_v33 = vmin.u32 %v6226_v10, %v15603_v24  ;;  %v6303_v27 = vsel %vm6297_vm10, %v6300_v56, %v6302_v16  ;;  %v6380_v61 = vsel %vm6379_vm4, %v6378_v41, 0  ;;  %8854 = vcosq.f32 %v5832_v49 }
 0x5b6   :  { %v18316_v25 = vsel %vm15401_vm14, 0, %v15410_v1  ;;  %v6322_v38 = vadd.s32 1, %v15608_v60  ;;  %v6382_v15 = vand.u32 31, %v6380_v61  ;;  %v18318_v45 = vxor.u32 2147483648, %v15419_v43 }
 0x5b7   :  { %v15627_v12 = vadd.s32 3, %v18316_v25  ;;  %8856 = vsinq.f32 %v5832_v49  ;;  %v15639_v18 = vsel %vm17784_vm15, %v5932_v35, %v5931_v32  ;;  %v15641_v2 = vadd.s32 3, %v6041_v7 }
 0x5b8   :  { %v15635_v52 = vsel %vm17785_vm12, %v18318_v45, %v15419_v43  ;;  %18320 = vst [vmem:[#allocation37_spill] sm:$0xff] %v15639_v18  ;;  %v6228_v1 = vclz %v8256_v33  ;;  %v6319_v41 = vmul.u32 %v6312_v13, %v6303_v27  ;;  %vm6321_vm14 = vc.u32 %v15618_v21, %v15607_v62 }
 0x5b9   :  { %18317 = vst [vmem:[#allocation35_spill] sm:$0xff] %v15627_v12  ;;  %18319 = vst [vmem:[#allocation23_spill] sm:$0xff] %v15635_v52  ;;  %v6383_v56 = vsub.s32 32, %v6382_v15  ;;  %v15647_v58 = vsel %vm5954_vm8, %v6036_v4, %v6035_v20  ;;  %vm8254_vm1 = vcmp.lt.s32.totalorder %v8253_v37, 0  ;;  %v6323_v43 = vsel %vm6321_vm14, %v6322_v38, %v15608_v60 }
 0x5ba   :  { %18321 = vst [vmem:[#allocation47_spill] sm:$0xff] %v15641_v2  ;;  %v6375_v49 = vand.u32 8388607, %v17773_v30  ;;  %v6324_v32 = vadd.s32 %v6323_v43, %v6319_v41  ;;  %v6385_v7 = vshll.u32 %v17841_v8, %v6382_v15  ;;  %v6388_v53 = vshll.u32 %v17830_v59, %v6382_v15  ;;  %v18324_v2 = vld [vmem:[#allocation68_spill] sm:$0xff] }
 0x5bb   :  { %v6386_v16 = vshrl.u32 %v17830_v59, %v6383_v56  ;;  %v6389_v13 = vshrl.u32 %v17871_v39, %v6383_v56  ;;  %v6391_v35 = vshll.u32 %v17871_v39, %v6382_v15  ;;  %v6392_v20 = vshrl.u32 %v17870_v42, %v6383_v56 }
 0x5bc   :  { %v6395_v4 = vshrl.u32 %v17837_v36, %v6383_v56  ;;  %v15659_v10 = vsel %vm8254_vm1, 0, %v8253_v37  ;;  %v8257_v60 = vadd.s32 4294967294, %v6228_v1  ;;  %v6325_v22 = vadd.s32 536870912, %v6324_v32 }
 0x5bd   :  { %v6394_v31 = vshll.u32 %v17870_v42, %v6382_v15  ;;  %v6381_v33 = vshrl.u32 %v6380_v61, 5  ;;  %v6387_v27 = vor.u32 %v6386_v16, %v6385_v7  ;;  %v6390_v25 = vor.u32 %v6389_v13, %v6388_v53 }
 0x5be   :  { %v6393_v38 = vor.u32 %v6392_v20, %v6391_v35  ;;  %v15662_v45 = vshrl.u32 %v6325_v22, 30  ;;  %v6397_v43 = vshll.u32 %v17837_v36, %v6382_v15  ;;  %v6398_v30 = vshrl.u32 %v17838_v9, %v6383_v56 }
 0x5bf   :  { %v6396_v41 = vor.u32 %v6395_v4, %v6394_v31  ;;  %v6112_v18 = vadd.s32 %v15469_v14, %v15474_v46  ;;  %v6376_v37 = vor.u32 8388608, %v6375_v49  ;;  %v1886_v1 = vand.u32 3, %v18323_v40  ;;  %v15670_v57 = vpop.eup %8854 }
 0x5c0   :  { %18322 = vst [vmem:[#allocation32_spill] sm:$0xff] %v15662_v45  ;;  %v1889_v52 = vxor.u32 2147483648, %v18324_v2  ;;  %18325 = vst [vmem:[#allocation28_spill] sm:$0xff] %v15670_v57  ;;  %v6132_v61 = vsub.s32 4294967266, %v15659_v10  ;;  %vm8258_vm8 = vcmp.lt.s32.totalorder %v8257_v60, 0  ;;  %v6327_v7 = vshll.u32 %v15662_v45, 30 }
 0x5c1   :  { %v6399_v16 = vor.u32 %v6398_v30, %v6397_v43  ;;  %v15674_v13 = vpop.eup %8856  ;;  %v6384_v15 = vshrl.u32 %v17841_v8, %v6383_v56  ;;  %vm6400_vm10 = vcmp.lt.s32.totalorder %v6381_v33, 1  ;;  %vm6402_vm11 = vcmp.lt.s32.totalorder %v6381_v33, 3 }
 0x5c2   :  { %18326 = vst [vmem:[#allocation57_spill] sm:$0xff] %v15674_v13  ;;  %vm6403_vm4 = vcmp.lt.s32.totalorder %v6381_v33, 4  ;;  %v15677_v14 = vsub.s32 %v6324_v32, %v6327_v7  ;;  %v6408_v46 = vsel %vm6400_vm10, %v6387_v27, %v6390_v25  ;;  %v15679_v53 = vsel %vm8258_vm8, 0, %v8257_v60  ;;  %v18327_v60 = vld [vmem:[#allocation67_spill] sm:$0xff] }
 0x5c3   :  { %v6405_v40 = vsel %vm6403_vm4, %v6393_v38, 2102212464  ;;  %v6409_v49 = vsel %vm6403_vm4, %v6396_v41, 920167782  ;;  %vm6401_vm14 = vcmp.lt.s32.totalorder %v6381_v33, 2  ;;  %v6416_v20 = vshll.u32 %v6376_v37, 8 }
 0x5c4   :  { %v6410_v35 = vsel %vm6402_vm11, %v6393_v38, %v6409_v49  ;;  %v6404_v4 = vsel %vm6400_vm10, %v6384_v15, %v6387_v27  ;;  %v6412_v22 = vsel %vm6400_vm10, %v6390_v25, %v6393_v38  ;;  %v6413_v31 = vsel %vm6403_vm4, %v6399_v16, 1326507024  ;;  %v18328_v38 = vld [vmem:[#allocation26_spill] sm:$0xff]  ;;  %v18330_v49 = vld [vmem:[#allocation73_spill] sm:$0xff] }
 0x5c5   :  { %v6411_v30 = vsel %vm6401_vm14, %v6408_v46, %v6410_v35  ;;  %v6406_v43 = vsel %vm6402_vm11, %v6390_v25, %v6405_v40  ;;  %v6414_v56 = vsel %vm6402_vm11, %v6396_v41, %v6413_v31  ;;  %v6330_v32 = vsub.s32 0, %v15677_v14  ;;  %v18329_v16 = vld [vmem:[#allocation70_spill] sm:$0xff] }
 0x5c6   :  { %v15682_v45 = vmul.u32.u64.low %v6416_v20, %v6411_v30  ;;  %v15683_v34 = vmul.u32.u64.high %v6416_v20, %v6411_v30, %v15682_v45  ;;  %v6415_v7 = vsel %vm6401_vm14, %v6412_v22, %v6414_v56  ;;  %vm1887_vm1 = vcmp.lt.s32.totalorder %v1886_v1, 2  ;;  %v18331_v22 = vld [vmem:[#allocation72_spill] sm:$0xff] }
 0x5c7   :  { %v1892_v57 = vxor.u32 2147483648, %v18327_v60  ;;  %v6128_v37 = vsub.s32 32, %v15659_v10  ;;  %v6133_v27 = vadd.s32 127, %v6132_v61  ;;  %vm1884_vm8 = vweird.f32 %v18328_v38 }
 0x5c8   :  { %v15690_v15 = vmul.u32.u64.low %v6416_v20, %v6415_v7  ;;  %v15691_v46 = vmul.u32.u64.high %v6416_v20, %v6415_v7, %v15690_v15  ;;  %v6236_v25 = vsub.s32 4294967266, %v15679_v53  ;;  %v6407_v41 = vsel %vm6401_vm14, %v6404_v4, %v6406_v43 }
 0x5c9   :  { %v2094_v40 = vand.u32 3, %v18329_v16  ;;  %v2097_v35 = vxor.u32 2147483648, %v18330_v49  ;;  %v6426_v30 = vadd.s32 1, %v15683_v34  ;;  %vm1888_vm10 = vcmp.eq.s32.totalorder %v1886_v1, 0 }
 0x5ca   :  { %vm1891_vm11 = vcmp.eq.s32.totalorder %v1886_v1, 2  ;;  %v2100_v31 = vxor.u32 2147483648, %v18331_v22  ;;  %v6216_v61 = vadd.s32 %v15547_v51, %v15538_v55  ;;  %v8260_v56 = vmin.u32 %v6330_v32, %v15677_v14 }
 0x5cb   :  { %v1890_v7 = vsel %vm1888_vm10, %v18327_v60, %v1889_v52  ;;  %v1893_v33 = vsel %vm1891_vm11, %v1892_v57, %v18324_v2  ;;  %v6130_v4 = vshrl.u32 %v6112_v18, %v6128_v37  ;;  %v6423_v43 = vmul.u32 %v6416_v20, %v6407_v41  ;;  %v18332_v2 = vld [vmem:[#allocation27_spill] sm:$0xff]  ;;  %v18333_v60 = vld [vmem:[#allocation5_spill] sm:$0xff] }
 0x5cc   :  { %vm6425_vm4 = vc.u32 %v15691_v46, %v15682_v45  ;;  %vm2096_vm14 = vcmp.eq.s32.totalorder %v2094_v40, 0  ;;  %v6237_v15 = vadd.s32 127, %v6236_v25  ;;  %vm2099_vm15 = vcmp.eq.s32.totalorder %v2094_v40, 2 }
 0x5cd   :  { %v6427_v16 = vsel %vm6425_vm4, %v6426_v30, %v15683_v34  ;;  %v2098_v13 = vsel %vm2096_vm14, %v18331_v22, %v2097_v35  ;;  %v6134_v12 = vshll.u32 %v6133_v27, 23  ;;  %v1894_v51 = vsel %vm1887_vm1, %v1890_v7, %v1893_v33  ;;  %v18337_v27 = vld [vmem:[#allocation43_spill] sm:$0xff]  ;;  %v18338_v35 = vld [vmem:[#allocation65_spill] sm:$0xff]  ;;  %v15760_v34 = vpop.f32.mrb[62].mxu0 }
 0x5ce   :  { %v6428_v55 = vadd.s32 %v6427_v16, %v6423_v43  ;;  %v2101_v52 = vsel %vm2099_vm15, %v2100_v31, %v18330_v49  ;;  %v6232_v57 = vsub.s32 32, %v15679_v53  ;;  %v6332_v18 = vclz %v8260_v56 }
 0x5cf   :  { %vm2092_vm10 = vweird.f32 %v18332_v2  ;;  %vm2095_vm11 = vcmp.lt.s32.totalorder %v2094_v40, 2  ;;  %v18334_v37 = vand.u32 2147483647, %v18333_v60  ;;  %v1774_v25 = vsub.s32 4, %v18337_v27 }
 0x5d0   :  { %v6429_v20 = vadd.s32 536870912, %v6428_v55  ;;  %v2102_v32 = vsel %vm2095_vm11, %v2098_v13, %v2101_v52  ;;  %v6238_v1 = vshll.u32 %v6237_v15, 23  ;;  %v1895_v41 = vsel %vm1884_vm8, nan, %v1894_v51  ;;  %v18340_v52 = vld [vmem:[#allocation24_spill] sm:$0xff] }
 0x5d1   :  { %vm15715_vm4 = vcmp.le.f32.partialorder %v18334_v37, 0.7853982  ;;  %v2103_v49 = vsel %vm2092_vm10, nan, %v2102_v32  ;;  %vm18339_vm15 = vcmp.lt.s32.totalorder %v18333_v60, 0  ;;  %v6129_v31 = vshll.u32 %v15559_v44, %v15659_v10 }
 0x5d2   :  { %v1776_v40 = vsel %vm15715_vm4, %v18333_v60, %v18338_v35  ;;  %v15726_v30 = vshrl.u32 %v6429_v20, 30  ;;  %v7167_v13 = vpack.c.bf16 %v2103_v49, %v1895_v41  ;;  %v1775_v22 = vsel %vm18339_vm15, %v1774_v25, %v18337_v27  ;;  %v18345_v20 = vld [vmem:[#allocation61_spill] sm:$0xff] }
 0x5d3   :  { %8858 = vcosq.f32 %v1776_v40  ;;  %v6135_v56 = vor.u32 4788187, %v6134_v12  ;;  %v6234_v38 = vshrl.u32 %v6216_v61, %v6232_v57  ;;  %v6246_v7 = vsub.s32 4, %v15595_v23  ;;  %v18344_v12 = vld [vmem:[#allocation54_spill] sm:$0xff] }
 0x5d4   :  { %8860 = vsinq.f32 %v1776_v40  ;;  %v8261_v33 = vadd.s32 4294967294, %v6332_v18  ;;  %v6431_v43 = vshll.u32 %v15726_v30, 30  ;;  %8304 = vmatprep.mubr.msk.bf16.mxu1 %vm17813_vm5, %v7167_v13  ;;  %v1777_v15 = vsel %vm15715_vm4, 0, %v1775_v22 }
 0x5d5   :  { %v6233_v16 = vshll.u32 %v15603_v24, %v15679_v53  ;;  %v6239_v51 = vor.u32 4788187, %v6238_v1  ;;  %v18341_v2 = vand.u32 2147483647, %v18340_v52  ;;  %v1982_v10 = vsub.s32 4, %v18344_v12 }
 0x5d6   :  { %v6040_v61 = vsel %vm15542_vm2, %v15129_v26, %v15647_v58  ;;  %v6131_v57 = vor.u32 %v6130_v4, %v6129_v31  ;;  %v15751_v18 = vsub.s32 %v6428_v55, %v6431_v43  ;;  %v1781_v32 = vadd.s32 3, %v1777_v15 }
 0x5d7   :  { %vm15742_vm1 = vcmp.le.f32.partialorder %v18341_v2, 0.7853982  ;;  %v6235_v53 = vor.u32 %v6234_v38, %v6233_v16  ;;  %vm18346_vm8 = vcmp.lt.s32.totalorder %v18340_v52, 0  ;;  %v6136_v27 = vand.u32 2147483647, %v6135_v56 }
 0x5d8   :  { %v1984_v24 = vsel %vm15742_vm1, %v18340_v52, %v18345_v20  ;;  %v1983_v37 = vsel %vm18346_vm8, %v1982_v10, %v18344_v12  ;;  %vm6162_vm2 = vcmp.lt.s32.totalorder %v15433_v54, 0  ;;  %vm8262_vm14 = vcmp.lt.s32.totalorder %v8261_v33, 0 }
 0x5d9   :  { %8862 = vcosq.f32 %v1984_v24  ;;  %v6434_v6 = vsub.s32 0, %v15751_v18  ;;  %v6240_v58 = vand.u32 2147483647, %v6239_v51  ;;  %v6247_v4 = vsel %vm6162_vm2, %v6246_v7, %v15595_v23 }
 0x5da   :  { %v1985_v55 = vsel %vm15742_vm1, 0, %v1983_v37  ;;  %8864 = vsinq.f32 %v1984_v24  ;;  %v18347_v25 = vand.u32 2147483647, %v15433_v54  ;;  %v15778_v49 = vadd.f32 %v15385_v47, %v17873_v5 }
 0x5db   :  { %8866 = vcosq.f32 %v6040_v61  ;;  %v8264_v41 = vmin.u32 %v6434_v6, %v15751_v18  ;;  %v6138_v35 = vcvt.s32.f32 %v6131_v57  ;;  %v6242_v40 = vcvt.s32.f32 %v6235_v53 }
 0x5dc   :  { %vm15771_vm10 = vcmp.le.f32.partialorder %v18347_v25, 0.7853982  ;;  %v15780_v23 = vsel %vm8262_vm14, 0, %v8261_v33  ;;  %v1782_v13 = vand.u32 3, %v1781_v32  ;;  %8868 = vsinq.f32 %v6040_v61 }
 0x5dd   :  { %v8859_v22 = vpop.eup %8858  ;;  %v6249_v31 = vsel %vm15771_vm10, 0, %v6247_v4  ;;  %v6436_v56 = vclz %v8264_v41  ;;  %v1989_v38 = vadd.s32 3, %v1985_v55  ;;  %v15784_v43 = vmul.f32 %v6138_v35, %v6136_v27 }
 0x5de   :  { %v8861_v7 = vpop.eup %8860  ;;  %v15786_v15 = vmul.f32 %v6242_v40, %v6240_v58  ;;  %v1788_v16 = vxor.u32 2147483648, %v8859_v22  ;;  %v6475_v47 = vand.u32 2139095040, %v15778_v49  ;;  %v6336_v51 = vsub.s32 32, %v15780_v23 }
 0x5df   :  { %v6340_v33 = vsub.s32 4294967266, %v15780_v23  ;;  %v8265_v2 = vadd.s32 4294967294, %v6436_v56  ;;  %v1785_v44 = vxor.u32 2147483648, %v8861_v7  ;;  %v6320_v12 = vadd.s32 %v15607_v62, %v15618_v21 }
 0x5e0   :  { %vm1784_vm11 = vcmp.eq.s32.totalorder %v1782_v13, 0  ;;  %vm1787_vm4 = vcmp.eq.s32.totalorder %v1782_v13, 2  ;;  %v6476_v10 = vshrl.u32 %v6475_v47, 23  ;;  %v1990_v20 = vand.u32 3, %v1989_v38 }
 0x5e1   :  { %v1786_v61 = vsel %vm1784_vm11, %v8859_v22, %v1785_v44  ;;  %v1789_v57 = vsel %vm1787_vm4, %v1788_v16, %v8861_v7  ;;  %v17786_v24 = vand.u32 2147483647, %v15778_v49  ;;  %v15795_v37 = vadd.s32 3, %v6249_v31 }
 0x5e2   :  { %v8267_v6 = vadd.s32 4294967169, %v6476_v10  ;;  %v15799_v58 = vshrl.u32 %v6320_v12, %v6336_v51  ;;  %v15801_v62 = vadd.s32 127, %v6340_v33  ;;  %vm8266_vm15 = vcmp.lt.s32.totalorder %v8265_v2, 0 }
 0x5e3   :  { %v8863_v53 = vpop.eup %8862  ;;  %18350 = vst [vmem:[#allocation63_spill] sm:$0xff] %v15795_v37  ;;  %vm1783_vm1 = vcmp.lt.s32.totalorder %v1782_v13, 2  ;;  %vm1780_vm8 = vweird.f32 %v18333_v60  ;;  %vm1995_vm14 = vcmp.eq.s32.totalorder %v1990_v20, 2  ;;  %v6479_v40 = vand.u32 8388607, %v17786_v24 }
 0x5e4   :  { %v8865_v21 = vpop.eup %8864  ;;  %v1790_v4 = vsel %vm1783_vm1, %v1786_v61, %v1789_v57  ;;  %v1996_v55 = vxor.u32 2147483648, %v8863_v53  ;;  %v6482_v25 = vadd.s32 1, %v8267_v6  ;;  %v15810_v22 = vadd.f32 %v15522_v29, %v17936_v19 }
 0x5e5   :  { %v15804_v41 = vpop.eup %8866  ;;  %v1993_v35 = vxor.u32 2147483648, %v8865_v21  ;;  %v15812_v31 = vsel %vm8266_vm15, 0, %v8265_v2  ;;  %vm1992_vm11 = vcmp.eq.s32.totalorder %v1990_v20, 0  ;;  %v1791_v38 = vsel %vm1780_vm8, nan, %v1790_v4 }
 0x5e6   :  { %18351 = vst [vmem:[#allocation68_spill] sm:$0xff] %v15804_v41  ;;  %v1997_v13 = vsel %vm1995_vm14, %v1996_v55, %v8865_v21  ;;  %vm6483_vm4 = vcmp.gt.s32.totalorder %v6482_v25, 0  ;;  %v15814_v56 = vpop.eup %8868  ;;  %vm1991_vm1 = vcmp.lt.s32.totalorder %v1990_v20, 2  ;;  %vm1988_vm12 = vweird.f32 %v18340_v52 }
 0x5e7   :  { %v1994_v7 = vsel %vm1992_vm11, %v8863_v53, %v1993_v35  ;;  %v6484_v16 = vsel %vm6483_vm4, %v6482_v25, 0  ;;  %v15819_v33 = vadd.f32 %v15611_v50, %v17873_v5  ;;  %v6444_v29 = vsub.s32 4294967266, %v15812_v31 }
 0x5e8   :  { %v1998_v47 = vsel %vm1991_vm1, %v1994_v7, %v1997_v13  ;;  %v6486_v51 = vand.u32 31, %v6484_v16  ;;  %v6480_v44 = vor.u32 8388608, %v6479_v40  ;;  %v7108_v10 = vsel %vm17814_vm7, %v1791_v38, %v18333_v60 }
 0x5e9   :  { %18352 = vst [vmem:[#allocation67_spill] sm:$0xff] %v15819_v33  ;;  %v1999_v2 = vsel %vm1988_vm12, nan, %v1998_v47  ;;  %v6579_v20 = vand.u32 2139095040, %v15810_v22  ;;  %v6485_v50 = vshrl.u32 %v6484_v16, 5  ;;  %v6440_v38 = vsub.s32 32, %v15812_v31 }
 0x5ea   :  { %v7110_v61 = vsel %vm17814_vm7, %v1999_v2, %v18340_v52  ;;  %v6487_v57 = vsub.s32 32, %v6486_v51  ;;  %v6489_v6 = vshll.u32 %v17841_v8, %v6486_v51  ;;  %v6492_v21 = vshll.u32 %v17830_v59, %v6486_v51 }
 0x5eb   :  { %v7166_v53 = vpack.c.bf16 %v7110_v61, %v7108_v10  ;;  %v6495_v25 = vshll.u32 %v17871_v39, %v6486_v51  ;;  %v6498_v52 = vshll.u32 %v17870_v42, %v6486_v51  ;;  %v6501_v40 = vshll.u32 %v17837_v36, %v6486_v51 }
 0x5ec   :  { %v6490_v4 = vshrl.u32 %v17830_v59, %v6487_v57  ;;  %v6493_v55 = vshrl.u32 %v17871_v39, %v6487_v57  ;;  %v6496_v60 = vshrl.u32 %v17870_v42, %v6487_v57  ;;  %v6499_v35 = vshrl.u32 %v17837_v36, %v6487_v57 }
 0x5ed   :  { %7377 = vmatmul.mubr.bf16.gmra.mrb[12].mxu1 %v7166_v53  ;;  %v6502_v13 = vshrl.u32 %v17838_v9, %v6487_v57  ;;  %v6445_v2 = vadd.s32 127, %v6444_v29  ;;  %vm6504_vm12 = vcmp.lt.s32.totalorder %v6485_v50, 1  ;;  %v6488_v24 = vshrl.u32 %v17841_v8, %v6487_v57 }
 0x5ee   :  { %v6491_v7 = vor.u32 %v6490_v4, %v6489_v6  ;;  %v6494_v16 = vor.u32 %v6493_v55, %v6492_v21  ;;  %v6497_v47 = vor.u32 %v6496_v60, %v6495_v25  ;;  %v6500_v10 = vor.u32 %v6499_v35, %v6498_v52 }
 0x5ef   :  { %v6503_v61 = vor.u32 %v6502_v13, %v6501_v40  ;;  %vm6507_vm15 = vcmp.lt.s32.totalorder %v6485_v50, 4  ;;  %v6580_v27 = vshrl.u32 %v6579_v20, 23  ;;  %vm6506_vm8 = vcmp.lt.s32.totalorder %v6485_v50, 3 }
 0x5f0   :  { %v6512_v53 = vsel %vm6504_vm12, %v6491_v7, %v6494_v16  ;;  %v6509_v32 = vsel %vm6507_vm15, %v6497_v47, 2102212464  ;;  %v6513_v12 = vsel %vm6507_vm15, %v6500_v10, 920167782  ;;  %v6516_v51 = vsel %vm6504_vm12, %v6494_v16, %v6497_v47 }
 0x5f1   :  { %vm6505_vm14 = vcmp.lt.s32.totalorder %v6485_v50, 2  ;;  %v6514_v26 = vsel %vm6506_vm8, %v6497_v47, %v6513_v12  ;;  %v6517_v37 = vsel %vm6507_vm15, %v6503_v61, 1326507024  ;;  %v6520_v41 = vshll.u32 %v6480_v44, 8 }
 0x5f2   :  { %v6508_v6 = vsel %vm6504_vm12, %v6488_v24, %v6491_v7  ;;  %v6510_v21 = vsel %vm6506_vm8, %v6494_v16, %v6509_v32  ;;  %v6515_v29 = vsel %vm6505_vm14, %v6512_v53, %v6514_v26  ;;  %v6518_v4 = vsel %vm6506_vm8, %v6500_v10, %v6517_v37 }
 0x5f3   :  { %v6446_v55 = vshll.u32 %v6445_v2, 23  ;;  %v6519_v25 = vsel %vm6505_vm14, %v6516_v51, %v6518_v4  ;;  %v15844_v57 = vmul.u32.u64.low %v6520_v41, %v6515_v29  ;;  %v15845_v60 = vmul.u32.u64.high %v6520_v41, %v6515_v29, %v15844_v57 }
 0x5f4   :  { %v15848_v20 = vmul.u32.u64.low %v6520_v41, %v6519_v25  ;;  %v15849_v52 = vmul.u32.u64.high %v6520_v41, %v6519_v25, %v15848_v20  ;;  %v8271_v35 = vadd.s32 4294967169, %v6580_v27  ;;  %v18353_v12 = vand.u32 2147483647, %v15810_v22 }
 0x5f5   :  { %v6140_v24 = vxor.u32 2147483648, %v15784_v43  ;;  %v6424_v26 = vadd.s32 %v15682_v45, %v15691_v46  ;;  %v6511_v32 = vsel %vm6505_vm14, %v6508_v6, %v6510_v21  ;;  %v6683_v37 = vand.u32 2139095040, %v15819_v33 }
 0x5f6   :  { %v6583_v40 = vand.u32 8388607, %v18353_v12  ;;  %v18354_v44 = vxor.u32 2147483648, %v15786_v15  ;;  %v18355_v27 = vshll.u32 %v15677_v14, %v15780_v23  ;;  %v6342_v16 = vshll.u32 %v15801_v62, 23 }
 0x5f7   :  { %v6586_v45 = vadd.s32 1, %v8271_v35  ;;  %v6442_v46 = vshrl.u32 %v6424_v26, %v6440_v38  ;;  %v15872_v50 = vor.u32 4788187, %v6446_v55  ;;  %v6530_v47 = vadd.s32 1, %v15845_v60 }
 0x5f8   :  { %v15863_v13 = vsel %vm6162_vm2, %v18354_v44, %v15786_v15  ;;  %v15869_v7 = vor.u32 %v15799_v58, %v18355_v27  ;;  %v6684_v2 = vshrl.u32 %v6683_v37, 23  ;;  %v6527_v10 = vmul.u32 %v6520_v41, %v6511_v32 }
 0x5f9   :  { %vm6529_vm2 = vc.u32 %v15849_v52, %v15844_v57  ;;  %v6584_v15 = vor.u32 8388608, %v6583_v40  ;;  %vm6587_vm11 = vcmp.gt.s32.totalorder %v6586_v45, 0  ;;  %v6441_v14 = vshll.u32 %v15751_v18, %v15812_v31 }
 0x5fa   :  { %v6531_v23 = vsel %vm6529_vm2, %v6530_v47, %v15845_v60  ;;  %v6588_v58 = vsel %vm6587_vm11, %v6586_v45, 0  ;;  %v8275_v62 = vadd.s32 4294967169, %v6684_v2  ;;  %v15880_v61 = vor.u32 4788187, %v6342_v16  ;;  %v15908_v47 = vpop.f32.mrb[63].mxu0 }
 0x5fb   :  { %v6454_v38 = vsub.s32 4, %v15726_v30  ;;  %v6532_v53 = vadd.s32 %v6531_v23, %v6527_v10  ;;  %v6590_v51 = vand.u32 31, %v6588_v58  ;;  %v15883_v6 = vor.u32 %v6442_v46, %v6441_v14 }
 0x5fc   :  { %v6448_v41 = vand.u32 2147483647, %v15872_v50  ;;  %v17790_v21 = vand.u32 2147483647, %v15819_v33  ;;  %v15889_v29 = vadd.f32 %v15615_v28, %v17936_v19  ;;  %v6589_v31 = vshrl.u32 %v6588_v58, 5 }
 0x5fd   :  { %v6533_v18 = vadd.s32 536870912, %v6532_v53  ;;  %v6591_v4 = vsub.s32 32, %v6590_v51  ;;  %v15891_v55 = vshll.u32 %v6584_v15, 8  ;;  %v6593_v25 = vshll.u32 %v17841_v8, %v6590_v51 }
 0x5fe   :  { %v6596_v60 = vshll.u32 %v17830_v59, %v6590_v51  ;;  %v6599_v20 = vshll.u32 %v17871_v39, %v6590_v51  ;;  %v6690_v35 = vadd.s32 1, %v8275_v62  ;;  %v6602_v28 = vshll.u32 %v17870_v42, %v6590_v51 }
 0x5ff   :  { %v15896_v12 = vshrl.u32 %v6533_v18, 30  ;;  %v6594_v40 = vshrl.u32 %v17830_v59, %v6591_v4  ;;  %v6597_v26 = vshrl.u32 %v17871_v39, %v6591_v4  ;;  %vm17802_vm4 = vcmp.lt.s32.totalorder %v15397_v11, 0 }
 0x600   :  { %v6600_v32 = vshrl.u32 %v17870_v42, %v6591_v4  ;;  %v6603_v37 = vshrl.u32 %v17837_v36, %v6591_v4  ;;  %v6605_v44 = vshll.u32 %v17837_v36, %v6590_v51  ;;  %v6606_v27 = vshrl.u32 %v17838_v9, %v6591_v4 }
 0x601   :  { %18356 = vst [vmem:[#allocation26_spill] sm:$0xff] %v15896_v12  ;;  %vm6370_vm1 = vcmp.lt.s32.totalorder %v15503_v0, 0  ;;  %v6535_v16 = vshll.u32 %v15896_v12, 30  ;;  %v6595_v45 = vor.u32 %v6594_v40, %v6593_v25  ;;  %v6598_v46 = vor.u32 %v6597_v26, %v6596_v60 }
 0x602   :  { %vm6608_vm12 = vcmp.lt.s32.totalorder %v6589_v31, 1  ;;  %v6592_v2 = vshrl.u32 %v17841_v8, %v6591_v4  ;;  %v6601_v10 = vor.u32 %v6600_v32, %v6599_v20  ;;  %v6604_v15 = vor.u32 %v6603_v37, %v6602_v28 }
 0x603   :  { %v6607_v14 = vor.u32 %v6606_v27, %v6605_v44  ;;  %vm6610_vm15 = vcmp.lt.s32.totalorder %v6589_v31, 3  ;;  %vm6611_vm8 = vcmp.lt.s32.totalorder %v6589_v31, 4  ;;  %v6616_v23 = vsel %vm6608_vm12, %v6595_v45, %v6598_v46 }
 0x604   :  { %vm6691_vm14 = vcmp.gt.s32.totalorder %v6690_v35, 0  ;;  %v6613_v58 = vsel %vm6611_vm8, %v6601_v10, 2102212464  ;;  %v6617_v62 = vsel %vm6611_vm8, %v6604_v15, 920167782  ;;  %v6620_v51 = vsel %vm6608_vm12, %v6598_v46, %v6601_v10 }
 0x605   :  { %v6621_v18 = vsel %vm6611_vm8, %v6607_v14, 1326507024  ;;  %v15913_v25 = vsub.s32 %v6532_v53, %v6535_v16  ;;  %vm6609_vm2 = vcmp.lt.s32.totalorder %v6589_v31, 2  ;;  %v6618_v60 = vsel %vm6610_vm15, %v6601_v10, %v6617_v62 }
 0x606   :  { %v6622_v4 = vsel %vm6610_vm15, %v6604_v15, %v6621_v18  ;;  %v6619_v20 = vsel %vm6609_vm2, %v6616_v23, %v6618_v60  ;;  %v6687_v26 = vand.u32 8388607, %v17790_v21  ;;  %v6692_v28 = vsel %vm6691_vm14, %v6690_v35, 0 }
 0x607   :  { %v6623_v40 = vsel %vm6609_vm2, %v6620_v51, %v6622_v4  ;;  %v6612_v32 = vsel %vm6608_vm12, %v6592_v2, %v6595_v45  ;;  %v6614_v37 = vsel %vm6610_vm15, %v6598_v46, %v6613_v58  ;;  %v18357_v27 = vand.u32 2147483647, %v15503_v0 }
 0x608   :  { %v15924_v53 = vmul.u32.u64.low %v15891_v55, %v6623_v40  ;;  %v15925_v44 = vmul.u32.u64.high %v15891_v55, %v6623_v40, %v15924_v53  ;;  %v15934_v10 = vmul.u32.u64.low %v15891_v55, %v6619_v20  ;;  %v15935_v15 = vmul.u32.u64.high %v15891_v55, %v6619_v20, %v15934_v10 }
 0x609   :  { %vm15929_vm11 = vcmp.le.f32.partialorder %v18357_v27, 0.7853982  ;;  %v6694_v35 = vand.u32 31, %v6692_v28  ;;  %v6787_v45 = vand.u32 2139095040, %v15889_v29  ;;  %v15944_v46 = vsel %vm17802_vm4, %v6140_v24, %v15784_v43 }
 0x60a   :  { %18360 = vst [vmem:[#allocation70_spill] sm:$0xff] %v15944_v46  ;;  %v15950_v2 = vsel %vm15771_vm10, %v15433_v54, %v15863_v13  ;;  %v6450_v14 = vcvt.s32.f32 %v15883_v6  ;;  %v6538_v23 = vsub.s32 0, %v15913_v25  ;;  %v6346_v58 = vcvt.s32.f32 %v15869_v7 }
 0x60b   :  { %v15960_v62 = vsel %vm6370_vm1, %v6454_v38, %v15726_v30  ;;  %v6615_v43 = vsel %vm6609_vm2, %v6612_v32, %v6614_v37  ;;  %v6695_v24 = vsub.s32 32, %v6694_v35  ;;  %v6344_v1 = vand.u32 2147483647, %v15880_v61 }
 0x60c   :  { %v15966_v13 = vmul.f32 %v6450_v14, %v6448_v41  ;;  %vm6633_vm10 = vc.u32 %v15925_v44, %v15934_v10  ;;  %v6688_v7 = vor.u32 8388608, %v6687_v26  ;;  %v6634_v6 = vadd.s32 1, %v15935_v15 }
 0x60d   :  { %v6698_v51 = vshrl.u32 %v17830_v59, %v6695_v24  ;;  %v6701_v30 = vshrl.u32 %v17871_v39, %v6695_v24  ;;  %v6788_v38 = vshrl.u32 %v6787_v45, 23  ;;  %v8268_v31 = vmin.u32 %v6538_v23, %v15913_v25 }
 0x60e   :  { %v6631_v18 = vmul.u32 %v15891_v55, %v6615_v43  ;;  %v6704_v61 = vshrl.u32 %v17870_v42, %v6695_v24  ;;  %v6707_v50 = vshrl.u32 %v17837_v36, %v6695_v24  ;;  %v6635_v41 = vsel %vm6633_vm10, %v6634_v6, %v15935_v15 }
 0x60f   :  { %v6697_v60 = vshll.u32 %v17841_v8, %v6694_v35  ;;  %v6700_v4 = vshll.u32 %v17830_v59, %v6694_v35  ;;  %v6706_v20 = vshll.u32 %v17870_v42, %v6694_v35  ;;  %v6693_v26 = vshrl.u32 %v6692_v28, 5 }
 0x610   :  { %v6636_v40 = vadd.s32 %v6635_v41, %v6631_v18  ;;  %v6703_v32 = vshll.u32 %v17871_v39, %v6694_v35  ;;  %v6709_v37 = vshll.u32 %v17837_v36, %v6694_v35  ;;  %v6710_v45 = vshrl.u32 %v17838_v9, %v6695_v24 }
 0x611   :  { %v6699_v53 = vor.u32 %v6698_v51, %v6697_v60  ;;  %v6702_v55 = vor.u32 %v6701_v30, %v6700_v4  ;;  %v6708_v27 = vor.u32 %v6707_v50, %v6706_v20  ;;  %8870 = vcosq.f32 %v15950_v2 }
 0x612   :  { %v6457_v15 = vsel %vm15929_vm11, 0, %v15960_v62  ;;  %v6637_v14 = vadd.s32 536870912, %v6636_v40  ;;  %v6705_v23 = vor.u32 %v6704_v61, %v6703_v32  ;;  %v15988_v43 = vmul.f32 %v6346_v58, %v6344_v1 }
 0x613   :  { %v6452_v28 = vxor.u32 2147483648, %v15966_v13  ;;  %v6711_v6 = vor.u32 %v6710_v45, %v6709_v37  ;;  %v8279_v18 = vadd.s32 4294967169, %v6788_v38  ;;  %v6540_v35 = vclz %v8268_v31 }
 0x614   :  { %v15991_v51 = vshrl.u32 %v6637_v14, 30  ;;  %vm6712_vm12 = vcmp.lt.s32.totalorder %v6693_v26, 1  ;;  %vm6715_vm15 = vcmp.lt.s32.totalorder %v6693_v26, 4  ;;  %v6696_v30 = vshrl.u32 %v17841_v8, %v6695_v24 }
 0x615   :  { %v6720_v50 = vsel %vm6712_vm12, %v6699_v53, %v6702_v55  ;;  %v6721_v41 = vsel %vm6715_vm15, %v6708_v27, 920167782  ;;  %v6728_v60 = vshll.u32 %v6688_v7, 8  ;;  %vm6713_vm8 = vcmp.lt.s32.totalorder %v6693_v26, 2 }
 0x616   :  { %v6639_v62 = vshll.u32 %v15991_v51, 30  ;;  %vm6714_vm14 = vcmp.lt.s32.totalorder %v6693_v26, 3  ;;  %v6717_v58 = vsel %vm6715_vm15, %v6705_v23, 2102212464  ;;  %v6724_v61 = vsel %vm6712_vm12, %v6702_v55, %v6705_v23  ;;  %v18362_v26 = vld [vmem:[#allocation75_spill] sm:$0xff] }
 0x617   :  { %v6722_v1 = vsel %vm6714_vm14, %v6705_v23, %v6721_v41  ;;  %v6725_v38 = vsel %vm6715_vm15, %v6711_v6, 1326507024  ;;  %v6794_v31 = vadd.s32 1, %v8279_v18  ;;  %v8269_v4 = vadd.s32 4294967294, %v6540_v35 }
 0x618   :  { %v15997_v20 = vsub.s32 %v6636_v40, %v6639_v62  ;;  %v6716_v32 = vsel %vm6712_vm12, %v6696_v30, %v6699_v53  ;;  %v6723_v24 = vsel %vm6713_vm8, %v6720_v50, %v6722_v1  ;;  %v6718_v37 = vsel %vm6714_vm14, %v6702_v55, %v6717_v58 }
 0x619   :  { %v6726_v45 = vsel %vm6714_vm14, %v6708_v27, %v6725_v38  ;;  %v16001_v7 = vmul.u32.u64.low %v6728_v60, %v6723_v24  ;;  %v16002_v14 = vmul.u32.u64.high %v6728_v60, %v6723_v24, %v16001_v7  ;;  %8872 = vsinq.f32 %v15950_v2 }
 0x61a   :  { %v6642_v41 = vsub.s32 0, %v15997_v20  ;;  %v6727_v23 = vsel %vm6713_vm8, %v6724_v61, %v6726_v45  ;;  %v17791_v6 = vand.u32 2147483647, %v15889_v29  ;;  %v16009_v40 = vadd.s32 3, %v6457_v15 }
 0x61b   :  { %v16011_v18 = vmul.u32.u64.low %v6728_v60, %v6727_v23  ;;  %v16012_v53 = vmul.u32.u64.high %v6728_v60, %v6727_v23, %v16011_v18  ;;  %vm6795_vm2 = vcmp.gt.s32.totalorder %v6794_v31, 0  ;;  %v16014_v55 = vpop.eup %8870  ;;  %v6719_v2 = vsel %vm6713_vm8, %v6716_v32, %v6718_v37 }
 0x61c   :  { %18361 = vst [vmem:[#allocation73_spill] sm:$0xff] %v16009_v40  ;;  %v8272_v35 = vmin.u32 %v6642_v41, %v15997_v20  ;;  %v6796_v30 = vsel %vm6795_vm2, %v6794_v31, 0  ;;  %v16022_v50 = vsel %vm6370_vm1, %v6452_v28, %v15966_v13  ;;  %vm8270_vm10 = vcmp.lt.s32.totalorder %v8269_v4, 0  ;;  %v18363_v28 = vld [vmem:[#allocation82_spill] sm:$0xff] }
 0x61d   :  { %v6738_v15 = vadd.s32 1, %v16002_v14  ;;  %v6798_v62 = vand.u32 31, %v6796_v30  ;;  %v16027_v58 = vadd.s32 %v15844_v57, %v15849_v52  ;;  %v6791_v61 = vand.u32 8388607, %v17791_v6 }
 0x61e   :  { %v6644_v1 = vclz %v8272_v35  ;;  %v16032_v38 = vand.u32 3, %v18362_v26  ;;  %v6735_v31 = vmul.u32 %v6728_v60, %v6719_v2  ;;  %vm6737_vm1 = vc.u32 %v16012_v53, %v16001_v7 }
 0x61f   :  { %v6799_v13 = vsub.s32 32, %v6798_v62  ;;  %v16037_v24 = vsel %vm8270_vm10, 0, %v8269_v4  ;;  %v6739_v57 = vsel %vm6737_vm1, %v6738_v15, %v16002_v14  ;;  %v6801_v52 = vshll.u32 %v17841_v8, %v6798_v62 }
 0x620   :  { %v8273_v37 = vadd.s32 4294967294, %v6644_v1  ;;  %v6740_v45 = vadd.s32 %v6739_v57, %v6735_v31  ;;  %v6804_v23 = vshll.u32 %v17830_v59, %v6798_v62  ;;  %v6807_v18 = vshll.u32 %v17871_v39, %v6798_v62 }
 0x621   :  { %v6802_v41 = vshrl.u32 %v17830_v59, %v6799_v13  ;;  %v6805_v60 = vshrl.u32 %v17871_v39, %v6799_v13  ;;  %v6808_v35 = vshrl.u32 %v17870_v42, %v6799_v13  ;;  %v6811_v4 = vshrl.u32 %v17837_v36, %v6799_v13 }
 0x622   :  { %vm8274_vm12 = vcmp.lt.s32.totalorder %v8273_v37, 0  ;;  %v6741_v1 = vadd.s32 536870912, %v6740_v45  ;;  %v6797_v14 = vshrl.u32 %v6796_v30, 5  ;;  %v6810_v15 = vshll.u32 %v17870_v42, %v6798_v62 }
 0x623   :  { %v16047_v2 = vsel %vm8274_vm12, 0, %v8273_v37  ;;  %v16050_v26 = vpop.eup %8872  ;;  %v6803_v57 = vor.u32 %v6802_v41, %v6801_v52  ;;  %v6806_v21 = vor.u32 %v6805_v60, %v6804_v23  ;;  %v6809_v6 = vor.u32 %v6808_v35, %v6807_v18 }
 0x624   :  { %v6652_v31 = vsub.s32 4294967266, %v16047_v2  ;;  %v16053_v27 = vshrl.u32 %v6741_v1, 30  ;;  %v6812_v32 = vor.u32 %v6811_v4, %v6810_v15  ;;  %v6813_v33 = vshll.u32 %v17837_v36, %v6798_v62 }
 0x625   :  { %v6814_v12 = vshrl.u32 %v17838_v9, %v6799_v13  ;;  %v6544_v37 = vsub.s32 32, %v16037_v24  ;;  %v6632_v40 = vadd.s32 %v15934_v10, %v15925_v44  ;;  %v6792_v46 = vor.u32 8388608, %v6791_v61 }
 0x626   :  { %18364 = vst [vmem:[#allocation72_spill] sm:$0xff] %v16053_v27  ;;  %v6548_v52 = vsub.s32 4294967266, %v16037_v24  ;;  %v6743_v41 = vshll.u32 %v16053_v27, 30  ;;  %v6800_v23 = vshrl.u32 %v17841_v8, %v6799_v13  ;;  %v6653_v18 = vadd.s32 127, %v6652_v31 }
 0x627   :  { %v6815_v60 = vor.u32 %v6814_v12, %v6813_v33  ;;  %vm6816_vm15 = vcmp.lt.s32.totalorder %v6797_v14, 1  ;;  %vm6818_vm8 = vcmp.lt.s32.totalorder %v6797_v14, 3  ;;  %vm6819_vm14 = vcmp.lt.s32.totalorder %v6797_v14, 4 }
 0x628   :  { %v16065_v62 = vsub.s32 %v6740_v45, %v6743_v41  ;;  %v6821_v35 = vsel %vm6819_vm14, %v6809_v6, 2102212464  ;;  %v6824_v4 = vsel %vm6816_vm15, %v6803_v57, %v6806_v21  ;;  %v6825_v1 = vsel %vm6819_vm14, %v6812_v32, 920167782 }
 0x629   :  { %v6648_v15 = vsub.s32 32, %v16047_v2  ;;  %vm6817_vm2 = vcmp.lt.s32.totalorder %v6797_v14, 2  ;;  %v6826_v44 = vsel %vm6818_vm8, %v6809_v6, %v6825_v1  ;;  %v6832_v10 = vshll.u32 %v6792_v46, 8  ;;  %v18366_v1 = vld [vmem:[#allocation6_spill] sm:$0xff] }
 0x62a   :  { %v6820_v61 = vsel %vm6816_vm15, %v6800_v23, %v6803_v57  ;;  %v6827_v30 = vsel %vm6817_vm2, %v6824_v4, %v6826_v44  ;;  %v6828_v13 = vsel %vm6816_vm15, %v6806_v21, %v6809_v6  ;;  %v6829_v33 = vsel %vm6819_vm14, %v6815_v60, 1326507024  ;;  %v18365_v57 = vld [vmem:[#allocation80_spill] sm:$0xff] }
 0x62b   :  { %vm2303_vm10 = vcmp.lt.s32.totalorder %v16032_v38, 2  ;;  %v6822_v12 = vsel %vm6818_vm8, %v6806_v21, %v6821_v35  ;;  %v6830_v45 = vsel %vm6818_vm8, %v6812_v32, %v6829_v33  ;;  %v6654_v27 = vshll.u32 %v6653_v18, 23  ;;  %v18368_v18 = vld [vmem:[#allocation86_spill] sm:$0xff] }
 0x62c   :  { %v16073_v31 = vmul.u32.u64.low %v6832_v10, %v6827_v30  ;;  %v16074_v41 = vmul.u32.u64.high %v6832_v10, %v6827_v30, %v16073_v31  ;;  %v6746_v11 = vsub.s32 0, %v16065_v62  ;;  %v6831_v46 = vsel %vm6817_vm2, %v6828_v13, %v6830_v45  ;;  %v18367_v30 = vld [vmem:[#allocation77_spill] sm:$0xff]  ;;  %v18370_v45 = vld [vmem:[#allocation84_spill] sm:$0xff] }
 0x62d   :  { %v2308_v23 = vxor.u32 2147483648, %v18365_v57  ;;  %v6549_v4 = vadd.s32 127, %v6548_v52  ;;  %v16080_v6 = vmul.u32.u64.low %v6832_v10, %v6831_v46  ;;  %v16081_v60 = vmul.u32.u64.high %v6832_v10, %v6831_v46, %v16080_v6 }
 0x62e   :  { %vm2300_vm1 = vweird.f32 %v18366_v1  ;;  %vm2304_vm12 = vcmp.eq.s32.totalorder %v16032_v38, 0  ;;  %v6650_v21 = vshrl.u32 %v6632_v40, %v6648_v15  ;;  %v6823_v32 = vsel %vm6817_vm2, %v6820_v61, %v6822_v12 }
 0x62f   :  { %v2510_v35 = vand.u32 3, %v18367_v30  ;;  %v2513_v44 = vxor.u32 2147483648, %v18368_v18  ;;  %v6842_v33 = vadd.s32 1, %v16074_v41  ;;  %v18369_v13 = vxor.u32 2147483648, %v18363_v28 }
 0x630   :  { %vm2307_vm15 = vcmp.eq.s32.totalorder %v16032_v38, 2  ;;  %v2516_v46 = vxor.u32 2147483648, %v18370_v45  ;;  %vm17806_vm8 = vcmp.lt.s32.totalorder %v15440_v63, 0  ;;  %v6649_v40 = vshll.u32 %v15997_v20, %v16047_v2  ;;  %v18371_v2 = vld [vmem:[#allocation16_spill] sm:$0xff] }
 0x631   :  { %v2306_v52 = vsel %vm2304_vm12, %v18365_v57, %v18369_v13  ;;  %v6655_v14 = vor.u32 4788187, %v6654_v27  ;;  %v8276_v15 = vmin.u32 %v6746_v11, %v16065_v62  ;;  %v2309_v61 = vsel %vm2307_vm15, %v2308_v23, %v18363_v28  ;;  %v18372_v23 = vld [vmem:[#allocation31_spill] sm:$0xff] }
 0x632   :  { %v6546_v12 = vshrl.u32 %v16027_v58, %v6544_v37  ;;  %v6839_v6 = vmul.u32 %v6832_v10, %v6823_v32  ;;  %vm6841_vm14 = vc.u32 %v16081_v60, %v16073_v31  ;;  %vm2512_vm2 = vcmp.eq.s32.totalorder %v2510_v35, 0 }
 0x633   :  { %v6651_v57 = vor.u32 %v6650_v21, %v6649_v40  ;;  %v6843_v30 = vsel %vm6841_vm14, %v6842_v33, %v16074_v41  ;;  %v2514_v13 = vsel %vm2512_vm2, %v18370_v45, %v2513_v44  ;;  %vm2515_vm12 = vcmp.eq.s32.totalorder %v2510_v35, 2  ;;  %v18377_v33 = vld [vmem:[#allocation76_spill] sm:$0xff] }
 0x634   :  { %v6550_v54 = vshll.u32 %v6549_v4, 23  ;;  %v6844_v20 = vadd.s32 %v6843_v30, %v6839_v6  ;;  %v2310_v11 = vsel %vm2303_vm10, %v2306_v52, %v2309_v61  ;;  %v2517_v27 = vsel %vm2515_vm12, %v2516_v46, %v18368_v18  ;;  %v18376_v4 = vld [vmem:[#allocation58_spill] sm:$0xff] }
 0x635   :  { %v6656_v28 = vand.u32 2147483647, %v6655_v14  ;;  %v6748_v58 = vclz %v8276_v15  ;;  %vm2508_vm15 = vweird.f32 %v18371_v2  ;;  %vm2511_vm4 = vcmp.lt.s32.totalorder %v2510_v35, 2 }
 0x636   :  { %v6845_v37 = vadd.s32 536870912, %v6844_v20  ;;  %v2518_v10 = vsel %vm2511_vm4, %v2514_v13, %v2517_v27  ;;  %v18373_v21 = vand.u32 2147483647, %v18372_v23  ;;  %v2190_v32 = vsub.s32 4, %v18376_v4  ;;  %v18381_v27 = vld [vmem:[#allocation40_spill] sm:$0xff] }
 0x637   :  { %v6658_v44 = vcvt.s32.f32 %v6651_v57  ;;  %v2311_v38 = vsel %vm2300_vm1, nan, %v2310_v11  ;;  %v2519_v18 = vsel %vm2508_vm15, nan, %v2518_v10  ;;  %v6551_v40 = vor.u32 4788187, %v6550_v54 }
 0x638   :  { %vm16110_vm14 = vcmp.le.f32.partialorder %v18373_v21, 0.7853982  ;;  %v16121_v52 = vshrl.u32 %v6845_v37, 30  ;;  %v7169_v45 = vpack.c.bf16 %v2519_v18, %v2311_v38  ;;  %v2191_v46 = vsel %vm2106_vm0, %v2190_v32, %v18376_v4  ;;  %v18386_v21 = vld [vmem:[#allocation78_spill] sm:$0xff] }
 0x639   :  { %v2192_v35 = vsel %vm16110_vm14, %v18372_v23, %v18377_v33  ;;  %v8277_v14 = vadd.s32 4294967294, %v6748_v58  ;;  %v2193_v1 = vsel %vm16110_vm14, 0, %v2191_v46  ;;  %v18378_v15 = vxor.u32 2147483648, %v15988_v43 }
 0x63a   :  { %8874 = vcosq.f32 %v2192_v35  ;;  %v6659_v6 = vmul.f32 %v6658_v44, %v6656_v28  ;;  %v6662_v57 = vsub.s32 4, %v15991_v51  ;;  %v6847_v30 = vshll.u32 %v16121_v52, 30  ;;  %8305 = vmatprep.mubr.msk.bf16.mxu1 %vm17813_vm5, %v7169_v45  ;;  %v18385_v28 = vld [vmem:[#allocation64_spill] sm:$0xff] }
 0x63b   :  { %8876 = vsinq.f32 %v2192_v35  ;;  %v16133_v61 = vsel %vm17806_vm8, %v18378_v15, %v15988_v43  ;;  %v6456_v54 = vsel %vm15929_vm11, %v15503_v0, %v16022_v50  ;;  %v18380_v13 = vshll.u32 %v15913_v25, %v16037_v24 }
 0x63c   :  { %18379 = vst [vmem:[#allocation27_spill] sm:$0xff] %v16133_v61  ;;  %v18382_v58 = vand.u32 2147483647, %v18381_v27  ;;  %v2398_v2 = vsub.s32 4, %v18385_v28  ;;  %vm6578_vm4 = vcmp.lt.s32.totalorder %v15810_v22, 0  ;;  %v16153_v37 = vsub.s32 %v6844_v20, %v6847_v30 }
 0x63d   :  { %v6547_v11 = vor.u32 %v6546_v12, %v18380_v13  ;;  %v2197_v10 = vadd.s32 3, %v2193_v1  ;;  %v6552_v25 = vand.u32 2147483647, %v6551_v40  ;;  %vm8278_vm11 = vcmp.lt.s32.totalorder %v8277_v14, 0 }
 0x63e   :  { %vm16147_vm0 = vcmp.le.f32.partialorder %v18382_v58, 0.7853982  ;;  %v2399_v50 = vsel %vm2314_vm6, %v2398_v2, %v18385_v28  ;;  %v6660_v24 = vxor.u32 2147483648, %v6659_v6  ;;  %v16165_v12 = vsel %vm6578_vm4, %v6662_v57, %v15991_v51 }
 0x63f   :  { %v2400_v16 = vsel %vm16147_vm0, %v18381_v27, %v18386_v21  ;;  %v6850_v20 = vsub.s32 0, %v16153_v37  ;;  %v6554_v41 = vcvt.s32.f32 %v6547_v11  ;;  %v18387_v4 = vand.u32 2147483647, %v15810_v22 }
 0x640   :  { %8878 = vcosq.f32 %v2400_v16  ;;  %v2401_v44 = vsel %vm16147_vm0, 0, %v2399_v50  ;;  %v16176_v38 = vsel %vm8278_vm11, 0, %v8277_v14  ;;  %v2198_v33 = vand.u32 3, %v2197_v10 }
 0x641   :  { %8880 = vcosq.f32 %v6456_v54  ;;  %vm16170_vm10 = vcmp.le.f32.partialorder %v18387_v4, 0.7853982  ;;  %v8280_v18 = vmin.u32 %v6850_v20, %v16153_v37  ;;  %v16181_v51 = vadd.f32 %v15760_v34, %v17873_v5 }
 0x642   :  { %8882 = vsinq.f32 %v2400_v16  ;;  %v16183_v35 = vmul.f32 %v6554_v41, %v6552_v25  ;;  %v2405_v46 = vadd.s32 3, %v2401_v44  ;;  %v6661_v14 = vsel %vm6578_vm4, %v6660_v24, %v6659_v6 }
 0x643   :  { %18390 = vst [vmem:[#allocation5_spill] sm:$0xff] %v16181_v51  ;;  %8884 = vsinq.f32 %v6456_v54  ;;  %v6736_v1 = vadd.s32 %v16001_v7, %v16012_v53  ;;  %v6852_v15 = vclz %v8280_v18  ;;  %v17803_v57 = vand.u32 2147483647, %v16181_v51 }
 0x644   :  { %v8875_v40 = vpop.eup %8874  ;;  %v6752_v34 = vsub.s32 32, %v16176_v38  ;;  %v6840_v30 = vadd.s32 %v16073_v31, %v16081_v60  ;;  %v6891_v13 = vand.u32 2139095040, %v16181_v51  ;;  %v6756_v11 = vsub.s32 4294967266, %v16176_v38 }
 0x645   :  { %v8877_v5 = vpop.eup %8876  ;;  %v2204_v54 = vxor.u32 2147483648, %v8875_v40  ;;  %v8281_v58 = vadd.s32 4294967294, %v6852_v15  ;;  %vm2203_vm6 = vcmp.eq.s32.totalorder %v2198_v33, 2  ;;  %vm2200_vm1 = vcmp.eq.s32.totalorder %v2198_v33, 0 }
 0x646   :  { %v2201_v43 = vxor.u32 2147483648, %v8877_v5  ;;  %v2406_v7 = vand.u32 3, %v2405_v46  ;;  %v6892_v53 = vshrl.u32 %v6891_v13, 23  ;;  %v16201_v28 = vsel %vm16170_vm10, %v15810_v22, %v6661_v14 }
 0x647   :  { %v2205_v6 = vsel %vm2203_vm6, %v2204_v54, %v8877_v5  ;;  %vm8282_vm2 = vcmp.lt.s32.totalorder %v8281_v58, 0  ;;  %v6895_v31 = vand.u32 8388607, %v17803_v57  ;;  %vm2199_vm12 = vcmp.lt.s32.totalorder %v2198_v33, 2 }
 0x648   :  { %v2202_v2 = vsel %vm2200_vm1, %v8875_v40, %v2201_v43  ;;  %v16207_v21 = vsel %vm8282_vm2, 0, %v8281_v58  ;;  %v8283_v16 = vadd.s32 4294967169, %v6892_v53  ;;  %v16211_v50 = vshrl.u32 %v6736_v1, %v6752_v34 }
 0x649   :  { %v16213_v24 = vadd.s32 127, %v6756_v11  ;;  %vm2196_vm15 = vweird.f32 %v18372_v23  ;;  %v2206_v20 = vsel %vm2199_vm12, %v2202_v2, %v2205_v6  ;;  %vm2408_vm14 = vcmp.eq.s32.totalorder %v2406_v7, 0  ;;  %v18391_v11 = vld [vmem:[#allocation87_spill] sm:$0xff] }
 0x64a   :  { %v8879_v60 = vpop.eup %8878  ;;  %v6898_v44 = vadd.s32 1, %v8283_v16  ;;  %v16218_v18 = vadd.f32 %v15908_v47, %v17936_v19  ;;  %v6856_v33 = vsub.s32 32, %v16207_v21  ;;  %vm2411_vm0 = vcmp.eq.s32.totalorder %v2406_v7, 2 }
 0x64b   :  { %v16209_v25 = vpop.eup %8880  ;;  %v2412_v4 = vxor.u32 2147483648, %v8879_v60  ;;  %v6896_v40 = vor.u32 8388608, %v6895_v31  ;;  %v6860_v1 = vsub.s32 4294967266, %v16207_v21  ;;  %v2207_v15 = vsel %vm2196_vm15, nan, %v2206_v20 }
 0x64c   :  { %v8883_v41 = vpop.eup %8882  ;;  %vm6899_vm4 = vcmp.gt.s32.totalorder %v6898_v44, 0  ;;  %vm2404_vm11 = vweird.f32 %v18381_v27  ;;  %vm2407_vm6 = vcmp.lt.s32.totalorder %v2406_v7, 2  ;;  %v16227_v58 = vand.u32 3, %v18391_v11 }
 0x64d   :  { %v2409_v46 = vxor.u32 2147483648, %v8883_v41  ;;  %v16221_v14 = vpop.eup %8884  ;;  %v2413_v5 = vsel %vm2411_vm0, %v2412_v4, %v8883_v41  ;;  %v6900_v54 = vsel %vm6899_vm4, %v6898_v44, 0  ;;  %v6858_v43 = vshrl.u32 %v6840_v30, %v6856_v33 }
 0x64e   :  { %v6902_v19 = vand.u32 31, %v6900_v54  ;;  %v7112_v53 = vsel %vm17814_vm7, %v2207_v15, %v18372_v23  ;;  %v16232_v2 = vshll.u32 %v6896_v40, 8  ;;  %v6861_v31 = vadd.s32 127, %v6860_v1 }
 0x64f   :  { %v2410_v34 = vsel %vm2408_vm14, %v8879_v60, %v2409_v46  ;;  %v6995_v16 = vand.u32 2139095040, %v16218_v18  ;;  %v6901_v41 = vshrl.u32 %v6900_v54, 5  ;;  %vm2719_vm14 = vcmp.lt.s32.totalorder %v16227_v58, 2 }
 0x650   :  { %v2414_v13 = vsel %vm2407_vm6, %v2410_v34, %v2413_v5  ;;  %v6903_v60 = vsub.s32 32, %v6902_v19  ;;  %v6905_v4 = vshll.u32 %v17841_v8, %v6902_v19  ;;  %v6908_v30 = vshll.u32 %v17830_v59, %v6902_v19 }
 0x651   :  { %v2415_v6 = vsel %vm2404_vm11, nan, %v2414_v13  ;;  %v6911_v33 = vshll.u32 %v17871_v39, %v6902_v19  ;;  %v6917_v1 = vshll.u32 %v17837_v36, %v6902_v19  ;;  %v6862_v5 = vshll.u32 %v6861_v31, 23 }
 0x652   :  { %v7114_v7 = vsel %vm17814_vm7, %v2415_v6, %v18381_v27  ;;  %v6906_v44 = vshrl.u32 %v17830_v59, %v6903_v60  ;;  %v6909_v23 = vshrl.u32 %v17871_v39, %v6903_v60  ;;  %v6912_v46 = vshrl.u32 %v17870_v42, %v6903_v60 }
 0x653   :  { %v7168_v20 = vpack.c.bf16 %v7114_v7, %v7112_v53  ;;  %v6914_v27 = vshll.u32 %v17870_v42, %v6902_v19  ;;  %v6915_v40 = vshrl.u32 %v17837_v36, %v6903_v60  ;;  %v6918_v15 = vshrl.u32 %v17838_v9, %v6903_v60 }
 0x654   :  { %v6907_v34 = vor.u32 %v6906_v44, %v6905_v4  ;;  %v6910_v54 = vor.u32 %v6909_v23, %v6908_v30  ;;  %v6913_v13 = vor.u32 %v6912_v46, %v6911_v33  ;;  %v6904_v11 = vshrl.u32 %v17841_v8, %v6903_v60 }
 0x655   :  { %7385 = vmatmul.mubr.bf16.gmra.mrb[16].mxu1 %v7168_v20  ;;  %v6916_v6 = vor.u32 %v6915_v40, %v6914_v27  ;;  %v6919_v53 = vor.u32 %v6918_v15, %v6917_v1  ;;  %vm6920_vm1 = vcmp.lt.s32.totalorder %v6901_v41, 1  ;;  %vm6922_vm2 = vcmp.lt.s32.totalorder %v6901_v41, 3 }
 0x656   :  { %vm6923_vm12 = vcmp.lt.s32.totalorder %v6901_v41, 4  ;;  %v6928_v7 = vsel %vm6920_vm1, %v6907_v34, %v6910_v54  ;;  %v6996_v20 = vshrl.u32 %v6995_v16, 23  ;;  %v6924_v57 = vsel %vm6920_vm1, %v6904_v11, %v6907_v34  ;;  %v18394_v34 = vld [vmem:[#allocation93_spill] sm:$0xff] }
 0x657   :  { %v6925_v45 = vsel %vm6923_vm12, %v6913_v13, 2102212464  ;;  %v6929_v10 = vsel %vm6923_vm12, %v6916_v6, 920167782  ;;  %v6932_v47 = vsel %vm6920_vm1, %v6910_v54, %v6913_v13  ;;  %vm6921_vm15 = vcmp.lt.s32.totalorder %v6901_v41, 2 }
 0x658   :  { %v6926_v19 = vsel %vm6922_vm2, %v6910_v54, %v6925_v45  ;;  %v6930_v51 = vsel %vm6922_vm2, %v6913_v13, %v6929_v10  ;;  %v6933_v31 = vsel %vm6923_vm12, %v6919_v53, 1326507024  ;;  %v6857_v4 = vshll.u32 %v16153_v37, %v16207_v21 }
 0x659   :  { %v6931_v30 = vsel %vm6921_vm15, %v6928_v7, %v6930_v51  ;;  %v6934_v60 = vsel %vm6922_vm2, %v6916_v6, %v6933_v31  ;;  %v18392_v44 = vand.u32 2147483647, %v16218_v18  ;;  %v6927_v33 = vsel %vm6921_vm15, %v6924_v57, %v6926_v19  ;;  %v18393_v57 = vld [vmem:[#allocation94_spill] sm:$0xff] }
 0x65a   :  { %v6935_v46 = vsel %vm6921_vm15, %v6932_v47, %v6934_v60  ;;  %v16254_v16 = vmul.u32.u64.low %v16232_v2, %v6931_v30  ;;  %v16255_v27 = vmul.u32.u64.high %v16232_v2, %v6931_v30, %v16254_v16  ;;  %v8287_v40 = vadd.s32 4294967169, %v6996_v20  ;;  %v18396_v30 = vld [vmem:[#allocation103_spill] sm:$0xff] }
 0x65b   :  { %v6999_v23 = vand.u32 8388607, %v18392_v44  ;;  %v16260_v45 = vmul.u32.u64.low %v16232_v2, %v6935_v46  ;;  %v16261_v10 = vmul.u32.u64.high %v16232_v2, %v6935_v46, %v16260_v45  ;;  %v16263_v37 = vor.u32 %v6858_v43, %v6857_v4  ;;  %v18395_v43 = vld [vmem:[#allocation99_spill] sm:$0xff] }
 0x65c   :  { %v16265_v51 = vor.u32 4788187, %v6862_v5  ;;  %v2721_v21 = vxor.u32 2147483648, %v18393_v57  ;;  %v6943_v47 = vmul.u32 %v16232_v2, %v6927_v33  ;;  %v7002_v15 = vadd.s32 1, %v8287_v40  ;;  %v18397_v33 = vld [vmem:[#allocation102_spill] sm:$0xff] }
 0x65d   :  { %v7000_v1 = vor.u32 8388608, %v6999_v23  ;;  %v2724_v54 = vxor.u32 2147483648, %v18394_v34  ;;  %v6946_v13 = vadd.s32 1, %v16255_v27  ;;  %vm2720_vm0 = vcmp.eq.s32.totalorder %v16227_v58, 0 }
 0x65e   :  { %vm2723_vm4 = vcmp.eq.s32.totalorder %v16227_v58, 2  ;;  %v16275_v11 = vand.u32 3, %v18395_v43  ;;  %vm6945_vm11 = vc.u32 %v16261_v10, %v16254_v16  ;;  %vm7003_vm6 = vcmp.gt.s32.totalorder %v7002_v15, 0 }
 0x65f   :  { %v2722_v5 = vsel %vm2720_vm0, %v18394_v34, %v2721_v21  ;;  %v2725_v2 = vsel %vm2723_vm4, %v2724_v54, %v18393_v57  ;;  %v6947_v7 = vsel %vm6945_vm11, %v6946_v13, %v16255_v27  ;;  %v7004_v20 = vsel %vm7003_vm6, %v7002_v15, 0  ;;  %v18398_v27 = vld [vmem:[#allocation71_spill] sm:$0xff] }
 0x660   :  { %v6948_v19 = vadd.s32 %v6947_v7, %v6943_v47  ;;  %v7006_v31 = vand.u32 31, %v7004_v20  ;;  %v16284_v4 = vshll.u32 %v7000_v1, 8  ;;  %v2929_v60 = vxor.u32 2147483648, %v18396_v30  ;;  %v18400_v7 = vld [vmem:[#allocation66_spill] sm:$0xff] }
 0x661   :  { %v16287_v44 = vshrl.u32 %v7004_v20, 5  ;;  %v2726_v23 = vsel %vm2719_vm14, %v2722_v5, %v2725_v2  ;;  %vm2928_vm1 = vcmp.eq.s32.totalorder %v16275_v11, 0  ;;  %v2932_v46 = vxor.u32 2147483648, %v18397_v33  ;;  %v18401_v20 = vld [vmem:[#allocation51_spill] sm:$0xff] }
 0x662   :  { %v6949_v45 = vadd.s32 536870912, %v6948_v19  ;;  %v7007_v40 = vsub.s32 32, %v7006_v31  ;;  %vm2931_vm2 = vcmp.eq.s32.totalorder %v16275_v11, 2  ;;  %v2606_v57 = vsub.s32 4, %v18398_v27 }
 0x663   :  { %v7009_v21 = vshll.u32 %v17841_v8, %v7006_v31  ;;  %v7012_v47 = vshll.u32 %v17830_v59, %v7006_v31  ;;  %v7015_v1 = vshll.u32 %v17871_v39, %v7006_v31  ;;  %v7018_v15 = vshll.u32 %v17870_v42, %v7006_v31 }
 0x664   :  { %v16299_v58 = vshrl.u32 %v6949_v45, 30  ;;  %v7010_v34 = vshrl.u32 %v17830_v59, %v7007_v40  ;;  %v7013_v54 = vshrl.u32 %v17871_v39, %v7007_v40  ;;  %v7021_v13 = vshll.u32 %v17837_v36, %v7006_v31  ;;  %v18402_v45 = vld [vmem:[#allocation42_spill] sm:$0xff] }
 0x665   :  { %vm2927_vm12 = vcmp.lt.s32.totalorder %v16275_v11, 2  ;;  %v7016_v43 = vshrl.u32 %v17870_v42, %v7007_v40  ;;  %v7019_v5 = vshrl.u32 %v17837_v36, %v7007_v40  ;;  %v7022_v2 = vshrl.u32 %v17838_v9, %v7007_v40 }
 0x666   :  { %18399 = vst [vmem:[#allocation43_spill] sm:$0xff] %v16299_v58  ;;  %vm7024_vm15 = vcmp.lt.s32.totalorder %v16287_v44, 1  ;;  %vm2716_vm14 = vweird.f32 %v18400_v7  ;;  %vm2924_vm0 = vweird.f32 %v18401_v20  ;;  %v18403_v59 = vand.u32 2147483647, %v18402_v45 }
 0x667   :  { %v6951_v31 = vshll.u32 %v16299_v58, 30  ;;  %v7008_v42 = vshrl.u32 %v17841_v8, %v7007_v40  ;;  %v7011_v41 = vor.u32 %v7010_v34, %v7009_v21  ;;  %v7014_v36 = vor.u32 %v7013_v54, %v7012_v47 }
 0x668   :  { %vm16313_vm4 = vcmp.le.f32.partialorder %v18403_v59, 0.7853982  ;;  %v7017_v53 = vor.u32 %v7016_v43, %v7015_v1  ;;  %v7020_v9 = vor.u32 %v7019_v5, %v7018_v15  ;;  %v7023_v6 = vor.u32 %v7022_v2, %v7021_v13  ;;  %v18406_v2 = vld [vmem:[#allocation88_spill] sm:$0xff] }
 0x669   :  { %vm7025_vm11 = vcmp.lt.s32.totalorder %v16287_v44, 2  ;;  %v16320_v61 = vsub.s32 %v6948_v19, %v6951_v31  ;;  %vm7026_vm6 = vcmp.lt.s32.totalorder %v16287_v44, 3  ;;  %vm7027_vm8 = vcmp.lt.s32.totalorder %v16287_v44, 4 }
 0x66a   :  { %v7032_v59 = vsel %vm7024_vm15, %v7011_v41, %v7014_v36  ;;  %v7029_v63 = vsel %vm7027_vm8, %v7017_v53, 2102212464  ;;  %v7033_v58 = vsel %vm7027_vm8, %v7020_v9, 920167782  ;;  %v7036_v8 = vsel %vm7024_vm15, %v7014_v36, %v7017_v53 }
 0x66b   :  { %v7037_v40 = vsel %vm7027_vm8, %v7023_v6, 1326507024  ;;  %v6954_v21 = vsub.s32 0, %v16320_v61  ;;  %v7034_v47 = vsel %vm7026_vm6, %v7017_v53, %v7033_v58  ;;  %v2930_v1 = vsel %vm2928_vm1, %v18397_v33, %v2929_v60 }
 0x66c   :  { %v7038_v19 = vsel %vm7026_vm6, %v7020_v9, %v7037_v40  ;;  %vm6786_vm3 = vcmp.lt.s32.totalorder %v15889_v29, 0  ;;  %v7028_v15 = vsel %vm7024_vm15, %v7008_v42, %v7011_v41  ;;  %v7035_v6 = vsel %vm7025_vm11, %v7032_v59, %v7034_v47  ;;  %v18444_v42 = vld [vmem:[#allocation120_spill] sm:$0xff] }
 0x66d   :  { %v7039_v34 = vsel %vm7025_vm11, %v7036_v8, %v7038_v19  ;;  %v2933_v53 = vsel %vm2931_vm2, %v2932_v46, %v18396_v30  ;;  %v8284_v58 = vmin.u32 %v6954_v21, %v16320_v61  ;;  %v7030_v60 = vsel %vm7026_vm6, %v7014_v36, %v7029_v63  ;;  %v18412_v8 = vld [vmem:[#allocation48_spill] sm:$0xff]  ;;  %v18416_v21 = vld [vmem:[#allocation81_spill] sm:$0xff] }
 0x66e   :  { %v16350_v33 = vmul.u32.u64.low %v16284_v4, %v7039_v34  ;;  %v16351_v54 = vmul.u32.u64.high %v16284_v4, %v7039_v34, %v16350_v33  ;;  %v16354_v41 = vmul.u32.u64.low %v16284_v4, %v7035_v6  ;;  %v16355_v13 = vmul.u32.u64.high %v16284_v4, %v7035_v6, %v16354_v41 }
 0x66f   :  { %v2934_v43 = vsel %vm2927_vm12, %v2930_v1, %v2933_v53  ;;  %v2607_v30 = vsel %vm2522_vm13, %v2606_v57, %v18398_v27  ;;  %vm17812_vm8 = vcmp.lt.s32.totalorder %v15778_v49, 0  ;;  %v6956_v46 = vclz %v8284_v58 }
 0x670   :  { %v2727_v63 = vsel %vm2716_vm14, nan, %v2726_v23  ;;  %v2935_v5 = vsel %vm2924_vm0, nan, %v2934_v43  ;;  %v2608_v31 = vsel %vm16313_vm4, %v18402_v45, %v18406_v2  ;;  %v18407_v11 = vand.u32 2147483647, %v15889_v29 }
 0x671   :  { %v7031_v27 = vsel %vm7025_vm11, %v7028_v15, %v7030_v60  ;;  %v7171_v57 = vpack.c.bf16 %v2935_v5, %v2727_v63  ;;  %v2609_v23 = vsel %vm16313_vm4, 0, %v2607_v30  ;;  %8886 = vcosq.f32 %v2608_v31 }
 0x672   :  { %vm16374_vm1 = vcmp.le.f32.partialorder %v18407_v11, 0.7853982  ;;  %v6870_v7 = vsub.s32 4, %v16121_v52  ;;  %v8285_v20 = vadd.s32 4294967294, %v6956_v46  ;;  %vm7049_vm13 = vc.u32 %v16351_v54, %v16354_v41 }
 0x673   :  { %8888 = vsinq.f32 %v2608_v31  ;;  %v18410_v36 = vand.u32 2147483647, %v16265_v51  ;;  %v18411_v9 = vcvt.s32.f32 %v16263_v37  ;;  %v7050_v44 = vadd.s32 1, %v16355_v13  ;;  %8306 = vmatprep.mubr.msk.bf16.mxu1 %vm17813_vm5, %v7171_v57  ;;  %v18417_v51 = vld [vmem:[#allocation98_spill] sm:$0xff] }
 0x674   :  { %v18413_v39 = vand.u32 2147483647, %v18412_v8  ;;  %v2814_v47 = vsub.s32 4, %v18416_v21  ;;  %vm8286_vm12 = vcmp.lt.s32.totalorder %v8285_v20, 0  ;;  %v7047_v19 = vmul.u32 %v16284_v4, %v7031_v27  ;;  %v18421_v27 = vld [vmem:[#allocation100_spill] sm:$0xff] }
 0x675   :  { %v6867_v59 = vmul.f32 %v18411_v9, %v18410_v36  ;;  %v2613_v1 = vadd.s32 3, %v2609_v23  ;;  %v6556_v15 = vxor.u32 2147483648, %v16183_v35  ;;  %v18418_v6 = vshll.u32 %v16065_v62, %v16176_v38 }
 0x676   :  { %vm16393_vm2 = vcmp.le.f32.partialorder %v18413_v39, 0.7853982  ;;  %v18419_v53 = vshll.u32 %v16213_v24, 23  ;;  %v7051_v4 = vsel %vm7049_vm13, %v7050_v44, %v16355_v13  ;;  %8890 = vcosq.f32 %v16201_v28  ;;  %v18423_v39 = vld [vmem:[#allocation104_spill] sm:$0xff] }
 0x677   :  { %v2816_v37 = vsel %vm16393_vm2, %v18412_v8, %v18417_v51  ;;  %v16408_v34 = vor.u32 %v16211_v50, %v18418_v6  ;;  %v18420_v60 = vsel %vm16170_vm10, 0, %v16165_v12  ;;  %v16425_v62 = vsel %vm6786_vm3, %v6870_v7, %v16121_v52 }
 0x678   :  { %v16412_v58 = vor.u32 4788187, %v18419_v53  ;;  %v16420_v33 = vadd.s32 3, %v18420_v60  ;;  %v7052_v38 = vadd.s32 %v7051_v4, %v7047_v19  ;;  %v6868_v50 = vxor.u32 2147483648, %v6867_v59  ;;  %v18424_v4 = vld [vmem:[#allocation55_spill] sm:$0xff] }
 0x679   :  { %v16427_v24 = vsel %vm8286_vm12, 0, %v8285_v20  ;;  %v2815_v13 = vsel %vm2730_vm9, %v2814_v47, %v18416_v21  ;;  %8892 = vcosq.f32 %v2816_v37  ;;  %v2614_v12 = vand.u32 3, %v2613_v1  ;;  %v18422_v20 = vld [vmem:[#allocation108_spill] sm:$0xff] }
 0x67a   :  { %8894 = vsinq.f32 %v16201_v28  ;;  %v7053_v32 = vadd.s32 536870912, %v7052_v38  ;;  %v2817_v43 = vsel %vm16393_vm2, 0, %v2815_v13  ;;  %v16438_v52 = vsel %vm17812_vm8, %v6556_v15, %v16183_v35  ;;  %v18426_v13 = vld [vmem:[#allocation115_spill] sm:$0xff] }
 0x67b   :  { %v6760_v30 = vand.u32 2147483647, %v16412_v58  ;;  %v6762_v46 = vcvt.s32.f32 %v16408_v34  ;;  %8896 = vsinq.f32 %v2816_v37  ;;  %v6873_v63 = vsel %vm16374_vm1, 0, %v16425_v62  ;;  %v8887_v31 = vpop.eup %8886 }
 0x67c   :  { %v6964_v28 = vsub.s32 4294967266, %v16427_v24  ;;  %v16446_v5 = vshrl.u32 %v7053_v32, 30  ;;  %v2821_v2 = vadd.s32 3, %v2817_v43  ;;  %v16450_v11 = vsel %vm6786_vm3, %v6868_v50, %v6867_v59 }
 0x67d   :  { %v16454_v35 = vadd.s32 %v16254_v16, %v16261_v10  ;;  %vm2612_vm9 = vweird.f32 %v18402_v45  ;;  %v3134_v57 = vand.u32 3, %v18421_v27  ;;  %v8889_v23 = vpop.eup %8888  ;;  %vm2615_vm10 = vcmp.lt.s32.totalorder %v2614_v12, 2 }
 0x67e   :  { %v7055_v7 = vshll.u32 %v16446_v5, 30  ;;  %vm2616_vm15 = vcmp.eq.s32.totalorder %v2614_v12, 0  ;;  %v3137_v36 = vxor.u32 2147483648, %v18422_v20  ;;  %v6960_v9 = vsub.s32 32, %v16427_v24 }
 0x67f   :  { %v2617_v44 = vxor.u32 2147483648, %v8889_v23  ;;  %v2620_v59 = vxor.u32 2147483648, %v8887_v31  ;;  %v3140_v40 = vxor.u32 2147483648, %v18423_v39  ;;  %v16462_v21 = vadd.s32 127, %v6964_v28 }
 0x680   :  { %v16464_v16 = vsub.s32 %v7052_v38, %v7055_v7  ;;  %vm2619_vm3 = vcmp.eq.s32.totalorder %v2614_v12, 2  ;;  %v2822_v10 = vand.u32 3, %v2821_v2  ;;  %vm2820_vm14 = vweird.f32 %v18412_v8  ;;  %v16467_v1 = vpop.eup %8890  ;;  %v18425_v38 = vld [vmem:[#allocation113_spill] sm:$0xff]  ;;  %v18427_v2 = vld [vmem:[#allocation79_spill] sm:$0xff] }
 0x681   :  { %v2618_v47 = vsel %vm2616_vm15, %v8887_v31, %v2617_v44  ;;  %v2621_v19 = vsel %vm2619_vm3, %v2620_v59, %v8889_v23  ;;  %vm3135_vm0 = vcmp.lt.s32.totalorder %v3134_v57, 2  ;;  %vm3136_vm4 = vcmp.eq.s32.totalorder %v3134_v57, 0  ;;  %v18428_v44 = vld [vmem:[#allocation114_spill] sm:$0xff] }
 0x682   :  { %v7058_v51 = vsub.s32 0, %v16464_v16  ;;  %v2622_v37 = vsel %vm2615_vm10, %v2618_v47, %v2621_v19  ;;  %v3138_v15 = vsel %vm3136_vm4, %v18423_v39, %v3137_v36  ;;  %vm3139_vm11 = vcmp.eq.s32.totalorder %v3134_v57, 2 }
 0x683   :  { %v8893_v6 = vpop.eup %8892  ;;  %v2623_v53 = vsel %vm2612_vm9, nan, %v2622_v37  ;;  %vm3132_vm6 = vweird.f32 %v18424_v4  ;;  %v3141_v60 = vsel %vm3139_vm11, %v3140_v40, %v18422_v20  ;;  %v3342_v50 = vand.u32 3, %v18425_v38  ;;  %v18429_v40 = vld [vmem:[#allocation53_spill] sm:$0xff] }
 0x684   :  { %v3345_v32 = vxor.u32 2147483648, %v18426_v13  ;;  %v16478_v43 = vpop.eup %8894  ;;  %v8288_v12 = vmin.u32 %v7058_v51, %v16464_v16  ;;  %vm2823_vm13 = vcmp.lt.s32.totalorder %v2822_v10, 2  ;;  %v2828_v28 = vxor.u32 2147483648, %v8893_v6 }
 0x685   :  { %vm3340_vm2 = vweird.f32 %v18427_v2  ;;  %v8897_v31 = vpop.eup %8896  ;;  %vm2824_vm12 = vcmp.eq.s32.totalorder %v2822_v10, 0  ;;  %vm2827_vm10 = vcmp.eq.s32.totalorder %v2822_v10, 2  ;;  %v7116_v27 = vsel %vm17814_vm7, %v2623_v53, %v18402_v45  ;;  %v18433_v45 = vld [vmem:[#allocation85_spill] sm:$0xff] }
 0x686   :  { %v3142_v23 = vsel %vm3135_vm0, %v3138_v15, %v3141_v60  ;;  %v7060_v7 = vclz %v8288_v12  ;;  %v2825_v20 = vxor.u32 2147483648, %v8897_v31  ;;  %v2829_v36 = vsel %vm2827_vm10, %v2828_v28, %v8897_v31  ;;  %v18434_v15 = vld [vmem:[#allocation105_spill] sm:$0xff] }
 0x687   :  { %vm3344_vm9 = vcmp.eq.s32.totalorder %v3342_v50, 0  ;;  %vm3347_vm15 = vcmp.eq.s32.totalorder %v3342_v50, 2  ;;  %v3348_v39 = vxor.u32 2147483648, %v18428_v44  ;;  %v18430_v47 = vand.u32 2147483647, %v18429_v40 }
 0x688   :  { %v3346_v59 = vsel %vm3344_vm9, %v18428_v44, %v3345_v32  ;;  %v8289_v51 = vadd.s32 4294967294, %v7060_v7  ;;  %v2826_v37 = vsel %vm2824_vm12, %v8893_v6, %v2825_v20  ;;  %v3022_v57 = vsub.s32 4, %v18433_v45 }
 0x689   :  { %vm16490_vm3 = vcmp.le.f32.partialorder %v18430_v47, 0.7853982  ;;  %v2830_v60 = vsel %vm2823_vm13, %v2826_v37, %v2829_v36  ;;  %vm3343_vm0 = vcmp.lt.s32.totalorder %v3342_v50, 2  ;;  %v3349_v38 = vsel %vm3347_vm15, %v3348_v39, %v18426_v13  ;;  %v18436_v39 = vld [vmem:[#allocation60_spill] sm:$0xff] }
 0x68a   :  { %v3024_v53 = vsel %vm16490_vm3, %v18429_v40, %v18434_v15  ;;  %vm8290_vm4 = vcmp.lt.s32.totalorder %v8289_v51, 0  ;;  %v2831_v32 = vsel %vm2820_vm14, nan, %v2830_v60  ;;  %v3350_v12 = vsel %vm3343_vm0, %v3346_v59, %v3349_v38 }
 0x68b   :  { %8898 = vcosq.f32 %v3024_v53  ;;  %vm18435_vm11 = vcmp.lt.s32.totalorder %v18429_v40, 0  ;;  %v7063_v28 = vsel %vm8290_vm4, 0, %v8289_v51  ;;  %v7118_v31 = vsel %vm17814_vm7, %v2831_v32, %v18412_v8  ;;  %v18450_v51 = vld [vmem:[#allocation127_spill] sm:$0xff] }
 0x68c   :  { %v3023_v6 = vsel %vm18435_vm11, %v3022_v57, %v18433_v45  ;;  %v3351_v10 = vsel %vm3340_vm2, nan, %v3350_v12  ;;  %v7064_v13 = vsub.s32 32, %v7063_v28  ;;  %v7068_v7 = vsub.s32 4294967266, %v7063_v28  ;;  %v18446_v12 = vld [vmem:[#allocation69_spill] sm:$0xff] }
 0x68d   :  { %v3025_v50 = vsel %vm16490_vm3, 0, %v3023_v6  ;;  %v7170_v20 = vpack.c.bf16 %v7118_v31, %v7116_v27  ;;  %v3143_v36 = vsel %vm3132_vm6, nan, %v3142_v23  ;;  %8900 = vsinq.f32 %v3024_v53  ;;  %v18440_v27 = vld [vmem:[#allocation92_spill] sm:$0xff]  ;;  %v18441_v23 = vld [vmem:[#allocation109_spill] sm:$0xff]  ;;  %v18445_v53 = vld [vmem:[#allocation119_spill] sm:$0xff] }
 0x68e   :  { %v7173_v44 = vpack.c.bf16 %v3351_v10, %v3143_v36  ;;  %v3029_v59 = vadd.s32 3, %v3025_v50  ;;  %v18437_v47 = vand.u32 2147483647, %v18436_v39  ;;  %v6962_v8 = vshrl.u32 %v16454_v35, %v6960_v9  ;;  %v18447_v6 = vld [vmem:[#allocation123_spill] sm:$0xff]  ;;  %v18448_v10 = vld [vmem:[#allocation101_spill] sm:$0xff] }
 0x68f   :  { %v7048_v2 = vadd.s32 %v16354_v41, %v16351_v54  ;;  %7393 = vmatmul.mubr.bf16.gmra.mrb[20].mxu1 %v7170_v20  ;;  %v3230_v4 = vsub.s32 4, %v18440_v27  ;;  %v16535_v37 = vmul.f32 %v6762_v46, %v6760_v30  ;;  %v16541_v35 = vadd.s32 3, %v6873_v63  ;;  %v18449_v20 = vld [vmem:[#allocation128_spill] sm:$0xff] }
 0x690   :  { %vm16517_vm14 = vcmp.le.f32.partialorder %v18437_v47, 0.7853982  ;;  %v6966_v54 = vshll.u32 %v16462_v21, 23  ;;  %8307 = vmatprep.mubr.msk.bf16.mxu1 %vm17813_vm5, %v7173_v44  ;;  %v6961_v41 = vshll.u32 %v16320_v61, %v16427_v24  ;;  %vm18442_vm6 = vcmp.lt.s32.totalorder %v18436_v39, 0  ;;  %v18443_v21 = vld [vmem:[#allocation116_spill] sm:$0xff] }
 0x691   :  { %v3232_v19 = vsel %vm16517_vm14, %v18436_v39, %v18441_v23  ;;  %v7066_v9 = vshrl.u32 %v7048_v2, %v7064_v13  ;;  %v3231_v34 = vsel %vm18442_vm6, %v3230_v4, %v18440_v27  ;;  %v16554_v58 = vsel %vm16374_vm1, %v15889_v29, %v16450_v11 }
 0x692   :  { %8902 = vcosq.f32 %v3232_v19  ;;  %v16556_v62 = vadd.s32 127, %v7068_v7  ;;  %v3030_v30 = vand.u32 3, %v3029_v59  ;;  %v3233_v46 = vsel %vm16517_vm14, 0, %v3231_v34 }
 0x693   :  { %8904 = vsinq.f32 %v3232_v19  ;;  %v16560_v63 = vor.u32 %v6962_v8, %v6961_v41  ;;  %v7065_v61 = vshll.u32 %v16464_v16, %v7063_v28  ;;  %v3237_v24 = vadd.s32 3, %v3233_v46 }
 0x694   :  { %v3550_v45 = vand.u32 3, %v18443_v21  ;;  %v16564_v15 = vor.u32 4788187, %v6966_v54  ;;  %vm3028_vm13 = vweird.f32 %v18429_v40  ;;  %v3553_v11 = vxor.u32 2147483648, %v18444_v42  ;;  %v18451_v54 = vld [vmem:[#allocation97_spill] sm:$0xff] }
 0x695   :  { %v8899_v57 = vpop.eup %8898  ;;  %v3556_v60 = vxor.u32 2147483648, %v18445_v53  ;;  %v16569_v38 = vor.u32 %v7066_v9, %v7065_v61  ;;  %vm3548_vm1 = vweird.f32 %v18446_v12  ;;  %v3758_v31 = vand.u32 3, %v18447_v6 }
 0x696   :  { %v3036_v32 = vxor.u32 2147483648, %v8899_v57  ;;  %v7070_v16 = vshll.u32 %v16556_v62, 23  ;;  %vm3031_vm2 = vcmp.lt.s32.totalorder %v3030_v30, 2  ;;  %vm3032_vm12 = vcmp.eq.s32.totalorder %v3030_v30, 0 }
 0x697   :  { %v3238_v28 = vand.u32 3, %v3237_v24  ;;  %vm3035_vm10 = vcmp.eq.s32.totalorder %v3030_v30, 2  ;;  %vm3236_vm9 = vweird.f32 %v18436_v39  ;;  %vm3552_vm15 = vcmp.eq.s32.totalorder %v3550_v45, 0  ;;  %v8901_v50 = vpop.eup %8900  ;;  %v18452_v30 = vld [vmem:[#allocation89_spill] sm:$0xff] }
 0x698   :  { %vm3555_vm3 = vcmp.eq.s32.totalorder %v3550_v45, 2  ;;  %vm3756_vm0 = vweird.f32 %v18448_v10  ;;  %vm3551_vm4 = vcmp.lt.s32.totalorder %v3550_v45, 2  ;;  %v3554_v13 = vsel %vm3552_vm15, %v18445_v53, %v3553_v11 }
 0x699   :  { %v3557_v7 = vsel %vm3555_vm3, %v3556_v60, %v18444_v42  ;;  %v3761_v36 = vxor.u32 2147483648, %v18449_v20  ;;  %v3033_v44 = vxor.u32 2147483648, %v8901_v50  ;;  %v3037_v59 = vsel %vm3035_vm10, %v3036_v32, %v8901_v50  ;;  %v18455_v32 = vld [vmem:[#allocation117_spill] sm:$0xff] }
 0x69a   :  { %vm3759_vm11 = vcmp.lt.s32.totalorder %v3758_v31, 2  ;;  %vm3760_vm14 = vcmp.eq.s32.totalorder %v3758_v31, 0  ;;  %vm3239_vm6 = vcmp.lt.s32.totalorder %v3238_v28, 2  ;;  %vm3763_vm8 = vcmp.eq.s32.totalorder %v3758_v31, 2 }
 0x69b   :  { %v3762_v8 = vsel %vm3760_vm14, %v18450_v51, %v3761_v36  ;;  %v3764_v2 = vxor.u32 2147483648, %v18450_v51  ;;  %v3034_v4 = vsel %vm3032_vm12, %v8899_v57, %v3033_v44  ;;  %v3558_v19 = vsel %vm3551_vm4, %v3554_v13, %v3557_v7  ;;  %v18460_v44 = vld [vmem:[#allocation107_spill] sm:$0xff] }
 0x69c   :  { %v8903_v47 = vpop.eup %8902  ;;  %v3438_v41 = vsub.s32 4, %v18451_v54  ;;  %v3038_v9 = vsel %vm3031_vm2, %v3034_v4, %v3037_v59  ;;  %vm3243_vm10 = vcmp.eq.s32.totalorder %v3238_v28, 2  ;;  %vm3240_vm15 = vcmp.eq.s32.totalorder %v3238_v28, 0  ;;  %v18464_v4 = vld [vmem:[#allocation133_spill] sm:$0xff] }
 0x69d   :  { %v8905_v27 = vpop.eup %8904  ;;  %v3244_v23 = vxor.u32 2147483648, %v8903_v47  ;;  %v3765_v62 = vsel %vm3763_vm8, %v3764_v2, %v18449_v20  ;;  %v3039_v46 = vsel %vm3028_vm13, nan, %v3038_v9  ;;  %v3559_v45 = vsel %vm3548_vm1, nan, %v3558_v19  ;;  %v18462_v2 = vld [vmem:[#allocation129_spill] sm:$0xff]  ;;  %v18465_v19 = vld [vmem:[#allocation131_spill] sm:$0xff] }
 0x69e   :  { %v3241_v34 = vxor.u32 2147483648, %v8905_v27  ;;  %v3766_v24 = vsel %vm3759_vm11, %v3762_v8, %v3765_v62  ;;  %v18453_v42 = vand.u32 2147483647, %v18452_v30  ;;  %v7120_v53 = vsel %vm17814_vm7, %v3039_v46, %v18429_v40  ;;  %v18456_v40 = vld [vmem:[#allocation74_spill] sm:$0xff] }
 0x69f   :  { %v3245_v61 = vsel %vm3243_vm10, %v3244_v23, %v8905_v27  ;;  %v3767_v57 = vsel %vm3756_vm0, nan, %v3766_v24  ;;  %vm18454_vm8 = vcmp.lt.s32.totalorder %v18452_v30, 0  ;;  %v18457_v13 = vand.u32 2147483647, %v18456_v40 }
 0x6a0   :  { %v3242_v21 = vsel %vm3240_vm15, %v8903_v47, %v3241_v34  ;;  %vm3353_vm2 = vcmp.le.f32.partialorder %v18453_v42, 0.7853982  ;;  %v3439_v60 = vsel %vm18454_vm8, %v3438_v41, %v18451_v54  ;;  %v7175_v31 = vpack.c.bf16 %v3767_v57, %v3559_v45  ;;  %v18461_v47 = vld [vmem:[#allocation122_spill] sm:$0xff]  ;;  %v18466_v45 = vld [vmem:[#allocation135_spill] sm:$0xff] }
 0x6a1   :  { %v3246_v11 = vsel %vm3239_vm6, %v3242_v21, %v3245_v61  ;;  %v3440_v12 = vsel %vm3353_vm2, %v18452_v30, %v18455_v32  ;;  %v3441_v10 = vsel %vm3353_vm2, 0, %v3439_v60  ;;  %vm16611_vm13 = vcmp.le.f32.partialorder %v18457_v13, 0.7853982  ;;  %v18468_v60 = vld [vmem:[#allocation137_spill] sm:$0xff] }
 0x6a2   :  { %v3247_v6 = vsel %vm3236_vm9, nan, %v3246_v11  ;;  %8906 = vcosq.f32 %v3440_v12  ;;  %v3445_v50 = vadd.s32 3, %v3441_v10  ;;  %v16615_v20 = vor.u32 4788187, %v7070_v16  ;;  %v18467_v11 = vld [vmem:[#allocation144_spill] sm:$0xff] }
 0x6a3   :  { %v7122_v28 = vsel %vm17814_vm7, %v3247_v6, %v18436_v39  ;;  %8908 = vsinq.f32 %v3440_v12  ;;  %v3646_v59 = vsub.s32 4, %v18460_v44  ;;  %v3648_v51 = vsel %vm16611_vm13, %v18456_v40, %v18461_v47  ;;  %v18469_v12 = vld [vmem:[#allocation106_spill] sm:$0xff]  ;;  %v18470_v6 = vld [vmem:[#allocation91_spill] sm:$0xff] }
 0x6a4   :  { %v7172_v36 = vpack.c.bf16 %v7122_v28, %v7120_v53  ;;  %v6970_v39 = vcvt.s32.f32 %v16560_v63  ;;  %v3446_v8 = vand.u32 3, %v3445_v50  ;;  %8910 = vcosq.f32 %v3648_v51 }
 0x6a5   :  { %v3966_v27 = vand.u32 3, %v18462_v2  ;;  %vm18463_vm1 = vcmp.lt.s32.totalorder %v18456_v40, 0  ;;  %8912 = vsinq.f32 %v3648_v51  ;;  %v3969_v23 = vxor.u32 2147483648, %v18464_v4 }
 0x6a6   :  { %7401 = vmatmul.mubr.bf16.gmra.mrb[24].mxu1 %v7172_v36  ;;  %v3647_v16 = vsel %vm18463_vm1, %v3646_v59, %v18460_v44  ;;  %v3972_v54 = vxor.u32 2147483648, %v18465_v19  ;;  %v6968_v41 = vand.u32 2147483647, %v16564_v15  ;;  %v7074_v9 = vcvt.s32.f32 %v16569_v38  ;;  %v18475_v59 = vld [vmem:[#allocation112_spill] sm:$0xff] }
 0x6a7   :  { %v7078_v34 = vsub.s32 4, %v16446_v5  ;;  %8308 = vmatprep.mubr.msk.bf16.mxu1 %vm17813_vm5, %v7175_v31  ;;  %v3649_v62 = vsel %vm16611_vm13, 0, %v3647_v16  ;;  %v7072_v46 = vand.u32 2147483647, %v16615_v20  ;;  %vm3968_vm12 = vcmp.eq.s32.totalorder %v3966_v27, 0  ;;  %v18471_v20 = vld [vmem:[#allocation83_spill] sm:$0xff] }
 0x6a8   :  { %v3653_v61 = vadd.s32 3, %v3649_v62  ;;  %vm3971_vm9 = vcmp.eq.s32.totalorder %v3966_v27, 2  ;;  %vm3444_vm3 = vweird.f32 %v18452_v30  ;;  %vm3447_vm0 = vcmp.lt.s32.totalorder %v3446_v8, 2  ;;  %v18533_v15 = vld [vmem:[#allocation12_spill] sm:$0xff] }
 0x6a9   :  { %v3970_v24 = vsel %vm3968_vm12, %v18465_v19, %v3969_v23  ;;  %v3973_v21 = vsel %vm3971_vm9, %v3972_v54, %v18464_v4  ;;  %v4174_v57 = vand.u32 3, %v18466_v45  ;;  %vm3448_vm4 = vcmp.eq.s32.totalorder %v3446_v8, 0 }
 0x6aa   :  { %v3654_v42 = vand.u32 3, %v3653_v61  ;;  %v4177_v53 = vxor.u32 2147483648, %v18467_v11  ;;  %v4180_v32 = vxor.u32 2147483648, %v18468_v60  ;;  %vm3451_vm11 = vcmp.eq.s32.totalorder %v3446_v8, 2 }
 0x6ab   :  { %vm3964_vm14 = vweird.f32 %v18469_v12  ;;  %vm3967_vm6 = vcmp.lt.s32.totalorder %v3966_v27, 2  ;;  %vm4172_vm10 = vweird.f32 %v18470_v6  ;;  %vm4176_vm15 = vcmp.eq.s32.totalorder %v4174_v57, 0  ;;  %v18476_v27 = vld [vmem:[#allocation130_spill] sm:$0xff] }
 0x6ac   :  { %v8907_v31 = vpop.eup %8906  ;;  %vm3652_vm2 = vweird.f32 %v18456_v40  ;;  %v3974_v10 = vsel %vm3967_vm6, %v3970_v24, %v3973_v21  ;;  %vm4175_vm8 = vcmp.lt.s32.totalorder %v4174_v57, 2  ;;  %v4178_v28 = vsel %vm4176_vm15, %v18468_v60, %v4177_v53  ;;  %v18482_v6 = vld [vmem:[#allocation118_spill] sm:$0xff] }
 0x6ad   :  { %vm4179_vm13 = vcmp.eq.s32.totalorder %v4174_v57, 2  ;;  %v8909_v50 = vpop.eup %8908  ;;  %v3452_v13 = vxor.u32 2147483648, %v8907_v31  ;;  %v18472_v36 = vand.u32 2147483647, %v18471_v20  ;;  %v3854_v47 = vsub.s32 4, %v18475_v59 }
 0x6ae   :  { %v4181_v7 = vsel %vm4179_vm13, %v4180_v32, %v18467_v11  ;;  %v3449_v51 = vxor.u32 2147483648, %v8909_v50  ;;  %vm3656_vm12 = vcmp.eq.s32.totalorder %v3654_v42, 0  ;;  %v8911_v4 = vpop.eup %8910  ;;  %vm3659_vm9 = vcmp.eq.s32.totalorder %v3654_v42, 2  ;;  %v18478_v32 = vld [vmem:[#allocation90_spill] sm:$0xff] }
 0x6af   :  { %vm16649_vm1 = vcmp.le.f32.partialorder %v18472_v36, 0.7853982  ;;  %v4182_v2 = vsel %vm4175_vm8, %v4178_v28, %v4181_v7  ;;  %v3453_v23 = vsel %vm3451_vm11, %v3452_v13, %v8909_v50  ;;  %vm18477_vm6 = vcmp.lt.s32.totalorder %v18471_v20, 0  ;;  %v8913_v54 = vpop.eup %8912  ;;  %v18483_v7 = vld [vmem:[#allocation136_spill] sm:$0xff] }
 0x6b0   :  { %v3856_v16 = vsel %vm16649_vm1, %v18471_v20, %v18476_v27  ;;  %v3855_v19 = vsel %vm18477_vm6, %v3854_v47, %v18475_v59  ;;  %v3450_v62 = vsel %vm3448_vm4, %v8907_v31, %v3449_v51  ;;  %v3660_v61 = vxor.u32 2147483648, %v8911_v4 }
 0x6b1   :  { %8914 = vcosq.f32 %v3856_v16  ;;  %v4183_v24 = vsel %vm4172_vm10, nan, %v4182_v2  ;;  %v3857_v21 = vsel %vm16649_vm1, 0, %v3855_v19  ;;  %v3454_v45 = vsel %vm3447_vm0, %v3450_v62, %v3453_v23  ;;  %v18488_v19 = vld [vmem:[#allocation147_spill] sm:$0xff]  ;;  %v8722_v62 = vld [vmem:[%s17451_s5] sm:$0xff]  }
 0x6b2   :  { %v3657_v57 = vxor.u32 2147483648, %v8913_v54  ;;  %8916 = vsinq.f32 %v3856_v16  ;;  %v3861_v11 = vadd.s32 3, %v3857_v21  ;;  %v3455_v53 = vsel %vm3444_vm3, nan, %v3454_v45  ;;  %8382 = vmatprep.subr.bf16.mxu0 %v8722_v62  ;;  %8430 = vmatprep.subr.bf16.mxu1 %v8722_v62 }
 0x6b3   :  { %v3661_v60 = vsel %vm3659_vm9, %v3660_v61, %v8913_v54  ;;  %v18479_v28 = vand.u32 2147483647, %v18478_v32  ;;  %v4062_v50 = vsub.s32 4, %v18482_v6  ;;  %vm3655_vm4 = vcmp.lt.s32.totalorder %v3654_v42, 2  ;;  %v8723_v61 = vld [vmem:[%s17451_s5 + $0x8] sm:$0xff]   ;;  %8383 = vmatpush3.bf16.msra.mxu0 %v8722_v62  ;;  %8438 = vmatpush3.bf16.msra.mxu1 %v8722_v62 }
 0x6b4   :  { %v3658_v13 = vsel %vm3656_vm12, %v8911_v4, %v3657_v57  ;;  %v16678_v8 = vand.u32 3, %v3861_v11  ;;  %v3975_v59 = vsel %vm3964_vm14, nan, %v3974_v10  ;;  %vm18484_vm3 = vcmp.lt.s32.totalorder %v18478_v32, 0  ;;  %v18485_v10 = vld [vmem:[#allocation141_spill] sm:$0xff]  ;;  %v18486_v4 = vld [vmem:[#allocation146_spill] sm:$0xff]  ;;  %v18489_v57 = vld [vmem:[#allocation36_spill] sm:$0xff]  ;;  %8384 = vmatprep.subr.bf16.mxu0 %v8723_v61  ;;  %8431 = vmatprep.subr.bf16.mxu1 %v8723_v61 }
 0x6b5   :  { %vm16672_vm11 = vcmp.le.f32.partialorder %v18479_v28, 0.7853982  ;;  %v3662_v44 = vsel %vm3655_vm4, %v3658_v13, %v3661_v60  ;;  %v4063_v47 = vsel %vm18484_vm3, %v4062_v50, %v18482_v6  ;;  %v16691_v42 = vmul.f32 %v7074_v9, %v7072_v46  ;;  %v18490_v60 = vld [vmem:[#allocation96_spill] sm:$0xff]  ;;  %v18491_v13 = vld [vmem:[#allocation126_spill] sm:$0xff] }
 0x6b6   :  { %v4064_v36 = vsel %vm16672_vm11, %v18478_v32, %v18483_v7  ;;  %v3663_v51 = vsel %vm3652_vm2, nan, %v3662_v44  ;;  %v7124_v2 = vsel %vm17814_vm7, %v3455_v53, %v18452_v30  ;;  %v7177_v27 = vpack.c.bf16 %v4183_v24, %v3975_v59  ;;  %v18487_v30 = vld [vmem:[#allocation145_spill] sm:$0xff]  ;;  %v16717_v24 = vpop.f32.mrb[0].mxu1  ;;  %v18492_v59 = vld [vmem:[#allocation8_spill] sm:$0xff] }
 0x6b7   :  { %8918 = vcosq.f32 %v4064_v36  ;;  %v7126_v12 = vsel %vm17814_vm7, %v3663_v51, %v18456_v40  ;;  %vm3863_vm0 = vcmp.lt.s32.totalorder %v16678_v8, 2  ;;  %vm3864_vm14 = vcmp.eq.s32.totalorder %v16678_v8, 0  ;;  %v7356_v6 = vpop.f32.mrb[1].mxu1  ;;  %8385 = vmatpush3.bf16.msra.mxu0 %v8723_v61  ;;  %8439 = vmatpush3.bf16.msra.mxu1 %v8723_v61 }
 0x6b8   :  { %v4065_v38 = vsel %vm16672_vm11, 0, %v4063_v47  ;;  %8920 = vsinq.f32 %v4064_v36  ;;  %v7174_v9 = vpack.c.bf16 %v7126_v12, %v7124_v2  ;;  %v4382_v16 = vand.u32 3, %v18485_v10  ;;  %v18493_v2 = vld [vmem:[#allocation95_spill] sm:$0xff] }
 0x6b9   :  { %v4069_v46 = vadd.s32 3, %v4065_v38  ;;  %v4385_v23 = vxor.u32 2147483648, %v18486_v4  ;;  %vm3860_vm10 = vweird.f32 %v18471_v20  ;;  %vm3867_vm15 = vcmp.eq.s32.totalorder %v16678_v8, 2 }
 0x6ba   :  { %v4388_v40 = vxor.u32 2147483648, %v18487_v30  ;;  %v4590_v54 = vand.u32 3, %v18488_v19  ;;  %7409 = vmatmul.mubr.bf16.gmra.mrb[28].mxu1 %v7174_v9  ;;  %vm4384_vm2 = vcmp.eq.s32.totalorder %v4382_v16, 0  ;;  %vm4387_vm8 = vcmp.eq.s32.totalorder %v4382_v16, 2  ;;  %v16751_v19 = vpop.f32.mrb[2].mxu1 }
 0x6bb   :  { %v8915_v21 = vpop.eup %8914  ;;  %v16719_v45 = vand.u32 3, %v4069_v46  ;;  %v4593_v11 = vxor.u32 2147483648, %v18489_v57  ;;  %8309 = vmatprep.mubr.msk.bf16.mxu1 %vm17813_vm5, %v7177_v27  ;;  %vm4380_vm13 = vweird.f32 %v18490_v60  ;;  %v4386_v28 = vsel %vm4384_vm2, %v18487_v30, %v4385_v23  ;;  %v18497_v46 = vld [vmem:[#allocation125_spill] sm:$0xff]  ;;  %v7359_v8 = vpop.f32.mrb[3].mxu1  ;;  %v18505_v60 = vld [vmem:[#allocation18_spill] sm:$0xff] }
 0x6bc   :  { %v3868_v53 = vxor.u32 2147483648, %v8915_v21  ;;  %v4389_v31 = vsel %vm4387_vm8, %v4388_v40, %v18486_v4  ;;  %v8917_v50 = vpop.eup %8916  ;;  %vm4383_vm12 = vcmp.lt.s32.totalorder %v4382_v16, 2  ;;  %vm4588_vm9 = vweird.f32 %v18491_v13  ;;  %v18498_v16 = vld [vmem:[#allocation142_spill] sm:$0xff]  ;;  %v16764_v6 = vpop.f32.mrb[4].mxu1 }
 0x6bd   :  { %vm4071_vm1 = vcmp.lt.s32.totalorder %v16719_v45, 2  ;;  %vm4591_vm6 = vcmp.lt.s32.totalorder %v4590_v54, 2  ;;  %v3865_v7 = vxor.u32 2147483648, %v8917_v50  ;;  %vm4068_vm11 = vweird.f32 %v18478_v32 }
 0x6be   :  { %v3869_v36 = vsel %vm3867_vm15, %v3868_v53, %v8917_v50  ;;  %vm4075_vm4 = vcmp.eq.s32.totalorder %v16719_v45, 2  ;;  %vm4592_vm3 = vcmp.eq.s32.totalorder %v4590_v54, 0  ;;  %v4390_v44 = vsel %vm4383_vm12, %v4386_v28, %v4389_v31 }
 0x6bf   :  { %v4594_v47 = vsel %vm4592_vm3, %v18492_v59, %v4593_v11  ;;  %v4596_v51 = vxor.u32 2147483648, %v18492_v59  ;;  %v18494_v27 = vand.u32 2147483647, %v18493_v2  ;;  %vm6994_vm15 = vcmp.lt.s32.totalorder %v16218_v18, 0  ;;  %v18504_v59 = vld [vmem:[#allocation132_spill] sm:$0xff] }
 0x6c0   :  { %v3866_v9 = vsel %vm3864_vm14, %v8915_v21, %v3865_v7  ;;  %vm4595_vm8 = vcmp.eq.s32.totalorder %v4590_v54, 2  ;;  %v4270_v10 = vsub.s32 4, %v18497_v46  ;;  %vm18499_vm14 = vcmp.lt.s32.totalorder %v18493_v2, 0  ;;  %v18500_v7 = vld [vmem:[#allocation121_spill] sm:$0xff] }
 0x6c1   :  { %vm16736_vm2 = vcmp.le.f32.partialorder %v18494_v27, 0.7853982  ;;  %v8919_v38 = vpop.eup %8918  ;;  %v3870_v23 = vsel %vm3863_vm0, %v3866_v9, %v3869_v36  ;;  %v4597_v40 = vsel %vm4595_vm8, %v4596_v51, %v18489_v57  ;;  %vm4072_vm0 = vcmp.eq.s32.totalorder %v16719_v45, 0  ;;  %v7364_v51 = vpop.f32.mrb[5].mxu1 }
 0x6c2   :  { %v4272_v4 = vsel %vm16736_vm2, %v18493_v2, %v18498_v16  ;;  %v4076_v30 = vxor.u32 2147483648, %v8919_v38  ;;  %v8921_v62 = vpop.eup %8920  ;;  %v3871_v21 = vsel %vm3860_vm10, nan, %v3870_v23  ;;  %v4598_v11 = vsel %vm4591_vm6, %v4594_v47, %v4597_v40 }
 0x6c3   :  { %8922 = vcosq.f32 %v4272_v4  ;;  %v4271_v53 = vsel %vm18499_vm14, %v4270_v10, %v18497_v46  ;;  %v4073_v57 = vxor.u32 2147483648, %v8921_v62  ;;  %v4599_v31 = vsel %vm4588_vm9, nan, %v4598_v11 }
 0x6c4   :  { %8924 = vsinq.f32 %v4272_v4  ;;  %v4077_v28 = vsel %vm4075_vm4, %v4076_v30, %v8921_v62  ;;  %v4391_v54 = vsel %vm4380_vm13, nan, %v4390_v44  ;;  %v4273_v50 = vsel %vm16736_vm2, 0, %v4271_v53  ;;  %v16793_v4 = vpop.f32.mrb[6].mxu1  ;;  %v18507_v30 = vld [vmem:[#allocation10_spill] sm:$0xff] }
 0x6c5   :  { %v18501_v36 = vand.u32 2147483647, %v18500_v7  ;;  %v4478_v47 = vsub.s32 4, %v18504_v59  ;;  %v4074_v27 = vsel %vm4072_vm0, %v8919_v38, %v4073_v57  ;;  %v7128_v13 = vsel %vm17814_vm7, %v3871_v21, %v18471_v20  ;;  %v18508_v62 = vld [vmem:[#allocation14_spill] sm:$0xff]  ;;  %v7367_v11 = vpop.f32.mrb[7].mxu1 }
 0x6c6   :  { %v4277_v9 = vadd.s32 3, %v4273_v50  ;;  %v4078_v12 = vsel %vm4071_vm1, %v4074_v27, %v4077_v28  ;;  %v7179_v46 = vpack.c.bf16 %v4599_v31, %v4391_v54  ;;  %vm18506_vm13 = vcmp.lt.s32.totalorder %v18500_v7, 0  ;;  %v8724_v28 = vld [vmem:[%s17451_s5 + $0x10] sm:$0xff]   ;;  %v16814_v31 = vpop.f32.mrb[8].mxu1  ;;  %v18510_v50 = vld [vmem:[#allocation150_spill] sm:$0xff] }
 0x6c7   :  { %vm16772_vm10 = vcmp.le.f32.partialorder %v18501_v36, 0.7853982  ;;  %v4479_v10 = vsel %vm18506_vm13, %v4478_v47, %v18504_v59  ;;  %v4079_v38 = vsel %vm4068_vm11, nan, %v4078_v12  ;;  %v4798_v40 = vand.u32 3, %v18507_v30  ;;  %v7372_v61 = vpop.f32.mrb[9].mxu1  ;;  %v8725_v59 = vld [vmem:[%s17451_s5 + $0x18] sm:$0xff]   ;;  %8386 = vmatprep.subr.bf16.mxu0 %v8724_v28  ;;  %8432 = vmatprep.subr.bf16.mxu1 %v8724_v28 }
 0x6c8   :  { %v4480_v44 = vsel %vm16772_vm10, %v18500_v7, %v18505_v60  ;;  %v4278_v16 = vand.u32 3, %v4277_v9  ;;  %v4481_v20 = vsel %vm16772_vm10, 0, %v4479_v10  ;;  %v7130_v45 = vsel %vm17814_vm7, %v4079_v38, %v18478_v32  ;;  %v16824_v9 = vpop.f32.mrb[10].mxu1  ;;  %8387 = vmatpush3.bf16.msra.mxu0 %v8724_v28  ;;  %v18512_v10 = vld [vmem:[#allocation29_spill] sm:$0xff]  ;;  %8440 = vmatpush3.bf16.msra.mxu1 %v8724_v28  ;;  %v18513_v30 = vld [vmem:[#allocation151_spill] sm:$0xff] }
 0x6c9   :  { %8926 = vcosq.f32 %v4480_v44  ;;  %v4485_v23 = vadd.s32 3, %v4481_v20  ;;  %v4801_v21 = vxor.u32 2147483648, %v18508_v62  ;;  %v16806_v8 = vsel %vm6994_vm15, %v7078_v34, %v16446_v5  ;;  %v18509_v5 = vld [vmem:[#allocation7_spill] sm:$0xff]  ;;  %v7375_v12 = vpop.f32.mrb[11].mxu1  ;;  %8388 = vmatprep.subr.bf16.mxu0 %v8725_v59  ;;  %8433 = vmatprep.subr.bf16.mxu1 %v8725_v59 }
 0x6ca   :  { %8928 = vsinq.f32 %v4480_v44  ;;  %v7176_v57 = vpack.c.bf16 %v7130_v45, %v7128_v13  ;;  %vm4276_vm1 = vweird.f32 %v18493_v2  ;;  %vm4279_vm12 = vcmp.lt.s32.totalorder %v4278_v16, 2  ;;  %v18511_v13 = vld [vmem:[#allocation139_spill] sm:$0xff]  ;;  %v16832_v20 = vpop.f32.mrb[12].mxu1  ;;  %v8726_v45 = vld [vmem:[%s17451_s5 + $0x20] sm:$0xff]  }
 0x6cb   :  { %vm4280_vm9 = vcmp.eq.s32.totalorder %v4278_v16, 0  ;;  %vm4283_vm6 = vcmp.eq.s32.totalorder %v4278_v16, 2  ;;  %v16809_v32 = vand.u32 3, %v4485_v23  ;;  %vm4799_vm11 = vcmp.lt.s32.totalorder %v4798_v40, 2 }
 0x6cc   :  { %7417 = vmatmul.mubr.bf16.gmra.mrb[32].mxu1 %v7176_v57  ;;  %vm4800_vm4 = vcmp.eq.s32.totalorder %v4798_v40, 0  ;;  %v4804_v34 = vxor.u32 2147483648, %v18509_v5  ;;  %v5006_v36 = vand.u32 3, %v18510_v50  ;;  %vm4803_vm3 = vcmp.eq.s32.totalorder %v4798_v40, 2  ;;  %8389 = vmatpush3.bf16.msra.mxu0 %v8725_v59  ;;  %v8727_v40 = vld [vmem:[%s17451_s5 + $0x28] sm:$0xff]   ;;  %v18526_v57 = vld [vmem:[#allocation143_spill] sm:$0xff] }
 0x6cd   :  { %v8923_v54 = vpop.eup %8922  ;;  %8310 = vmatprep.mubr.msk.bf16.mxu1 %vm17813_vm5, %v7179_v46  ;;  %v4802_v27 = vsel %vm4800_vm4, %v18509_v5, %v4801_v21  ;;  %vm5004_vm2 = vweird.f32 %v18511_v13  ;;  %vm4484_vm8 = vweird.f32 %v18500_v7  ;;  %vm4488_vm14 = vcmp.eq.s32.totalorder %v16809_v32, 0  ;;  %v18514_v21 = vld [vmem:[#allocation110_spill] sm:$0xff]  ;;  %v7380_v5 = vpop.f32.mrb[13].mxu1  ;;  %8390 = vmatprep.subr.bf16.mxu0 %v8726_v45 }
 0x6ce   :  { %v8925_v47 = vpop.eup %8924  ;;  %v4284_v51 = vxor.u32 2147483648, %v8923_v54  ;;  %vm4491_vm0 = vcmp.eq.s32.totalorder %v16809_v32, 2  ;;  %v4805_v44 = vsel %vm4803_vm3, %v4804_v34, %v18508_v62  ;;  %vm5007_vm10 = vcmp.lt.s32.totalorder %v5006_v36, 2  ;;  %8441 = vmatpush3.bf16.msra.mxu1 %v8725_v59 }
 0x6cf   :  { %v4281_v60 = vxor.u32 2147483648, %v8925_v47  ;;  %vm5008_vm13 = vcmp.eq.s32.totalorder %v5006_v36, 0  ;;  %v5009_v38 = vxor.u32 2147483648, %v18512_v10  ;;  %vm5011_vm4 = vcmp.eq.s32.totalorder %v5006_v36, 2  ;;  %8434 = vmatprep.subr.bf16.mxu1 %v8726_v45 }
 0x6d0   :  { %v4285_v46 = vsel %vm4283_vm6, %v4284_v51, %v8925_v47  ;;  %v5012_v62 = vxor.u32 2147483648, %v18513_v30  ;;  %v18515_v11 = vand.u32 2147483647, %v18514_v21  ;;  %v18518_v47 = vld [vmem:[#allocation138_spill] sm:$0xff]  ;;  %v18519_v51 = vld [vmem:[#allocation39_spill] sm:$0xff]  ;;  %v4806_v53 = vsel %vm4799_vm11, %v4802_v27, %v4805_v44  ;;  %8391 = vmatpush3.bf16.msra.mxu0 %v8726_v45 }
 0x6d1   :  { %v4282_v23 = vsel %vm4280_vm9, %v8923_v54, %v4281_v60  ;;  %v5010_v61 = vsel %vm5008_vm13, %v18513_v30, %v5009_v38  ;;  %v4686_v28 = vsub.s32 4, %v18518_v47  ;;  %v16852_v60 = vpop.f32.mrb[14].mxu1  ;;  %8392 = vmatprep.subr.bf16.mxu0 %v8727_v40 }
 0x6d2   :  { %vm16841_vm6 = vcmp.le.f32.partialorder %v18515_v11, 0.7853982  ;;  %v4286_v50 = vsel %vm4279_vm12, %v4282_v23, %v4285_v46  ;;  %v5013_v5 = vsel %vm5011_vm4, %v5012_v62, %v18512_v10  ;;  %v7383_v16 = vpop.f32.mrb[15].mxu1  ;;  %vm18520_vm12 = vcmp.lt.s32.totalorder %v18514_v21, 0  ;;  %v18521_v62 = vld [vmem:[#allocation111_spill] sm:$0xff]  ;;  %8442 = vmatpush3.bf16.msra.mxu1 %v8726_v45 }
 0x6d3   :  { %v8927_v34 = vpop.eup %8926  ;;  %v4688_v54 = vsel %vm16841_vm6, %v18514_v21, %v18519_v51  ;;  %v4287_v46 = vsel %vm4276_vm1, nan, %v4286_v50  ;;  %v5014_v23 = vsel %vm5007_vm10, %v5010_v61, %v5013_v5  ;;  %v4687_v30 = vsel %vm18520_vm12, %v4686_v28, %v18518_v47  ;;  %v18522_v47 = vld [vmem:[#allocation134_spill] sm:$0xff]  ;;  %8435 = vmatprep.subr.bf16.mxu1 %v8727_v40 }
 0x6d4   :  { %v8929_v12 = vpop.eup %8928  ;;  %v4492_v11 = vxor.u32 2147483648, %v8927_v34  ;;  %8930 = vcosq.f32 %v4688_v54  ;;  %v5015_v44 = vsel %vm5004_vm2, nan, %v5014_v23  ;;  %v4689_v36 = vsel %vm16841_vm6, 0, %v4687_v30  ;;  %8393 = vmatpush3.bf16.msra.mxu0 %v8727_v40 }
 0x6d5   :  { %v4489_v38 = vxor.u32 2147483648, %v8929_v12  ;;  %8932 = vsinq.f32 %v4688_v54  ;;  %vm4487_vm1 = vcmp.lt.s32.totalorder %v16809_v32, 2  ;;  %vm4796_vm9 = vweird.f32 %v18521_v62 }
 0x6d6   :  { %v4493_v27 = vsel %vm4491_vm0, %v4492_v11, %v8929_v12  ;;  %v4693_v50 = vadd.s32 3, %v4689_v36  ;;  %v4807_v61 = vsel %vm4796_vm9, nan, %v4806_v53  ;;  %v18523_v28 = vand.u32 2147483647, %v18522_v47  ;;  %v18527_v12 = vld [vmem:[#allocation149_spill] sm:$0xff]  ;;  %v8728_v11 = vld [vmem:[%s17451_s5 + $0x30] sm:$0xff]   ;;  %8443 = vmatpush3.bf16.msra.mxu1 %v8727_v40 }
 0x6d7   :  { %v4490_v10 = vsel %vm4488_vm14, %v8927_v34, %v4489_v38  ;;  %v4894_v51 = vsub.s32 4, %v18526_v57  ;;  %v7132_v32 = vsel %vm17814_vm7, %v4287_v46, %v18493_v2  ;;  %v7181_v34 = vpack.c.bf16 %v5015_v44, %v4807_v61  ;;  %8394 = vmatprep.subr.bf16.mxu0 %v8728_v11  ;;  %8436 = vmatprep.subr.bf16.mxu1 %v8728_v11  ;;  %v18580_v38 = vld [vmem:[#allocation63_spill] sm:$0xff] }
 0x6d8   :  { %v4494_v59 = vsel %vm4487_vm1, %v4490_v10, %v4493_v27  ;;  %vm16877_vm11 = vcmp.le.f32.partialorder %v18523_v28, 0.7853982  ;;  %v16897_v16 = vand.u32 3, %v4693_v50  ;;  %vm18528_vm3 = vcmp.lt.s32.totalorder %v18522_v47, 0  ;;  %v8729_v10 = vld [vmem:[%s17451_s5 + $0x38] sm:$0xff]   ;;  %v18535_v50 = vld [vmem:[#allocation19_spill] sm:$0xff]  ;;  %8395 = vmatpush3.bf16.msra.mxu0 %v8728_v11 }
 0x6d9   :  { %v4495_v54 = vsel %vm4484_vm8, nan, %v4494_v59  ;;  %v4896_v53 = vsel %vm16877_vm11, %v18522_v47, %v18527_v12  ;;  %v4895_v2 = vsel %vm18528_vm3, %v4894_v51, %v18526_v57  ;;  %v18529_v46 = vand.u32 2147483647, %v16218_v18  ;;  %v18537_v28 = vld [vmem:[#allocation45_spill] sm:$0xff]  ;;  %8396 = vmatprep.subr.bf16.mxu0 %v8729_v10 }
 0x6da   :  { %v7134_v5 = vsel %vm17814_vm7, %v4495_v54, %v18500_v7  ;;  %8934 = vcosq.f32 %v4896_v53  ;;  %v5214_v23 = vand.u32 3, %v14977_v3  ;;  %v16914_v7 = vmul.f32 %v6970_v39, %v6968_v41  ;;  %v18534_v41 = vld [vmem:[#allocation49_spill] sm:$0xff]  ;;  %8444 = vmatpush3.bf16.msra.mxu1 %v8728_v11 }
 0x6db   :  { %8936 = vcosq.f32 %v16554_v58  ;;  %vm16905_vm2 = vcmp.le.f32.partialorder %v18529_v46, 0.7853982  ;;  %v7178_v45 = vpack.c.bf16 %v7134_v5, %v7132_v32  ;;  %v4897_v27 = vsel %vm16877_vm11, 0, %v4895_v2  ;;  %v18538_v32 = vld [vmem:[#allocation124_spill] sm:$0xff]  ;;  %v18539_v5 = vld [vmem:[#allocation22_spill] sm:$0xff]  ;;  %8437 = vmatprep.subr.bf16.mxu1 %v8729_v10 }
 0x6dc   :  { %v7081_v30 = vsel %vm16905_vm2, 0, %v16806_v8  ;;  %8938 = vsinq.f32 %v4896_v53  ;;  %v18532_v44 = vxor.u32 2147483648, %v16691_v42  ;;  %v4901_v63 = vadd.s32 3, %v4897_v27  ;;  %8397 = vmatpush3.bf16.msra.mxu0 %v8729_v10 }
 0x6dd   :  { %7425 = vmatmul.mubr.bf16.gmra.mrb[36].mxu1 %v7178_v45  ;;  %v5217_v39 = vxor.u32 2147483648, %v18533_v15  ;;  %v5220_v36 = vxor.u32 2147483648, %v18534_v41  ;;  %vm4695_vm8 = vcmp.lt.s32.totalorder %v16897_v16, 2  ;;  %v5422_v59 = vand.u32 3, %v18535_v50 }
 0x6de   :  { %v16926_v3 = vsel %vm6994_vm15, %v18532_v44, %v16691_v42  ;;  %v8931_v62 = vpop.eup %8930  ;;  %8311 = vmatprep.mubr.msk.bf16.mxu1 %vm17813_vm5, %v7181_v34  ;;  %v18536_v42 = vld [vmem:[#allocation46_spill] sm:$0xff]  ;;  %v5428_v13 = vxor.u32 2147483648, %v18537_v28  ;;  %vm4692_vm15 = vweird.f32 %v18514_v21  ;;  %vm4696_vm14 = vcmp.eq.s32.totalorder %v16897_v16, 0  ;;  %v18540_v44 = vld [vmem:[#allocation140_spill] sm:$0xff]  ;;  %8445 = vmatpush3.bf16.msra.mxu1 %v8729_v10 }
 0x6df   :  { %v5425_v61 = vxor.u32 2147483648, %v18536_v42  ;;  %v4700_v57 = vxor.u32 2147483648, %v8931_v62  ;;  %vm5216_vm0 = vcmp.eq.s32.totalorder %v5214_v23, 0  ;;  %vm5219_vm10 = vcmp.eq.s32.totalorder %v5214_v23, 2  ;;  %v8933_v51 = vpop.eup %8932 }
 0x6e0   :  { %vm4699_vm13 = vcmp.eq.s32.totalorder %v16897_v16, 2  ;;  %v4902_v54 = vand.u32 3, %v4901_v63  ;;  %vm5212_vm4 = vweird.f32 %v18538_v32  ;;  %v5218_v34 = vsel %vm5216_vm0, %v18534_v41, %v5217_v39 }
 0x6e1   :  { %v5221_v12 = vsel %vm5219_vm10, %v5220_v36, %v18533_v15  ;;  %v4697_v40 = vxor.u32 2147483648, %v8933_v51  ;;  %vm5215_vm6 = vcmp.lt.s32.totalorder %v5214_v23, 2  ;;  %vm5424_vm12 = vcmp.eq.s32.totalorder %v5422_v59, 0  ;;  %v18544_v15 = vld [vmem:[#allocation13_spill] sm:$0xff]  ;;  %v18545_v36 = vld [vmem:[#allocation15_spill] sm:$0xff] }
 0x6e2   :  { %vm5427_vm1 = vcmp.eq.s32.totalorder %v5422_v59, 2  ;;  %v4701_v53 = vsel %vm4699_vm13, %v4700_v57, %v8933_v51  ;;  %vm4900_vm9 = vweird.f32 %v18522_v47  ;;  %vm5420_vm11 = vweird.f32 %v18539_v5  ;;  %v18547_v57 = vld [vmem:[#allocation11_spill] sm:$0xff] }
 0x6e3   :  { %v5426_v2 = vsel %vm5424_vm12, %v18537_v28, %v5425_v61  ;;  %v5429_v46 = vsel %vm5427_vm1, %v5428_v13, %v18536_v42  ;;  %v4698_v45 = vsel %vm4696_vm14, %v8931_v62, %v4697_v40  ;;  %v5222_v27 = vsel %vm5215_vm6, %v5218_v34, %v5221_v12  ;;  %v18559_v34 = vld [vmem:[#allocation28_spill] sm:$0xff] }
 0x6e4   :  { %v18541_v63 = vand.u32 2147483647, %v18540_v44  ;;  %v5102_v39 = vsub.s32 4, %v18544_v15  ;;  %v8935_v41 = vpop.eup %8934  ;;  %vm4903_vm0 = vcmp.lt.s32.totalorder %v4902_v54, 2  ;;  %vm4904_vm10 = vcmp.eq.s32.totalorder %v4902_v54, 0 }
 0x6e5   :  { %vm5423_vm13 = vcmp.lt.s32.totalorder %v5422_v59, 2  ;;  %v16961_v62 = vpop.eup %8936  ;;  %v4702_v50 = vsel %vm4695_vm8, %v4698_v45, %v4701_v53  ;;  %v4908_v42 = vxor.u32 2147483648, %v8935_v41  ;;  %vm18546_vm14 = vcmp.lt.s32.totalorder %v18540_v44, 0 }
 0x6e6   :  { %vm16952_vm3 = vcmp.le.f32.partialorder %v18541_v63, 0.7853982  ;;  %v5430_v61 = vsel %vm5423_vm13, %v5426_v2, %v5429_v46  ;;  %v5103_v28 = vsel %vm18546_vm14, %v5102_v39, %v18544_v15  ;;  %v8939_v13 = vpop.eup %8938  ;;  %vm4907_vm6 = vcmp.eq.s32.totalorder %v4902_v54, 2  ;;  %v18551_v46 = vld [vmem:[#allocation148_spill] sm:$0xff] }
 0x6e7   :  { %v5104_v11 = vsel %vm16952_vm3, %v18540_v44, %v18545_v36  ;;  %v5105_v59 = vsel %vm16952_vm3, 0, %v5103_v28  ;;  %v18548_v51 = vand.u32 2147483647, %v18547_v57  ;;  %v4905_v16 = vxor.u32 2147483648, %v8939_v13  ;;  %v18552_v63 = vld [vmem:[#allocation20_spill] sm:$0xff] }
 0x6e8   :  { %8940 = vcosq.f32 %v5104_v11  ;;  %v4909_v12 = vsel %vm4907_vm6, %v4908_v42, %v8939_v13  ;;  %v5109_v40 = vadd.s32 3, %v5105_v59  ;;  %v4703_v53 = vsel %vm4692_vm15, nan, %v4702_v50  ;;  %v18555_v59 = vld [vmem:[#allocation56_spill] sm:$0xff] }
 0x6e9   :  { %vm16972_vm12 = vcmp.le.f32.partialorder %v18548_v51, 0.7853982  ;;  %8942 = vsinq.f32 %v5104_v11  ;;  %v5431_v2 = vsel %vm5420_vm11, nan, %v5430_v61  ;;  %v5310_v45 = vsub.s32 4, %v18551_v46  ;;  %v18554_v11 = vld [vmem:[#allocation17_spill] sm:$0xff]  ;;  %v18556_v51 = vld [vmem:[#allocation35_spill] sm:$0xff] }
 0x6ea   :  { %v5312_v23 = vsel %vm16972_vm12, %v18547_v57, %v18552_v63  ;;  %v4906_v15 = vsel %vm4904_vm10, %v8935_v41, %v4905_v16  ;;  %v5223_v10 = vsel %vm5212_vm4, nan, %v5222_v27  ;;  %v5110_v39 = vand.u32 3, %v5109_v40 }
 0x6eb   :  { %8944 = vcosq.f32 %v5312_v23  ;;  %v4910_v36 = vsel %vm4903_vm0, %v4906_v15, %v4909_v12  ;;  %vm18553_vm8 = vcmp.lt.s32.totalorder %v18547_v57, 0  ;;  %v5630_v50 = vand.u32 3, %v18554_v11  ;;  %v18557_v12 = vld [vmem:[#allocation57_spill] sm:$0xff]  ;;  %v18561_v15 = vld [vmem:[#allocation44_spill] sm:$0xff] }
 0x6ec   :  { %v5311_v5 = vsel %vm18553_vm8, %v5310_v45, %v18551_v46  ;;  %8946 = vsinq.f32 %v5312_v23  ;;  %v16997_v42 = vsel %vm16905_vm2, %v16218_v18, %v16926_v3  ;;  %v4911_v32 = vsel %vm4900_vm9, nan, %v4910_v36  ;;  %v18560_v46 = vld [vmem:[#allocation152_spill] sm:$0xff] }
 0x6ed   :  { %v7136_v54 = vsel %vm17814_vm7, %v4703_v53, %v18514_v21  ;;  %v7183_v27 = vpack.c.bf16 %v5431_v2, %v5223_v10  ;;  %v7138_v41 = vsel %vm17814_vm7, %v4911_v32, %v18522_v47  ;;  %vm5111_vm15 = vcmp.lt.s32.totalorder %v5110_v39, 2  ;;  %v18558_v53 = vld [vmem:[#allocation38_spill] sm:$0xff]  ;;  %v18562_v10 = vld [vmem:[#allocation9_spill] sm:$0xff] }
 0x6ee   :  { %v5313_v61 = vsel %vm16972_vm12, 0, %v5311_v5  ;;  %v5633_v28 = vxor.u32 2147483648, %v15442_v48  ;;  %v7180_v3 = vpack.c.bf16 %v7138_v41, %v7136_v54  ;;  %vm5108_vm4 = vweird.f32 %v18540_v44 }
 0x6ef   :  { %vm5112_vm1 = vcmp.eq.s32.totalorder %v5110_v39, 0  ;;  %vm5115_vm9 = vcmp.eq.s32.totalorder %v5110_v39, 2  ;;  %v5317_v13 = vadd.s32 3, %v5313_v61  ;;  %vm5631_vm11 = vcmp.lt.s32.totalorder %v5630_v50, 2 }
 0x6f0   :  { %v5636_v21 = vxor.u32 2147483648, %v18555_v59  ;;  %v5838_v16 = vand.u32 3, %v18556_v51  ;;  %v5841_v40 = vxor.u32 2147483648, %v18557_v12  ;;  %7433 = vmatmul.mubr.bf16.gmra.mrb[40].mxu1 %v7180_v3  ;;  %vm5628_vm3 = vweird.f32 %v18558_v53 }
 0x6f1   :  { %v5318_v47 = vand.u32 3, %v5317_v13  ;;  %vm5632_vm0 = vcmp.eq.s32.totalorder %v5630_v50, 0  ;;  %v5844_v2 = vxor.u32 2147483648, %v18559_v34  ;;  %v5518_v45 = vsub.s32 4, %v18560_v46  ;;  %8312 = vmatprep.mubr.msk.bf16.mxu1 %vm17813_vm5, %v7183_v27 }
 0x6f2   :  { %v8941_v63 = vpop.eup %8940  ;;  %vm5316_vm10 = vweird.f32 %v18547_v57  ;;  %v5634_v23 = vsel %vm5632_vm0, %v18555_v59, %v5633_v28  ;;  %vm5635_vm13 = vcmp.eq.s32.totalorder %v5630_v50, 2  ;;  %vm5836_vm14 = vweird.f32 %v18561_v15 }
 0x6f3   :  { %v18563_v36 = vand.u32 2147483647, %v18562_v10  ;;  %v8943_v11 = vpop.eup %8942  ;;  %v5116_v32 = vxor.u32 2147483648, %v8941_v63  ;;  %v5637_v54 = vsel %vm5635_vm13, %v5636_v21, %v15442_v48  ;;  %vm5840_vm12 = vcmp.eq.s32.totalorder %v5838_v16, 0 }
 0x6f4   :  { %vm5843_vm8 = vcmp.eq.s32.totalorder %v5838_v16, 2  ;;  %v5113_v27 = vxor.u32 2147483648, %v8943_v11  ;;  %vm5839_vm5 = vcmp.lt.s32.totalorder %v5838_v16, 2  ;;  %v5842_v41 = vsel %vm5840_vm12, %v18559_v34, %v5841_v40 }
 0x6f5   :  { %vm17023_vm6 = vcmp.le.f32.partialorder %v18563_v36, 0.7853982  ;;  %v5845_v61 = vsel %vm5843_vm8, %v5844_v2, %v18557_v12  ;;  %v8945_v28 = vpop.eup %8944  ;;  %v5117_v3 = vsel %vm5115_vm9, %v5116_v32, %v8943_v11  ;;  %vm5320_vm0 = vcmp.eq.s32.totalorder %v5318_v47, 0  ;;  %v18567_v36 = vld [vmem:[#allocation52_spill] sm:$0xff] }
 0x6f6   :  { %v5846_v13 = vsel %vm5839_vm5, %v5842_v41, %v5845_v61  ;;  %vm18566_vm7 = vcmp.lt.s32.totalorder %v18562_v10, 0  ;;  %v8947_v51 = vpop.eup %8946  ;;  %v5114_v48 = vsel %vm5112_vm1, %v8941_v63, %v5113_v27  ;;  %vm5323_vm13 = vcmp.eq.s32.totalorder %v5318_v47, 2  ;;  %v18572_v27 = vld [vmem:[#allocation25_spill] sm:$0xff] }
 0x6f7   :  { %v5519_v59 = vsel %vm18566_vm7, %v5518_v45, %v18560_v46  ;;  %v5324_v21 = vxor.u32 2147483648, %v8945_v28  ;;  %v5520_v16 = vsel %vm17023_vm6, %v18562_v10, %v18567_v36  ;;  %v5118_v12 = vsel %vm5111_vm15, %v5114_v48, %v5117_v3  ;;  %v18577_v48 = vld [vmem:[#allocation47_spill] sm:$0xff] }
 0x6f8   :  { %v5321_v40 = vxor.u32 2147483648, %v8947_v51  ;;  %v5638_v34 = vsel %vm5631_vm11, %v5634_v23, %v5637_v54  ;;  %v5521_v2 = vsel %vm17023_vm6, 0, %v5519_v59  ;;  %v5119_v46 = vsel %vm5108_vm4, nan, %v5118_v12  ;;  %v18568_v23 = vld [vmem:[#allocation41_spill] sm:$0xff] }
 0x6f9   :  { %v5325_v45 = vsel %vm5323_vm13, %v5324_v21, %v8947_v51  ;;  %v5847_v63 = vsel %vm5836_vm14, nan, %v5846_v13  ;;  %8948 = vcosq.f32 %v5520_v16  ;;  %vm5319_vm5 = vcmp.lt.s32.totalorder %v5318_v47, 2 }
 0x6fa   :  { %v5322_v11 = vsel %vm5320_vm0, %v8945_v28, %v5321_v40  ;;  %8950 = vsinq.f32 %v5520_v16  ;;  %v5525_v39 = vadd.s32 3, %v5521_v2  ;;  %v5639_v50 = vsel %vm5628_vm3, nan, %v5638_v34  ;;  %v18574_v28 = vld [vmem:[#allocation23_spill] sm:$0xff]  ;;  %v18578_v40 = vld [vmem:[#allocation68_spill] sm:$0xff] }
 0x6fb   :  { %v5326_v32 = vsel %vm5319_vm5, %v5322_v11, %v5325_v45  ;;  %v18569_v5 = vand.u32 2147483647, %v18568_v23  ;;  %v5726_v41 = vsub.s32 4, %v18572_v27  ;;  %vm18573_vm15 = vcmp.ge.s32.totalorder %v14648_v17, 6 }
 0x6fc   :  { %v5327_v15 = vsel %vm5316_vm10, nan, %v5326_v32  ;;  %v7140_v47 = vsel %vm18573_vm15, %v5119_v46, %v18540_v44  ;;  %v7185_v61 = vpack.c.bf16 %v5847_v63, %v5639_v50  ;;  %vm18575_vm4 = vmmov %vm18573_vm15  ;;  %v5526_v13 = vand.u32 3, %v5525_v39  ;;  %v18581_v63 = vld [vmem:[#allocation21_spill] sm:$0xff] }
 0x6fd   :  { %vm17052_vm7 = vcmp.le.f32.partialorder %v18569_v5, 0.7853982  ;;  %v7142_v3 = vsel %vm18575_vm4, %v5327_v15, %v18547_v57  ;;  %vm18576_vm1 = vcmp.lt.s32.totalorder %v18568_v23, 0  ;;  %v6764_v51 = vxor.u32 2147483648, %v16535_v37  ;;  %v18582_v5 = vld [vmem:[#allocation30_spill] sm:$0xff] }
 0x6fe   :  { %v5728_v53 = vsel %vm17052_vm7, %v18568_v23, %v18574_v28  ;;  %v5727_v59 = vsel %vm18576_vm1, %v5726_v41, %v18572_v27  ;;  %v7182_v44 = vpack.c.bf16 %v7142_v3, %v7140_v47  ;;  %v6046_v21 = vand.u32 3, %v18577_v48  ;;  %v18583_v15 = vld [vmem:[#allocation50_spill] sm:$0xff] }
 0x6ff   :  { %8952 = vcosq.f32 %v5728_v53  ;;  %v6972_v36 = vxor.u32 2147483648, %v16914_v7  ;;  %v17080_v57 = vadd.s32 3, %v7081_v30  ;;  %v5729_v16 = vsel %vm17052_vm7, 0, %v5727_v59  ;;  %v18588_v59 = vld [vmem:[#allocation37_spill] sm:$0xff] }
 0x700   :  { %8954 = vsinq.f32 %v16554_v58  ;;  %7441 = vmatmul.mubr.bf16.gmra.mrb[44].mxu1 %v7182_v44  ;;  %v5733_v12 = vadd.s32 3, %v5729_v16  ;;  %v6049_v58 = vxor.u32 2147483648, %v15814_v56  ;;  %v6052_v34 = vxor.u32 2147483648, %v18578_v40 }
 0x701   :  { %8956 = vsinq.f32 %v5728_v53  ;;  %vm18579_vm9 = vcmask 31744   ;;  %vm5527_vm11 = vcmp.lt.s32.totalorder %v5526_v13, 2  ;;  %v6254_v2 = vand.u32 3, %v18580_v38  ;;  %v18587_v53 = vld [vmem:[#allocation33_spill] sm:$0xff] }
 0x702   :  { %8958 = vcosq.f32 %v16997_v42  ;;  %8313 = vmatprep.mubr.msk.bf16.mxu1 %vm18579_vm9, %v7185_v61  ;;  %v6257_v8 = vxor.u32 2147483648, %v16050_v26  ;;  %v6260_v30 = vxor.u32 2147483648, %v16014_v55  ;;  %vm5524_vm2 = vweird.f32 %v18562_v10 }
 0x703   :  { %vm5528_vm3 = vcmp.eq.s32.totalorder %v5526_v13, 0  ;;  %vm5531_vm10 = vcmp.eq.s32.totalorder %v5526_v13, 2  ;;  %vm6048_vm14 = vcmp.eq.s32.totalorder %v6046_v21, 0  ;;  %vm6051_vm6 = vcmp.eq.s32.totalorder %v6046_v21, 2  ;;  %v8949_v46 = vpop.eup %8948  ;;  %v18590_v13 = vld [vmem:[#allocation34_spill] sm:$0xff] }
 0x704   :  { %v5734_v45 = vand.u32 3, %v5733_v12  ;;  %vm6044_vm12 = vweird.f32 %v18581_v63  ;;  %vm6047_vm8 = vcmp.lt.s32.totalorder %v6046_v21, 2  ;;  %v6050_v11 = vsel %vm6048_vm14, %v18578_v40, %v6049_v58  ;;  %v8951_v32 = vpop.eup %8950 }
 0x705   :  { %v6053_v39 = vsel %vm6051_vm6, %v6052_v34, %v15814_v56  ;;  %v5532_v50 = vxor.u32 2147483648, %v8949_v46  ;;  %vm6252_vm0 = vweird.f32 %v18582_v5  ;;  %vm6256_vm13 = vcmp.eq.s32.totalorder %v6254_v2, 0 }
 0x706   :  { %vm6259_vm5 = vcmp.eq.s32.totalorder %v6254_v2, 2  ;;  %v5529_v54 = vxor.u32 2147483648, %v8951_v32  ;;  %vm5732_vm7 = vweird.f32 %v18568_v23  ;;  %v6258_v27 = vsel %vm6256_vm13, %v16014_v55, %v6257_v8 }
 0x707   :  { %v6261_v41 = vsel %vm6259_vm5, %v6260_v30, %v16050_v26  ;;  %v18584_v47 = vand.u32 2147483647, %v18583_v15  ;;  %v5533_v56 = vsel %vm5531_vm10, %v5532_v50, %v8951_v32  ;;  %v6054_v28 = vsel %vm6047_vm8, %v6050_v11, %v6053_v39  ;;  %v18594_v50 = vld [vmem:[#allocation59_spill] sm:$0xff] }
 0x708   :  { %v5934_v3 = vsub.s32 4, %v18587_v53  ;;  %v5530_v55 = vsel %vm5528_vm3, %v8949_v46, %v5529_v54  ;;  %vm5735_vm4 = vcmp.lt.s32.totalorder %v5734_v45, 2  ;;  %vm6255_vm1 = vcmp.lt.s32.totalorder %v6254_v2, 2 }
 0x709   :  { %vm17101_vm15 = vcmp.le.f32.partialorder %v18584_v47, 0.7853982  ;;  %v8953_v48 = vpop.eup %8952  ;;  %v5534_v21 = vsel %vm5527_vm11, %v5530_v55, %v5533_v56  ;;  %v6262_v12 = vsel %vm6255_vm1, %v6258_v27, %v6261_v41  ;;  %vm18589_vm9 = vcmp.lt.s32.totalorder %v18583_v15, 0  ;;  %v18595_v27 = vld [vmem:[#allocation70_spill] sm:$0xff] }
 0x70a   :  { %v5936_v44 = vsel %vm17101_vm15, %v18583_v15, %v18588_v59  ;;  %v17112_v26 = vpop.eup %8954  ;;  %v5740_v16 = vxor.u32 2147483648, %v8953_v48  ;;  %v5935_v58 = vsel %vm18589_vm9, %v5934_v3, %v18587_v53  ;;  %vm5736_vm10 = vcmp.eq.s32.totalorder %v5734_v45, 0  ;;  %v18597_v3 = vld [vmem:[#allocation73_spill] sm:$0xff] }
 0x70b   :  { %8960 = vcosq.f32 %v5936_v44  ;;  %v8957_v40 = vpop.eup %8956  ;;  %vm5739_vm14 = vcmp.eq.s32.totalorder %v5734_v45, 2  ;;  %v5937_v34 = vsel %vm17101_vm15, 0, %v5935_v58  ;;  %v18591_v46 = vand.u32 2147483647, %v18590_v13 }
 0x70c   :  { %8962 = vsinq.f32 %v5936_v44  ;;  %v17120_v38 = vpop.eup %8958  ;;  %v5737_v2 = vxor.u32 2147483648, %v8957_v40  ;;  %v5741_v8 = vsel %vm5739_vm14, %v5740_v16, %v8957_v40  ;;  %v5941_v30 = vadd.s32 3, %v5937_v34 }
 0x70d   :  { %vm17124_vm11 = vcmp.le.f32.partialorder %v18591_v46, 0.7853982  ;;  %v5535_v39 = vsel %vm5524_vm2, nan, %v5534_v21  ;;  %v6263_v32 = vsel %vm6252_vm0, nan, %v6262_v12  ;;  %v6142_v54 = vsub.s32 4, %v18594_v50  ;;  %v18615_v46 = vld [vmem:[#allocation67_spill] sm:$0xff] }
 0x70e   :  { %v6144_v41 = vsel %vm17124_vm11, %v18590_v13, %v18595_v27  ;;  %v5738_v47 = vsel %vm5736_vm10, %v8953_v48, %v5737_v2  ;;  %v6055_v61 = vsel %vm6044_vm12, nan, %v6054_v28  ;;  %v5942_v56 = vand.u32 3, %v5941_v30 }
 0x70f   :  { %8964 = vcosq.f32 %v6144_v41  ;;  %v5742_v53 = vsel %vm5735_vm4, %v5738_v47, %v5741_v8  ;;  %vm18596_vm2 = vcmp.lt.s32.totalorder %v18590_v13, 0  ;;  %v6462_v59 = vand.u32 3, %v18597_v3  ;;  %v18605_v47 = vld [vmem:[#allocation32_spill] sm:$0xff] }
 0x710   :  { %v6143_v5 = vsel %vm18596_vm2, %v6142_v54, %v18594_v50  ;;  %8966 = vsinq.f32 %v6144_v41  ;;  %v5743_v44 = vsel %vm5732_vm7, nan, %v5742_v53  ;;  %vm18598_vm3 = vcmp.ge.s32.totalorder %v14648_v17, 6 }
 0x711   :  { %8968 = vsinq.f32 %v16997_v42  ;;  %v7144_v63 = vsel %vm18598_vm3, %v5535_v39, %v18562_v10  ;;  %v7187_v28 = vpack.c.bf16 %v6263_v32, %v6055_v61  ;;  %vm18599_vm6 = vmmov %vm18598_vm3  ;;  %vm5943_vm12 = vcmp.lt.s32.totalorder %v5942_v56, 2 }
 0x712   :  { %v7146_v45 = vsel %vm18599_vm6, %v5743_v44, %v18568_v23  ;;  %v6145_v48 = vsel %vm17124_vm11, 0, %v6143_v5  ;;  %v6465_v55 = vxor.u32 2147483648, %v16221_v14  ;;  %vm5944_vm8 = vcmp.eq.s32.totalorder %v5942_v56, 0  ;;  %v18606_v44 = vld [vmem:[#allocation27_spill] sm:$0xff] }
 0x713   :  { %v7184_v21 = vpack.c.bf16 %v7146_v45, %v7144_v63  ;;  %vm5947_vm0 = vcmp.eq.s32.totalorder %v5942_v56, 2  ;;  %v6149_v42 = vadd.s32 3, %v6145_v48  ;;  %vm5940_vm13 = vweird.f32 %v18583_v15 }
 0x714   :  { %vm6463_vm5 = vcmp.lt.s32.totalorder %v6462_v59, 2  ;;  %v6468_v10 = vxor.u32 2147483648, %v16209_v25  ;;  %v6670_v12 = vand.u32 3, %v16420_v33  ;;  %v6673_v23 = vxor.u32 2147483648, %v16478_v43  ;;  %v18601_v33 = vld [vmem:[#allocation62_spill] sm:$0xff] }
 0x715   :  { %v8961_v16 = vpop.eup %8960  ;;  %7449 = vmatmul.mubr.bf16.gmra.mrb[48].mxu1 %v7184_v21  ;;  %v6150_v40 = vand.u32 3, %v6149_v42  ;;  %vm6460_vm7 = vweird.f32 %v15503_v0  ;;  %vm6464_vm15 = vcmp.eq.s32.totalorder %v6462_v59, 0  ;;  %v6676_v34 = vxor.u32 2147483648, %v16467_v1 }
 0x716   :  { %v5948_v58 = vxor.u32 2147483648, %v8961_v16  ;;  %v8963_v2 = vpop.eup %8962  ;;  %vm18600_vm4 = vcmask 31744   ;;  %vm6148_vm1 = vweird.f32 %v18590_v13  ;;  %v6466_v8 = vsel %vm6464_vm15, %v16209_v25, %v6465_v55 }
 0x717   :  { %8314 = vmatprep.mubr.msk.bf16.mxu1 %vm18600_vm4, %v7187_v28  ;;  %vm6467_vm9 = vcmp.eq.s32.totalorder %v6462_v59, 2  ;;  %vm6668_vm10 = vweird.f32 %v15810_v22  ;;  %v18602_v30 = vand.u32 2147483647, %v18601_v33  ;;  %v5945_v11 = vxor.u32 2147483648, %v8963_v2 }
 0x718   :  { %v5949_v39 = vsel %vm5947_vm0, %v5948_v58, %v8963_v2  ;;  %vm6672_vm11 = vcmp.eq.s32.totalorder %v6670_v12, 0  ;;  %vm6675_vm2 = vcmp.eq.s32.totalorder %v6670_v12, 2  ;;  %v6469_v32 = vsel %vm6467_vm9, %v6468_v10, %v16221_v14 }
 0x719   :  { %vm17168_vm14 = vcmp.le.f32.partialorder %v18602_v30, 0.7853982  ;;  %vm6671_vm3 = vcmp.lt.s32.totalorder %v6670_v12, 2  ;;  %v6674_v50 = vsel %vm6672_vm11, %v16467_v1, %v6673_v23  ;;  %v6677_v25 = vsel %vm6675_vm2, %v6676_v34, %v16478_v43  ;;  %v8965_v54 = vpop.eup %8964  ;;  %v18611_v12 = vld [vmem:[#allocation26_spill] sm:$0xff] }
 0x71a   :  { %v5946_v27 = vsel %vm5944_vm8, %v8961_v16, %v5945_v11  ;;  %vm6151_vm6 = vcmp.lt.s32.totalorder %v6150_v40, 2  ;;  %v6678_v41 = vsel %vm6671_vm3, %v6674_v50, %v6677_v25  ;;  %v6350_v61 = vsub.s32 4, %v18605_v47  ;;  %v8967_v53 = vpop.eup %8966  ;;  %v18616_v11 = vld [vmem:[#allocation5_spill] sm:$0xff] }
 0x71b   :  { %v5950_v5 = vsel %vm5943_vm12, %v5946_v27, %v5949_v39  ;;  %vm6152_vm0 = vcmp.eq.s32.totalorder %v6150_v40, 0  ;;  %v6156_v3 = vxor.u32 2147483648, %v8965_v54  ;;  %v6352_v14 = vsel %vm17168_vm14, %v18601_v33, %v18606_v44  ;;  %v17183_v1 = vpop.eup %8968 }
 0x71c   :  { %v6153_v43 = vxor.u32 2147483648, %v8967_v53  ;;  %vm6155_vm15 = vcmp.eq.s32.totalorder %v6150_v40, 2  ;;  %v6470_v63 = vsel %vm6463_vm5, %v6466_v8, %v6469_v32  ;;  %vm18607_vm8 = vcmp.lt.s32.totalorder %v18601_v33, 0 }
 0x71d   :  { %v6351_v28 = vsel %vm18607_vm8, %v6350_v61, %v18605_v47  ;;  %v6157_v45 = vsel %vm6155_vm15, %v6156_v3, %v8967_v53  ;;  %v6679_v56 = vsel %vm6668_vm10, nan, %v6678_v41  ;;  %8970 = vcosq.f32 %v6352_v14 }
 0x71e   :  { %v6353_v48 = vsel %vm17168_vm14, 0, %v6351_v28  ;;  %v5951_v55 = vsel %vm5940_vm13, nan, %v5950_v5  ;;  %v6154_v21 = vsel %vm6152_vm0, %v8965_v54, %v6153_v43  ;;  %8972 = vsinq.f32 %v6352_v14  ;;  %v18621_v14 = vld [vmem:[#allocation72_spill] sm:$0xff] }
 0x71f   :  { %v6357_v42 = vadd.s32 3, %v6353_v48  ;;  %v6158_v59 = vsel %vm6151_vm6, %v6154_v21, %v6157_v45  ;;  %v6471_v16 = vsel %vm6460_vm7, nan, %v6470_v63  ;;  %v18608_v10 = vand.u32 2147483647, %v15778_v49 }
 0x720   :  { %v6558_v23 = vsub.s32 4, %v18611_v12  ;;  %v6159_v58 = vsel %vm6148_vm1, nan, %v6158_v59  ;;  %v7189_v34 = vpack.c.bf16 %v6679_v56, %v6471_v16  ;;  %vm18612_vm13 = vcmp.ge.s32.totalorder %v14648_v17, 6 }
 0x721   :  { %vm17200_vm12 = vcmp.le.f32.partialorder %v18608_v10, 0.7853982  ;;  %v6358_v2 = vand.u32 3, %v6357_v42  ;;  %v7148_v0 = vsel %vm18612_vm13, %v5951_v55, %v18583_v15  ;;  %vm18613_vm5 = vmmov %vm18612_vm13  ;;  %vm18614_vm7 = vcmp.lt.s32.totalorder %v15778_v49, 0  ;;  %v17269_v55 = vld [vmem:[%s17450_s4] ss:$0 sm:$0xff] }
 0x722   :  { %v6560_v40 = vsel %vm17200_vm12, %v15778_v49, %v16438_v52  ;;  %v7150_v8 = vsel %vm18613_vm5, %v6159_v58, %v18590_v13  ;;  %v6559_v30 = vsel %vm18614_vm7, %v6558_v23, %v18611_v12  ;;  %vm6682_vm4 = vcmp.lt.s32.totalorder %v18615_v46, 0 }
 0x723   :  { %8974 = vcosq.f32 %v6560_v40  ;;  %vm6890_vm1 = vcmp.lt.s32.totalorder %v18616_v11, 0  ;;  %v7186_v39 = vpack.c.bf16 %v7150_v8, %v7148_v0  ;;  %v6878_v52 = vand.u32 3, %v16541_v35 }
 0x724   :  { %v6765_v15 = vsel %vm6682_vm4, %v6764_v51, %v16535_v37  ;;  %v6973_v13 = vsel %vm6890_vm1, %v6972_v36, %v16914_v7  ;;  %v6561_v32 = vsel %vm17200_vm12, 0, %v6559_v30  ;;  %8976 = vsinq.f32 %v6560_v40 }
 0x725   :  { %7457 = vmatmul.mubr.bf16.gmra.mrb[52].mxu1 %v7186_v39  ;;  %vm6359_vm9 = vcmp.lt.s32.totalorder %v6358_v2, 2  ;;  %v6565_v50 = vadd.s32 3, %v6561_v32  ;;  %v6881_v35 = vxor.u32 2147483648, %v17112_v26  ;;  %v6884_v25 = vxor.u32 2147483648, %v16961_v62 }
 0x726   :  { %vm18617_vm10 = vcmask 31744   ;;  %vm6360_vm14 = vcmp.eq.s32.totalorder %v6358_v2, 0  ;;  %v7086_v37 = vand.u32 3, %v17080_v57  ;;  %v7089_v51 = vxor.u32 2147483648, %v17183_v1 }
 0x727   :  { %8315 = vmatprep.mubr.msk.bf16.mxu1 %vm18617_vm10, %v7189_v34  ;;  %v7092_v7 = vxor.u32 2147483648, %v17120_v38  ;;  %vm6356_vm11 = vweird.f32 %v18601_v33  ;;  %vm6363_vm2 = vcmp.eq.s32.totalorder %v6358_v2, 2  ;;  %vm6879_vm3 = vcmp.lt.s32.totalorder %v6878_v52, 2  ;;  %v8971_v36 = vpop.eup %8970  ;;  %v18625_v34 = vld [vmem:[#allocation43_spill] sm:$0xff] }
 0x728   :  { %vm6880_vm6 = vcmp.eq.s32.totalorder %v6878_v52, 0  ;;  %vm6883_vm0 = vcmp.eq.s32.totalorder %v6878_v52, 2  ;;  %v6566_v54 = vand.u32 3, %v6565_v50  ;;  %vm6876_vm15 = vweird.f32 %v15889_v29  ;;  %v8973_v57 = vpop.eup %8972  ;;  %v7386_v53 = vpop.f32.mrb[16].mxu1 }
 0x729   :  { %v6882_v27 = vsel %vm6880_vm6, %v16961_v62, %v6881_v35  ;;  %v6885_v41 = vsel %vm6883_vm0, %v6884_v25, %v17112_v26  ;;  %vm7084_vm8 = vweird.f32 %v16218_v18  ;;  %v6364_v47 = vxor.u32 2147483648, %v8971_v36 }
 0x72a   :  { %vm7088_vm12 = vcmp.eq.s32.totalorder %v7086_v37, 0  ;;  %vm7091_vm13 = vcmp.eq.s32.totalorder %v7086_v37, 2  ;;  %v18618_v61 = vand.u32 2147483647, %v18615_v46  ;;  %v6361_v5 = vxor.u32 2147483648, %v8973_v57 }
 0x72b   :  { %vm6564_vm7 = vweird.f32 %v15778_v49  ;;  %vm7087_vm10 = vcmp.lt.s32.totalorder %v7086_v37, 2  ;;  %v7090_v62 = vsel %vm7088_vm12, %v17120_v38, %v7089_v51  ;;  %v7093_v26 = vsel %vm7091_vm13, %v7092_v7, %v17183_v1 }
 0x72c   :  { %vm17248_vm5 = vcmp.le.f32.partialorder %v18618_v61, 0.7853982  ;;  %v6365_v3 = vsel %vm6363_vm2, %v6364_v47, %v8973_v57  ;;  %v7094_v44 = vsel %vm7087_vm10, %v7090_v62, %v7093_v26  ;;  %v6766_v43 = vsub.s32 4, %v18621_v14  ;;  %v7388_v26 = vpop.f32.mrb[17].mxu1 }
 0x72d   :  { %v6768_v63 = vsel %vm17248_vm5, %v18615_v46, %v6765_v15  ;;  %v8975_v28 = vpop.eup %8974  ;;  %v6362_v45 = vsel %vm6360_vm14, %v8971_v36, %v6361_v5  ;;  %vm6567_vm6 = vcmp.lt.s32.totalorder %v6566_v54, 2  ;;  %v6886_v56 = vsel %vm6879_vm3, %v6882_v27, %v6885_v41 }
 0x72e   :  { %8978 = vcosq.f32 %v6768_v63  ;;  %v6366_v38 = vsel %vm6359_vm9, %v6362_v45, %v6365_v3  ;;  %vm6568_vm0 = vcmp.eq.s32.totalorder %v6566_v54, 0  ;;  %v6572_v1 = vxor.u32 2147483648, %v8975_v28  ;;  %v8977_v21 = vpop.eup %8976 }
 0x72f   :  { %v6767_v48 = vsel %vm6682_vm4, %v6766_v43, %v18621_v14  ;;  %vm6571_vm2 = vcmp.eq.s32.totalorder %v6566_v54, 2  ;;  %v7095_v42 = vsel %vm7084_vm8, nan, %v7094_v44  ;;  %8980 = vsinq.f32 %v6768_v63  ;;  %v7389_v14 = vpop.f32.mrb[18].mxu1 }
 0x730   :  { %v6769_v59 = vsel %vm17248_vm5, 0, %v6767_v48  ;;  %v6569_v16 = vxor.u32 2147483648, %v8977_v21  ;;  %v6573_v10 = vsel %vm6571_vm2, %v6572_v1, %v8977_v21  ;;  %v18622_v12 = vand.u32 2147483647, %v18616_v11 }
 0x731   :  { %v6773_v22 = vadd.s32 3, %v6769_v59  ;;  %v6367_v58 = vsel %vm6356_vm11, nan, %v6366_v38  ;;  %v6974_v2 = vsub.s32 4, %v18625_v34  ;;  %v17289_v40 = vadd.f32 %v17269_v55, %v16717_v24 }
 0x732   :  { %vm17277_vm4 = vcmp.le.f32.partialorder %v18622_v12, 0.7853982  ;;  %v6570_v0 = vsel %vm6568_vm0, %v8975_v28, %v6569_v16  ;;  %v6887_v8 = vsel %vm6876_vm15, nan, %v6886_v56  ;;  %v17296_v30 = vadd.f32 %v17269_v55, %v16751_v19  ;;  %v7391_v56 = vpop.f32.mrb[19].mxu1 }
 0x733   :  { %v6976_v18 = vsel %vm17277_vm4, %v18616_v11, %v6973_v13  ;;  %v6574_v39 = vsel %vm6567_vm6, %v6570_v0, %v6573_v10  ;;  %v6975_v52 = vsel %vm6890_vm1, %v6974_v2, %v18625_v34  ;;  %v8317_v24 = vmul.f32 -1.442695, %v17289_v40 }
 0x734   :  { %8982 = vcosq.f32 %v6976_v18  ;;  %v6575_v15 = vsel %vm6564_vm7, nan, %v6574_v39  ;;  %vm18626_vm9 = vcmp.ge.s32.totalorder %v14648_v17, 6  ;;  %v7191_v13 = vpack.c.bf16 %v7095_v42, %v6887_v8 }
 0x735   :  { %8984 = vsinq.f32 %v6976_v18  ;;  %v7152_v29 = vsel %vm18626_vm9, %v6367_v58, %v18601_v33  ;;  %v6774_v32 = vand.u32 3, %v6773_v22  ;;  %vm18627_vm14 = vmmov %vm18626_vm9  ;;  %v6977_v50 = vsel %vm17277_vm4, 0, %v6975_v52 }
 0x736   :  { %v7154_v19 = vsel %vm18627_vm14, %v6575_v15, %v15778_v49  ;;  %8986 = vpow2.f32 %v8317_v24  ;;  %v8318_v35 = vmul.f32 -1.442695, %v17296_v30  ;;  %v6981_v37 = vadd.s32 3, %v6977_v50  ;;  %vm18629_vm10 = vmmov %vm18626_vm9 }
 0x737   :  { %v7188_v25 = vpack.c.bf16 %v7154_v19, %v7152_v29  ;;  %v17316_v51 = vadd.f32 %v17269_v55, %v16764_v6  ;;  %v17320_v33 = vadd.f32 %v17269_v55, %v16793_v4  ;;  %v17324_v49 = vadd.f32 %v17269_v55, %v16814_v31  ;;  %vm18630_vm6 = vmmov %vm18626_vm9 }
 0x738   :  { %v8979_v7 = vpop.eup %8978  ;;  %8988 = vpow2.f32 %v8318_v35  ;;  %v17328_v36 = vadd.f32 %v17269_v55, %v16824_v9  ;;  %v17332_v54 = vadd.f32 %v17269_v55, %v16832_v20  ;;  %v6982_v27 = vand.u32 3, %v6981_v37 }
 0x739   :  { %7465 = vmatmul.mubr.bf16.gmra.mrb[56].mxu1 %v7188_v25  ;;  %v6780_v6 = vxor.u32 2147483648, %v8979_v7  ;;  %v8319_v4 = vmul.f32 -1.442695, %v17316_v51  ;;  %v8320_v41 = vmul.f32 -1.442695, %v17320_v33  ;;  %v8981_v57 = vpop.eup %8980  ;;  %vm18628_vm1 = vcmask 31744  }
 0x73a   :  { %8316 = vmatprep.mubr.msk.bf16.mxu1 %vm18628_vm1, %v7191_v13  ;;  %vm6772_vm11 = vweird.f32 %v18615_v46  ;;  %vm6779_vm3 = vcmp.eq.s32.totalorder %v6774_v32, 2  ;;  %v8321_v31 = vmul.f32 -1.442695, %v17324_v49  ;;  %v17341_v9 = vadd.f32 %v17269_v55, %v16852_v60 }
 0x73b   :  { %vm6775_vm15 = vcmp.lt.s32.totalorder %v6774_v32, 2  ;;  %v6777_v20 = vxor.u32 2147483648, %v8981_v57  ;;  %v6781_v47 = vsel %vm6779_vm3, %v6780_v6, %v8981_v57  ;;  %v8322_v61 = vmul.f32 -1.442695, %v17328_v36 }
 0x73c   :  { %vm6776_vm8 = vcmp.eq.s32.totalorder %v6774_v32, 0  ;;  %8990 = vpow2.f32 %v8319_v4  ;;  %v8323_v5 = vmul.f32 -1.442695, %v17332_v54  ;;  %v17346_v62 = vadd.f32 %v17269_v55, %v7386_v53 }
 0x73d   :  { %v6778_v44 = vsel %vm6776_vm8, %v8979_v7, %v6777_v20  ;;  %vm6983_vm12 = vcmp.lt.s32.totalorder %v6982_v27, 2  ;;  %8992 = vpow2.f32 %v8320_v41  ;;  %v8324_v60 = vmul.f32 -1.442695, %v17341_v9 }
 0x73e   :  { %v8983_v3 = vpop.eup %8982  ;;  %v6782_v63 = vsel %vm6775_vm15, %v6778_v44, %v6781_v47  ;;  %8994 = vpow2.f32 %v8321_v31  ;;  %v8325_v45 = vmul.f32 -1.442695, %v17346_v62  ;;  %vm6987_vm13 = vcmp.eq.s32.totalorder %v6982_v27, 2 }
 0x73f   :  { %v8985_v43 = vpop.eup %8984  ;;  %v6988_v28 = vxor.u32 2147483648, %v8983_v3  ;;  %8996 = vpow2.f32 %v8322_v61  ;;  %v17352_v1 = vadd.f32 %v17269_v55, %v7389_v14  ;;  %v6783_v21 = vsel %vm6772_vm11, nan, %v6782_v63 }
 0x740   :  { %v6985_v38 = vxor.u32 2147483648, %v8985_v43  ;;  %v8987_v48 = vpop.eup %8986  ;;  %vm6984_vm5 = vcmp.eq.s32.totalorder %v6982_v27, 0  ;;  %8998 = vpow2.f32 %v8323_v5  ;;  %vm6980_vm7 = vweird.f32 %v18616_v11 }
 0x741   :  { %v6989_v42 = vsel %vm6987_vm13, %v6988_v28, %v8985_v43  ;;  %v7577_v16 = vadd.f32 1.0, %v8987_v48  ;;  %9000 = vpow2.f32 %v8324_v60  ;;  %v8326_v10 = vmul.f32 -1.442695, %v17352_v1 }
 0x742   :  { %v6986_v59 = vsel %vm6984_vm5, %v8983_v3, %v6985_v38  ;;  %v8989_v22 = vpop.eup %8988  ;;  %9002 = vpow2.f32 %v8325_v45  ;;  %v7156_v34 = vsel %vm18629_vm10, %v6783_v21, %v18615_v46 }
 0x743   :  { %v6990_v12 = vsel %vm6983_vm12, %v6986_v59, %v6989_v42  ;;  %9004 = vrcp.f32 %v7577_v16  ;;  %v7578_v58 = vadd.f32 1.0, %v8989_v22 }
 0x744   :  { %v6991_v23 = vsel %vm6980_vm7, nan, %v6990_v12  ;;  %9006 = vpow2.f32 %v8326_v10 }
 0x745   :  { %v7158_v2 = vsel %vm18630_vm6, %v6991_v23, %v18616_v11  ;;  %9008 = vrcp.f32 %v7578_v58 }
 0x746   :  { %v7190_v18 = vpack.c.bf16 %v7158_v2, %v7156_v34  ;;  %v8991_v0 = vpop.eup %8990 }
 0x747   :  { %v8993_v8 = vpop.eup %8992  ;;  %v7579_v39 = vadd.f32 1.0, %v8991_v0 }
 0x748   :  { %7473 = vmatmul.mubr.bf16.gmra.mrb[60].mxu1 %v7190_v18  ;;  %v8995_v52 = vpop.eup %8994  ;;  %v7580_v24 = vadd.f32 1.0, %v8993_v8 }
 0x749   :  { %v8997_v15 = vpop.eup %8996  ;;  %9010 = vrcp.f32 %v7579_v39  ;;  %v7581_v29 = vadd.f32 1.0, %v8995_v52 }
 0x74a   :  { %v8999_v13 = vpop.eup %8998  ;;  %9012 = vrcp.f32 %v7580_v24  ;;  %v7582_v32 = vadd.f32 1.0, %v8997_v15 }
 0x74b   :  { %v9001_v46 = vpop.eup %9000  ;;  %9014 = vrcp.f32 %v7581_v29  ;;  %v7583_v19 = vadd.f32 1.0, %v8999_v13 }
 0x74c   :  { %v9003_v17 = vpop.eup %9002  ;;  %9016 = vrcp.f32 %v7582_v32  ;;  %v7584_v11 = vadd.f32 1.0, %v9001_v46 }
 0x74d   :  { %v9005_v50 = vpop.eup %9004  ;;  %9018 = vrcp.f32 %v7583_v19  ;;  %v7585_v35 = vadd.f32 1.0, %v9003_v17 }
 0x74e   :  { %v9007_v25 = vpop.eup %9006  ;;  %9020 = vrcp.f32 %v7584_v11  ;;  %v7673_v6 = vmul.f32 %v9005_v50, %v17289_v40 }
 0x74f   :  { %v9009_v37 = vpop.eup %9008  ;;  %9022 = vrcp.f32 %v7585_v35  ;;  %v7586_v7 = vadd.f32 1.0, %v9007_v25 }
 0x750   :  { %v7674_v27 = vmul.f32 %v9009_v37, %v17296_v30 }
 0x751   :  { %9024 = vrcp.f32 %v7586_v7 }
 0x752   :  { %v7705_v4 = vpack.c.bf16 %v7674_v27, %v7673_v6 }
 0x753   :  { %v9011_v41 = vpop.eup %9010 }
 0x754   :  { %v9013_v57 = vpop.eup %9012  ;;  %8398 = vmatprep.mubr.bf16.mxu0 %v7705_v4  ;;  %v7675_v20 = vmul.f32 %v9011_v41, %v17316_v51 }
 0x755   :  { %v9015_v31 = vpop.eup %9014  ;;  %v7676_v47 = vmul.f32 %v9013_v57, %v17320_v33 }
 0x756   :  { %v9017_v61 = vpop.eup %9016  ;;  %v7677_v26 = vmul.f32 %v9015_v31, %v17324_v49 }
 0x757   :  { %v9019_v53 = vpop.eup %9018  ;;  %v7706_v5 = vpack.c.bf16 %v7676_v47, %v7675_v20  ;;  %v7678_v3 = vmul.f32 %v9017_v61, %v17328_v36 }
 0x758   :  { %v9021_v40 = vpop.eup %9020  ;;  %v7679_v30 = vmul.f32 %v9019_v53, %v17332_v54 }
 0x759   :  { %v9023_v44 = vpop.eup %9022  ;;  %v7680_v60 = vmul.f32 %v9021_v40, %v17341_v9  ;;  %8399 = vmatmul.mubr.bf16.vlgmr.msra.gmra.mrb[64].mxu0 %v7706_v5  ;;  %v7707_v14 = vpack.c.bf16 %v7678_v3, %v7677_v26 }
 0x75a   :  { %v7681_v33 = vmul.f32 %v9023_v44, %v17346_v62 }
 0x75b   :  { %v9025_v43 = vpop.eup %9024  ;;  %8402 = vmatprep.mubr.bf16.mxu0 %v7707_v14  ;;  %v7708_v51 = vpack.c.bf16 %v7680_v60, %v7679_v30 }
 0x75c   :  { %v7682_v63 = vmul.f32 %v9025_v43, %v17352_v1 }
 0x75e   :  { %v7709_v28 = vpack.c.bf16 %v7682_v63, %v7681_v33 }
 0x761   :  { %8403 = vmatmul.mubr.bf16.gmra.mrb[68].mxu0 %v7708_v51 }
 0x762   :  { %8406 = vmatprep.mubr.bf16.mxu0 %v7709_v28  ;;  %v7394_v49 = vpop.f32.mrb[20].mxu1 }
 0x763   :  { %v7395_v36 = vadd.f32 %v17269_v55, %v7394_v49  ;;  %v7396_v45 = vpop.f32.mrb[21].mxu1 }
 0x764   :  { %v7397_v56 = vpop.f32.mrb[22].mxu1 }
 0x765   :  { %v8327_v54 = vmul.f32 -1.442695, %v7395_v36  ;;  %v7398_v9 = vadd.f32 %v17269_v55, %v7397_v56  ;;  %v7399_v38 = vpop.f32.mrb[23].mxu1 }
 0x767   :  { %9026 = vpow2.f32 %v8327_v54  ;;  %v8328_v48 = vmul.f32 -1.442695, %v7398_v9 }
 0x769   :  { %9028 = vpow2.f32 %v8328_v48 }
 0x771   :  { %v9027_v21 = vpop.eup %9026 }
 0x772   :  { %v7587_v42 = vadd.f32 1.0, %v9027_v21 }
 0x773   :  { %v9029_v62 = vpop.eup %9028 }
 0x774   :  { %9030 = vrcp.f32 %v7587_v42  ;;  %v7588_v1 = vadd.f32 1.0, %v9029_v62 }
 0x776   :  { %9032 = vrcp.f32 %v7588_v1 }
 0x779   :  { %v7402_v59 = vpop.f32.mrb[24].mxu1 }
 0x77a   :  { %v7403_v16 = vadd.f32 %v17269_v55, %v7402_v59  ;;  %v7404_v10 = vpop.f32.mrb[25].mxu1 }
 0x77b   :  { %v7405_v22 = vpop.f32.mrb[26].mxu1 }
 0x77c   :  { %v8329_v12 = vmul.f32 -1.442695, %v7403_v16  ;;  %v7406_v23 = vadd.f32 %v17269_v55, %v7405_v22  ;;  %v7407_v58 = vpop.f32.mrb[27].mxu1 }
 0x77e   :  { %9034 = vpow2.f32 %v8329_v12  ;;  %v8330_v34 = vmul.f32 -1.442695, %v7406_v23  ;;  %v9031_v2 = vpop.eup %9030 }
 0x77f   :  { %v7683_v0 = vmul.f32 %v9031_v2, %v7395_v36 }
 0x780   :  { %9036 = vpow2.f32 %v8330_v34  ;;  %v9033_v18 = vpop.eup %9032 }
 0x781   :  { %v7684_v8 = vmul.f32 %v9033_v18, %v7398_v9 }
 0x783   :  { %v7710_v39 = vpack.c.bf16 %v7684_v8, %v7683_v0 }
 0x785   :  { %8407 = vmatmul.mubr.bf16.gmra.mrb[72].mxu0 %v7710_v39 }
 0x788   :  { %v9035_v52 = vpop.eup %9034 }
 0x789   :  { %v7589_v24 = vadd.f32 1.0, %v9035_v52 }
 0x78a   :  { %v9037_v15 = vpop.eup %9036 }
 0x78b   :  { %9038 = vrcp.f32 %v7589_v24  ;;  %v7590_v29 = vadd.f32 1.0, %v9037_v15 }
 0x78d   :  { %v7410_v13 = vpop.f32.mrb[28].mxu1  ;;  %9040 = vrcp.f32 %v7590_v29 }
 0x78e   :  { %v7411_v32 = vadd.f32 %v17269_v55, %v7410_v13  ;;  %v7412_v46 = vpop.f32.mrb[29].mxu1 }
 0x78f   :  { %v7413_v19 = vpop.f32.mrb[30].mxu1 }
 0x790   :  { %v8331_v17 = vmul.f32 -1.442695, %v7411_v32  ;;  %v7414_v11 = vadd.f32 %v17269_v55, %v7413_v19  ;;  %v7415_v50 = vpop.f32.mrb[31].mxu1 }
 0x792   :  { %9042 = vpow2.f32 %v8331_v17  ;;  %v8332_v35 = vmul.f32 -1.442695, %v7414_v11 }
 0x794   :  { %9044 = vpow2.f32 %v8332_v35 }
 0x795   :  { %v9039_v25 = vpop.eup %9038 }
 0x796   :  { %v7685_v7 = vmul.f32 %v9039_v25, %v7403_v16 }
 0x797   :  { %v9041_v37 = vpop.eup %9040 }
 0x798   :  { %v7686_v6 = vmul.f32 %v9041_v37, %v7406_v23 }
 0x79a   :  { %v7711_v27 = vpack.c.bf16 %v7686_v6, %v7685_v7 }
 0x79c   :  { %v9043_v4 = vpop.eup %9042  ;;  %8410 = vmatprep.mubr.bf16.mxu0 %v7711_v27 }
 0x79d   :  { %v7591_v41 = vadd.f32 1.0, %v9043_v4 }
 0x79e   :  { %v9045_v31 = vpop.eup %9044 }
 0x79f   :  { %v7418_v57 = vpop.f32.mrb[32].mxu1  ;;  %9046 = vrcp.f32 %v7591_v41  ;;  %v7592_v61 = vadd.f32 1.0, %v9045_v31 }
 0x7a0   :  { %v7419_v20 = vadd.f32 %v17269_v55, %v7418_v57  ;;  %v7420_v47 = vpop.f32.mrb[33].mxu1 }
 0x7a1   :  { %v7421_v53 = vpop.f32.mrb[34].mxu1  ;;  %9048 = vrcp.f32 %v7592_v61 }
 0x7a2   :  { %v8333_v5 = vmul.f32 -1.442695, %v7419_v20  ;;  %v7422_v26 = vadd.f32 %v17269_v55, %v7421_v53  ;;  %v7423_v3 = vpop.f32.mrb[35].mxu1 }
 0x7a4   :  { %9050 = vpow2.f32 %v8333_v5  ;;  %v8334_v40 = vmul.f32 -1.442695, %v7422_v26 }
 0x7a6   :  { %9052 = vpow2.f32 %v8334_v40 }
 0x7a9   :  { %v9047_v44 = vpop.eup %9046 }
 0x7aa   :  { %v7687_v14 = vmul.f32 %v9047_v44, %v7411_v32 }
 0x7ab   :  { %v9049_v30 = vpop.eup %9048 }
 0x7ac   :  { %v7688_v43 = vmul.f32 %v9049_v30, %v7414_v11 }
 0x7ae   :  { %v9051_v60 = vpop.eup %9050  ;;  %v7712_v45 = vpack.c.bf16 %v7688_v43, %v7687_v14 }
 0x7af   :  { %v7593_v33 = vadd.f32 1.0, %v9051_v60 }
 0x7b0   :  { %v7426_v51 = vpop.f32.mrb[36].mxu1  ;;  %v9053_v49 = vpop.eup %9052  ;;  %8411 = vmatmul.mubr.bf16.gmra.mrb[76].mxu0 %v7712_v45 }
 0x7b1   :  { %v7427_v63 = vadd.f32 %v17269_v55, %v7426_v51  ;;  %v7428_v28 = vpop.f32.mrb[37].mxu1  ;;  %9054 = vrcp.f32 %v7593_v33  ;;  %v7594_v56 = vadd.f32 1.0, %v9053_v49 }
 0x7b2   :  { %v7429_v36 = vpop.f32.mrb[38].mxu1 }
 0x7b3   :  { %v8335_v54 = vmul.f32 -1.442695, %v7427_v63  ;;  %v7430_v9 = vadd.f32 %v17269_v55, %v7429_v36  ;;  %v7431_v38 = vpop.f32.mrb[39].mxu1  ;;  %9056 = vrcp.f32 %v7594_v56 }
 0x7b5   :  { %v8336_v48 = vmul.f32 -1.442695, %v7430_v9  ;;  %9058 = vpow2.f32 %v8335_v54 }
 0x7b7   :  { %9060 = vpow2.f32 %v8336_v48 }
 0x7bb   :  { %v9055_v21 = vpop.eup %9054 }
 0x7bc   :  { %v7689_v1 = vmul.f32 %v9055_v21, %v7419_v20 }
 0x7bd   :  { %v9057_v42 = vpop.eup %9056 }
 0x7be   :  { %v7690_v59 = vmul.f32 %v9057_v42, %v7422_v26 }
 0x7bf   :  { %v9059_v62 = vpop.eup %9058 }
 0x7c0   :  { %v7595_v10 = vadd.f32 1.0, %v9059_v62  ;;  %v7713_v23 = vpack.c.bf16 %v7690_v59, %v7689_v1 }
 0x7c1   :  { %v9061_v16 = vpop.eup %9060 }
 0x7c2   :  { %v7596_v22 = vadd.f32 1.0, %v9061_v16  ;;  %9062 = vrcp.f32 %v7595_v10  ;;  %8414 = vmatprep.mubr.bf16.mxu0 %v7713_v23 }
 0x7c3   :  { %v7434_v12 = vpop.f32.mrb[40].mxu1 }
 0x7c4   :  { %v7435_v58 = vadd.f32 %v17269_v55, %v7434_v12  ;;  %v7436_v34 = vpop.f32.mrb[41].mxu1  ;;  %9064 = vrcp.f32 %v7596_v22 }
 0x7c5   :  { %v7437_v2 = vpop.f32.mrb[42].mxu1 }
 0x7c6   :  { %v8337_v18 = vmul.f32 -1.442695, %v7435_v58  ;;  %v7438_v0 = vadd.f32 %v17269_v55, %v7437_v2  ;;  %v7439_v8 = vpop.f32.mrb[43].mxu1 }
 0x7c8   :  { %9066 = vpow2.f32 %v8337_v18  ;;  %v8338_v39 = vmul.f32 -1.442695, %v7438_v0 }
 0x7ca   :  { %9068 = vpow2.f32 %v8338_v39 }
 0x7cc   :  { %v9063_v52 = vpop.eup %9062 }
 0x7cd   :  { %v7691_v15 = vmul.f32 %v9063_v52, %v7427_v63 }
 0x7ce   :  { %v9065_v24 = vpop.eup %9064 }
 0x7cf   :  { %v7692_v29 = vmul.f32 %v9065_v24, %v7430_v9 }
 0x7d1   :  { %v7714_v17 = vpack.c.bf16 %v7692_v29, %v7691_v15 }
 0x7d2   :  { %v9067_v32 = vpop.eup %9066 }
 0x7d3   :  { %v7442_v13 = vpop.f32.mrb[44].mxu1  ;;  %v7597_v11 = vadd.f32 1.0, %v9067_v32  ;;  %8415 = vmatmul.mubr.bf16.gmra.mrb[80].mxu0 %v7714_v17 }
 0x7d4   :  { %v7443_v46 = vadd.f32 %v17269_v55, %v7442_v13  ;;  %v7444_v19 = vpop.f32.mrb[45].mxu1  ;;  %v9069_v35 = vpop.eup %9068 }
 0x7d5   :  { %v7445_v50 = vpop.f32.mrb[46].mxu1  ;;  %9070 = vrcp.f32 %v7597_v11  ;;  %v7598_v6 = vadd.f32 1.0, %v9069_v35 }
 0x7d6   :  { %v8339_v25 = vmul.f32 -1.442695, %v7443_v46  ;;  %v7446_v37 = vadd.f32 %v17269_v55, %v7445_v50  ;;  %v7447_v7 = vpop.f32.mrb[47].mxu1 }
 0x7d8   :  { %9072 = vpow2.f32 %v8339_v25  ;;  %v8340_v27 = vmul.f32 -1.442695, %v7446_v37 }
 0x7d9   :  { %9074 = vrcp.f32 %v7598_v6 }
 0x7da   :  { %9076 = vpow2.f32 %v8340_v27 }
 0x7df   :  { %v9071_v4 = vpop.eup %9070 }
 0x7e0   :  { %v7693_v47 = vmul.f32 %v9071_v4, %v7435_v58 }
 0x7e2   :  { %v9073_v41 = vpop.eup %9072 }
 0x7e3   :  { %v9075_v57 = vpop.eup %9074  ;;  %v7599_v31 = vadd.f32 1.0, %v9073_v41 }
 0x7e4   :  { %v9077_v20 = vpop.eup %9076  ;;  %v7694_v61 = vmul.f32 %v9075_v57, %v7438_v0 }
 0x7e5   :  { %9078 = vrcp.f32 %v7599_v31  ;;  %v7600_v53 = vadd.f32 1.0, %v9077_v20 }
 0x7e6   :  { %v7715_v40 = vpack.c.bf16 %v7694_v61, %v7693_v47 }
 0x7e7   :  { %9080 = vrcp.f32 %v7600_v53 }
 0x7e8   :  { %v7450_v5 = vpop.f32.mrb[48].mxu1  ;;  %8418 = vmatprep.mubr.bf16.mxu0 %v7715_v40 }
 0x7e9   :  { %v7451_v26 = vadd.f32 %v17269_v55, %v7450_v5  ;;  %v7452_v3 = vpop.f32.mrb[49].mxu1 }
 0x7ea   :  { %v7453_v44 = vpop.f32.mrb[50].mxu1 }
 0x7eb   :  { %v8341_v30 = vmul.f32 -1.442695, %v7451_v26  ;;  %v7454_v60 = vadd.f32 %v17269_v55, %v7453_v44  ;;  %v7455_v14 = vpop.f32.mrb[51].mxu1 }
 0x7ed   :  { %9082 = vpow2.f32 %v8341_v30  ;;  %v8342_v43 = vmul.f32 -1.442695, %v7454_v60 }
 0x7ef   :  { %9084 = vpow2.f32 %v8342_v43  ;;  %v9079_v51 = vpop.eup %9078 }
 0x7f0   :  { %v7695_v63 = vmul.f32 %v9079_v51, %v7443_v46 }
 0x7f1   :  { %v9081_v33 = vpop.eup %9080 }
 0x7f2   :  { %v7696_v28 = vmul.f32 %v9081_v33, %v7446_v37 }
 0x7f4   :  { %v7716_v54 = vpack.c.bf16 %v7696_v28, %v7695_v63 }
 0x7f6   :  { %8419 = vmatmul.mubr.bf16.gmra.mrb[84].mxu0 %v7716_v54 }
 0x7f7   :  { %v9083_v36 = vpop.eup %9082 }
 0x7f8   :  { %v7458_v49 = vpop.f32.mrb[52].mxu1  ;;  %v7601_v9 = vadd.f32 1.0, %v9083_v36 }
 0x7f9   :  { %v7459_v45 = vadd.f32 %v17269_v55, %v7458_v49  ;;  %v7460_v56 = vpop.f32.mrb[53].mxu1  ;;  %v9085_v48 = vpop.eup %9084 }
 0x7fa   :  { %v7461_v38 = vpop.f32.mrb[54].mxu1  ;;  %9086 = vrcp.f32 %v7601_v9  ;;  %v7602_v1 = vadd.f32 1.0, %v9085_v48 }
 0x7fb   :  { %v8343_v21 = vmul.f32 -1.442695, %v7459_v45  ;;  %v7462_v42 = vadd.f32 %v17269_v55, %v7461_v38  ;;  %v7463_v62 = vpop.f32.mrb[55].mxu1 }
 0x7fd   :  { %9088 = vpow2.f32 %v8343_v21  ;;  %v8344_v59 = vmul.f32 -1.442695, %v7462_v42 }
 0x7fe   :  { %9090 = vrcp.f32 %v7602_v1 }
 0x7ff   :  { %9092 = vpow2.f32 %v8344_v59 }
 0x804   :  { %v9087_v16 = vpop.eup %9086 }
 0x805   :  { %v7697_v58 = vmul.f32 %v9087_v16, %v7451_v26  ;;  %v17400_v26 = vld [vmem:[%s17452_s6] ss:$0 sm:$0xff]  ;;  %s9146_s6 = smov [#allocation2]  }
 0x806   :  { %s7990_s29 = sshll.u32 %s9146_s6, 4  ;;  %s7991_s29 = int_to_ptr.vmem [resolvable:$true] %s7990_s29 }
 0x807   :  { %v9089_v10 = vpop.eup %9088  ;;  %s9114_s30 = scalar_lea.vmem %s7991_s29, 4096  ;;  %p9119_p1 = scmp.lt.s32.totalorder %s7991_s29, %s7991_s29 }
 0x808   :  { %v9091_v22 = vpop.eup %9090  ;;  %v7603_v12 = vadd.f32 1.0, %v9089_v10  ;;  %p9115_p0 = scmp.ne.s32.totalorder %s7991_s29, %s9114_s30  ;;  %p9120_p2 = scmp.lt.s32.totalorder %s9114_s30, %s9114_s30 }
 0x809   :  { %v9093_v23 = vpop.eup %9092  ;;  %v7698_v34 = vmul.f32 %v9091_v22, %v7454_v60 }
 0x80a   :  { %9094 = vrcp.f32 %v7603_v12  ;;  %v7604_v2 = vadd.f32 1.0, %v9093_v23  ;;  %p9121_p3 = por %p9120_p2, %p9119_p1 }
 0x80b   :  { %v7717_v39 = vpack.c.bf16 %v7698_v34, %v7697_v58 }
 0x80c   :  { %v7466_v18 = vpop.f32.mrb[56].mxu1  ;;  %9096 = vrcp.f32 %v7604_v2  ;;  %p9122_p4 = pnand %p9121_p3, %p9115_p0 }
 0x80d   :  { %v7467_v0 = vadd.f32 %v17269_v55, %v7466_v18  ;;  %v7468_v8 = vpop.f32.mrb[57].mxu1  ;;  %8422 = vmatprep.mubr.bf16.mxu0 %v7717_v39 }
 0x80e   :  { %v7469_v52 = vpop.f32.mrb[58].mxu1 }
 0x80f   :  { %v8345_v24 = vmul.f32 -1.442695, %v7467_v0  ;;  %v7470_v15 = vadd.f32 %v17269_v55, %v7469_v52  ;;  %v7471_v29 = vpop.f32.mrb[59].mxu1 }
 0x811   :  { %9098 = vpow2.f32 %v8345_v24  ;;  %v8346_v13 = vmul.f32 -1.442695, %v7470_v15 }
 0x813   :  { %9100 = vpow2.f32 %v8346_v13 }
 0x814   :  { %v9095_v32 = vpop.eup %9094 }
 0x815   :  { %v7699_v19 = vmul.f32 %v9095_v32, %v7459_v45 }
 0x816   :  { %v9097_v46 = vpop.eup %9096 }
 0x817   :  { %v7700_v17 = vmul.f32 %v9097_v46, %v7462_v42 }
 0x819   :  { %v7718_v37 = vpack.c.bf16 %v7700_v17, %v7699_v19 }
 0x81b   :  { %v7474_v11 = vpop.f32.mrb[60].mxu1  ;;  %v9099_v50 = vpop.eup %9098  ;;  %8423 = vmatmul.mubr.bf16.gmra.mrb[88].mxu0 %v7718_v37 }
 0x81c   :  { %v7475_v35 = vadd.f32 %v17269_v55, %v7474_v11  ;;  %v7476_v25 = vpop.f32.mrb[61].mxu1  ;;  %v7605_v7 = vadd.f32 1.0, %v9099_v50 }
 0x81d   :  { %v7477_v6 = vpop.f32.mrb[62].mxu1  ;;  %v9101_v27 = vpop.eup %9100 }
 0x81e   :  { %v8347_v4 = vmul.f32 -1.442695, %v7475_v35  ;;  %v7478_v41 = vadd.f32 %v17269_v55, %v7477_v6  ;;  %v7479_v57 = vpop.f32.mrb[63].mxu1  ;;  %9102 = vrcp.f32 %v7605_v7  ;;  %v7606_v31 = vadd.f32 1.0, %v9101_v27 }
 0x820   :  { %9104 = vpow2.f32 %v8347_v4  ;;  %v8348_v20 = vmul.f32 -1.442695, %v7478_v41 }
 0x821   :  { %9106 = vrcp.f32 %v7606_v31 }
 0x822   :  { %9108 = vpow2.f32 %v8348_v20 }
 0x828   :  { %v9103_v47 = vpop.eup %9102 }
 0x829   :  { %v7701_v40 = vmul.f32 %v9103_v47, %v7467_v0 }
 0x82a   :  { %v9105_v61 = vpop.eup %9104 }
 0x82b   :  { %v9107_v53 = vpop.eup %9106  ;;  %v7607_v5 = vadd.f32 1.0, %v9105_v61 }
 0x82c   :  { %v9109_v3 = vpop.eup %9108  ;;  %v7702_v55 = vmul.f32 %v9107_v53, %v7470_v15  ;;  %v8400_v30 = vpop.f32.mrb[64].mxu0 }
 0x82d   :  { %9110 = vrcp.f32 %v7607_v5  ;;  %v7608_v44 = vadd.f32 1.0, %v9109_v3  ;;  %v7835_v14 = vadd.f32 %v8400_v30, %v17400_v26  ;;  %v7826_v43 = vpop.f32.mrb[65].mxu0 }
 0x82e   :  { %v7719_v60 = vpack.c.bf16 %v7702_v55, %v7701_v40  ;;  %v7827_v51 = vadd.f32 %v17400_v26, %v7826_v43  ;;  %v8401_v33 = vpop.f32.mrb[66].mxu0 }
 0x82f   :  { %9112 = vrcp.f32 %v7608_v44  ;;  %7955 = vst [vmem:[#allocation2 + $0x10] sm:$0xff] %v7835_v14  ;;  %v7838_v63 = vadd.f32 %v8401_v33, %v17400_v26  ;;  %v7829_v28 = vpop.f32.mrb[67].mxu0 }
 0x830   :  { %8426 = vmatprep.mubr.bf16.mxu1 %v7719_v60  ;;  %7953 = vst [vmem:[#allocation2] sm:$0xff] %v7827_v51  ;;  %v7830_v49 = vadd.f32 %v17400_v26, %v7829_v28 }
 0x831   :  { %7956 = vst [vmem:[#allocation2 + $0x18] sm:$0xff] %v7838_v63 }
 0x832   :  { %7954 = vst [vmem:[#allocation2 + $0x8] sm:$0xff] %v7830_v49 }
 0x834   :  { %v8404_v36 = vpop.f32.mrb[68].mxu0 }
 0x835   :  { %v7851_v45 = vadd.f32 %v8404_v36, %v17400_v26  ;;  %v7842_v56 = vpop.f32.mrb[69].mxu0 }
 0x836   :  { %v7843_v9 = vadd.f32 %v17400_v26, %v7842_v56  ;;  %v8405_v38 = vpop.f32.mrb[70].mxu0 }
 0x837   :  { %v9111_v54 = vpop.eup %9110  ;;  %7959 = vst [vmem:[#allocation2 + $0x30] sm:$0xff] %v7851_v45  ;;  %v7854_v48 = vadd.f32 %v8405_v38, %v17400_v26  ;;  %v7845_v21 = vpop.f32.mrb[71].mxu0 }
 0x838   :  { %7957 = vst [vmem:[#allocation2 + $0x20] sm:$0xff] %v7843_v9  ;;  %v7846_v62 = vadd.f32 %v17400_v26, %v7845_v21  ;;  %v7703_v1 = vmul.f32 %v9111_v54, %v7475_v35 }
 0x839   :  { %v9113_v42 = vpop.eup %9112  ;;  %7960 = vst [vmem:[#allocation2 + $0x38] sm:$0xff] %v7854_v48 }
 0x83a   :  { %v7704_v59 = vmul.f32 %v9113_v42, %v7478_v41  ;;  %7958 = vst [vmem:[#allocation2 + $0x28] sm:$0xff] %v7846_v62 }
 0x83c   :  { %v7720_v16 = vpack.c.bf16 %v7704_v59, %v7703_v1 }
 0x83e   :  { %8427 = vmatmul.mubr.bf16.vlgmr.msra.gmra.mrb[64].mxu1 %v7720_v16 }
 0x858   :  { %v8408_v10 = vpop.f32.mrb[72].mxu0 }
 0x859   :  { %v7867_v22 = vadd.f32 %v8408_v10, %v17400_v26  ;;  %v7858_v12 = vpop.f32.mrb[73].mxu0 }
 0x85a   :  { %v7859_v23 = vadd.f32 %v17400_v26, %v7858_v12  ;;  %v8409_v58 = vpop.f32.mrb[74].mxu0 }
 0x85b   :  { %7963 = vst [vmem:[#allocation2 + $0x50] sm:$0xff] %v7867_v22  ;;  %v7870_v34 = vadd.f32 %v8409_v58, %v17400_v26  ;;  %v7861_v2 = vpop.f32.mrb[75].mxu0 }
 0x85c   :  { %7961 = vst [vmem:[#allocation2 + $0x40] sm:$0xff] %v7859_v23  ;;  %v7862_v18 = vadd.f32 %v17400_v26, %v7861_v2 }
 0x85d   :  { %7964 = vst [vmem:[#allocation2 + $0x58] sm:$0xff] %v7870_v34 }
 0x85e   :  { %7962 = vst [vmem:[#allocation2 + $0x48] sm:$0xff] %v7862_v18 }
 0x883   :  { %v8412_v0 = vpop.f32.mrb[76].mxu0 }
 0x884   :  { %v7883_v8 = vadd.f32 %v8412_v0, %v17400_v26  ;;  %v7874_v39 = vpop.f32.mrb[77].mxu0 }
 0x885   :  { %v7875_v52 = vadd.f32 %v17400_v26, %v7874_v39  ;;  %v8413_v24 = vpop.f32.mrb[78].mxu0 }
 0x886   :  { %7967 = vst [vmem:[#allocation2 + $0x70] sm:$0xff] %v7883_v8  ;;  %v7886_v15 = vadd.f32 %v8413_v24, %v17400_v26  ;;  %v7877_v29 = vpop.f32.mrb[79].mxu0 }
 0x887   :  { %7965 = vst [vmem:[#allocation2 + $0x60] sm:$0xff] %v7875_v52  ;;  %v7878_v13 = vadd.f32 %v17400_v26, %v7877_v29 }
 0x888   :  { %7968 = vst [vmem:[#allocation2 + $0x78] sm:$0xff] %v7886_v15 }
 0x889   :  { %7966 = vst [vmem:[#allocation2 + $0x68] sm:$0xff] %v7878_v13 }
 0x8a6   :  { %v8416_v32 = vpop.f32.mrb[80].mxu0 }
 0x8a7   :  { %v7899_v46 = vadd.f32 %v8416_v32, %v17400_v26  ;;  %v7890_v19 = vpop.f32.mrb[81].mxu0 }
 0x8a8   :  { %v7891_v17 = vadd.f32 %v17400_v26, %v7890_v19  ;;  %v8417_v11 = vpop.f32.mrb[82].mxu0 }
 0x8a9   :  { %7971 = vst [vmem:[#allocation2 + $0x90] sm:$0xff] %v7899_v46  ;;  %v7902_v50 = vadd.f32 %v8417_v11, %v17400_v26  ;;  %v7893_v35 = vpop.f32.mrb[83].mxu0 }
 0x8aa   :  { %7969 = vst [vmem:[#allocation2 + $0x80] sm:$0xff] %v7891_v17  ;;  %v7894_v25 = vadd.f32 %v17400_v26, %v7893_v35 }
 0x8ab   :  { %7972 = vst [vmem:[#allocation2 + $0x98] sm:$0xff] %v7902_v50 }
 0x8ac   :  { %7970 = vst [vmem:[#allocation2 + $0x88] sm:$0xff] %v7894_v25 }
 0x8c9   :  { %v8420_v37 = vpop.f32.mrb[84].mxu0 }
 0x8ca   :  { %v7915_v7 = vadd.f32 %v8420_v37, %v17400_v26  ;;  %v7906_v6 = vpop.f32.mrb[85].mxu0 }
 0x8cb   :  { %v7907_v27 = vadd.f32 %v17400_v26, %v7906_v6  ;;  %v8421_v4 = vpop.f32.mrb[86].mxu0 }
 0x8cc   :  { %7975 = vst [vmem:[#allocation2 + $0xb0] sm:$0xff] %v7915_v7  ;;  %v7918_v41 = vadd.f32 %v8421_v4, %v17400_v26  ;;  %v7909_v57 = vpop.f32.mrb[87].mxu0 }
 0x8cd   :  { %7973 = vst [vmem:[#allocation2 + $0xa0] sm:$0xff] %v7907_v27  ;;  %v7910_v31 = vadd.f32 %v17400_v26, %v7909_v57 }
 0x8ce   :  { %7976 = vst [vmem:[#allocation2 + $0xb8] sm:$0xff] %v7918_v41 }
 0x8cf   :  { %7974 = vst [vmem:[#allocation2 + $0xa8] sm:$0xff] %v7910_v31 }
 0x8ee   :  { %v8424_v20 = vpop.f32.mrb[88].mxu0 }
 0x8ef   :  { %v7931_v47 = vadd.f32 %v8424_v20, %v17400_v26  ;;  %v7922_v61 = vpop.f32.mrb[89].mxu0 }
 0x8f0   :  { %v7923_v53 = vadd.f32 %v17400_v26, %v7922_v61  ;;  %v8425_v5 = vpop.f32.mrb[90].mxu0 }
 0x8f1   :  { %7979 = vst [vmem:[#allocation2 + $0xd0] sm:$0xff] %v7931_v47  ;;  %v7934_v3 = vadd.f32 %v8425_v5, %v17400_v26  ;;  %v7925_v40 = vpop.f32.mrb[91].mxu0 }
 0x8f2   :  { %7977 = vst [vmem:[#allocation2 + $0xc0] sm:$0xff] %v7923_v53  ;;  %v7926_v55 = vadd.f32 %v17400_v26, %v7925_v40 }
 0x8f3   :  { %7980 = vst [vmem:[#allocation2 + $0xd8] sm:$0xff] %v7934_v3 }
 0x8f4   :  { %7978 = vst [vmem:[#allocation2 + $0xc8] sm:$0xff] %v7926_v55 }
 0x911   :  { %v8428_v44 = vpop.f32.mrb[64].mxu1 }
 0x912   :  { %v7947_v30 = vadd.f32 %v8428_v44, %v17400_v26  ;;  %v7938_v60 = vpop.f32.mrb[65].mxu1 }
 0x913   :  { %v7939_v14 = vadd.f32 %v17400_v26, %v7938_v60  ;;  %v8429_v43 = vpop.f32.mrb[66].mxu1 }
 0x914   :  { %7983 = vst [vmem:[#allocation2 + $0xf0] sm:$0xff] %v7947_v30  ;;  %v7950_v51 = vadd.f32 %v8429_v43, %v17400_v26  ;;  %v7941_v33 = vpop.f32.mrb[67].mxu1 }
 0x915   :  { %7981 = vst [vmem:[#allocation2 + $0xe0] sm:$0xff] %v7939_v14  ;;  %v7942_v63 = vadd.f32 %v17400_v26, %v7941_v33 }
 0x916   :  { %7984 = vst [vmem:[#allocation2 + $0xf8] sm:$0xff] %v7950_v51 }
 0x917   :  { %7982 = vst [vmem:[#allocation2 + $0xe8] sm:$0xff] %v7942_v63 }
 0x918   :  { %9125 = shalt.err (!%p9122_p4)
}
 0x919   :  { %s9126_s9 = scalar_lea.hbm %s17453_s7, 4096 }
 0x91a   :  { %p9127_p5 = scmp.ne.s32.totalorder %s17453_s7, %s9126_s9  ;;  %p9130_p6 = scmp.lt.u32.totalorder %s9126_s9, %s17453_s7 }
 0x91c   :  { %p9132_p7 = pnand %p9130_p6, %p9127_p5 }
 0x91e   :  { %9135 = shalt.err (!%p9132_p7)
}
 0x91f   :  { %s9147_s3 = smov 128   ;;  %s9148_s14 = smov 8  }
 0x920   :  { %7996 = dma.vmem_to_hbm [thread:$0]  %s7991_s29, 4096, %s17453_s7, [#allocation3], %s9147_s3, %s9147_s3, %s9148_s14  }
 0x921   :  { %9136 = dma.done.wait [#allocation3], 4096  }
 0x922   :  { %9137 = vsyncadd [#allocation3], 4294963200 }
 0x923   :  { %8000 = vsyncpa [#allocation3], 1 }

</bundles_post_ra>
